<compile_context>
chip_gen: v7x
topology: tpu7x:2x2x1
jax: 0.10.0
libtpu: 0.0.40
codegen_flags: <defaults>
</compile_context>

<pallas_src>
import functools

import numpy as np
import jax
import jax.numpy as jnp
from jax.experimental import pallas as pl
from jax.experimental.pallas import tpu as pltpu


def _round_up(x, m):
    return (x + m - 1) // m * m


# ----------------------------------------------------------------------------
# Pallas kernel: fused (x @ w_dup) -> cos / sin, written at full `dim` width
# ----------------------------------------------------------------------------
def _pos_enc_kernel(x_ref, w_ref, o_ref, *, use_mxu):
    x = x_ref[...]                     # (tm, M)    f32
    w = w_ref[...]                     # (M, dim)   f32, columns pre-duplicated
    if use_mxu:
        proj = jnp.dot(x, w, preferred_element_type=jnp.float32,
                       precision=jax.lax.Precision.HIGHEST)
    else:
        # M is tiny (2-3 coords): unrolled broadcast-FMAs on the VPU; exact f32
        # and avoids a nearly-empty K=2 MXU pass + result-FIFO pop.
        m_dim = x.shape[-1]
        proj = x[:, 0:1] * w[0:1, :]
        for j in range(1, m_dim):
            proj = proj + x[:, j:j + 1] * w[j:j + 1, :]
    o_ref[0] = jnp.cos(proj)           # EUP transcendentals
    o_ref[1] = jnp.sin(proj)


def _pick_row_tile(rp, block_rows, dim, m_dim):
    """Largest row tile: multiple of 8, divides rp, <= block_rows, under a VMEM
    budget, and leaving >= 2 grid blocks when possible (v7x megacore)."""
    cap = min(block_rows, rp)
    if rp >= 16:                                   # keep >= 2 grid blocks
        cap = min(cap, max(8, (rp // 2) // 8 * 8))
    # Double-buffered (2, tm, dim) output dominates VMEM; stay under the default
    # scoped limit on every generation (v5e 16 MiB default, v7x 64 MiB physical).
    vmem_budget = 12 * 1024 * 1024
    bytes_per_row = 2 * (2 * dim * 4 + m_dim * 4)  # 2x for double buffering
    cap = min(cap, max(8, (vmem_budget // bytes_per_row) // 8 * 8))
    t = max(8, cap // 8 * 8)
    while t >= 8:
        if rp % t == 0:
            return t
        t -= 8
    return 8


# ----------------------------------------------------------------------------
# Wrapper
# ----------------------------------------------------------------------------
def learnable_positional_encoding(x, wr, *, block_rows=1024, interpret=False):
    """Pallas port of LearnablePositionalEncoding.forward.

    Args:
      x:  (..., M) float positions (e.g. (B, N, 2) keypoints).
      wr: (dim//2, M) weight in torch nn.Linear layout (no bias).

    Returns:
      (2, *x.shape[:-2], 1, x.shape[-2], dim) float32, matching
      torch.stack([cos, sin], 0).unsqueeze(-3).repeat_interleave(2, dim=-1).
    """
    x = x.astype(jnp.float32)
    dh, m_dim_w = wr.shape
    *lead, m_dim = x.shape
    assert m_dim == m_dim_w, (m_dim, m_dim_w)
    dim = 2 * dh

    # Fold repeat_interleave(2, -1) into the projection: duplicate weight
    # columns (exact — columns 2j and 2j+1 of w_dup are bitwise identical).
    w_dup = jnp.repeat(wr.astype(jnp.float32).T, 2, axis=1)   # (M, dim), tiny

    r = int(np.prod(lead)) if lead else 1
    x2 = x.reshape(r, m_dim)

    rp = _round_up(r, 8)
    padded = rp != r
    if padded:
        # Fallback only (r not a multiple of 8); costs one extra output pass.
        x2 = jnp.pad(x2, ((0, rp - r), (0, 0)))

    tm = _pick_row_tile(rp, block_rows, dim, m_dim)
    kern = functools.partial(_pos_enc_kernel, use_mxu=m_dim >= 16)

    out = pl.pallas_call(
        kern,
        out_shape=jax.ShapeDtypeStruct((2, rp, dim), jnp.float32),
        grid=(rp // tm,),
        in_specs=[
            pl.BlockSpec((tm, m_dim), lambda i: (i, 0)),   # row tile of positions
            pl.BlockSpec((m_dim, dim), lambda i: (0, 0)),  # full (tiny) weight
        ],
        out_specs=pl.BlockSpec((2, tm, dim), lambda i: (0, i, 0)),
        compiler_params=pltpu.CompilerParams(
            dimension_semantics=("parallel",)),
        interpret=interpret,
    )(x2, w_dup)

    if padded:
        out = out[:, :r]
    emb = out.reshape((2, *lead, dim))         # (2, B, N, dim) — metadata-only
    return jnp.expand_dims(emb, axis=-3)       # unsqueeze(-3): (2, B, 1, N, dim)


# ----------------------------------------------------------------------------
# Pure-JAX reference (mirrors the torch module exactly)
# ----------------------------------------------------------------------------
def reference_positional_encoding(x, wr):
    proj = jnp.einsum("...m,dm->...d", x.astype(jnp.float32),
                      wr.astype(jnp.float32),
                      precision=jax.lax.Precision.HIGHEST)
    emb = jnp.stack([jnp.cos(proj), jnp.sin(proj)], axis=0)
    emb = jnp.expand_dims(emb, axis=-3)
    return jnp.repeat(emb, 2, axis=-1)


if __name__ == "__main__":
    key = jax.random.PRNGKey(0)
    k_x, k_w, k_x2, k_w2 = jax.random.split(key, 4)

    # Primary shapes consistent with the module's use on keypoints:
    #   M = 2 (x, y coordinates), dim = 256 -> kernel writes 256-wide lanes.
    batch, n_kpts, m_pos, dim = 2, 200, 2, 256
    gamma = 1.0

    kpts = jax.random.uniform(k_x, (batch, n_kpts, m_pos), jnp.float32,
                              minval=-1.0, maxval=1.0)
    # nn.init.normal_(Wr.weight, mean=0, std=gamma**-2); weight is (dim//2, M).
    wr = jax.random.normal(k_w, (dim // 2, m_pos), jnp.float32) * (gamma ** -2)

    fwd = jax.jit(learnable_positional_encoding)
    enc = jax.block_until_ready(fwd(kpts, wr))
    assert enc.shape == (2, batch, 1, n_kpts, dim), enc.shape

    ref = jax.block_until_ready(reference_positional_encoding(kpts, wr))
    np.testing.assert_allclose(np.asarray(enc), np.asarray(ref),
                               rtol=1e-5, atol=1e-5)

    # Ragged row count (r not a multiple of 8) exercises the pad/slice fallback.
    n2, m2, dim2 = 13, 3, 128
    x_small = jax.random.uniform(k_x2, (1, n2, m2), jnp.float32,
                                 minval=-1.0, maxval=1.0)
    wr_small = jax.random.normal(k_w2, (dim2 // 2, m2), jnp.float32)
    enc2 = jax.block_until_ready(
        jax.jit(learnable_positional_encoding)(x_small, wr_small))
    ref2 = jax.block_until_ready(
        reference_positional_encoding(x_small, wr_small))
    assert enc2.shape == (2, 1, 1, n2, dim2), enc2.shape
    np.testing.assert_allclose(np.asarray(enc2), np.asarray(ref2),
                               rtol=1e-5, atol=1e-5)

    print("KERNEL_OK")
</pallas_src>

<mosaic_0001>
module attributes {stable_mosaic.version = 11 : i64} {
  func.func @_pos_enc_kernel(%arg0: i32, %arg1: memref<200x2xf32, #tpu.memory_space<vmem>>, %arg2: memref<2x256xf32, #tpu.memory_space<vmem>>, %arg3: memref<2x200x256xf32, #tpu.memory_space<vmem>>) attributes {dimension_semantics = [#tpu.dimension_semantics<parallel>], iteration_bounds = array<i64: 2>, scalar_prefetch = 0 : i64, scratch_operands = 0 : i64, tpu.core_type = #tpu.core_type<tc>, window_params = [{transform_indices = @transform_0, window_bounds = array<i64: 200, 2>}, {pipeline_mode = #tpu.pipeline_mode<synchronous>, transform_indices = @transform_1, window_bounds = array<i64: 2, 256>}, {transform_indices = @transform_2, window_bounds = array<i64: 2, 200, 256>}]} {
    %c0 = arith.constant 0 : index
    %c0_0 = arith.constant 0 : index
    %0 = vector.load %arg1[%c0, %c0_0] : memref<200x2xf32, #tpu.memory_space<vmem>>, vector<200x2xf32>
    %c0_1 = arith.constant 0 : index
    %c0_2 = arith.constant 0 : index
    %1 = vector.load %arg2[%c0_1, %c0_2] : memref<2x256xf32, #tpu.memory_space<vmem>>, vector<2x256xf32>
    %2 = vector.extract_strided_slice %0 {offsets = [0, 0], sizes = [200, 1], strides = [1, 1]} : vector<200x2xf32> to vector<200x1xf32>
    %3 = vector.extract_strided_slice %1 {offsets = [0, 0], sizes = [1, 256], strides = [1, 1]} : vector<2x256xf32> to vector<1x256xf32>
    %4 = vector.broadcast %2 : vector<200x1xf32> to vector<200x256xf32>
    %5 = vector.broadcast %3 : vector<1x256xf32> to vector<200x256xf32>
    %6 = arith.mulf %4, %5 : vector<200x256xf32>
    %7 = vector.extract_strided_slice %0 {offsets = [0, 1], sizes = [200, 1], strides = [1, 1]} : vector<200x2xf32> to vector<200x1xf32>
    %8 = vector.extract_strided_slice %1 {offsets = [1, 0], sizes = [1, 256], strides = [1, 1]} : vector<2x256xf32> to vector<1x256xf32>
    %9 = vector.broadcast %7 : vector<200x1xf32> to vector<200x256xf32>
    %10 = vector.broadcast %8 : vector<1x256xf32> to vector<200x256xf32>
    %11 = arith.mulf %9, %10 : vector<200x256xf32>
    %12 = arith.addf %6, %11 : vector<200x256xf32>
    %13 = math.cos %12 : vector<200x256xf32>
    %c0_3 = arith.constant 0 : index
    %c0_4 = arith.constant 0 : index
    %c0_5 = arith.constant 0 : index
    %14 = vector.load %arg3[%c0_3, %c0_4, %c0_5] : memref<2x200x256xf32, #tpu.memory_space<vmem>>, vector<1x200x256xf32>
    %15 = vector.shape_cast %14 : vector<1x200x256xf32> to vector<200x256xf32>
    %16 = vector.shape_cast %13 : vector<200x256xf32> to vector<1x200x256xf32>
    tpu.vector_store %arg3[%c0_3, %c0_4, %c0_5], %16 {strides = array<i32>} : memref<2x200x256xf32, #tpu.memory_space<vmem>>, vector<1x200x256xf32>,
    %17 = math.sin %12 : vector<200x256xf32>
    %c1 = arith.constant 1 : index
    %c0_6 = arith.constant 0 : index
    %c0_7 = arith.constant 0 : index
    %18 = vector.load %arg3[%c1, %c0_6, %c0_7] : memref<2x200x256xf32, #tpu.memory_space<vmem>>, vector<1x200x256xf32>
    %19 = vector.shape_cast %18 : vector<1x200x256xf32> to vector<200x256xf32>
    %20 = vector.shape_cast %17 : vector<200x256xf32> to vector<1x200x256xf32>
    tpu.vector_store %arg3[%c1, %c0_6, %c0_7], %20 {strides = array<i32>} : memref<2x200x256xf32, #tpu.memory_space<vmem>>, vector<1x200x256xf32>,
    return
  }
  func.func @transform_0(%arg0: i32) -> (i32, i32) {
    %c0_i32 = arith.constant 0 : i32
    %c0_i32_0 = arith.constant 0 : i32
    return %arg0, %c0_i32 : i32, i32
  }
  func.func @transform_1(%arg0: i32) -> (i32, i32) {
    %c0_i32 = arith.constant 0 : i32
    %c0_i32_0 = arith.constant 0 : i32
    %c0_i32_1 = arith.constant 0 : i32
    return %c0_i32, %c0_i32_0 : i32, i32
  }
  func.func @transform_2(%arg0: i32) -> (i32, i32, i32) {
    %c0_i32 = arith.constant 0 : i32
    %c0_i32_0 = arith.constant 0 : i32
    %c0_i32_1 = arith.constant 0 : i32
    return %c0_i32, %arg0, %c0_i32_0 : i32, i32, i32
  }
}

</mosaic_0001>

<bundles_post_ra>
// kernel: learnable_positional_encoding.1
= control target key start
LH: loop header
LB: loop body
LE: loop exit
PB: predicated region body
PF: predicated region fallthrough
CT: control target
= control target key end

     0   :  { %7 = vsyncpa [#allocation3], 0  ;;  %s17678_s0 = inlined_call_operand.vmem [shape: f32[400,2], index: 0, kind: input, shape index: {}]   ;;  %s17679_s1 = inlined_call_operand.vmem [shape: f32[2,256], index: 1, kind: input, shape index: {}]   ;;  %s17680_s2 = inlined_call_operand.hbm [shape: f32[2,400,256], index: 2, kind: output, shape index: {}]  }
   0x1   :  { %9 = vsyncpa [#allocation3 + $0x1], 0  ;;  %s12133_s9 = smov 0   ;;  %s12135_s10 = smov 0  }
   0x2   :  { %s12137_s11 = smov 0   ;;  %s12139_s12 = smov 0  }
   0x3 LB: > { %s12154_s13 = sadd.s32 4294967295, %s12101_s12   ;;  %s11140_s14 = sadd.s32 4294967294, %s12101_s12   ;;  %s12101_s12 = sphi %s12139_s12, %s17874_s12   ;;  %s12097_s11 = sphi %s12137_s11, %s17873_s11   ;;  %s12093_s10 = sphi %s12135_s10, %s17872_s10   ;;  %s12089_s9 = sphi %s12133_s9, %s17871_s9  }
   0x4   : > { %s12158_s15 = sadd.s32 1, %s12101_s12   ;;  %s69_s16 = sadd.s32 1, %s12097_s11 }
   0x5   : > { %s66_s17 = ssub.s32 %s12101_s12, %s12158_s15  ;;  %p79_p0 = scmp.ne.s32.totalorder %s12097_s11, %s12093_s10 }
   0x6   : > { %p67_p1 = scmp.eq.s32.totalorder %s66_s17, 0  ;;  %p80_p2 = scmp.eq.s32.totalorder %s12154_s13, 1 }
   0x7   : > { %p85_p3 = scmp.ne.s32.totalorder %s12093_s10, %s12089_s9  ;;  %p86_p4 = scmp.eq.s32.totalorder %s11140_s14, 1 }
   0x8   : > { %s12169_s18 = scalar_select %p67_p1, %s12097_s11, %s69_s16  }
   0x9   : > { %p12171_p5 = por %p80_p2, %p79_p0  ;;  %p12175_p6 = por %p86_p4, %p85_p3 }
   0xa   : > { %p11143_p7 = scmp.ge.s32.totalorder %s12101_s12, 1  ;;  %p116_p8 = scmp.lt.s32.totalorder %s12101_s12, 3 }
   0xc   : > { %p117_p9 = pnand %p11143_p7, %p116_p8 }
   0xe   : > { %120 = sbr.rel (%p117_p9) target bundleno = 1603 (0x643), region = 28 }
  0x15   : > { %s138_s21 = smul.u32 25, %s12154_s13  ;;  %v12103_v0 = vmov 0   ;;  %v12104_v26 = vmov 1   ;;  %v297_v27 = vlaneseq  ;;  %v12219_v31 = vld [vmem:[%s17679_s1] sm:$0xf]  ;;  %s135_s28 = sand.u32 1, %s12093_s10  }
  0x16   : > { %11864 = vset.pattern.permute.xlu1 %v12103_v0  ;;  %11863 = vset.pattern.permute.xlu0 %v12103_v0  ;;  %s12655_s29 = smul.u32 800, %s135_s28  ;;  %s11035_s3 = scalar_lea.sflag [#allocation3], %s135_s28 }
  0x17   : > { %p139_p10 = scmp.lt.s32.totalorder %s138_s21, 49  ;;  %v12212_v28 = vshrl.u32 %v297_v27, 7 }
  0x18   : > { %s12696_s30 = scalar_lea.vmem [#allocation2], %s12655_s29 }
  0x19   : > { %s17876_s21 = smov (!%p139_p10, %s138_s21), 49  ;;  %v299_v29 = vsub.s32 0, %v12212_v28  ;;  %v303_v30 = vsub.s32 2, %v12212_v28  ;;  %v467_v27 = vsub.s32 1, %v12212_v28 }
  0x1a   : > { %s11144_s22 = sshll.u32 %s17876_s21, 3 }
  0x1b   : > { %s12185_s25 = scalar_lea.vmem %s17678_s0, %s11144_s22  ;;  %v300_v32 = vrot.slane %v12219_v31, %v299_v29  ;;  %v304_v33 = vrot.slane %v12219_v31, %v303_v30 }
  0x1c   : > { %v147_v1 = vld [vmem:[%s12185_s25 + $0x10] sm:$0xff]  ;;  %v145_v2 = vld [vmem:[%s12185_s25] sm:$0xff]  ;;  %v148_v3 = vld [vmem:[%s12185_s25 + $0x18] sm:$0xff] }
  0x1d   : > { %183 = vperm.xlu1 %11864, %v147_v1   ;;  %173 = vperm.xlu0 %11863, %v145_v2   ;;  %v146_v4 = vld [vmem:[%s12185_s25 + $0x8] sm:$0xff]  ;;  %v149_v6 = vld [vmem:[%s12185_s25 + $0x20] sm:$0xff]  ;;  %v152_v7 = vld [vmem:[%s12185_s25 + $0x38] sm:$0xff]  ;;  %v12227_v36 = vrot.slane %v300_v32, %v299_v29  ;;  %v12229_v37 = vrot.slane %v304_v33, %v299_v29  ;;  %v471_v29 = vsub.s32 3, %v12212_v28 }
  0x1e   : > { %v150_v5 = vld [vmem:[%s12185_s25 + $0x28] sm:$0xff]  ;;  %v151_v8 = vld [vmem:[%s12185_s25 + $0x30] sm:$0xff]  ;;  %v153_v10 = vld [vmem:[%s12185_s25 + $0x40] sm:$0xff] }
  0x1f   : > { %v154_v9 = vld [vmem:[%s12185_s25 + $0x48] sm:$0xff]  ;;  %v156_v11 = vld [vmem:[%s12185_s25 + $0x58] sm:$0xff]  ;;  %v155_v12 = vld [vmem:[%s12185_s25 + $0x50] sm:$0xff] }
  0x20   : > { %v158_v13 = vld [vmem:[%s12185_s25 + $0x68] sm:$0xff]  ;;  %v157_v14 = vld [vmem:[%s12185_s25 + $0x60] sm:$0xff]  ;;  %v160_v15 = vld [vmem:[%s12185_s25 + $0x78] sm:$0xff] }
  0x21   : > { %188 = vperm.xlu1 %11864, %v148_v3   ;;  %178 = vperm.xlu0 %11863, %v146_v4   ;;  %v159_v16 = vld [vmem:[%s12185_s25 + $0x70] sm:$0xff]  ;;  %v162_v17 = vld [vmem:[%s12185_s25 + $0x88] sm:$0xff]  ;;  %v161_v18 = vld [vmem:[%s12185_s25 + $0x80] sm:$0xff] }
  0x22   : > { %v164_v19 = vld [vmem:[%s12185_s25 + $0x98] sm:$0xff]  ;;  %v163_v20 = vld [vmem:[%s12185_s25 + $0x90] sm:$0xff]  ;;  %v166_v21 = vld [vmem:[%s12185_s25 + $0xa8] sm:$0xff] }
  0x23   : > { %v165_v22 = vld [vmem:[%s12185_s25 + $0xa0] sm:$0xff]  ;;  %v168_v23 = vld [vmem:[%s12185_s25 + $0xb8] sm:$0xff]  ;;  %v167_v24 = vld [vmem:[%s12185_s25 + $0xb0] sm:$0xff] }
  0x24   : > { %v169_v25 = vld [vmem:[%s12185_s25 + $0xc0] sm:$0xff] }
  0x25   : > { %198 = vperm.xlu1 %11864, %v150_v5   ;;  %193 = vperm.xlu0 %11863, %v149_v6  }
  0x29   : > { %208 = vperm.xlu1 %11864, %v152_v7   ;;  %203 = vperm.xlu0 %11863, %v151_v8  }
  0x2d   : > { %218 = vperm.xlu1 %11864, %v154_v9   ;;  %213 = vperm.xlu0 %11863, %v153_v10  }
  0x31   : > { %228 = vperm.xlu1 %11864, %v156_v11   ;;  %223 = vperm.xlu0 %11863, %v155_v12  }
  0x35   : > { %238 = vperm.xlu1 %11864, %v158_v13   ;;  %233 = vperm.xlu0 %11863, %v157_v14  }
  0x39   : > { %248 = vperm.xlu1 %11864, %v160_v15   ;;  %243 = vperm.xlu0 %11863, %v159_v16  }
  0x3d   : > { %258 = vperm.xlu1 %11864, %v162_v17   ;;  %253 = vperm.xlu0 %11863, %v161_v18  }
  0x41   : > { %268 = vperm.xlu1 %11864, %v164_v19   ;;  %263 = vperm.xlu0 %11863, %v163_v20  }
  0x45   : > { %278 = vperm.xlu1 %11864, %v166_v21   ;;  %273 = vperm.xlu0 %11863, %v165_v22  }
  0x49   : > { %288 = vperm.xlu1 %11864, %v168_v23   ;;  %283 = vperm.xlu0 %11863, %v167_v24  }
  0x4d   : > { %11865 = vset.pattern.permute.xlu1 %v12104_v26  ;;  %293 = vperm.xlu0 %11863, %v169_v25  }
  0x4e   : > { %366 = vperm.xlu1 %11865, %v145_v2  }
  0x51   : > { %11866 = vset.pattern.permute.xlu0 %v12104_v26 }
  0x52   : > { %374 = vperm.xlu1 %11865, %v147_v1   ;;  %370 = vperm.xlu0 %11866, %v146_v4  }
  0x56   : > { %378 = vperm.xlu1 %11865, %v148_v3   ;;  %382 = vperm.xlu0 %11866, %v149_v6  }
  0x5a   : > { %386 = vperm.xlu1 %11865, %v150_v5   ;;  %390 = vperm.xlu0 %11866, %v151_v8  }
  0x5e   : > { %394 = vperm.xlu1 %11865, %v152_v7   ;;  %398 = vperm.xlu0 %11866, %v153_v10  }
  0x62   : > { %402 = vperm.xlu1 %11865, %v154_v9   ;;  %406 = vperm.xlu0 %11866, %v155_v12  }
  0x66   : > { %410 = vperm.xlu1 %11865, %v156_v11   ;;  %414 = vperm.xlu0 %11866, %v157_v14  }
  0x6a   : > { %418 = vperm.xlu1 %11865, %v158_v13   ;;  %422 = vperm.xlu0 %11866, %v159_v16  }
  0x6e   : > { %426 = vperm.xlu1 %11865, %v160_v15   ;;  %430 = vperm.xlu0 %11866, %v161_v18  }
  0x72   : > { %434 = vperm.xlu1 %11865, %v162_v17   ;;  %438 = vperm.xlu0 %11866, %v163_v20  }
  0x76   : > { %442 = vperm.xlu1 %11865, %v164_v19   ;;  %446 = vperm.xlu0 %11866, %v165_v22  }
  0x7a   : > { %450 = vperm.xlu1 %11865, %v166_v21   ;;  %454 = vperm.xlu0 %11866, %v167_v24  }
  0x7e   : > { %458 = vperm.xlu1 %11865, %v168_v23   ;;  %462 = vperm.xlu0 %11866, %v169_v25  }
  0x9c   : > { %v12223_v34 = vpop.permute.xlu1 %183  ;;  %v12225_v35 = vpop.permute.xlu0 %173 }
  0xa0   : > { %v189_v38 = vpop.permute.xlu1 %188  ;;  %v12231_v39 = vpop.permute.xlu0 %178 }
  0xa1   : > { %v12234_v40 = vmul.f32 %v12227_v36, %v189_v38  ;;  %v12237_v41 = vmul.f32 %v12229_v37, %v189_v38  ;;  %v12241_v42 = vmul.f32 %v12229_v37, %v12231_v39 }
  0xa4   : > { %v199_v43 = vpop.permute.xlu1 %198  ;;  %v194_v44 = vpop.permute.xlu0 %193 }
  0xa5   : > { %v12244_v45 = vmul.f32 %v12227_v36, %v199_v43  ;;  %v12247_v46 = vmul.f32 %v12229_v37, %v199_v43  ;;  %v12250_v47 = vmul.f32 %v12227_v36, %v194_v44  ;;  %v12253_v48 = vmul.f32 %v12229_v37, %v194_v44 }
  0xa8   : > { %v209_v49 = vpop.permute.xlu1 %208  ;;  %v204_v50 = vpop.permute.xlu0 %203 }
  0xa9   : > { %v12256_v51 = vmul.f32 %v12227_v36, %v209_v49  ;;  %v12259_v52 = vmul.f32 %v12229_v37, %v209_v49  ;;  %v12262_v53 = vmul.f32 %v12227_v36, %v204_v50  ;;  %v12265_v54 = vmul.f32 %v12229_v37, %v204_v50 }
  0xaa   : > { %v468_v49 = vrot.slane %v12219_v31, %v467_v27  ;;  %v472_v50 = vrot.slane %v12219_v31, %v471_v29 }
  0xac   : > { %v219_v55 = vpop.permute.xlu1 %218  ;;  %v214_v56 = vpop.permute.xlu0 %213 }
  0xad   : > { %v12268_v57 = vmul.f32 %v12227_v36, %v219_v55  ;;  %v12271_v58 = vmul.f32 %v12229_v37, %v219_v55  ;;  %v12274_v59 = vmul.f32 %v12227_v36, %v214_v56  ;;  %v12277_v60 = vmul.f32 %v12229_v37, %v214_v56 }
  0xaf   : > { %17697 = vst [vmem:[#allocation7_spill] sm:$0xff] %v12268_v57  ;;  %17698 = vst [vmem:[#allocation8_spill] sm:$0xff] %v12271_v58 }
  0xb0   : > { %v229_v61 = vpop.permute.xlu1 %228  ;;  %v224_v62 = vpop.permute.xlu0 %223 }
  0xb1   : > { %v12280_v63 = vmul.f32 %v12227_v36, %v229_v61  ;;  %v12283_v0 = vmul.f32 %v12229_v37, %v229_v61  ;;  %v12286_v1 = vmul.f32 %v12227_v36, %v224_v62  ;;  %v12289_v2 = vmul.f32 %v12229_v37, %v224_v62 }
  0xb3   : > { %17699 = vst [vmem:[#allocation9_spill] sm:$0xff] %v12280_v63  ;;  %17700 = vst [vmem:[#allocation10_spill] sm:$0xff] %v12283_v0 }
  0xb4   : > { %17701 = vst [vmem:[#allocation11_spill] sm:$0xff] %v12286_v1  ;;  %17702 = vst [vmem:[#allocation12_spill] sm:$0xff] %v12289_v2  ;;  %v239_v3 = vpop.permute.xlu1 %238  ;;  %v234_v4 = vpop.permute.xlu0 %233 }
  0xb5   : > { %v12292_v5 = vmul.f32 %v12227_v36, %v239_v3  ;;  %v12295_v6 = vmul.f32 %v12229_v37, %v239_v3  ;;  %v12298_v7 = vmul.f32 %v12227_v36, %v234_v4  ;;  %v12301_v8 = vmul.f32 %v12229_v37, %v234_v4 }
  0xb6   : > { %v12367_v4 = vrot.slane %v468_v49, %v467_v27 }
  0xb7   : > { %17703 = vst [vmem:[#allocation13_spill] sm:$0xff] %v12292_v5  ;;  %17704 = vst [vmem:[#allocation14_spill] sm:$0xff] %v12295_v6 }
  0xb8   : > { %17705 = vst [vmem:[#allocation15_spill] sm:$0xff] %v12298_v7  ;;  %17706 = vst [vmem:[#allocation16_spill] sm:$0xff] %v12301_v8  ;;  %v249_v9 = vpop.permute.xlu1 %248  ;;  %v244_v10 = vpop.permute.xlu0 %243 }
  0xb9   : > { %v12304_v11 = vmul.f32 %v12227_v36, %v249_v9  ;;  %v12307_v12 = vmul.f32 %v12229_v37, %v249_v9  ;;  %v12310_v13 = vmul.f32 %v12227_v36, %v244_v10  ;;  %v12313_v14 = vmul.f32 %v12229_v37, %v244_v10 }
  0xba   : > { %v12369_v9 = vrot.slane %v472_v50, %v467_v27 }
  0xbb   : > { %17707 = vst [vmem:[#allocation17_spill] sm:$0xff] %v12304_v11  ;;  %17708 = vst [vmem:[#allocation18_spill] sm:$0xff] %v12307_v12 }
  0xbc   : > { %17709 = vst [vmem:[#allocation19_spill] sm:$0xff] %v12310_v13  ;;  %17710 = vst [vmem:[#allocation20_spill] sm:$0xff] %v12313_v14  ;;  %v259_v15 = vpop.permute.xlu1 %258  ;;  %v254_v16 = vpop.permute.xlu0 %253 }
  0xbd   : > { %v12316_v17 = vmul.f32 %v12227_v36, %v259_v15  ;;  %v12319_v18 = vmul.f32 %v12229_v37, %v259_v15  ;;  %v12322_v19 = vmul.f32 %v12227_v36, %v254_v16  ;;  %v12325_v20 = vmul.f32 %v12229_v37, %v254_v16 }
  0xbf   : > { %17711 = vst [vmem:[#allocation21_spill] sm:$0xff] %v12316_v17  ;;  %17712 = vst [vmem:[#allocation22_spill] sm:$0xff] %v12319_v18  ;;  %v17693_v18 = vmov 1326507024  }
  0xc0   : > { %17713 = vst [vmem:[#allocation23_spill] sm:$0xff] %v12322_v19  ;;  %17714 = vst [vmem:[#allocation24_spill] sm:$0xff] %v12325_v20  ;;  %v269_v21 = vpop.permute.xlu1 %268  ;;  %v264_v22 = vpop.permute.xlu0 %263 }
  0xc1   : > { %v12328_v23 = vmul.f32 %v12227_v36, %v269_v21  ;;  %v12331_v24 = vmul.f32 %v12229_v37, %v269_v21  ;;  %v12334_v25 = vmul.f32 %v12227_v36, %v264_v22  ;;  %v12337_v26 = vmul.f32 %v12229_v37, %v264_v22 }
  0xc2   : > { %v315_v21 = vmul.f32 %v12227_v36, %v12225_v35  ;;  %v316_v22 = vmul.f32 %v12229_v37, %v12225_v35  ;;  %v319_v35 = vmul.f32 %v12227_v36, %v12223_v34 }
  0xc3   : > { %17715 = vst [vmem:[#allocation25_spill] sm:$0xff] %v12328_v23  ;;  %17716 = vst [vmem:[#allocation26_spill] sm:$0xff] %v12331_v24 }
  0xc4   : > { %17717 = vst [vmem:[#allocation27_spill] sm:$0xff] %v12334_v25  ;;  %17718 = vst [vmem:[#allocation28_spill] sm:$0xff] %v12337_v26  ;;  %v279_v30 = vpop.permute.xlu1 %278  ;;  %v274_v32 = vpop.permute.xlu0 %273 }
  0xc5   : > { %v12342_v33 = vmul.f32 %v12227_v36, %v279_v30  ;;  %v12345_v38 = vmul.f32 %v12229_v37, %v279_v30  ;;  %v12348_v43 = vmul.f32 %v12227_v36, %v274_v32  ;;  %v12351_v44 = vmul.f32 %v12229_v37, %v274_v32 }
  0xc7   : > { %17719 = vst [vmem:[#allocation29_spill] sm:$0xff] %v12342_v33  ;;  %17720 = vst [vmem:[#allocation30_spill] sm:$0xff] %v12345_v38 }
  0xc8   : > { %17721 = vst [vmem:[#allocation31_spill] sm:$0xff] %v12348_v43  ;;  %17722 = vst [vmem:[#allocation32_spill] sm:$0xff] %v12351_v44  ;;  %v289_v55 = vpop.permute.xlu1 %288  ;;  %v284_v28 = vpop.permute.xlu0 %283 }
  0xc9   : > { %v12356_v56 = vmul.f32 %v12227_v36, %v289_v55  ;;  %v12359_v61 = vmul.f32 %v12229_v37, %v289_v55  ;;  %v12362_v62 = vmul.f32 %v12227_v36, %v284_v28  ;;  %v12365_v3 = vmul.f32 %v12229_v37, %v284_v28 }
  0xcb   : > { %17723 = vst [vmem:[#allocation33_spill] sm:$0xff] %v12356_v56  ;;  %17724 = vst [vmem:[#allocation34_spill] sm:$0xff] %v12359_v61 }
  0xcc   : > { %17725 = vst [vmem:[#allocation35_spill] sm:$0xff] %v12362_v62  ;;  %17726 = vst [vmem:[#allocation36_spill] sm:$0xff] %v12365_v3  ;;  %v294_v10 = vpop.permute.xlu0 %293 }
  0xcd   : > { %v12372_v31 = vmul.f32 %v12227_v36, %v294_v10  ;;  %v12375_v15 = vmul.f32 %v12229_v37, %v294_v10  ;;  %v367_v16 = vpop.permute.xlu1 %366 }
  0xce   : > { %v483_v29 = vmul.f32 %v12367_v4, %v367_v16  ;;  %v484_v30 = vmul.f32 %v12369_v9, %v367_v16 }
  0xcf   : > { %17727 = vst [vmem:[#allocation37_spill] sm:$0xff] %v12372_v31  ;;  %17728 = vst [vmem:[#allocation38_spill] sm:$0xff] %v12375_v15 }
  0xd0   : > { %v12383_v27 = vadd.f32 %v483_v29, %v315_v21  ;;  %v12385_v32 = vadd.f32 %v484_v30, %v316_v22 }
  0xd1   : > { %v12387_v49 = vpop.permute.xlu1 %374 }
  0xd2   : > { %v17681_v50 = vand.u32 2147483647, %v12383_v27  ;;  %v586_v55 = vand.u32 2139095040, %v12383_v27  ;;  %v17682_v28 = vand.u32 2147483647, %v12385_v32  ;;  %v689_v10 = vand.u32 2139095040, %v12385_v32 }
  0xd3   : > { %v487_v16 = vmul.f32 %v12367_v4, %v12387_v49  ;;  %vm585_vm13 = vcmp.lt.s32.totalorder %v12383_v27, 0 }
  0xd4   : > { %v587_v15 = vshrl.u32 %v586_v55, 23  ;;  %v590_v21 = vand.u32 8388607, %v17681_v50  ;;  %v690_v22 = vshrl.u32 %v689_v10, 23  ;;  %v693_v29 = vand.u32 8388607, %v17682_v28 }
  0xd5   : > { %v12401_v31 = vadd.f32 %v487_v16, %v319_v35 }
  0xd6   : > { %v11145_v30 = vadd.s32 4294967169, %v587_v15  ;;  %v11149_v61 = vadd.s32 4294967169, %v690_v22  ;;  %v591_v3 = vor.u32 8388608, %v590_v21  ;;  %v694_v62 = vor.u32 8388608, %v693_v29 }
  0xd7   : > { %v998_v55 = vand.u32 2139095040, %v12401_v31  ;;  %v17689_v21 = vmov 683565275  }
  0xd8   : > { %v593_v56 = vadd.s32 1, %v11145_v30  ;;  %v696_v38 = vadd.s32 1, %v11149_v61  ;;  %v12404_v24 = vshll.u32 %v591_v3, 8  ;;  %v12408_v15 = vshll.u32 %v694_v62, 8 }
  0xd9   : > { %v999_v44 = vshrl.u32 %v998_v55, 23  ;;  %v17685_v3 = vmov 2102212464   ;;  %v17691_v62 = vmov 920167782  }
  0xda   : > { %vm594_vm0 = vcmp.gt.s32.totalorder %v593_v56, 0  ;;  %vm697_vm1 = vcmp.gt.s32.totalorder %v696_v38, 0 }
  0xdb   : > { %v595_v33 = vsel %vm594_vm0, %v593_v56, 0  ;;  %v698_v10 = vsel %vm697_vm1, %v696_v38, 0  ;;  %v12412_v29 = vadd.s32 4294967169, %v999_v44  ;;  %v17687_v56 = vmov 2475754826  }
  0xdc   : > { %v596_v43 = vshrl.u32 %v595_v33, 5  ;;  %v597_v50 = vand.u32 31, %v595_v33  ;;  %v12406_v28 = vshrl.u32 %v698_v10, 5  ;;  %v700_v22 = vand.u32 31, %v698_v10 }
  0xdd   : > { %v17683_v33 = vmov 2131351028   ;;  %vm688_vm1 = vcmp.lt.s32.totalorder %v12385_v32, 0 }
  0xde   : > { %v598_v16 = vsub.s32 32, %v597_v50  ;;  %v600_v61 = vshll.u32 %v17689_v21, %v597_v50  ;;  %v603_v30 = vshll.u32 %v17687_v56, %v597_v50  ;;  %v606_v38 = vshll.u32 %v17683_v33, %v597_v50 }
  0xdf   : > { %v609_v55 = vshll.u32 %v17685_v3, %v597_v50  ;;  %v612_v23 = vshll.u32 %v17691_v62, %v597_v50  ;;  %vm615_vm2 = vcmp.lt.s32.totalorder %v596_v43, 1  ;;  %vm616_vm3 = vcmp.lt.s32.totalorder %v596_v43, 2 }
  0xe0   : > { %v601_v35 = vshrl.u32 %v17687_v56, %v598_v16  ;;  %v604_v26 = vshrl.u32 %v17683_v33, %v598_v16  ;;  %v607_v10 = vshrl.u32 %v17685_v3, %v598_v16  ;;  %v599_v44 = vshrl.u32 %v17689_v21, %v598_v16 }
  0xe1   : > { %v610_v25 = vshrl.u32 %v17691_v62, %v598_v16  ;;  %v613_v17 = vshrl.u32 %v17693_v18, %v598_v16  ;;  %v701_v11 = vsub.s32 32, %v700_v22  ;;  %vm617_vm4 = vcmp.lt.s32.totalorder %v596_v43, 3 }
  0xe2   : > { %v602_v20 = vor.u32 %v601_v35, %v600_v61  ;;  %v605_v19 = vor.u32 %v604_v26, %v603_v30  ;;  %v608_v12 = vor.u32 %v607_v10, %v606_v38  ;;  %vm618_vm5 = vcmp.lt.s32.totalorder %v596_v43, 4 }
  0xe3   : > { %v611_v50 = vor.u32 %v610_v25, %v609_v55  ;;  %v614_v14 = vor.u32 %v613_v17, %v612_v23  ;;  %v17729_v16 = vmov 683565275   ;;  %v17730_v61 = vmov 2475754826  }
  0xe4   : > { %v619_v33 = vsel %vm615_vm2, %v599_v44, %v602_v20  ;;  %v620_v3 = vsel %vm618_vm5, %v608_v12, 2102212464  ;;  %v623_v56 = vsel %vm615_vm2, %v602_v20, %v605_v19  ;;  %v627_v21 = vsel %vm615_vm2, %v605_v19, %v608_v12 }
  0xe5   : > { %v621_v62 = vsel %vm617_vm4, %v605_v19, %v620_v3  ;;  %v624_v13 = vsel %vm618_vm5, %v611_v50, 920167782  ;;  %v628_v6 = vsel %vm618_vm5, %v614_v14, 1326507024  ;;  %v703_v18 = vshll.u32 %v17729_v16, %v700_v22 }
  0xe6   : > { %v625_v35 = vsel %vm617_vm4, %v608_v12, %v624_v13  ;;  %v629_v26 = vsel %vm617_vm4, %v611_v50, %v628_v6  ;;  %v704_v30 = vshrl.u32 %v17730_v61, %v701_v11  ;;  %v706_v17 = vshll.u32 %v17730_v61, %v700_v22 }
  0xe7   : > { %v622_v23 = vsel %vm616_vm3, %v619_v33, %v621_v62  ;;  %v626_v25 = vsel %vm616_vm3, %v623_v56, %v625_v35  ;;  %v630_v38 = vsel %vm616_vm3, %v627_v21, %v629_v26  ;;  %v17731_v20 = vmov 2131351028  }
  0xe8   : > { %v707_v55 = vshrl.u32 %v17731_v20, %v701_v11  ;;  %v12435_v19 = vmul.u32.u64.low %v12404_v24, %v630_v38  ;;  %v12436_v3 = vmul.u32.u64.high %v12404_v24, %v630_v38, %v12435_v19  ;;  %v705_v6 = vor.u32 %v704_v30, %v703_v18 }
  0xe9   : > { %v12439_v14 = vmul.u32.u64.low %v12404_v24, %v626_v25  ;;  %v12440_v12 = vmul.u32.u64.high %v12404_v24, %v626_v25, %v12439_v14  ;;  %v709_v10 = vshll.u32 %v17731_v20, %v700_v22  ;;  %v17732_v33 = vmov 2102212464  }
  0xea   : > { %v708_v13 = vor.u32 %v707_v55, %v706_v17  ;;  %v710_v62 = vshrl.u32 %v17732_v33, %v701_v11  ;;  %v702_v43 = vshrl.u32 %v17729_v16, %v701_v11  ;;  %v712_v21 = vshll.u32 %v17732_v33, %v700_v22 }
  0xeb   : > { %v17733_v56 = vmov 920167782   ;;  %v17734_v50 = vmov 1326507024   ;;  %v638_v26 = vmul.u32 %v12404_v24, %v622_v23  ;;  %vm718_vm6 = vcmp.lt.s32.totalorder %v12406_v28, 1 }
  0xec   : > { %v713_v44 = vshrl.u32 %v17733_v56, %v701_v11  ;;  %v716_v35 = vshrl.u32 %v17734_v50, %v701_v11  ;;  %v711_v38 = vor.u32 %v710_v62, %v709_v10  ;;  %v715_v25 = vshll.u32 %v17733_v56, %v700_v22 }
  0xed   : > { %vm640_vm7 = vc.u32 %v12436_v3, %v12439_v14  ;;  %v641_v18 = vadd.s32 1, %v12440_v12  ;;  %vm719_vm8 = vcmp.lt.s32.totalorder %v12406_v28, 2  ;;  %vm720_vm9 = vcmp.lt.s32.totalorder %v12406_v28, 3 }
  0xee   : > { %v714_v30 = vor.u32 %v713_v44, %v712_v21  ;;  %v717_v17 = vor.u32 %v716_v35, %v715_v25  ;;  %vm721_vm10 = vcmp.lt.s32.totalorder %v12406_v28, 4  ;;  %v726_v11 = vsel %vm718_vm6, %v705_v6, %v708_v13 }
  0xef   : > { %v642_v24 = vsel %vm640_vm7, %v641_v18, %v12440_v12  ;;  %v723_v23 = vsel %vm721_vm10, %v711_v38, 2102212464  ;;  %v730_v55 = vsel %vm718_vm6, %v708_v13, %v711_v38  ;;  %v722_v10 = vsel %vm718_vm6, %v702_v43, %v705_v6 }
  0xf0   : > { %v727_v22 = vsel %vm721_vm10, %v714_v30, 920167782  ;;  %v643_v19 = vadd.s32 %v642_v24, %v638_v26  ;;  %v731_v5 = vsel %vm721_vm10, %v717_v17, 1326507024  ;;  %v724_v8 = vsel %vm720_vm9, %v708_v13, %v723_v23 }
  0xf1   : > { %v728_v62 = vsel %vm720_vm9, %v711_v38, %v727_v22  ;;  %v732_v44 = vsel %vm720_vm9, %v714_v30, %v731_v5  ;;  %v1005_v35 = vadd.s32 1, %v12412_v29  ;;  %v488_v13 = vmul.f32 %v12369_v9, %v12387_v49 }
  0xf2   : > { %v729_v21 = vsel %vm719_vm8, %v726_v11, %v728_v62  ;;  %v644_v25 = vadd.s32 536870912, %v643_v19  ;;  %v733_v7 = vsel %vm719_vm8, %v730_v55, %v732_v44  ;;  %v725_v5 = vsel %vm719_vm8, %v722_v10, %v724_v8 }
  0xf3   : > { %v12465_v12 = vmul.u32.u64.low %v12408_v15, %v729_v21  ;;  %v12466_v18 = vmul.u32.u64.high %v12408_v15, %v729_v21, %v12465_v12  ;;  %v12469_v26 = vmul.u32.u64.low %v12408_v15, %v733_v7  ;;  %v12470_v6 = vmul.u32.u64.high %v12408_v15, %v733_v7, %v12469_v26 }
  0xf4   : > { %vm1006_vm11 = vcmp.gt.s32.totalorder %v1005_v35, 0  ;;  %v645_v43 = vshrl.u32 %v644_v25, 30  ;;  %v320_v38 = vmul.f32 %v12229_v37, %v12223_v34  ;;  %v17735_v11 = vand.u32 2147483647, %v12401_v31  ;;  %v12486_v34 = vpop.permute.xlu0 %370 }
  0xf5   : > { %v1007_v29 = vsel %vm1006_vm11, %v1005_v35, 0  ;;  %v744_v17 = vadd.s32 1, %v12466_v18  ;;  %v741_v7 = vmul.u32 %v12408_v15, %v725_v5  ;;  %vm743_vm12 = vc.u32 %v12470_v6, %v12465_v12 }
  0xf6   : > { %v646_v30 = vshll.u32 %v645_v43, 30  ;;  %v1002_v24 = vand.u32 8388607, %v17735_v11  ;;  %v12483_v49 = vadd.f32 %v488_v13, %v320_v38  ;;  %v1009_v23 = vand.u32 31, %v1007_v29 }
  0xf7   : > { %v745_v8 = vsel %vm743_vm12, %v744_v17, %v12466_v18  ;;  %v669_v37 = vsub.s32 4, %v645_v43  ;;  %v12491_v15 = vmul.f32 %v12227_v36, %v12231_v39  ;;  %v12505_v13 = vmul.f32 %v12367_v4, %v12486_v34 }
  0xf8   : > { %v647_v22 = vsub.s32 %v643_v19, %v646_v30  ;;  %v746_v28 = vadd.s32 %v745_v8, %v741_v7  ;;  %v1003_v10 = vor.u32 8388608, %v1002_v24  ;;  %v1010_v21 = vsub.s32 32, %v1009_v23 }
  0xf9   : > { %v1101_v44 = vand.u32 2139095040, %v12483_v49  ;;  %v17736_v19 = vand.u32 2147483647, %v12383_v27  ;;  %v639_v36 = vadd.s32 %v12439_v14, %v12436_v3  ;;  %v12509_v5 = vshrl.u32 %v1007_v29, 5 }
  0xfa   : > { %v649_v55 = vsub.s32 0, %v647_v22  ;;  %v747_v62 = vadd.s32 536870912, %v746_v28  ;;  %v12511_v38 = vshll.u32 %v1003_v10, 8  ;;  %v670_v30 = vsel %vm585_vm13, %v669_v37, %v645_v43 }
  0xfb   : > { %vm12496_vm14 = vcmp.le.f32.partialorder %v17736_v19, 0.7853982  ;;  %v1022_v11 = vshrl.u32 %v17733_v56, %v1010_v21  ;;  %v1102_v24 = vshrl.u32 %v1101_v44, 23  ;;  %v742_v8 = vadd.s32 %v12465_v12, %v12470_v6 }
  0xfc   : > { %v11146_v35 = vmin.u32 %v649_v55, %v647_v22  ;;  %v12500_v18 = vshrl.u32 %v747_v62, 30  ;;  %v1013_v55 = vshrl.u32 %v17730_v61, %v1010_v21  ;;  %v1016_v3 = vshrl.u32 %v17731_v20, %v1010_v21 }
  0xfd   : > { %v1012_v29 = vshll.u32 %v17729_v16, %v1009_v23  ;;  %v1019_v10 = vshrl.u32 %v17732_v33, %v1010_v21  ;;  %v1021_v43 = vshll.u32 %v17732_v33, %v1009_v23  ;;  %v12527_v37 = vsel %vm12496_vm14, 0, %v670_v30 }
  0xfe   : > { %v651_v39 = vclz %v11146_v35  ;;  %v749_v17 = vshll.u32 %v12500_v18, 30  ;;  %v1015_v62 = vshll.u32 %v17730_v61, %v1009_v23  ;;  %v1018_v12 = vshll.u32 %v17731_v20, %v1009_v23 }
  0xff   : > { %v1025_v35 = vshrl.u32 %v17734_v50, %v1010_v21  ;;  %v1011_v63 = vshrl.u32 %v17729_v16, %v1010_v21  ;;  %v1024_v2 = vshll.u32 %v17733_v56, %v1009_v23  ;;  %vm1030_vm0 = vcmp.lt.s32.totalorder %v12509_v5, 4 }
 0x100   : > { %v11147_v7 = vadd.s32 4294967294, %v651_v39  ;;  %v12520_v14 = vsub.s32 %v746_v28, %v749_v17  ;;  %v1023_v28 = vor.u32 %v1022_v11, %v1021_v43  ;;  %v1014_v17 = vor.u32 %v1013_v55, %v1012_v29 }
 0x101   : > { %v1017_v26 = vor.u32 %v1016_v3, %v1015_v62  ;;  %v1020_v30 = vor.u32 %v1019_v10, %v1018_v12  ;;  %vm1027_vm2 = vcmp.lt.s32.totalorder %v12509_v5, 1  ;;  %vm1029_vm3 = vcmp.lt.s32.totalorder %v12509_v5, 3 }
 0x102   : > { %vm11148_vm15 = vcmp.lt.s32.totalorder %v11147_v7, 0  ;;  %v752_v44 = vsub.s32 0, %v12520_v14  ;;  %v1036_v55 = vsel %vm1030_vm0, %v1023_v28, 920167782  ;;  %v772_v21 = vsub.s32 4, %v12500_v18 }
 0x103   : > { %v654_v6 = vsel %vm11148_vm15, 0, %v11147_v7  ;;  %v1026_v7 = vor.u32 %v1025_v35, %v1024_v2  ;;  %v1035_v23 = vsel %vm1027_vm2, %v1014_v17, %v1017_v26  ;;  %vm1028_vm4 = vcmp.lt.s32.totalorder %v12509_v5, 2 }
 0x104   : > { %v655_v19 = vsub.s32 32, %v654_v6  ;;  %v659_v39 = vsub.s32 4294967266, %v654_v6  ;;  %v11150_v0 = vmin.u32 %v752_v44, %v12520_v14  ;;  %v656_v1 = vshll.u32 %v647_v22, %v654_v6 }
 0x105   : > { %v17739_v10 = vand.u32 2147483647, %v12385_v32  ;;  %v1039_v62 = vsel %vm1027_vm2, %v1017_v26, %v1020_v30  ;;  %v1040_v12 = vsel %vm1030_vm0, %v1026_v7, 1326507024  ;;  %vm675_vm15 = vweird.f32 %v12383_v27 }
 0x106   : > { %v657_v58 = vshrl.u32 %v639_v36, %v655_v19  ;;  %v660_v57 = vadd.s32 127, %v659_v39  ;;  %v754_v11 = vclz %v11150_v0  ;;  %v1037_v0 = vsel %vm1029_vm3, %v1020_v30, %v1036_v55 }
 0x107   : > { %vm12550_vm5 = vcmp.le.f32.partialorder %v17739_v10, 0.7853982  ;;  %v1038_v43 = vsel %vm1028_vm4, %v1035_v23, %v1037_v0  ;;  %v1041_v35 = vsel %vm1029_vm3, %v1023_v28, %v1040_v12  ;;  %v11165_v19 = vadd.s32 4294967169, %v1102_v24 }
 0x108   : > { %v658_v3 = vor.u32 %v657_v58, %v656_v1  ;;  %v661_v29 = vshll.u32 %v660_v57, 23  ;;  %v11151_v22 = vadd.s32 4294967294, %v754_v11  ;;  %v1031_v57 = vsel %vm1027_vm2, %v1011_v63, %v1014_v17 }
 0x109   : > { %v1032_v1 = vsel %vm1030_vm0, %v1020_v30, 2102212464  ;;  %v1042_v11 = vsel %vm1028_vm4, %v1039_v62, %v1041_v35  ;;  %v12576_v28 = vmul.u32.u64.low %v12511_v38, %v1038_v43  ;;  %v12577_v24 = vmul.u32.u64.high %v12511_v38, %v1038_v43, %v12576_v28 }
 0x10a   : > { %v662_v2 = vor.u32 4788187, %v661_v29  ;;  %v665_v36 = vcvt.s32.f32 %v658_v3  ;;  %vm11152_vm6 = vcmp.lt.s32.totalorder %v11151_v22, 0  ;;  %v1033_v17 = vsel %vm1029_vm3, %v1017_v26, %v1032_v1 }
 0x10b   : > { %v757_v44 = vsel %vm11152_vm6, 0, %v11151_v22  ;;  %v12572_v3 = vmul.u32.u64.low %v12511_v38, %v1042_v11  ;;  %v12573_v7 = vmul.u32.u64.high %v12511_v38, %v1042_v11, %v12572_v3  ;;  %v773_v26 = vsel %vm688_vm1, %v772_v21, %v12500_v18 }
 0x10c   : > { %v663_v6 = vand.u32 2147483647, %v662_v2  ;;  %v758_v63 = vsub.s32 32, %v757_v44  ;;  %v762_v39 = vsub.s32 4294967266, %v757_v44  ;;  %v759_v30 = vshll.u32 %v12520_v14, %v757_v44 }
 0x10d   : > { %v5876_v0 = vadd.s32 3, %v12527_v37  ;;  %v1108_v2 = vadd.s32 1, %v11165_v19  ;;  %v1034_v10 = vsel %vm1028_vm4, %v1031_v57, %v1033_v17  ;;  %v12590_v62 = vand.u32 3, %v12527_v37 }
 0x10e   : > { %v666_v55 = vmul.f32 %v665_v36, %v663_v6  ;;  %v760_v29 = vshrl.u32 %v742_v8, %v758_v63  ;;  %v763_v23 = vadd.s32 127, %v762_v39  ;;  %v17742_v8 = vand.u32 2147483647, %v12483_v49 }
 0x10f   : > { %vm1052_vm7 = vc.u32 %v12573_v7, %v12576_v28  ;;  %vm1109_vm8 = vcmp.gt.s32.totalorder %v1108_v2, 0  ;;  %v775_v5 = vsel %vm12550_vm5, 0, %v773_v26  ;;  %v1053_v57 = vadd.s32 1, %v12577_v24 }
 0x110   : > { %v667_v22 = vxor.u32 2147483648, %v666_v55  ;;  %v761_v36 = vor.u32 %v760_v29, %v759_v30  ;;  %v764_v14 = vshll.u32 %v763_v23, 23  ;;  %v1105_v1 = vand.u32 8388607, %v17742_v8 }
 0x111   : > { %v12599_v12 = vand.u32 3, %v5876_v0  ;;  %v1050_v6 = vmul.u32 %v12511_v38, %v1034_v10  ;;  %v1110_v37 = vsel %vm1109_vm8, %v1108_v2, 0  ;;  %v1054_v19 = vsel %vm1052_vm7, %v1053_v57, %v12577_v24 }
 0x112   : > { %v668_v43 = vsel %vm585_vm13, %v667_v22, %v666_v55  ;;  %v765_v21 = vor.u32 4788187, %v764_v14  ;;  %v768_v35 = vcvt.s32.f32 %v761_v36  ;;  %v5980_v63 = vadd.s32 3, %v775_v5 }
 0x113   : > { %v671_v18 = vsel %vm12496_vm14, %v12383_v27, %v668_v43  ;;  %v1055_v25 = vadd.s32 %v1054_v19, %v1050_v6  ;;  %v1106_v39 = vor.u32 8388608, %v1105_v1  ;;  %v1112_v17 = vand.u32 31, %v1110_v37 }
 0x114   : > { %11867 = vcosq.f32 %v671_v18  ;;  %v766_v44 = vand.u32 2147483647, %v765_v21  ;;  %v12603_v55 = vshrl.u32 %v1110_v37, 5  ;;  %v12607_v30 = vadd.f32 %v12505_v13, %v12491_v15 }
 0x115   : > { %11869 = vsinq.f32 %v671_v18  ;;  %vm681_vm9 = vcmp.eq.s32.totalorder %v12590_v62, 2  ;;  %v1056_v38 = vadd.s32 536870912, %v1055_v25  ;;  %v12610_v3 = vsub.s32 32, %v1112_v17 }
 0x116   : > { %v769_v11 = vmul.f32 %v768_v35, %v766_v44  ;;  %v12614_v29 = vmul.f32 %v12369_v9, %v12486_v34  ;;  %vm678_vm10 = vcmp.eq.s32.totalorder %v12590_v62, 0  ;;  %v12617_v24 = vand.u32 3, %v775_v5 }
 0x117   : > { %vm5879_vm11 = vcmp.eq.s32.totalorder %v12599_v12, 0  ;;  %vm5882_vm12 = vcmp.eq.s32.totalorder %v12599_v12, 2  ;;  %vm677_vm13 = vcmp.lt.s32.totalorder %v12590_v62, 2  ;;  %vm5878_vm14 = vcmp.lt.s32.totalorder %v12599_v12, 2 }
 0x118   : > { %v770_v23 = vxor.u32 2147483648, %v769_v11  ;;  %v12623_v15 = vand.u32 3, %v5980_v63  ;;  %v12626_v13 = vadd.s32 %v12576_v28, %v12573_v7  ;;  %v12628_v34 = vshrl.u32 %v1056_v38, 30 }
 0x119   : > { %v12630_v22 = vshll.u32 %v1106_v39, 8  ;;  %v1122_v0 = vshrl.u32 %v17732_v33, %v12610_v3  ;;  %vm1130_vm0 = vcmp.lt.s32.totalorder %v12603_v55, 1  ;;  %v792_v2 = vand.u32 2139095040, %v12607_v30 }
 0x11a   : > { %v771_v26 = vsel %vm688_vm1, %v770_v23, %v769_v11  ;;  %v1058_v28 = vshll.u32 %v12628_v34, 30  ;;  %v1116_v36 = vshrl.u32 %v17730_v61, %v12610_v3  ;;  %v1119_v14 = vshrl.u32 %v17731_v20, %v12610_v3 }
 0x11b   : > { %v774_v7 = vsel %vm12550_vm5, %v12385_v32, %v771_v26  ;;  %v1121_v10 = vshll.u32 %v17731_v20, %v1112_v17  ;;  %v1125_v8 = vshrl.u32 %v17733_v56, %v12610_v3  ;;  %v1128_v1 = vshrl.u32 %v17734_v50, %v12610_v3 }
 0x11c   : > { %11871 = vcosq.f32 %v774_v7  ;;  %v12657_v58 = vsub.s32 %v1055_v25, %v1058_v28  ;;  %v1115_v18 = vshll.u32 %v17729_v16, %v1112_v17  ;;  %v1118_v21 = vshll.u32 %v17730_v61, %v1112_v17 }
 0x11d   : > { %11873 = vsinq.f32 %v774_v7  ;;  %vm1131_vm1 = vcmp.lt.s32.totalorder %v12603_v55, 2  ;;  %v1123_v6 = vor.u32 %v1122_v0, %v1121_v10  ;;  %v1124_v37 = vshll.u32 %v17732_v33, %v1112_v17 }
 0x11e   : > { %v11868_v43 = vpop.eup %11867  ;;  %v1127_v44 = vshll.u32 %v17733_v56, %v1112_v17  ;;  %v1061_v19 = vsub.s32 0, %v12657_v58  ;;  %v1117_v63 = vor.u32 %v1116_v36, %v1115_v18  ;;  %v1120_v39 = vor.u32 %v1119_v14, %v1118_v21 }
 0x11f   : > { %v11870_v5 = vpop.eup %11869  ;;  %v682_v57 = vxor.u32 2147483648, %v11868_v43  ;;  %vm784_vm2 = vcmp.eq.s32.totalorder %v12617_v24, 2  ;;  %vm5986_vm3 = vcmp.eq.s32.totalorder %v12623_v15, 2  ;;  %v1126_v38 = vor.u32 %v1125_v8, %v1124_v37 }
 0x120   : > { %v679_v35 = vxor.u32 2147483648, %v11870_v5  ;;  %v1129_v23 = vor.u32 %v1128_v1, %v1127_v44  ;;  %vm781_vm4 = vcmp.eq.s32.totalorder %v12617_v24, 0  ;;  %vm5983_vm5 = vcmp.eq.s32.totalorder %v12623_v15, 0 }
 0x121   : > { %v683_v25 = vsel %vm681_vm9, %v682_v57, %v11870_v5  ;;  %v5884_v11 = vsel %vm5882_vm12, %v682_v57, %v11870_v5  ;;  %v11162_v0 = vmin.u32 %v1061_v19, %v12657_v58  ;;  %vm1133_vm6 = vcmp.lt.s32.totalorder %v12603_v55, 4 }
 0x122   : > { %v680_v17 = vsel %vm678_vm10, %v11868_v43, %v679_v35  ;;  %v5881_v26 = vsel %vm5879_vm11, %v11868_v43, %v679_v35  ;;  %vm780_vm7 = vcmp.lt.s32.totalorder %v12617_v24, 2  ;;  %vm5982_vm8 = vcmp.lt.s32.totalorder %v12623_v15, 2 }
 0x123   : > { %v684_v7 = vsel %vm677_vm13, %v680_v17, %v683_v25  ;;  %v5885_v28 = vsel %vm5878_vm14, %v5881_v26, %v5884_v11  ;;  %vm1132_vm9 = vcmp.lt.s32.totalorder %v12603_v55, 3  ;;  %v1135_v36 = vsel %vm1133_vm6, %v1123_v6, 2102212464 }
 0x124   : > { %v685_v14 = vsel %vm675_vm15, nan, %v684_v7  ;;  %vm778_vm10 = vweird.f32 %v12385_v32  ;;  %v5886_v62 = vsel %vm675_vm15, nan, %v5885_v28  ;;  %v1063_v10 = vclz %v11162_v0 }
 0x125   : > { %v1138_v12 = vsel %vm1130_vm0, %v1117_v63, %v1120_v39  ;;  %5733 = vst [vmem:[%s12696_s30] sm:$0xff] %v685_v14  ;;  %11545 = vst [vmem:[%s12696_s30 + $0x190] sm:$0xff] %v5886_v62  ;;  %vm997_vm11 = vcmp.lt.s32.totalorder %v12401_v31, 0  ;;  %v1114_v8 = vshrl.u32 %v17729_v16, %v12610_v3  ;;  %v1139_v1 = vsel %vm1133_vm6, %v1126_v38, 920167782 }
 0x126   : > { %v1142_v27 = vsel %vm1130_vm0, %v1120_v39, %v1123_v6  ;;  %v1143_v43 = vsel %vm1133_vm6, %v1129_v23, 1326507024  ;;  %v11163_v18 = vadd.s32 4294967294, %v1063_v10  ;;  %v1081_v21 = vsub.s32 4, %v12628_v34  ;;  %v11872_v37 = vpop.eup %11871 }
 0x127   : > { %v1140_v5 = vsel %vm1132_vm9, %v1123_v6, %v1139_v1  ;;  %v1144_v57 = vsel %vm1132_vm9, %v1126_v38, %v1143_v43  ;;  %v1134_v3 = vsel %vm1130_vm0, %v1114_v8, %v1117_v63  ;;  %v1136_v44 = vsel %vm1132_vm9, %v1120_v39, %v1135_v36  ;;  %v11874_v25 = vpop.eup %11873 }
 0x128   : > { %v1141_v35 = vsel %vm1131_vm1, %v1138_v12, %v1140_v5  ;;  %v1145_v19 = vsel %vm1131_vm1, %v1142_v27, %v1144_v57  ;;  %v785_v11 = vxor.u32 2147483648, %v11872_v37  ;;  %vm11164_vm12 = vcmp.lt.s32.totalorder %v11163_v18, 0 }
 0x129   : > { %v12723_v6 = vmul.u32.u64.low %v12630_v22, %v1145_v19  ;;  %v12724_v23 = vmul.u32.u64.high %v12630_v22, %v1145_v19, %v12723_v6  ;;  %v782_v38 = vxor.u32 2147483648, %v11874_v25  ;;  %v1066_v17 = vsel %vm11164_vm12, 0, %v11163_v18 }
 0x12a   : > { %v12727_v63 = vmul.u32.u64.low %v12630_v22, %v1141_v35  ;;  %v12728_v26 = vmul.u32.u64.high %v12630_v22, %v1141_v35, %v12727_v63  ;;  %v786_v39 = vsel %vm784_vm2, %v785_v11, %v11874_v25  ;;  %v5988_v0 = vsel %vm5986_vm3, %v785_v11, %v11874_v25 }
 0x12b   : > { %v1067_v7 = vsub.s32 32, %v1066_v17  ;;  %v1137_v28 = vsel %vm1131_vm1, %v1134_v3, %v1136_v44  ;;  %v783_v36 = vsel %vm781_vm4, %v11872_v37, %v782_v38  ;;  %v5985_v14 = vsel %vm5983_vm5, %v11872_v37, %v782_v38 }
 0x12c   : > { %v1071_v62 = vsub.s32 4294967266, %v1066_v17  ;;  %v793_v10 = vshrl.u32 %v792_v2, 23  ;;  %v787_v12 = vsel %vm780_vm7, %v783_v36, %v786_v39  ;;  %v5989_v8 = vsel %vm5982_vm8, %v5985_v14, %v5988_v0 }
 0x12d   : > { %v1068_v1 = vshll.u32 %v12657_v58, %v1066_v17  ;;  %v1069_v55 = vshrl.u32 %v12626_v13, %v1067_v7  ;;  %v788_v27 = vsel %vm778_vm10, nan, %v787_v12  ;;  %v5990_v43 = vsel %vm778_vm10, nan, %v5989_v8 }
 0x12e   : > { %v1072_v18 = vadd.s32 127, %v1071_v62  ;;  %vm1155_vm13 = vc.u32 %v12724_v23, %v12727_v63  ;;  %5734 = vst [vmem:[%s12696_s30 + $0x8] sm:$0xff] %v788_v27  ;;  %11546 = vst [vmem:[%s12696_s30 + $0x198] sm:$0xff] %v5990_v43  ;;  %v1082_v24 = vsel %vm997_vm11, %v1081_v21, %v12628_v34  ;;  %v1156_v15 = vadd.s32 1, %v12728_v26 }
 0x12f   : > { %v1070_v2 = vor.u32 %v1069_v55, %v1068_v1  ;;  %v1153_v13 = vmul.u32 %v12630_v22, %v1137_v28  ;;  %v11153_v5 = vadd.s32 4294967169, %v793_v10  ;;  %v17743_v57 = vand.u32 2147483647, %v12401_v31 }
 0x130   : > { %v1073_v58 = vshll.u32 %v1072_v18, 23  ;;  %v1157_v37 = vsel %vm1155_vm13, %v1156_v15, %v12728_v26  ;;  %v12769_v3 = vadd.f32 %v12614_v29, %v12241_v42  ;;  %v789_v34 = vand.u32 2147483647, %v12607_v30 }
 0x131   : > { %vm12762_vm14 = vcmp.le.f32.partialorder %v17743_v57, 0.7853982  ;;  %v1158_v22 = vadd.s32 %v1157_v37, %v1153_v13  ;;  %v799_v35 = vadd.s32 1, %v11153_v5  ;;  %v1077_v25 = vcvt.s32.f32 %v1070_v2 }
 0x132   : > { %v1074_v21 = vor.u32 4788187, %v1073_v58  ;;  %v1084_v44 = vsel %vm12762_vm14, 0, %v1082_v24  ;;  %v796_v38 = vand.u32 8388607, %v789_v34  ;;  %v895_v39 = vand.u32 2139095040, %v12769_v3 }
 0x133   : > { %v1159_v11 = vadd.s32 536870912, %v1158_v22  ;;  %vm800_vm15 = vcmp.gt.s32.totalorder %v799_v35, 0  ;;  %v6292_v6 = vadd.s32 3, %v1084_v44  ;;  %v12780_v36 = vand.u32 3, %v1084_v44 }
 0x134   : > { %v1075_v19 = vand.u32 2147483647, %v1074_v21  ;;  %v801_v17 = vsel %vm800_vm15, %v799_v35, 0  ;;  %v12783_v14 = vadd.s32 %v12727_v63, %v12724_v23  ;;  %v797_v8 = vor.u32 8388608, %v796_v38 }
 0x135   : > { %v12776_v42 = vshrl.u32 %v1159_v11, 30  ;;  %v803_v29 = vand.u32 31, %v801_v17  ;;  %v12785_v62 = vand.u32 3, %v6292_v6  ;;  %v896_v1 = vshrl.u32 %v895_v39, 23 }
 0x136   : > { %v1078_v26 = vmul.f32 %v1077_v25, %v1075_v19  ;;  %v892_v23 = vand.u32 2147483647, %v12769_v3  ;;  %vm1100_vm0 = vcmp.lt.s32.totalorder %v12483_v49, 0  ;;  %v802_v18 = vshrl.u32 %v801_v17, 5 }
 0x137   : > { %v1161_v7 = vshll.u32 %v12776_v42, 30  ;;  %v804_v28 = vsub.s32 32, %v803_v29  ;;  %v806_v24 = vshll.u32 %v17729_v16, %v803_v29  ;;  %v809_v15 = vshll.u32 %v17730_v61, %v803_v29 }
 0x138   : > { %v1079_v0 = vxor.u32 2147483648, %v1078_v26  ;;  %v812_v2 = vshll.u32 %v17731_v20, %v803_v29  ;;  %v815_v5 = vshll.u32 %v17732_v33, %v803_v29  ;;  %v12805_v57 = vshll.u32 %v797_v8, 8 }
 0x139   : > { %v12789_v12 = vsub.s32 %v1158_v22, %v1161_v7  ;;  %v807_v27 = vshrl.u32 %v17730_v61, %v804_v28  ;;  %v810_v43 = vshrl.u32 %v17731_v20, %v804_v28  ;;  %v813_v58 = vshrl.u32 %v17732_v33, %v804_v28 }
 0x13a   : > { %v1080_v10 = vsel %vm997_vm11, %v1079_v0, %v1078_v26  ;;  %v11157_v32 = vadd.s32 4294967169, %v896_v1  ;;  %v816_v22 = vshrl.u32 %v17733_v56, %v804_v28  ;;  %vm1093_vm1 = vcmp.eq.s32.totalorder %v12780_v36, 2 }
 0x13b   : > { %v1083_v55 = vsel %vm12762_vm14, %v12401_v31, %v1080_v10  ;;  %v1164_v63 = vsub.s32 0, %v12789_v12  ;;  %v808_v37 = vor.u32 %v807_v27, %v806_v24  ;;  %v811_v21 = vor.u32 %v810_v43, %v809_v15 }
 0x13c   : > { %11875 = vcosq.f32 %v1083_v55  ;;  %v814_v44 = vor.u32 %v813_v58, %v812_v2  ;;  %v1184_v19 = vsub.s32 4, %v12776_v42  ;;  %vm6298_vm2 = vcmp.eq.s32.totalorder %v12785_v62, 2 }
 0x13d   : > { %11877 = vsinq.f32 %v1083_v55  ;;  %v11166_v13 = vmin.u32 %v1164_v63, %v12789_v12  ;;  %v818_v25 = vshll.u32 %v17733_v56, %v803_v29  ;;  %v819_v11 = vshrl.u32 %v17734_v50, %v804_v28 }
 0x13e   : > { %vm1090_vm3 = vcmp.eq.s32.totalorder %v12780_v36, 0  ;;  %vm6295_vm4 = vcmp.eq.s32.totalorder %v12785_v62, 0  ;;  %v805_v6 = vshrl.u32 %v17729_v16, %v804_v28  ;;  %v817_v38 = vor.u32 %v816_v22, %v815_v5 }
 0x13f   : > { %v1166_v35 = vclz %v11166_v13  ;;  %vm821_vm5 = vcmp.lt.s32.totalorder %v802_v18, 1  ;;  %vm822_vm6 = vcmp.lt.s32.totalorder %v802_v18, 2  ;;  %vm1089_vm7 = vcmp.lt.s32.totalorder %v12780_v36, 2 }
 0x140   : > { %vm6294_vm8 = vcmp.lt.s32.totalorder %v12785_v62, 2  ;;  %v820_v26 = vor.u32 %v819_v11, %v818_v25  ;;  %vm823_vm9 = vcmp.lt.s32.totalorder %v802_v18, 3  ;;  %vm824_vm10 = vcmp.lt.s32.totalorder %v802_v18, 4 }
 0x141   : > { %v11167_v17 = vadd.s32 4294967294, %v1166_v35  ;;  %vm1087_vm11 = vweird.f32 %v12401_v31  ;;  %v825_v29 = vsel %vm821_vm5, %v805_v6, %v808_v37  ;;  %v826_v39 = vsel %vm824_vm10, %v814_v44, 2102212464 }
 0x142   : > { %v829_v0 = vsel %vm821_vm5, %v808_v37, %v811_v21  ;;  %v830_v7 = vsel %vm824_vm10, %v817_v38, 920167782  ;;  %v17746_v28 = vand.u32 2147483647, %v12483_v49  ;;  %v827_v8 = vsel %vm823_vm9, %v811_v21, %v826_v39 }
 0x143   : > { %vm11168_vm13 = vcmp.lt.s32.totalorder %v11167_v17, 0  ;;  %v831_v1 = vsel %vm823_vm9, %v814_v44, %v830_v7  ;;  %v833_v55 = vsel %vm821_vm5, %v811_v21, %v814_v44  ;;  %v1185_v43 = vsel %vm1100_vm0, %v1184_v19, %v12776_v42 }
 0x144   : > { %vm12823_vm12 = vcmp.le.f32.partialorder %v17746_v28, 0.7853982  ;;  %v1169_v27 = vsel %vm11168_vm13, 0, %v11167_v17  ;;  %v832_v63 = vsel %vm822_vm6, %v829_v0, %v831_v1  ;;  %v834_v24 = vsel %vm824_vm10, %v820_v26, 1326507024 }
 0x145   : > { %v1170_v2 = vsub.s32 32, %v1169_v27  ;;  %v1174_v58 = vsub.s32 4294967266, %v1169_v27  ;;  %v828_v13 = vsel %vm822_vm6, %v825_v29, %v827_v8  ;;  %v835_v5 = vsel %vm823_vm9, %v817_v38, %v834_v24 }
 0x146   : > { %v11876_v15 = vpop.eup %11875  ;;  %v836_v35 = vsel %vm822_vm6, %v833_v55, %v835_v5  ;;  %v12838_v21 = vmul.u32.u64.low %v12805_v57, %v832_v63  ;;  %v12839_v44 = vmul.u32.u64.high %v12805_v57, %v832_v63, %v12838_v21  ;;  %v1171_v19 = vshll.u32 %v12789_v12, %v1169_v27  ;;  %v379_v63 = vpop.permute.xlu1 %378 }
 0x147   : > { %v11878_v37 = vpop.eup %11877  ;;  %v1094_v22 = vxor.u32 2147483648, %v11876_v15  ;;  %v1172_v25 = vshrl.u32 %v12783_v14, %v1170_v2  ;;  %v1175_v11 = vadd.s32 127, %v1174_v58  ;;  %v902_v28 = vadd.s32 1, %v11157_v32 }
 0x148   : > { %v1091_v42 = vxor.u32 2147483648, %v11878_v37  ;;  %v12849_v18 = vmul.u32.u64.low %v12805_v57, %v836_v35  ;;  %v12850_v17 = vmul.u32.u64.high %v12805_v57, %v836_v35, %v12849_v18  ;;  %v847_v7 = vadd.s32 1, %v12839_v44 }
 0x149   : > { %v1095_v6 = vsel %vm1093_vm1, %v1094_v22, %v11878_v37  ;;  %v6300_v38 = vsel %vm6298_vm2, %v1094_v22, %v11878_v37  ;;  %v1173_v29 = vor.u32 %v1172_v25, %v1171_v19  ;;  %v1176_v12 = vshll.u32 %v1175_v11, 23 }
 0x14a   : > { %v1092_v26 = vsel %vm1090_vm3, %v11876_v15, %v1091_v42  ;;  %v6297_v14 = vsel %vm6295_vm4, %v11876_v15, %v1091_v42  ;;  %v899_v27 = vand.u32 8388607, %v892_v23  ;;  %v1187_v36 = vsel %vm12823_vm12, 0, %v1185_v43 }
 0x14b   : > { %v1096_v39 = vsel %vm1089_vm7, %v1092_v26, %v1095_v6  ;;  %v6301_v0 = vsel %vm6294_vm8, %v6297_v14, %v6300_v38  ;;  %v1177_v1 = vor.u32 4788187, %v1176_v12  ;;  %v844_v62 = vmul.u32 %v12805_v57, %v828_v13 }
 0x14c   : > { %v1097_v8 = vsel %vm1087_vm11, nan, %v1096_v39  ;;  %v6302_v55 = vsel %vm1087_vm11, nan, %v6301_v0  ;;  %vm846_vm14 = vc.u32 %v12850_v17, %v12838_v21  ;;  %vm903_vm15 = vcmp.gt.s32.totalorder %v902_v28, 0 }
 0x14d   : > { %5737 = vst [vmem:[%s12696_s30 + $0x20] sm:$0xff] %v1097_v8  ;;  %11549 = vst [vmem:[%s12696_s30 + $0x1b0] sm:$0xff] %v6302_v55  ;;  %v1178_v32 = vand.u32 2147483647, %v1177_v1  ;;  %v1180_v24 = vcvt.s32.f32 %v1173_v29  ;;  %v848_v31 = vsel %vm846_vm14, %v847_v7, %v12839_v44  ;;  %v904_v15 = vsel %vm903_vm15, %v902_v28, 0 }
 0x14e   : > { %v849_v2 = vadd.s32 %v848_v31, %v844_v62  ;;  %v906_v58 = vand.u32 31, %v904_v15  ;;  %v489_v5 = vmul.f32 %v12367_v4, %v379_v63  ;;  %v12876_v22 = vand.u32 3, %v1187_v36 }
 0x14f   : > { %v1181_v37 = vmul.f32 %v1180_v24, %v1178_v32  ;;  %v900_v43 = vor.u32 8388608, %v899_v27  ;;  %v490_v35 = vmul.f32 %v12369_v9, %v379_v63  ;;  %v6396_v57 = vadd.s32 3, %v1187_v36 }
 0x150   : > { %v850_v13 = vadd.s32 536870912, %v849_v2  ;;  %v905_v42 = vshrl.u32 %v904_v15, 5  ;;  %v907_v19 = vsub.s32 32, %v906_v58  ;;  %v909_v11 = vshll.u32 %v17729_v16, %v906_v58 }
 0x151   : > { %v1182_v25 = vxor.u32 2147483648, %v1181_v37  ;;  %v912_v44 = vshll.u32 %v17730_v61, %v906_v58  ;;  %v915_v6 = vshll.u32 %v17731_v20, %v906_v58  ;;  %v918_v29 = vshll.u32 %v17732_v33, %v906_v58 }
 0x152   : > { %v12882_v38 = vshrl.u32 %v850_v13, 30  ;;  %v910_v18 = vshrl.u32 %v17730_v61, %v907_v19  ;;  %v913_v26 = vshrl.u32 %v17731_v20, %v907_v19  ;;  %v916_v14 = vshrl.u32 %v17732_v33, %v907_v19 }
 0x153   : > { %v1183_v12 = vsel %vm1100_vm0, %v1182_v25, %v1181_v37  ;;  %v919_v39 = vshrl.u32 %v17733_v56, %v907_v19  ;;  %v922_v0 = vshrl.u32 %v17734_v50, %v907_v19  ;;  %v921_v1 = vshll.u32 %v17733_v56, %v906_v58 }
 0x154   : > { %v1186_v7 = vsel %vm12823_vm12, %v12483_v49, %v1183_v12  ;;  %v852_v28 = vshll.u32 %v12882_v38, 30  ;;  %v911_v8 = vor.u32 %v910_v18, %v909_v11  ;;  %v914_v55 = vor.u32 %v913_v26, %v912_v44 }
 0x155   : > { %11879 = vcosq.f32 %v1186_v7  ;;  %v917_v27 = vor.u32 %v916_v14, %v915_v6  ;;  %v920_v63 = vor.u32 %v919_v39, %v918_v29  ;;  %vm791_vm0 = vcmp.lt.s32.totalorder %v12607_v30, 0 }
 0x156   : > { %11881 = vsinq.f32 %v1186_v7  ;;  %v12897_v36 = vsub.s32 %v849_v2, %v852_v28  ;;  %v923_v62 = vor.u32 %v922_v0, %v921_v1  ;;  %v12900_v32 = vshll.u32 %v900_v43, 8 }
 0x157   : > { %v12903_v10 = vadd.f32 %v489_v5, %v12234_v40  ;;  %v12906_v24 = vadd.f32 %v490_v35, %v12237_v41  ;;  %v6397_v31 = vand.u32 3, %v6396_v57  ;;  %vm924_vm1 = vcmp.lt.s32.totalorder %v905_v42, 1 }
 0x158   : > { %v855_v15 = vsub.s32 0, %v12897_v36  ;;  %vm927_vm2 = vcmp.lt.s32.totalorder %v905_v42, 4  ;;  %vm1196_vm3 = vcmp.eq.s32.totalorder %v12876_v22, 2  ;;  %v908_v2 = vshrl.u32 %v17729_v16, %v907_v19 }
 0x159   : > { %v929_v58 = vsel %vm927_vm2, %v917_v27, 2102212464  ;;  %v932_v37 = vsel %vm924_vm1, %v911_v8, %v914_v55  ;;  %v933_v13 = vsel %vm927_vm2, %v920_v63, 920167782  ;;  %vm1193_vm4 = vcmp.eq.s32.totalorder %v12876_v22, 0 }
 0x15a   : > { %v11154_v40 = vmin.u32 %v855_v15, %v12897_v36  ;;  %vm925_vm5 = vcmp.lt.s32.totalorder %v905_v42, 2  ;;  %vm926_vm6 = vcmp.lt.s32.totalorder %v905_v42, 3  ;;  %v936_v41 = vsel %vm924_vm1, %v914_v55, %v917_v27 }
 0x15b   : > { %vm1192_vm7 = vcmp.lt.s32.totalorder %v12876_v22, 2  ;;  %v928_v5 = vsel %vm924_vm1, %v908_v2, %v911_v8  ;;  %v930_v43 = vsel %vm926_vm6, %v914_v55, %v929_v58  ;;  %v934_v35 = vsel %vm926_vm6, %v917_v27, %v933_v13 }
 0x15c   : > { %v937_v57 = vsel %vm927_vm2, %v923_v62, 1326507024  ;;  %vm1190_vm8 = vweird.f32 %v12483_v49  ;;  %v857_v25 = vclz %v11154_v40  ;;  %v875_v19 = vsub.s32 4, %v12882_v38 }
 0x15d   : > { %v935_v11 = vsel %vm925_vm5, %v932_v37, %v934_v35  ;;  %v938_v44 = vsel %vm926_vm6, %v920_v63, %v937_v57  ;;  %v1204_v29 = vand.u32 2139095040, %v12903_v10  ;;  %v931_v14 = vsel %vm925_vm5, %v928_v5, %v930_v43 }
 0x15e   : > { %v939_v6 = vsel %vm925_vm5, %v936_v41, %v938_v44  ;;  %v12919_v18 = vmul.u32.u64.low %v12900_v32, %v935_v11  ;;  %v12920_v26 = vmul.u32.u64.high %v12900_v32, %v935_v11, %v12919_v18  ;;  %v11155_v12 = vadd.s32 4294967294, %v857_v25 }
 0x15f   : > { %v12926_v39 = vmul.u32.u64.low %v12900_v32, %v939_v6  ;;  %v12927_v0 = vmul.u32.u64.high %v12900_v32, %v939_v6, %v12926_v39  ;;  %v11880_v7 = vpop.eup %11879  ;;  %vm6398_vm9 = vcmp.lt.s32.totalorder %v6397_v31, 2  ;;  %vm6399_vm10 = vcmp.eq.s32.totalorder %v6397_v31, 0 }
 0x160   : > { %vm6402_vm11 = vcmp.eq.s32.totalorder %v6397_v31, 2  ;;  %v845_v28 = vadd.s32 %v12838_v21, %v12850_v17  ;;  %v11882_v8 = vpop.eup %11881  ;;  %v1197_v1 = vxor.u32 2147483648, %v11880_v7  ;;  %vm11156_vm12 = vcmp.lt.s32.totalorder %v11155_v12, 0 }
 0x161   : > { %v876_v55 = vsel %vm791_vm0, %v875_v19, %v12882_v38  ;;  %v1201_v42 = vand.u32 2147483647, %v12903_v10  ;;  %v1194_v27 = vxor.u32 2147483648, %v11882_v8  ;;  %v860_v63 = vsel %vm11156_vm12, 0, %v11155_v12 }
 0x162   : > { %v947_v62 = vmul.u32 %v12900_v32, %v931_v14  ;;  %v950_v15 = vadd.s32 1, %v12920_v26  ;;  %v1198_v2 = vsel %vm1196_vm3, %v1197_v1, %v11882_v8  ;;  %v6404_v21 = vsel %vm6402_vm11, %v1197_v1, %v11882_v8 }
 0x163   : > { %v861_v17 = vsub.s32 32, %v860_v63  ;;  %v1205_v58 = vshrl.u32 %v1204_v29, 23  ;;  %v1195_v37 = vsel %vm1193_vm4, %v11880_v7, %v1194_v27  ;;  %v6401_v38 = vsel %vm6399_vm10, %v11880_v7, %v1194_v27 }
 0x164   : > { %v862_v13 = vshll.u32 %v12897_v36, %v860_v63  ;;  %v865_v40 = vsub.s32 4294967266, %v860_v63  ;;  %v1199_v32 = vsel %vm1192_vm7, %v1195_v37, %v1198_v2  ;;  %v6405_v41 = vsel %vm6398_vm9, %v6401_v38, %v6404_v21  ;;  %v12970_v2 = vpop.permute.xlu0 %382 }
 0x165   : > { %v863_v5 = vshrl.u32 %v845_v28, %v861_v17  ;;  %vm949_vm13 = vc.u32 %v12927_v0, %v12919_v18  ;;  %v1200_v43 = vsel %vm1190_vm8, nan, %v1199_v32  ;;  %v6406_v35 = vsel %vm1190_vm8, nan, %v6405_v41 }
 0x166   : > { %v866_v57 = vadd.s32 127, %v865_v40  ;;  %v951_v25 = vsel %vm949_vm13, %v950_v15, %v12920_v26  ;;  %5738 = vst [vmem:[%s12696_s30 + $0x28] sm:$0xff] %v1200_v43  ;;  %11550 = vst [vmem:[%s12696_s30 + $0x1b8] sm:$0xff] %v6406_v35  ;;  %vm12957_vm14 = vcmp.le.f32.partialorder %v789_v34, 0.7853982  ;;  %v11169_v31 = vadd.s32 4294967169, %v1205_v58 }
 0x167   : > { %v952_v36 = vadd.s32 %v951_v25, %v947_v62  ;;  %v1304_v19 = vand.u32 2147483647, %v12906_v24  ;;  %v864_v11 = vor.u32 %v863_v5, %v862_v13  ;;  %v878_v49 = vsel %vm12957_vm14, 0, %v876_v55 }
 0x168   : > { %v867_v44 = vshll.u32 %v866_v57, 23  ;;  %v1208_v6 = vand.u32 8388607, %v1201_v42  ;;  %v1211_v29 = vadd.s32 1, %v11169_v31  ;;  %v1307_v12 = vand.u32 2139095040, %v12906_v24 }
 0x169   : > { %v953_v26 = vadd.s32 536870912, %v952_v36  ;;  %v6084_v39 = vadd.s32 3, %v878_v49  ;;  %v1311_v7 = vand.u32 8388607, %v1304_v19  ;;  %v871_v8 = vcvt.s32.f32 %v864_v11 }
 0x16a   : > { %v868_v34 = vor.u32 4788187, %v867_v44  ;;  %vm1212_vm15 = vcmp.gt.s32.totalorder %v1211_v29, 0  ;;  %v1209_v1 = vor.u32 8388608, %v1208_v6  ;;  %v1308_v62 = vshrl.u32 %v1307_v12, 23 }
 0x16b   : > { %v954_v14 = vshrl.u32 %v953_v26, 30  ;;  %v1213_v27 = vsel %vm1212_vm15, %v1211_v29, 0  ;;  %vm894_vm1 = vcmp.lt.s32.totalorder %v12769_v3, 0  ;;  %v12972_v21 = vand.u32 3, %v878_v49 }
 0x16c   : > { %v869_v28 = vand.u32 2147483647, %v868_v34  ;;  %v1215_v55 = vand.u32 31, %v1213_v27  ;;  %v1312_v37 = vor.u32 8388608, %v1311_v7  ;;  %v948_v13 = vadd.s32 %v12919_v18, %v12927_v0 }
 0x16d   : > { %v955_v63 = vshll.u32 %v954_v14, 30  ;;  %v12978_v40 = vand.u32 3, %v6084_v39  ;;  %v12980_v32 = vshll.u32 %v1209_v1, 8  ;;  %v978_v5 = vsub.s32 4, %v954_v14 }
 0x16e   : > { %v872_v15 = vmul.f32 %v871_v8, %v869_v28  ;;  %v1216_v58 = vsub.s32 32, %v1215_v55  ;;  %v11173_v43 = vadd.s32 4294967169, %v1308_v62  ;;  %v12985_v35 = vmul.f32 %v12367_v4, %v12970_v2 }
 0x16f   : > { %v12974_v17 = vsub.s32 %v952_v36, %v955_v63  ;;  %v1214_v11 = vshrl.u32 %v1213_v27, 5  ;;  %v12996_v44 = vshll.u32 %v1312_v37, 8  ;;  %v1218_v49 = vshll.u32 %v17729_v16, %v1215_v55 }
 0x170   : > { %v873_v38 = vxor.u32 2147483648, %v872_v15  ;;  %v1219_v25 = vshrl.u32 %v17730_v61, %v1216_v58  ;;  %v1222_v36 = vshrl.u32 %v17731_v20, %v1216_v58  ;;  %v1225_v18 = vshrl.u32 %v17732_v33, %v1216_v58 }
 0x171   : > { %v958_v41 = vsub.s32 0, %v12974_v17  ;;  %v1221_v6 = vshll.u32 %v17730_v61, %v1215_v55  ;;  %v1224_v26 = vshll.u32 %v17731_v20, %v1215_v55  ;;  %v979_v12 = vsel %vm894_vm1, %v978_v5, %v954_v14 }
 0x172   : > { %v874_v57 = vsel %vm791_vm0, %v873_v38, %v872_v15  ;;  %vm13003_vm0 = vcmp.le.f32.partialorder %v892_v23, 0.7853982  ;;  %v1314_v34 = vadd.s32 1, %v11173_v43  ;;  %v1220_v39 = vor.u32 %v1219_v25, %v1218_v49 }
 0x173   : > { %v877_v0 = vsel %vm12957_vm14, %v12607_v30, %v874_v57  ;;  %v11158_v31 = vmin.u32 %v958_v41, %v12974_v17  ;;  %v1223_v7 = vor.u32 %v1222_v36, %v1221_v6  ;;  %v1226_v28 = vor.u32 %v1225_v18, %v1224_v26 }
 0x174   : > { %11883 = vcosq.f32 %v877_v0  ;;  %v1227_v8 = vshll.u32 %v17732_v33, %v1215_v55  ;;  %v1228_v27 = vshrl.u32 %v17733_v56, %v1216_v58  ;;  %v1230_v63 = vshll.u32 %v17733_v56, %v1215_v55 }
 0x175   : > { %11885 = vsinq.f32 %v877_v0  ;;  %v960_v22 = vclz %v11158_v31  ;;  %v1231_v23 = vshrl.u32 %v17734_v50, %v1216_v58  ;;  %vm887_vm2 = vcmp.eq.s32.totalorder %v12972_v21, 2 }
 0x176   : > { %vm6090_vm3 = vcmp.eq.s32.totalorder %v12978_v40, 2  ;;  %v1217_v62 = vshrl.u32 %v17729_v16, %v1216_v58  ;;  %vm1233_vm4 = vcmp.lt.s32.totalorder %v1214_v11, 1  ;;  %vm1234_vm5 = vcmp.lt.s32.totalorder %v1214_v11, 2 }
 0x177   : > { %v11159_v1 = vadd.s32 4294967294, %v960_v22  ;;  %vm1235_vm6 = vcmp.lt.s32.totalorder %v1214_v11, 3  ;;  %vm884_vm7 = vcmp.eq.s32.totalorder %v12972_v21, 0  ;;  %vm6087_vm9 = vcmp.eq.s32.totalorder %v12978_v40, 0 }
 0x178   : > { %v1229_v14 = vor.u32 %v1228_v27, %v1227_v8  ;;  %v1232_v15 = vor.u32 %v1231_v23, %v1230_v63  ;;  %vm1236_vm10 = vcmp.lt.s32.totalorder %v1214_v11, 4  ;;  %vm883_vm11 = vcmp.lt.s32.totalorder %v12972_v21, 2 }
 0x179   : > { %vm11160_vm8 = vcmp.lt.s32.totalorder %v11159_v1, 0  ;;  %vm6086_vm12 = vcmp.lt.s32.totalorder %v12978_v40, 2  ;;  %v1237_v37 = vsel %vm1233_vm4, %v1217_v62, %v1220_v39  ;;  %v1238_v38 = vsel %vm1236_vm10, %v1226_v28, 2102212464 }
 0x17a   : > { %v963_v55 = vsel %vm11160_vm8, 0, %v11159_v1  ;;  %v1241_v58 = vsel %vm1233_vm4, %v1220_v39, %v1223_v7  ;;  %vm881_vm13 = vweird.f32 %v12607_v30  ;;  %v1239_v43 = vsel %vm1235_vm6, %v1223_v7, %v1238_v38 }
 0x17b   : > { %v964_v41 = vsub.s32 32, %v963_v55  ;;  %v968_v5 = vsub.s32 4294967266, %v963_v55  ;;  %v1245_v57 = vsel %vm1233_vm4, %v1223_v7, %v1226_v28  ;;  %v965_v25 = vshll.u32 %v12974_v17, %v963_v55 }
 0x17c   : > { %v1242_v36 = vsel %vm1236_vm10, %v1229_v14, 920167782  ;;  %v1246_v18 = vsel %vm1236_vm10, %v1232_v15, 1326507024  ;;  %vm1315_vm14 = vcmp.gt.s32.totalorder %v1314_v34, 0  ;;  %v13030_v22 = vsel %vm13003_vm0, 0, %v979_v12 }
 0x17d   : > { %v966_v0 = vshrl.u32 %v948_v13, %v964_v41  ;;  %v969_v31 = vadd.s32 127, %v968_v5  ;;  %v1243_v49 = vsel %vm1235_vm6, %v1226_v28, %v1242_v36  ;;  %v1247_v6 = vsel %vm1235_vm6, %v1229_v14, %v1246_v18 }
 0x17e   : > { %v11884_v26 = vpop.eup %11883  ;;  %v1240_v39 = vsel %vm1234_vm5, %v1237_v37, %v1239_v43  ;;  %v1248_v7 = vsel %vm1234_vm5, %v1245_v57, %v1247_v6  ;;  %v1316_v8 = vsel %vm1315_vm14, %v1314_v34, 0  ;;  %v1244_v13 = vsel %vm1234_vm5, %v1241_v58, %v1243_v49 }
 0x17f   : > { %v11886_v17 = vpop.eup %11885  ;;  %v888_v1 = vxor.u32 2147483648, %v11884_v26  ;;  %v967_v27 = vor.u32 %v966_v0, %v965_v25  ;;  %v970_v63 = vshll.u32 %v969_v31, 23  ;;  %v1318_v14 = vand.u32 31, %v1316_v8 }
 0x180   : > { %v885_v23 = vxor.u32 2147483648, %v11886_v17  ;;  %v13036_v28 = vmul.u32.u64.low %v12980_v32, %v1248_v7  ;;  %v13037_v62 = vmul.u32.u64.high %v12980_v32, %v1248_v7, %v13036_v28  ;;  %v1256_v18 = vmul.u32 %v12980_v32, %v1240_v39 }
 0x181   : > { %v889_v12 = vsel %vm887_vm2, %v888_v1, %v11886_v17  ;;  %v971_v15 = vor.u32 4788187, %v970_v63  ;;  %v974_v55 = vcvt.s32.f32 %v967_v27  ;;  %v6092_v34 = vsel %vm6090_vm3, %v888_v1, %v11886_v17 }
 0x182   : > { %v886_v11 = vsel %vm884_vm7, %v11884_v26, %v885_v23  ;;  %v6089_v37 = vsel %vm6087_vm9, %v11884_v26, %v885_v23  ;;  %v13048_v38 = vmul.u32.u64.low %v12980_v32, %v1244_v13  ;;  %v13049_v58 = vmul.u32.u64.high %v12980_v32, %v1244_v13, %v13048_v38 }
 0x183   : > { %v890_v41 = vsel %vm883_vm11, %v886_v11, %v889_v12  ;;  %v972_v5 = vand.u32 2147483647, %v971_v15  ;;  %v6093_v43 = vsel %vm6086_vm12, %v6089_v37, %v6092_v34  ;;  %v1319_v57 = vsub.s32 32, %v1318_v14 }
 0x184   : > { %v891_v25 = vsel %vm881_vm13, nan, %v890_v41  ;;  %v6094_v36 = vsel %vm881_vm13, nan, %v6093_v43  ;;  %v1317_v0 = vshrl.u32 %v1316_v8, 5  ;;  %vm1258_vm15 = vc.u32 %v13037_v62, %v13048_v38 }
 0x185   : > { %v975_v31 = vmul.f32 %v974_v55, %v972_v5  ;;  %5735 = vst [vmem:[%s12696_s30 + $0x10] sm:$0xff] %v891_v25  ;;  %11547 = vst [vmem:[%s12696_s30 + $0x1a0] sm:$0xff] %v6094_v36  ;;  %v1321_v21 = vshll.u32 %v17729_v16, %v1318_v14  ;;  %v1322_v40 = vshrl.u32 %v17730_v61, %v1319_v57  ;;  %v1259_v49 = vadd.s32 1, %v13049_v58 }
 0x186   : > { %v1324_v6 = vshll.u32 %v17730_v61, %v1318_v14  ;;  %v1325_v30 = vshrl.u32 %v17731_v20, %v1319_v57  ;;  %v1327_v26 = vshll.u32 %v17731_v20, %v1318_v14  ;;  %v1328_v7 = vshrl.u32 %v17732_v33, %v1319_v57 }
 0x187   : > { %v976_v32 = vxor.u32 2147483648, %v975_v31  ;;  %v1323_v39 = vor.u32 %v1322_v40, %v1321_v21  ;;  %v1330_v8 = vshll.u32 %v17732_v33, %v1318_v14  ;;  %v1260_v17 = vsel %vm1258_vm15, %v1259_v49, %v13049_v58 }
 0x188   : > { %v1326_v1 = vor.u32 %v1325_v30, %v1324_v6  ;;  %v1331_v27 = vshrl.u32 %v17733_v56, %v1319_v57  ;;  %v1333_v63 = vshll.u32 %v17733_v56, %v1318_v14  ;;  %v1261_v23 = vadd.s32 %v1260_v17, %v1256_v18 }
 0x189   : > { %v977_v13 = vsel %vm894_vm1, %v976_v32, %v975_v31  ;;  %v1329_v28 = vor.u32 %v1328_v7, %v1327_v26  ;;  %v1334_v12 = vshrl.u32 %v17734_v50, %v1319_v57  ;;  %v6188_v55 = vadd.s32 3, %v13030_v22 }
 0x18a   : > { %v980_v15 = vsel %vm13003_vm0, %v12769_v3, %v977_v13  ;;  %v1332_v34 = vor.u32 %v1331_v27, %v1330_v8  ;;  %v13085_v11 = vadd.f32 %v12985_v35, %v12250_v47  ;;  %v1262_v14 = vadd.s32 536870912, %v1261_v23 }
 0x18b   : > { %11887 = vcosq.f32 %v980_v15  ;;  %v1335_v37 = vor.u32 %v1334_v12, %v1333_v63  ;;  %vm1336_vm2 = vcmp.lt.s32.totalorder %v1317_v0, 1  ;;  %v1320_v58 = vshrl.u32 %v17729_v16, %v1319_v57 }
 0x18c   : > { %11889 = vsinq.f32 %v980_v15  ;;  %vm1339_vm1 = vcmp.lt.s32.totalorder %v1317_v0, 4  ;;  %v1344_v41 = vsel %vm1336_vm2, %v1323_v39, %v1326_v1  ;;  %v1263_v5 = vshrl.u32 %v1262_v14, 30 }
 0x18d   : > { %vm1338_vm3 = vcmp.lt.s32.totalorder %v1317_v0, 3  ;;  %v1341_v29 = vsel %vm1339_vm1, %v1329_v28, 2102212464  ;;  %v1345_v43 = vsel %vm1339_vm1, %v1332_v34, 920167782  ;;  %vm1337_vm0 = vcmp.lt.s32.totalorder %v1317_v0, 2 }
 0x18e   : > { %v1346_v25 = vsel %vm1338_vm3, %v1329_v28, %v1345_v43  ;;  %v1348_v36 = vsel %vm1336_vm2, %v1326_v1, %v1329_v28  ;;  %v1349_v18 = vsel %vm1339_vm1, %v1335_v37, 1326507024  ;;  %v985_v47 = vand.u32 3, %v13030_v22 }
 0x18f   : > { %v1264_v35 = vshll.u32 %v1263_v5, 30  ;;  %v1340_v31 = vsel %vm1336_vm2, %v1320_v58, %v1323_v39  ;;  %v1347_v21 = vsel %vm1337_vm0, %v1344_v41, %v1346_v25  ;;  %v1342_v40 = vsel %vm1338_vm3, %v1326_v1, %v1341_v29 }
 0x190   : > { %v1350_v49 = vsel %vm1338_vm3, %v1332_v34, %v1349_v18  ;;  %v13091_v57 = vmul.u32.u64.low %v12996_v44, %v1347_v21  ;;  %v13092_v6 = vmul.u32.u64.high %v12996_v44, %v1347_v21, %v13091_v57  ;;  %v6189_v30 = vand.u32 3, %v6188_v55 }
 0x191   : > { %v13095_v26 = vsub.s32 %v1261_v23, %v1264_v35  ;;  %v1351_v32 = vsel %vm1337_vm0, %v1348_v36, %v1350_v49  ;;  %vm984_vm4 = vweird.f32 %v12769_v3  ;;  %vm1203_vm5 = vcmp.lt.s32.totalorder %v12903_v10, 0 }
 0x192   : > { %v13101_v22 = vmul.u32.u64.low %v12996_v44, %v1351_v32  ;;  %v13102_v39 = vmul.u32.u64.high %v12996_v44, %v1351_v32, %v13101_v22  ;;  %vm13106_vm6 = vcmp.le.f32.partialorder %v1201_v42, 0.7853982  ;;  %v1343_v17 = vsel %vm1337_vm0, %v1340_v31, %v1342_v40 }
 0x193   : > { %v1267_v8 = vsub.s32 0, %v13095_v26  ;;  %v1410_v1 = vand.u32 2139095040, %v13085_v11  ;;  %vm986_vm7 = vcmp.lt.s32.totalorder %v985_v47, 2  ;;  %vm987_vm8 = vcmp.eq.s32.totalorder %v985_v47, 0 }
 0x194   : > { %vm990_vm9 = vcmp.eq.s32.totalorder %v985_v47, 2  ;;  %v1362_v27 = vadd.s32 1, %v13092_v6  ;;  %vm6190_vm10 = vcmp.lt.s32.totalorder %v6189_v30, 2  ;;  %vm6191_vm11 = vcmp.eq.s32.totalorder %v6189_v30, 0 }
 0x195   : > { %v11888_v63 = vpop.eup %11887  ;;  %v11170_v13 = vmin.u32 %v1267_v8, %v13095_v26  ;;  %v1287_v42 = vsub.s32 4, %v1263_v5  ;;  %vm6194_vm12 = vcmp.eq.s32.totalorder %v6189_v30, 2  ;;  %v1359_v12 = vmul.u32 %v12996_v44, %v1343_v17 }
 0x196   : > { %v11890_v23 = vpop.eup %11889  ;;  %v991_v28 = vxor.u32 2147483648, %v11888_v63  ;;  %vm1361_vm13 = vc.u32 %v13102_v39, %v13091_v57  ;;  %v1411_v34 = vshrl.u32 %v1410_v1, 23  ;;  %v1407_v41 = vand.u32 2147483647, %v13085_v11 }
 0x197   : > { %v988_v0 = vxor.u32 2147483648, %v11890_v23  ;;  %v1269_v15 = vclz %v11170_v13  ;;  %v1363_v55 = vsel %vm1361_vm13, %v1362_v27, %v13092_v6  ;;  %v1288_v25 = vsel %vm1203_vm5, %v1287_v42, %v1263_v5 }
 0x198   : > { %v992_v14 = vsel %vm990_vm9, %v991_v28, %v11890_v23  ;;  %v6196_v37 = vsel %vm6194_vm12, %v991_v28, %v11890_v23  ;;  %v1364_v58 = vadd.s32 %v1363_v55, %v1359_v12  ;;  %v492_v31 = vmul.f32 %v12369_v9, %v12970_v2 }
 0x199   : > { %v989_v29 = vsel %vm987_vm8, %v11888_v63, %v988_v0  ;;  %v6193_v44 = vsel %vm6191_vm11, %v11888_v63, %v988_v0  ;;  %v11171_v43 = vadd.s32 4294967294, %v1269_v15  ;;  %v11177_v49 = vadd.s32 4294967169, %v1411_v34 }
 0x19a   : > { %v993_v36 = vsel %vm986_vm7, %v989_v29, %v992_v14  ;;  %v6197_v18 = vsel %vm6190_vm10, %v6193_v44, %v6196_v37  ;;  %v1365_v35 = vadd.s32 536870912, %v1364_v58  ;;  %v1257_v5 = vadd.s32 %v13048_v38, %v13037_v62 }
 0x19b   : > { %v994_v21 = vsel %vm984_vm4, nan, %v993_v36  ;;  %v6198_v40 = vsel %vm984_vm4, nan, %v6197_v18  ;;  %vm11172_vm14 = vcmp.lt.s32.totalorder %v11171_v43, 0  ;;  %v1290_v6 = vsel %vm13106_vm6, 0, %v1288_v25 }
 0x19c   : > { %5736 = vst [vmem:[%s12696_s30 + $0x18] sm:$0xff] %v994_v21  ;;  %11548 = vst [vmem:[%s12696_s30 + $0x1a8] sm:$0xff] %v6198_v40  ;;  %v1272_v47 = vsel %vm11172_vm14, 0, %v11171_v43  ;;  %v1366_v30 = vshrl.u32 %v1365_v35, 30  ;;  %v1414_v22 = vand.u32 8388607, %v1407_v41  ;;  %v13145_v38 = vadd.f32 %v492_v31, %v12253_v48 }
 0x19d   : > { %v1273_v32 = vsub.s32 32, %v1272_v47  ;;  %v1277_v2 = vsub.s32 4294967266, %v1272_v47  ;;  %v1417_v8 = vadd.s32 1, %v11177_v49  ;;  %v1274_v17 = vshll.u32 %v13095_v26, %v1272_v47 }
 0x19e   : > { %v1367_v3 = vshll.u32 %v1366_v30, 30  ;;  %v6500_v62 = vadd.s32 3, %v1290_v6  ;;  %v1415_v28 = vor.u32 8388608, %v1414_v22  ;;  %v1390_v0 = vsub.s32 4, %v1366_v30 }
 0x19f   : > { %v1275_v1 = vshrl.u32 %v1257_v5, %v1273_v32  ;;  %v1278_v27 = vadd.s32 127, %v1277_v2  ;;  %vm1418_vm15 = vcmp.gt.s32.totalorder %v1417_v8, 0  ;;  %v13150_v34 = vand.u32 3, %v1290_v6 }
 0x1a0   : > { %v13142_v63 = vsub.s32 %v1364_v58, %v1367_v3  ;;  %v1419_v13 = vsel %vm1418_vm15, %v1417_v8, 0  ;;  %vm1306_vm2 = vcmp.lt.s32.totalorder %v12906_v24, 0  ;;  %v1360_v14 = vadd.s32 %v13091_v57, %v13102_v39 }
 0x1a1   : > { %v1276_v42 = vor.u32 %v1275_v1, %v1274_v17  ;;  %v1279_v23 = vshll.u32 %v1278_v27, 23  ;;  %v13148_v15 = vshrl.u32 %v1419_v13, 5  ;;  %v1421_v55 = vand.u32 31, %v1419_v13 }
 0x1a2   : > { %v1370_v12 = vsub.s32 0, %v13142_v63  ;;  %v13156_v37 = vand.u32 3, %v6500_v62  ;;  %v1510_v58 = vand.u32 2147483647, %v13145_v38  ;;  %v13159_v25 = vshll.u32 %v1415_v28, 8 }
 0x1a3   : > { %v1280_v26 = vor.u32 4788187, %v1279_v23  ;;  %v1283_v44 = vcvt.s32.f32 %v1276_v42  ;;  %v1422_v43 = vsub.s32 32, %v1421_v55  ;;  %v1391_v18 = vsel %vm1306_vm2, %v1390_v0, %v1366_v30 }
 0x1a4   : > { %v11174_v48 = vmin.u32 %v1370_v12, %v13142_v63  ;;  %vm1439_vm1 = vcmp.lt.s32.totalorder %v13148_v15, 1  ;;  %v1513_v35 = vand.u32 2139095040, %v13145_v38  ;;  %v1424_v39 = vshll.u32 %v17729_v16, %v1421_v55 }
 0x1a5   : > { %v1281_v29 = vand.u32 2147483647, %v1280_v26  ;;  %v1427_v31 = vshll.u32 %v17730_v61, %v1421_v55  ;;  %v1430_v21 = vshll.u32 %v17731_v20, %v1421_v55  ;;  %vm13170_vm3 = vcmp.le.f32.partialorder %v1304_v19, 0.7853982 }
 0x1a6   : > { %v1372_v36 = vclz %v11174_v48  ;;  %v1425_v5 = vshrl.u32 %v17730_v61, %v1422_v43  ;;  %v1428_v47 = vshrl.u32 %v17731_v20, %v1422_v43  ;;  %v1433_v6 = vshll.u32 %v17732_v33, %v1421_v55 }
 0x1a7   : > { %v1284_v57 = vmul.f32 %v1283_v44, %v1281_v29  ;;  %v1431_v32 = vshrl.u32 %v17732_v33, %v1422_v43  ;;  %v1434_v2 = vshrl.u32 %v17733_v56, %v1422_v43  ;;  %v1436_v22 = vshll.u32 %v17733_v56, %v1421_v55 }
 0x1a8   : > { %v11175_v49 = vadd.s32 4294967294, %v1372_v36  ;;  %v1426_v8 = vor.u32 %v1425_v5, %v1424_v39  ;;  %v1429_v19 = vor.u32 %v1428_v47, %v1427_v31  ;;  %v1437_v3 = vshrl.u32 %v17734_v50, %v1422_v43 }
 0x1a9   : > { %v1285_v30 = vxor.u32 2147483648, %v1284_v57  ;;  %v1432_v27 = vor.u32 %v1431_v32, %v1430_v21  ;;  %v1435_v62 = vor.u32 %v1434_v2, %v1433_v6  ;;  %vm1440_vm4 = vcmp.lt.s32.totalorder %v13148_v15, 2 }
 0x1aa   : > { %vm11176_vm0 = vcmp.lt.s32.totalorder %v11175_v49, 0  ;;  %v1423_v12 = vshrl.u32 %v17729_v16, %v1422_v43  ;;  %v1438_v0 = vor.u32 %v1437_v3, %v1436_v22  ;;  %vm1441_vm7 = vcmp.lt.s32.totalorder %v13148_v15, 3 }
 0x1ab   : > { %v1286_v17 = vsel %vm1203_vm5, %v1285_v30, %v1284_v57  ;;  %v1375_v1 = vsel %vm11176_vm0, 0, %v11175_v49  ;;  %vm1442_vm5 = vcmp.lt.s32.totalorder %v13148_v15, 4  ;;  %v1447_v7 = vsel %vm1439_vm1, %v1426_v8, %v1429_v19 }
 0x1ac   : > { %v1289_v13 = vsel %vm13106_vm6, %v12903_v10, %v1286_v17  ;;  %v1376_v42 = vsub.s32 32, %v1375_v1  ;;  %v1380_v23 = vsub.s32 4294967266, %v1375_v1  ;;  %v1377_v28 = vshll.u32 %v13142_v63, %v1375_v1 }
 0x1ad   : > { %11891 = vcosq.f32 %v1289_v13  ;;  %v1444_v48 = vsel %vm1442_vm5, %v1432_v27, 2102212464  ;;  %v1448_v29 = vsel %vm1442_vm5, %v1435_v62, 920167782  ;;  %v1451_v63 = vsel %vm1439_vm1, %v1429_v19, %v1432_v27 }
 0x1ae   : > { %11893 = vsinq.f32 %v1289_v13  ;;  %v1378_v55 = vshrl.u32 %v1360_v14, %v1376_v42  ;;  %v1381_v26 = vadd.s32 127, %v1380_v23  ;;  %v1449_v57 = vsel %vm1441_vm7, %v1432_v27, %v1448_v29 }
 0x1af   : > { %v1393_v43 = vsel %vm13170_vm3, 0, %v1391_v18  ;;  %v1450_v14 = vsel %vm1440_vm4, %v1447_v7, %v1449_v57  ;;  %v1452_v39 = vsel %vm1442_vm5, %v1438_v0, 1326507024  ;;  %v1514_v31 = vshrl.u32 %v1513_v35, 23 }
 0x1b0   : > { %v1379_v44 = vor.u32 %v1378_v55, %v1377_v28  ;;  %v1382_v36 = vshll.u32 %v1381_v26, 23  ;;  %v1443_v49 = vsel %vm1439_vm1, %v1423_v12, %v1426_v8  ;;  %v1445_v5 = vsel %vm1441_vm7, %v1429_v19, %v1444_v48 }
 0x1b1   : > { %v1453_v47 = vsel %vm1441_vm7, %v1435_v62, %v1452_v39  ;;  %vm1295_vm6 = vcmp.lt.s32.totalorder %v13150_v34, 2  ;;  %v13205_v30 = vmul.u32.u64.low %v13159_v25, %v1450_v14  ;;  %v13206_v32 = vmul.u32.u64.high %v13159_v25, %v1450_v14, %v13205_v30 }
 0x1b2   : > { %v1383_v21 = vor.u32 4788187, %v1382_v36  ;;  %v1454_v6 = vsel %vm1440_vm4, %v1451_v63, %v1453_v47  ;;  %v11181_v18 = vadd.s32 4294967169, %v1514_v31  ;;  %vm1293_vm8 = vweird.f32 %v12903_v10  ;;  %v387_v31 = vpop.permute.xlu1 %386 }
 0x1b3   : > { %v1386_v2 = vcvt.s32.f32 %v1379_v44  ;;  %v13211_v22 = vmul.u32.u64.low %v13159_v25, %v1454_v6  ;;  %v13212_v8 = vmul.u32.u64.high %v13159_v25, %v1454_v6, %v13211_v22  ;;  %vm1296_vm9 = vcmp.eq.s32.totalorder %v13150_v34, 0 }
 0x1b4   : > { %v1384_v35 = vand.u32 2147483647, %v1383_v21  ;;  %vm1299_vm10 = vcmp.eq.s32.totalorder %v13150_v34, 2  ;;  %v1446_v19 = vsel %vm1440_vm4, %v1443_v49, %v1445_v5  ;;  %v1520_v3 = vadd.s32 1, %v11181_v18 }
 0x1b5   : > { %vm6502_vm11 = vcmp.lt.s32.totalorder %v13156_v37, 2  ;;  %vm6503_vm12 = vcmp.eq.s32.totalorder %v13156_v37, 0  ;;  %vm6506_vm13 = vcmp.eq.s32.totalorder %v13156_v37, 2  ;;  %v6604_v27 = vadd.s32 3, %v1393_v43 }
 0x1b6   : > { %v1387_v17 = vmul.f32 %v1386_v2, %v1384_v35  ;;  %v1465_v62 = vadd.s32 1, %v13206_v32  ;;  %v1517_v13 = vand.u32 8388607, %v1510_v58  ;;  %vm1521_vm14 = vcmp.gt.s32.totalorder %v1520_v3, 0 }
 0x1b7   : > { %v11892_v1 = vpop.eup %11891  ;;  %v1462_v28 = vmul.u32 %v13159_v25, %v1446_v19  ;;  %vm1464_vm15 = vc.u32 %v13212_v8, %v13205_v30  ;;  %v13227_v0 = vand.u32 3, %v1393_v43  ;;  %v1522_v26 = vsel %vm1521_vm14, %v1520_v3, 0 }
 0x1b8   : > { %v11894_v42 = vpop.eup %11893  ;;  %v1300_v23 = vxor.u32 2147483648, %v11892_v1  ;;  %v1388_v15 = vxor.u32 2147483648, %v1387_v17  ;;  %v1466_v55 = vsel %vm1464_vm15, %v1465_v62, %v13206_v32  ;;  %v13243_v63 = vand.u32 3, %v6604_v27 }
 0x1b9   : > { %v1297_v12 = vxor.u32 2147483648, %v11894_v42  ;;  %v1467_v25 = vadd.s32 %v1466_v55, %v1462_v28  ;;  %v1524_v49 = vand.u32 31, %v1522_v26  ;;  %v1518_v34 = vor.u32 8388608, %v1517_v13 }
 0x1ba   : > { %v1301_v48 = vsel %vm1299_vm10, %v1300_v23, %v11894_v42  ;;  %v1389_v7 = vsel %vm1306_vm2, %v1388_v15, %v1387_v17  ;;  %v6508_v29 = vsel %vm6506_vm13, %v1300_v23, %v11894_v42  ;;  %v493_v6 = vmul.f32 %v12367_v4, %v387_v31 }
 0x1bb   : > { %v1298_v44 = vsel %vm1296_vm9, %v11892_v1, %v1297_v12  ;;  %v1392_v36 = vsel %vm13170_vm3, %v12906_v24, %v1389_v7  ;;  %v6505_v57 = vsel %vm6503_vm12, %v11892_v1, %v1297_v12  ;;  %v1468_v39 = vadd.s32 536870912, %v1467_v25 }
 0x1bc   : > { %v1302_v43 = vsel %vm1295_vm6, %v1298_v44, %v1301_v48  ;;  %11895 = vcosq.f32 %v1392_v36  ;;  %v6509_v14 = vsel %vm6502_vm11, %v6505_v57, %v6508_v29  ;;  %v1525_v47 = vsub.s32 32, %v1524_v49 }
 0x1bd   : > { %v1303_v21 = vsel %vm1293_vm8, nan, %v1302_v43  ;;  %11897 = vsinq.f32 %v1392_v36  ;;  %v6510_v40 = vsel %vm1293_vm8, nan, %v6509_v14  ;;  %v13255_v5 = vshrl.u32 %v1468_v39, 30 }
 0x1be   : > { %5739 = vst [vmem:[%s12696_s30 + $0x30] sm:$0xff] %v1303_v21  ;;  %11551 = vst [vmem:[%s12696_s30 + $0x1c0] sm:$0xff] %v6510_v40  ;;  %vm1402_vm2 = vcmp.eq.s32.totalorder %v13227_v0, 2  ;;  %v13260_v32 = vshrl.u32 %v1522_v26, 5  ;;  %v1527_v18 = vshll.u32 %v17729_v16, %v1524_v49  ;;  %v1530_v10 = vshll.u32 %v17730_v61, %v1524_v49 }
 0x1bf   : > { %v1470_v37 = vshll.u32 %v13255_v5, 30  ;;  %vm1399_vm1 = vcmp.eq.s32.totalorder %v13227_v0, 0  ;;  %vm6607_vm3 = vcmp.eq.s32.totalorder %v13243_v63, 0  ;;  %v1528_v35 = vshrl.u32 %v17730_v61, %v1525_v47 }
 0x1c0   : > { %v1531_v2 = vshrl.u32 %v17731_v20, %v1525_v47  ;;  %v1533_v22 = vshll.u32 %v17731_v20, %v1524_v49  ;;  %v1534_v19 = vshrl.u32 %v17732_v33, %v1525_v47  ;;  %vm1398_vm0 = vcmp.lt.s32.totalorder %v13227_v0, 2 }
 0x1c1   : > { %vm6606_vm4 = vcmp.lt.s32.totalorder %v13243_v63, 2  ;;  %v13272_v3 = vsub.s32 %v1467_v25, %v1470_v37  ;;  %v1536_v17 = vshll.u32 %v17732_v33, %v1524_v49  ;;  %v1537_v1 = vshrl.u32 %v17733_v56, %v1525_v47 }
 0x1c2   : > { %v1540_v27 = vshrl.u32 %v17734_v50, %v1525_v47  ;;  %vm1396_vm5 = vweird.f32 %v12906_v24  ;;  %vm6610_vm7 = vcmp.eq.s32.totalorder %v13243_v63, 2  ;;  %v1529_v62 = vor.u32 %v1528_v35, %v1527_v18 }
 0x1c3   : > { %v1539_v13 = vshll.u32 %v17733_v56, %v1524_v49  ;;  %v494_v42 = vmul.f32 %v12369_v9, %v387_v31  ;;  %v1473_v23 = vsub.s32 0, %v13272_v3  ;;  %v1532_v15 = vor.u32 %v1531_v2, %v1530_v10 }
 0x1c4   : > { %v1535_v28 = vor.u32 %v1534_v19, %v1533_v22  ;;  %v1538_v12 = vor.u32 %v1537_v1, %v1536_v17  ;;  %v1463_v55 = vadd.s32 %v13205_v30, %v13212_v8  ;;  %vm1542_vm6 = vcmp.lt.s32.totalorder %v13260_v32, 1 }
 0x1c5   : > { %v13285_v26 = vshll.u32 %v1518_v34, 8  ;;  %v13288_v48 = vadd.f32 %v493_v6, %v12244_v45  ;;  %v11178_v29 = vmin.u32 %v1473_v23, %v13272_v3  ;;  %v1541_v25 = vor.u32 %v1540_v27, %v1539_v13 }
 0x1c6   : > { %v11896_v7 = vpop.eup %11895  ;;  %vm1543_vm8 = vcmp.lt.s32.totalorder %v13260_v32, 2  ;;  %vm1545_vm9 = vcmp.lt.s32.totalorder %v13260_v32, 4  ;;  %v1526_v57 = vshrl.u32 %v17729_v16, %v1525_v47  ;;  %vm1544_vm10 = vcmp.lt.s32.totalorder %v13260_v32, 3 }
 0x1c7   : > { %v11898_v44 = vpop.eup %11897  ;;  %v1403_v36 = vxor.u32 2147483648, %v11896_v7  ;;  %v1551_v30 = vsel %vm1545_vm9, %v1538_v12, 920167782  ;;  %v1475_v45 = vclz %v11178_v29  ;;  %v1550_v43 = vsel %vm1542_vm6, %v1529_v62, %v1532_v15 }
 0x1c8   : > { %v1400_v8 = vxor.u32 2147483648, %v11898_v44  ;;  %v1552_v14 = vsel %vm1544_vm10, %v1535_v28, %v1551_v30  ;;  %v1547_v21 = vsel %vm1545_vm9, %v1535_v28, 2102212464  ;;  %v1554_v40 = vsel %vm1542_vm6, %v1532_v15, %v1535_v28 }
 0x1c9   : > { %v1404_v39 = vsel %vm1402_vm2, %v1403_v36, %v11898_v44  ;;  %v6612_v31 = vsel %vm6610_vm7, %v1403_v36, %v11898_v44  ;;  %v11179_v47 = vadd.s32 4294967294, %v1475_v45  ;;  %v1555_v6 = vsel %vm1545_vm9, %v1541_v25, 1326507024 }
 0x1ca   : > { %v1401_v49 = vsel %vm1399_vm1, %v11896_v7, %v1400_v8  ;;  %v6609_v34 = vsel %vm6607_vm3, %v11896_v7, %v1400_v8  ;;  %v1553_v10 = vsel %vm1543_vm8, %v1550_v43, %v1552_v14  ;;  %v1556_v35 = vsel %vm1544_vm10, %v1538_v12, %v1555_v6 }
 0x1cb   : > { %v1405_v37 = vsel %vm1398_vm0, %v1401_v49, %v1404_v39  ;;  %v6613_v18 = vsel %vm6606_vm4, %v6609_v34, %v6612_v31  ;;  %vm11180_vm11 = vcmp.lt.s32.totalorder %v11179_v47, 0  ;;  %v1557_v0 = vsel %vm1543_vm8, %v1554_v40, %v1556_v35 }
 0x1cc   : > { %v1406_v2 = vsel %vm1396_vm5, nan, %v1405_v37  ;;  %v6614_v22 = vsel %vm1396_vm5, nan, %v6613_v18  ;;  %v1478_v63 = vsel %vm11180_vm11, 0, %v11179_v47  ;;  %v1493_v19 = vsub.s32 4, %v13255_v5  ;;  %v13369_v47 = vpop.permute.xlu0 %390 }
 0x1cd   : > { %5740 = vst [vmem:[%s12696_s30 + $0x38] sm:$0xff] %v1406_v2  ;;  %11552 = vst [vmem:[%s12696_s30 + $0x1c8] sm:$0xff] %v6614_v22  ;;  %v13333_v17 = vmul.u32.u64.low %v13285_v26, %v1557_v0  ;;  %v13334_v1 = vmul.u32.u64.high %v13285_v26, %v1557_v0, %v13333_v17  ;;  %v1479_v27 = vsub.s32 32, %v1478_v63  ;;  %v1483_v13 = vsub.s32 4294967266, %v1478_v63 }
 0x1ce   : > { %v1546_v23 = vsel %vm1542_vm6, %v1526_v57, %v1529_v62  ;;  %v1548_v24 = vsel %vm1544_vm10, %v1532_v15, %v1547_v21  ;;  %vm1409_vm12 = vcmp.lt.s32.totalorder %v13085_v11, 0  ;;  %v13346_v7 = vadd.f32 %v494_v42, %v12247_v46 }
 0x1cf   : > { %v13342_v28 = vmul.u32.u64.low %v13285_v26, %v1553_v10  ;;  %v13343_v12 = vmul.u32.u64.high %v13285_v26, %v1553_v10, %v13342_v28  ;;  %v1480_v29 = vshll.u32 %v13272_v3, %v1478_v63  ;;  %v1481_v25 = vshrl.u32 %v1463_v55, %v1479_v27 }
 0x1d0   : > { %v1484_v44 = vadd.s32 127, %v1483_v13  ;;  %v1616_v36 = vand.u32 2139095040, %v13288_v48  ;;  %v1494_v62 = vsel %vm1409_vm12, %v1493_v19, %v13255_v5  ;;  %v1549_v15 = vsel %vm1543_vm8, %v1546_v23, %v1548_v24 }
 0x1d1   : > { %v1482_v57 = vor.u32 %v1481_v25, %v1480_v29  ;;  %vm1567_vm13 = vc.u32 %v13334_v1, %v13342_v28  ;;  %v1568_v46 = vadd.s32 1, %v13343_v12  ;;  %v1719_v3 = vand.u32 2139095040, %v13346_v7 }
 0x1d2   : > { %v1485_v30 = vshll.u32 %v1484_v44, 23  ;;  %v1617_v8 = vshrl.u32 %v1616_v36, 23  ;;  %vm13360_vm14 = vcmp.le.f32.partialorder %v1407_v41, 0.7853982  ;;  %v1565_v5 = vmul.u32 %v13285_v26, %v1549_v15 }
 0x1d3   : > { %v1489_v45 = vcvt.s32.f32 %v1482_v57  ;;  %v1496_v43 = vsel %vm13360_vm14, 0, %v1494_v62  ;;  %v1569_v14 = vsel %vm1567_vm13, %v1568_v46, %v13343_v12  ;;  %v1613_v39 = vand.u32 2147483647, %v13288_v48 }
 0x1d4   : > { %v1486_v55 = vor.u32 4788187, %v1485_v30  ;;  %v11185_v32 = vadd.s32 4294967169, %v1617_v8  ;;  %v1570_v21 = vadd.s32 %v1569_v14, %v1565_v5  ;;  %v1720_v49 = vshrl.u32 %v1719_v3, 23 }
 0x1d5   : > { %v6708_v6 = vadd.s32 3, %v1496_v43  ;;  %v1620_v26 = vand.u32 8388607, %v1613_v39  ;;  %v1716_v18 = vand.u32 2147483647, %v13346_v7  ;;  %v495_v0 = vmul.f32 %v12367_v4, %v13369_v47 }
 0x1d6   : > { %v1487_v31 = vand.u32 2147483647, %v1486_v55  ;;  %v1623_v40 = vadd.s32 1, %v11185_v32  ;;  %v1571_v34 = vadd.s32 536870912, %v1570_v21  ;;  %v11189_v22 = vadd.s32 4294967169, %v1720_v49 }
 0x1d7   : > { %v13378_v19 = vand.u32 3, %v1496_v43  ;;  %vm1512_vm2 = vcmp.lt.s32.totalorder %v13145_v38, 0  ;;  %v13385_v23 = vadd.s32 %v13342_v28, %v13334_v1  ;;  %v13387_v24 = vand.u32 3, %v6708_v6 }
 0x1d8   : > { %v1490_v41 = vmul.f32 %v1489_v45, %v1487_v31  ;;  %vm1624_vm15 = vcmp.gt.s32.totalorder %v1623_v40, 0  ;;  %v1572_v35 = vshrl.u32 %v1571_v34, 30  ;;  %v1621_v12 = vor.u32 8388608, %v1620_v26 }
 0x1d9   : > { %v1625_v37 = vsel %vm1624_vm15, %v1623_v40, 0  ;;  %v13393_v25 = vand.u32 8388607, %v1716_v18  ;;  %v13395_v44 = vadd.s32 1, %v11189_v22  ;;  %vm1505_vm1 = vcmp.eq.s32.totalorder %v13378_v19, 2 }
 0x1da   : > { %v1491_v10 = vxor.u32 2147483648, %v1490_v41  ;;  %v1627_v2 = vand.u32 31, %v1625_v37  ;;  %v1573_v17 = vshll.u32 %v1572_v35, 30  ;;  %v13397_v36 = vshrl.u32 %v1625_v37, 5 }
 0x1db   : > { %v1596_v15 = vsub.s32 4, %v1572_v35  ;;  %vm6714_vm3 = vcmp.eq.s32.totalorder %v13387_v24, 2  ;;  %v13411_v32 = vshll.u32 %v1621_v12, 8  ;;  %v1724_v45 = vor.u32 8388608, %v13393_v25 }
 0x1dc   : > { %v1492_v63 = vsel %vm1409_vm12, %v1491_v10, %v1490_v41  ;;  %v1628_v27 = vsub.s32 32, %v1627_v2  ;;  %v13389_v29 = vsub.s32 %v1570_v21, %v1573_v17  ;;  %v1630_v57 = vshll.u32 %v17729_v16, %v1627_v2 }
 0x1dd   : > { %v1495_v13 = vsel %vm13360_vm14, %v13085_v11, %v1492_v63  ;;  %v1633_v8 = vshll.u32 %v17730_v61, %v1627_v2  ;;  %v1636_v46 = vshll.u32 %v17731_v20, %v1627_v2  ;;  %v1639_v3 = vshll.u32 %v17732_v33, %v1627_v2 }
 0x1de   : > { %11899 = vcosq.f32 %v1495_v13  ;;  %v1631_v62 = vshrl.u32 %v17730_v61, %v1628_v27  ;;  %v1634_v1 = vshrl.u32 %v17731_v20, %v1628_v27  ;;  %v1576_v28 = vsub.s32 0, %v13389_v29 }
 0x1df   : > { %11901 = vsinq.f32 %v1495_v13  ;;  %v1637_v30 = vshrl.u32 %v17732_v33, %v1628_v27  ;;  %v1640_v42 = vshrl.u32 %v17733_v56, %v1628_v27  ;;  %vm1502_vm0 = vcmp.eq.s32.totalorder %v13378_v19, 0 }
 0x1e0   : > { %v11182_v55 = vmin.u32 %v1576_v28, %v13389_v29  ;;  %v1632_v5 = vor.u32 %v1631_v62, %v1630_v57  ;;  %vm6711_vm4 = vcmp.eq.s32.totalorder %v13387_v24, 0  ;;  %v1635_v43 = vor.u32 %v1634_v1, %v1633_v8 }
 0x1e1   : > { %v1638_v14 = vor.u32 %v1637_v30, %v1636_v46  ;;  %v1641_v31 = vor.u32 %v1640_v42, %v1639_v3  ;;  %v13417_v21 = vadd.f32 %v495_v0, %v12262_v53  ;;  %vm1501_vm5 = vcmp.lt.s32.totalorder %v13378_v19, 2 }
 0x1e2   : > { %v1578_v40 = vclz %v11182_v55  ;;  %vm6710_vm7 = vcmp.lt.s32.totalorder %v13387_v24, 2  ;;  %v1629_v49 = vshrl.u32 %v17729_v16, %v1628_v27  ;;  %v1642_v41 = vshll.u32 %v17733_v56, %v1627_v2 }
 0x1e3   : > { %v1643_v34 = vshrl.u32 %v17734_v50, %v1628_v27  ;;  %vm1499_vm6 = vweird.f32 %v13085_v11  ;;  %v1597_v6 = vsel %vm1512_vm2, %v1596_v15, %v1572_v35  ;;  %vm1645_vm8 = vcmp.lt.s32.totalorder %v13397_v36, 1 }
 0x1e4   : > { %vm1646_vm9 = vcmp.lt.s32.totalorder %v13397_v36, 2  ;;  %vm1727_vm10 = vcmp.gt.s32.totalorder %v13395_v44, 0  ;;  %v11183_v53 = vadd.s32 4294967294, %v1578_v40  ;;  %vm1648_vm11 = vcmp.lt.s32.totalorder %v13397_v36, 4 }
 0x1e5   : > { %v1644_v26 = vor.u32 %v1643_v34, %v1642_v41  ;;  %v1649_v37 = vsel %vm1645_vm8, %v1629_v49, %v1632_v5  ;;  %vm1647_vm12 = vcmp.lt.s32.totalorder %v13397_v36, 3  ;;  %v1650_v10 = vsel %vm1648_vm11, %v1638_v14, 2102212464 }
 0x1e6   : > { %v1653_v2 = vsel %vm1645_vm8, %v1632_v5, %v1635_v43  ;;  %v1654_v35 = vsel %vm1648_vm11, %v1641_v31, 920167782  ;;  %vm11184_vm13 = vcmp.lt.s32.totalorder %v11183_v53, 0  ;;  %v1651_v0 = vsel %vm1647_vm12, %v1635_v43, %v1650_v10 }
 0x1e7   : > { %v1655_v63 = vsel %vm1647_vm12, %v1638_v14, %v1654_v35  ;;  %v1658_v17 = vsel %vm1648_vm11, %v1644_v26, 1326507024  ;;  %v1581_v12 = vsel %vm11184_vm13, 0, %v11183_v53  ;;  %v1652_v62 = vsel %vm1646_vm9, %v1649_v37, %v1651_v0 }
 0x1e8   : > { %v11900_v22 = vpop.eup %11899  ;;  %v1657_v1 = vsel %vm1645_vm8, %v1635_v43, %v1638_v14  ;;  %v1582_v15 = vsub.s32 32, %v1581_v12  ;;  %v1586_v57 = vsub.s32 4294967266, %v1581_v12  ;;  %v1656_v30 = vsel %vm1646_vm9, %v1653_v2, %v1655_v63 }
 0x1e9   : > { %v11902_v27 = vpop.eup %11901  ;;  %v1506_v13 = vxor.u32 2147483648, %v11900_v22  ;;  %v1583_v46 = vshll.u32 %v13389_v29, %v1581_v12  ;;  %v1659_v42 = vsel %vm1647_vm12, %v1641_v31, %v1658_v17  ;;  %v1728_v31 = vsel %vm1727_vm10, %v13395_v44, 0 }
 0x1ea   : > { %v1503_v28 = vxor.u32 2147483648, %v11902_v27  ;;  %v1584_v5 = vshrl.u32 %v13385_v23, %v1582_v15  ;;  %v1587_v43 = vadd.s32 127, %v1586_v57  ;;  %v1660_v49 = vsel %vm1646_vm9, %v1657_v1, %v1659_v42 }
 0x1eb   : > { %v1507_v8 = vsel %vm1505_vm1, %v1506_v13, %v11902_v27  ;;  %v6716_v3 = vsel %vm6714_vm3, %v1506_v13, %v11902_v27  ;;  %v13474_v19 = vmul.u32.u64.low %v13411_v32, %v1660_v49  ;;  %v13475_v24 = vmul.u32.u64.high %v13411_v32, %v1660_v49, %v13474_v19 }
 0x1ec   : > { %v1504_v55 = vsel %vm1502_vm0, %v11900_v22, %v1503_v28  ;;  %v6713_v14 = vsel %vm6711_vm4, %v11900_v22, %v1503_v28  ;;  %v1585_v41 = vor.u32 %v1584_v5, %v1583_v46  ;;  %v1588_v34 = vshll.u32 %v1587_v43, 23 }
 0x1ed   : > { %v1508_v40 = vsel %vm1501_vm5, %v1504_v55, %v1507_v8  ;;  %v6717_v29 = vsel %vm6710_vm7, %v6713_v14, %v6716_v3  ;;  %v13478_v36 = vmul.u32.u64.low %v13411_v32, %v1656_v30  ;;  %v13479_v26 = vmul.u32.u64.high %v13411_v32, %v1656_v30, %v13478_v36 }
 0x1ee   : > { %v1509_v23 = vsel %vm1499_vm6, nan, %v1508_v40  ;;  %v6718_v53 = vsel %vm1499_vm6, nan, %v6717_v29  ;;  %vm13484_vm14 = vcmp.le.f32.partialorder %v1510_v58, 0.7853982  ;;  %v1589_v37 = vor.u32 4788187, %v1588_v34 }
 0x1ef   : > { %5741 = vst [vmem:[%s12696_s30 + $0x40] sm:$0xff] %v1509_v23  ;;  %11553 = vst [vmem:[%s12696_s30 + $0x1d0] sm:$0xff] %v6718_v53  ;;  %v1730_v11 = vand.u32 31, %v1728_v31  ;;  %v1599_v10 = vsel %vm13484_vm14, 0, %v1597_v6  ;;  %v1668_v2 = vmul.u32 %v13411_v32, %v1652_v62  ;;  %v13493_v35 = vshll.u32 %v1724_v45, 8 }
 0x1f0   : > { %v1822_v22 = vand.u32 2139095040, %v13417_v21  ;;  %v1590_v0 = vand.u32 2147483647, %v1589_v37  ;;  %v1592_v63 = vcvt.s32.f32 %v1585_v41  ;;  %v1729_v17 = vshrl.u32 %v1728_v31, 5 }
 0x1f1   : > { %v1731_v58 = vsub.s32 32, %v1730_v11  ;;  %vm1670_vm15 = vc.u32 %v13475_v24, %v13478_v36  ;;  %v1671_v27 = vadd.s32 1, %v13479_v26  ;;  %v1733_v13 = vshll.u32 %v17729_v16, %v1730_v11 }
 0x1f2   : > { %v1736_v6 = vshll.u32 %v17730_v61, %v1730_v11  ;;  %v1593_v32 = vmul.f32 %v1592_v63, %v1590_v0  ;;  %v1739_v12 = vshll.u32 %v17731_v20, %v1730_v11  ;;  %v1742_v28 = vshll.u32 %v17732_v33, %v1730_v11 }
 0x1f3   : > { %v1734_v25 = vshrl.u32 %v17730_v61, %v1731_v58  ;;  %v1737_v45 = vshrl.u32 %v17731_v20, %v1731_v58  ;;  %v1672_v62 = vsel %vm1670_vm15, %v1671_v27, %v13479_v26  ;;  %v1740_v1 = vshrl.u32 %v17732_v33, %v1731_v58 }
 0x1f4   : > { %v1743_v15 = vshrl.u32 %v17733_v56, %v1731_v58  ;;  %v1594_v57 = vxor.u32 2147483648, %v1593_v32  ;;  %v1673_v30 = vadd.s32 %v1672_v62, %v1668_v2  ;;  %v1745_v55 = vshll.u32 %v17733_v56, %v1730_v11 }
 0x1f5   : > { %v1735_v8 = vor.u32 %v1734_v25, %v1733_v13  ;;  %v1738_v46 = vor.u32 %v1737_v45, %v1736_v6  ;;  %v1741_v3 = vor.u32 %v1740_v1, %v1739_v12  ;;  %v1746_v5 = vshrl.u32 %v17734_v50, %v1731_v58 }
 0x1f6   : > { %v1744_v42 = vor.u32 %v1743_v15, %v1742_v28  ;;  %v1595_v43 = vsel %vm1512_vm2, %v1594_v57, %v1593_v32  ;;  %v13512_v14 = vand.u32 3, %v1599_v10  ;;  %v1674_v40 = vadd.s32 536870912, %v1673_v30 }
 0x1f7   : > { %v1823_v29 = vshrl.u32 %v1822_v22, 23  ;;  %v1598_v49 = vsel %vm13484_vm14, %v13145_v38, %v1595_v43  ;;  %v1732_v31 = vshrl.u32 %v17729_v16, %v1731_v58  ;;  %v1747_v23 = vor.u32 %v1746_v5, %v1745_v55 }
 0x1f8   : > { %vm1748_vm1 = vcmp.lt.s32.totalorder %v1729_v17, 1  ;;  %11903 = vcosq.f32 %v1598_v49  ;;  %v1675_v41 = vshrl.u32 %v1674_v40, 30  ;;  %vm1750_vm3 = vcmp.lt.s32.totalorder %v1729_v17, 3 }
 0x1f9   : > { %vm1751_vm0 = vcmp.lt.s32.totalorder %v1729_v17, 4  ;;  %11905 = vsinq.f32 %v1598_v49  ;;  %v1756_v53 = vsel %vm1748_vm1, %v1735_v8, %v1738_v46  ;;  %v6812_v26 = vadd.s32 3, %v1599_v10 }
 0x1fa   : > { %v1753_v34 = vsel %vm1751_vm0, %v1741_v3, 2102212464  ;;  %v1757_v19 = vsel %vm1751_vm0, %v1744_v42, 920167782  ;;  %v1676_v37 = vshll.u32 %v1675_v41, 30  ;;  %vm1749_vm2 = vcmp.lt.s32.totalorder %v1729_v17, 2 }
 0x1fb   : > { %v1758_v11 = vsel %vm1750_vm3, %v1741_v3, %v1757_v19  ;;  %v1752_v2 = vsel %vm1748_vm1, %v1732_v31, %v1735_v8  ;;  %v1760_v22 = vsel %vm1748_vm1, %v1738_v46, %v1741_v3  ;;  %v1761_v0 = vsel %vm1751_vm0, %v1747_v23, 1326507024 }
 0x1fc   : > { %v1759_v44 = vsel %vm1749_vm2, %v1756_v53, %v1758_v11  ;;  %v13520_v63 = vsub.s32 %v1673_v30, %v1676_v37  ;;  %v1754_v58 = vsel %vm1750_vm3, %v1738_v46, %v1753_v34  ;;  %v1762_v27 = vsel %vm1750_vm3, %v1744_v42, %v1761_v0 }
 0x1fd   : > { %v11193_v13 = vadd.s32 4294967169, %v1823_v29  ;;  %v1763_v6 = vsel %vm1749_vm2, %v1760_v22, %v1762_v27  ;;  %v13526_v10 = vmul.u32.u64.low %v13493_v35, %v1759_v44  ;;  %v13527_v32 = vmul.u32.u64.high %v13493_v35, %v1759_v44, %v13526_v10 }
 0x1fe   : > { %v1679_v25 = vsub.s32 0, %v13520_v63  ;;  %v13532_v45 = vmul.u32.u64.low %v13493_v35, %v1763_v6  ;;  %v13533_v12 = vmul.u32.u64.high %v13493_v35, %v1763_v6, %v13532_v45  ;;  %v496_v62 = vmul.f32 %v12369_v9, %v13369_v47 }
 0x1ff   : > { %vm1602_vm4 = vweird.f32 %v13145_v38  ;;  %v6813_v1 = vand.u32 3, %v6812_v26  ;;  %vm1615_vm5 = vcmp.lt.s32.totalorder %v13288_v48, 0  ;;  %v1755_v28 = vsel %vm1749_vm2, %v1752_v2, %v1754_v58 }
 0x200   : > { %v1829_v15 = vadd.s32 1, %v11193_v13  ;;  %vm1604_vm7 = vcmp.lt.s32.totalorder %v13512_v14, 2  ;;  %vm1605_vm6 = vcmp.eq.s32.totalorder %v13512_v14, 0  ;;  %vm13544_vm8 = vcmp.le.f32.partialorder %v1613_v39, 0.7853982 }
 0x201   : > { %v11186_v47 = vmin.u32 %v1679_v25, %v13520_v63  ;;  %v1819_v30 = vand.u32 2147483647, %v13417_v21  ;;  %vm1608_vm9 = vcmp.eq.s32.totalorder %v13512_v14, 2  ;;  %v1699_v8 = vsub.s32 4, %v1675_v41 }
 0x202   : > { %v1774_v17 = vadd.s32 1, %v13527_v32  ;;  %vm1830_vm10 = vcmp.gt.s32.totalorder %v1829_v15, 0  ;;  %v11904_v46 = vpop.eup %11903  ;;  %v1771_v42 = vmul.u32 %v13493_v35, %v1755_v28  ;;  %vm1773_vm11 = vc.u32 %v13533_v12, %v13526_v10 }
 0x203   : > { %v1681_v3 = vclz %v11186_v47  ;;  %v1831_v39 = vsel %vm1830_vm10, %v1829_v15, 0  ;;  %v11906_v55 = vpop.eup %11905  ;;  %v1609_v5 = vxor.u32 2147483648, %v11904_v46  ;;  %vm6814_vm12 = vcmp.lt.s32.totalorder %v6813_v1, 2 }
 0x204   : > { %vm6815_vm13 = vcmp.eq.s32.totalorder %v6813_v1, 0  ;;  %v1775_v43 = vsel %vm1773_vm11, %v1774_v17, %v13527_v32  ;;  %v1606_v40 = vxor.u32 2147483648, %v11906_v55  ;;  %vm6818_vm14 = vcmp.eq.s32.totalorder %v6813_v1, 2 }
 0x205   : > { %v11187_v29 = vadd.s32 4294967294, %v1681_v3  ;;  %v1776_v49 = vadd.s32 %v1775_v43, %v1771_v42  ;;  %v1610_v31 = vsel %vm1608_vm9, %v1609_v5, %v11906_v55  ;;  %v6820_v23 = vsel %vm6818_vm14, %v1609_v5, %v11906_v55 }
 0x206   : > { %v1700_v35 = vsel %vm1615_vm5, %v1699_v8, %v1675_v41  ;;  %v1833_v34 = vand.u32 31, %v1831_v39  ;;  %v1607_v53 = vsel %vm1605_vm6, %v11904_v46, %v1606_v40  ;;  %v6817_v19 = vsel %vm6815_vm13, %v11904_v46, %v1606_v40 }
 0x207   : > { %vm11188_vm15 = vcmp.lt.s32.totalorder %v11187_v29, 0  ;;  %v1777_v26 = vadd.s32 536870912, %v1776_v49  ;;  %v1611_v37 = vsel %vm1604_vm7, %v1607_v53, %v1610_v31  ;;  %v6821_v11 = vsel %vm6814_vm12, %v6817_v19, %v6820_v23 }
 0x208   : > { %v1684_v2 = vsel %vm11188_vm15, 0, %v11187_v29  ;;  %v1834_v44 = vsub.s32 32, %v1833_v34  ;;  %v1612_v22 = vsel %vm1602_vm4, nan, %v1611_v37  ;;  %v6822_v41 = vsel %vm1602_vm4, nan, %v6821_v11 }
 0x209   : > { %v1669_v0 = vadd.s32 %v13478_v36, %v13475_v24  ;;  %v1685_v58 = vsub.s32 32, %v1684_v2  ;;  %5742 = vst [vmem:[%s12696_s30 + $0x48] sm:$0xff] %v1612_v22  ;;  %11554 = vst [vmem:[%s12696_s30 + $0x1d8] sm:$0xff] %v6822_v41  ;;  %v1689_v27 = vsub.s32 4294967266, %v1684_v2  ;;  %v13575_v14 = vsel %vm13544_vm8, 0, %v1700_v35 }
 0x20a   : > { %v13577_v13 = vshrl.u32 %v1777_v26, 30  ;;  %v1826_v32 = vand.u32 8388607, %v1819_v30  ;;  %v1686_v38 = vshll.u32 %v13520_v63, %v1684_v2  ;;  %v1837_v24 = vshrl.u32 %v17730_v61, %v1834_v44 }
 0x20b   : > { %v1687_v6 = vshrl.u32 %v1669_v0, %v1685_v58  ;;  %v1690_v25 = vadd.s32 127, %v1689_v27  ;;  %v13585_v36 = vadd.s32 3, %v13575_v14  ;;  %v13588_v1 = vadd.f32 %v496_v62, %v12265_v54 }
 0x20c   : > { %v1779_v45 = vshll.u32 %v13577_v13, 30  ;;  %v1836_v28 = vshll.u32 %v17729_v16, %v1833_v34  ;;  %v1840_v15 = vshrl.u32 %v17731_v20, %v1834_v44  ;;  %v1843_v63 = vshrl.u32 %v17732_v33, %v1834_v44 }
 0x20d   : > { %v1688_v47 = vor.u32 %v1687_v6, %v1686_v38  ;;  %v1691_v8 = vshll.u32 %v1690_v25, 23  ;;  %v1827_v46 = vor.u32 8388608, %v1826_v32  ;;  %v1832_v3 = vshrl.u32 %v1831_v39, 5 }
 0x20e   : > { %v13592_v17 = vsub.s32 %v1776_v49, %v1779_v45  ;;  %v1839_v42 = vshll.u32 %v17730_v61, %v1833_v34  ;;  %v1846_v55 = vshrl.u32 %v17733_v56, %v1834_v44  ;;  %v1838_v62 = vor.u32 %v1837_v24, %v1836_v28 }
 0x20f   : > { %v1692_v5 = vor.u32 4788187, %v1691_v8  ;;  %v1842_v43 = vshll.u32 %v17731_v20, %v1833_v34  ;;  %v1845_v29 = vshll.u32 %v17732_v33, %v1833_v34  ;;  %v1848_v49 = vshll.u32 %v17733_v56, %v1833_v34 }
 0x210   : > { %v1782_v54 = vsub.s32 0, %v13592_v17  ;;  %v1841_v40 = vor.u32 %v1840_v15, %v1839_v42  ;;  %v1849_v31 = vshrl.u32 %v17734_v50, %v1834_v44  ;;  %v1695_v35 = vcvt.s32.f32 %v1688_v47 }
 0x211   : > { %v1693_v23 = vand.u32 2147483647, %v1692_v5  ;;  %v1844_v53 = vor.u32 %v1843_v63, %v1842_v43  ;;  %v1772_v19 = vadd.s32 %v13526_v10, %v13533_v12  ;;  %v1847_v26 = vor.u32 %v1846_v55, %v1845_v29 }
 0x212   : > { %v11190_v39 = vmin.u32 %v1782_v54, %v13592_v17  ;;  %v1850_v37 = vor.u32 %v1849_v31, %v1848_v49  ;;  %v13605_v11 = vshll.u32 %v1827_v46, 8  ;;  %v1802_v41 = vsub.s32 4, %v13577_v13 }
 0x213   : > { %v1696_v2 = vmul.f32 %v1695_v35, %v1693_v23  ;;  %v1835_v34 = vshrl.u32 %v17729_v16, %v1834_v44  ;;  %vm1851_vm1 = vcmp.lt.s32.totalorder %v1832_v3, 1  ;;  %vm1852_vm3 = vcmp.lt.s32.totalorder %v1832_v3, 2 }
 0x214   : > { %v1784_v22 = vclz %v11190_v39  ;;  %vm1853_vm0 = vcmp.lt.s32.totalorder %v1832_v3, 3  ;;  %vm1854_vm2 = vcmp.lt.s32.totalorder %v1832_v3, 4  ;;  %v1859_v6 = vsel %vm1851_vm1, %v1838_v62, %v1841_v40 }
 0x215   : > { %v1697_v0 = vxor.u32 2147483648, %v1696_v2  ;;  %v1856_v27 = vsel %vm1854_vm2, %v1844_v53, 2102212464  ;;  %v1855_v32 = vsel %vm1851_vm1, %v1835_v34, %v1838_v62  ;;  %v1860_v12 = vsel %vm1854_vm2, %v1847_v26, 920167782 }
 0x216   : > { %v11191_v58 = vadd.s32 4294967294, %v1784_v22  ;;  %v1857_v10 = vsel %vm1853_vm0, %v1841_v40, %v1856_v27  ;;  %v1864_v38 = vsel %vm1854_vm2, %v1850_v37, 1326507024  ;;  %v1861_v45 = vsel %vm1853_vm0, %v1844_v53, %v1860_v12 }
 0x217   : > { %v1698_v25 = vsel %vm1615_vm5, %v1697_v0, %v1696_v2  ;;  %v1863_v44 = vsel %vm1851_vm1, %v1841_v40, %v1844_v53  ;;  %v1862_v15 = vsel %vm1852_vm3, %v1859_v6, %v1861_v45  ;;  %v1865_v47 = vsel %vm1853_vm0, %v1847_v26, %v1864_v38  ;;  %v13629_v40 = vpop.permute.xlu1 %394 }
 0x218   : > { %vm11192_vm4 = vcmp.lt.s32.totalorder %v11191_v58, 0  ;;  %v1701_v24 = vsel %vm13544_vm8, %v13288_v48, %v1698_v25  ;;  %v1866_v42 = vsel %vm1852_vm3, %v1863_v44, %v1865_v47  ;;  %v1706_v29 = vand.u32 3, %v13575_v14 }
 0x219   : > { %v1787_v28 = vsel %vm11192_vm4, 0, %v11191_v58  ;;  %11907 = vcosq.f32 %v1701_v24  ;;  %v13621_v55 = vmul.u32.u64.low %v13605_v11, %v1862_v15  ;;  %v13622_v5 = vmul.u32.u64.high %v13605_v11, %v1862_v15, %v13621_v55 }
 0x21a   : > { %v1788_v8 = vsub.s32 32, %v1787_v28  ;;  %v1789_v63 = vshll.u32 %v13592_v17, %v1787_v28  ;;  %v1792_v46 = vsub.s32 4294967266, %v1787_v28  ;;  %11909 = vsinq.f32 %v1701_v24 }
 0x21b   : > { %v13626_v62 = vmul.u32.u64.low %v13605_v11, %v1866_v42  ;;  %v13627_v43 = vmul.u32.u64.high %v13605_v11, %v1866_v42, %v13626_v62  ;;  %vm1718_vm5 = vcmp.lt.s32.totalorder %v13346_v7, 0  ;;  %v1858_v17 = vsel %vm1852_vm3, %v1855_v32, %v1857_v10 }
 0x21c   : > { %v1790_v57 = vshrl.u32 %v1772_v19, %v1788_v8  ;;  %v1793_v54 = vadd.s32 127, %v1792_v46  ;;  %v1925_v49 = vand.u32 2139095040, %v13588_v1  ;;  %vm13637_vm7 = vcmp.le.f32.partialorder %v1716_v18, 0.7853982 }
 0x21d   : > { %v1803_v39 = vsel %vm1718_vm5, %v1802_v41, %v13577_v13  ;;  %v6917_v14 = vand.u32 3, %v13585_v36  ;;  %v1877_v53 = vadd.s32 1, %v13622_v5  ;;  %v497_v19 = vmul.f32 %v12367_v4, %v13629_v40 }
 0x21e   : > { %v1791_v23 = vor.u32 %v1790_v57, %v1789_v63  ;;  %v1794_v35 = vshll.u32 %v1793_v54, 23  ;;  %v1926_v3 = vshrl.u32 %v1925_v49, 23  ;;  %v1874_v18 = vmul.u32 %v13605_v11, %v1858_v17 }
 0x21f   : > { %vm1876_vm6 = vc.u32 %v13627_v43, %v13621_v55  ;;  %v1922_v37 = vand.u32 2147483647, %v13588_v1  ;;  %vm1705_vm8 = vweird.f32 %v13288_v48  ;;  %vm1707_vm9 = vcmp.lt.s32.totalorder %v1706_v29, 2 }
 0x220   : > { %v1795_v26 = vor.u32 4788187, %v1794_v35  ;;  %v1805_v13 = vsel %vm13637_vm7, 0, %v1803_v39  ;;  %v1878_v36 = vsel %vm1876_vm6, %v1877_v53, %v13622_v5  ;;  %v11197_v2 = vadd.s32 4294967169, %v1926_v3 }
 0x221   : > { %vm1708_vm10 = vcmp.eq.s32.totalorder %v1706_v29, 0  ;;  %v1798_v41 = vcvt.s32.f32 %v1791_v23  ;;  %v1879_v34 = vadd.s32 %v1878_v36, %v1874_v18  ;;  %vm1711_vm11 = vcmp.eq.s32.totalorder %v1706_v29, 2 }
 0x222   : > { %v1796_v22 = vand.u32 2147483647, %v1795_v26  ;;  %vm6918_vm12 = vcmp.lt.s32.totalorder %v6917_v14, 2  ;;  %vm6919_vm13 = vcmp.eq.s32.totalorder %v6917_v14, 0  ;;  %v1932_v11 = vadd.s32 1, %v11197_v2 }
 0x223   : > { %v11908_v0 = vpop.eup %11907  ;;  %v13656_v27 = vand.u32 3, %v1805_v13  ;;  %vm6922_vm14 = vcmp.eq.s32.totalorder %v6917_v14, 2  ;;  %v1880_v6 = vadd.s32 536870912, %v1879_v34  ;;  %v7020_v12 = vadd.s32 3, %v1805_v13 }
 0x224   : > { %v1799_v58 = vmul.f32 %v1798_v41, %v1796_v22  ;;  %v11910_v32 = vpop.eup %11909  ;;  %v1712_v10 = vxor.u32 2147483648, %v11908_v0  ;;  %v1929_v38 = vand.u32 8388607, %v1922_v37  ;;  %vm1933_vm15 = vcmp.gt.s32.totalorder %v1932_v11, 0 }
 0x225   : > { %v1709_v25 = vxor.u32 2147483648, %v11910_v32  ;;  %v13660_v44 = vshrl.u32 %v1880_v6, 30  ;;  %v1934_v24 = vsel %vm1933_vm15, %v1932_v11, 0  ;;  %v13664_v8 = vadd.f32 %v497_v19, %v12256_v51 }
 0x226   : > { %v1800_v45 = vxor.u32 2147483648, %v1799_v58  ;;  %v1713_v28 = vsel %vm1711_vm11, %v1712_v10, %v11910_v32  ;;  %v6924_v15 = vsel %vm6922_vm14, %v1712_v10, %v11910_v32  ;;  %v1936_v47 = vand.u32 31, %v1934_v24 }
 0x227   : > { %v1710_v63 = vsel %vm1708_vm10, %v11908_v0, %v1709_v25  ;;  %v6921_v42 = vsel %vm6919_vm13, %v11908_v0, %v1709_v25  ;;  %v1882_v5 = vshll.u32 %v13660_v44, 30  ;;  %v13676_v17 = vand.u32 3, %v7020_v12 }
 0x228   : > { %v1801_v46 = vsel %vm1718_vm5, %v1800_v45, %v1799_v58  ;;  %v1714_v57 = vsel %vm1707_vm9, %v1710_v63, %v1713_v28  ;;  %v6925_v62 = vsel %vm6918_vm12, %v6921_v42, %v6924_v15  ;;  %v1930_v29 = vor.u32 8388608, %v1929_v38 }
 0x229   : > { %v1804_v54 = vsel %vm13637_vm7, %v13346_v7, %v1801_v46  ;;  %v1715_v51 = vsel %vm1705_vm8, nan, %v1714_v57  ;;  %v6926_v49 = vsel %vm1705_vm8, nan, %v6925_v62  ;;  %v13682_v23 = vsub.s32 %v1879_v34, %v1882_v5 }
 0x22a   : > { %11911 = vcosq.f32 %v1804_v54  ;;  %5743 = vst [vmem:[%s12696_s30 + $0x50] sm:$0xff] %v1715_v51  ;;  %11555 = vst [vmem:[%s12696_s30 + $0x1e0] sm:$0xff] %v6926_v49  ;;  %v1937_v35 = vsub.s32 32, %v1936_v47  ;;  %v13687_v39 = vshrl.u32 %v1934_v24, 5  ;;  %v1939_v14 = vshll.u32 %v17729_v16, %v1936_v47 }
 0x22b   : > { %11913 = vsinq.f32 %v1804_v54  ;;  %v1885_v31 = vsub.s32 0, %v13682_v23  ;;  %v2028_v53 = vand.u32 2139095040, %v13664_v8  ;;  %v1942_v48 = vshll.u32 %v17730_v61, %v1936_v47 }
 0x22c   : > { %v1940_v3 = vshrl.u32 %v17730_v61, %v1937_v35  ;;  %v1943_v19 = vshrl.u32 %v17731_v20, %v1937_v35  ;;  %v1945_v26 = vshll.u32 %v17731_v20, %v1936_v47  ;;  %vm1814_vm1 = vcmp.eq.s32.totalorder %v13656_v27, 2 }
 0x22d   : > { %vm7026_vm3 = vcmp.eq.s32.totalorder %v13676_v17, 2  ;;  %v11194_v18 = vmin.u32 %v1885_v31, %v13682_v23  ;;  %v1946_v13 = vshrl.u32 %v17732_v33, %v1937_v35  ;;  %v1948_v36 = vshll.u32 %v17732_v33, %v1936_v47 }
 0x22e   : > { %v1949_v2 = vshrl.u32 %v17733_v56, %v1937_v35  ;;  %vm1811_vm0 = vcmp.eq.s32.totalorder %v13656_v27, 0  ;;  %vm7023_vm2 = vcmp.eq.s32.totalorder %v13676_v17, 0  ;;  %v1875_v22 = vadd.s32 %v13621_v55, %v13627_v43 }
 0x22f   : > { %v1941_v41 = vor.u32 %v1940_v3, %v1939_v14  ;;  %v13705_v34 = vshll.u32 %v1930_v29, 8  ;;  %v498_v11 = vmul.f32 %v12369_v9, %v13629_v40  ;;  %vm1810_vm4 = vcmp.lt.s32.totalorder %v13656_v27, 2 }
 0x230   : > { %vm7022_vm5 = vcmp.lt.s32.totalorder %v13676_v17, 2  ;;  %v1887_v0 = vclz %v11194_v18  ;;  %v1944_v58 = vor.u32 %v1943_v19, %v1942_v48  ;;  %v1947_v6 = vor.u32 %v1946_v13, %v1945_v26 }
 0x231   : > { %v1950_v32 = vor.u32 %v1949_v2, %v1948_v36  ;;  %vm1808_vm7 = vweird.f32 %v13346_v7  ;;  %v1905_v10 = vsub.s32 4, %v13660_v44  ;;  %v1951_v55 = vshll.u32 %v17733_v56, %v1936_v47 }
 0x232   : > { %v1952_v43 = vshrl.u32 %v17734_v50, %v1937_v35  ;;  %v2029_v12 = vshrl.u32 %v2028_v53, 23  ;;  %vm1821_vm6 = vcmp.lt.s32.totalorder %v13417_v21, 0  ;;  %v11195_v40 = vadd.s32 4294967294, %v1887_v0 }
 0x233   : > { %v1938_v38 = vshrl.u32 %v17729_v16, %v1937_v35  ;;  %vm1954_vm8 = vcmp.lt.s32.totalorder %v13687_v39, 1  ;;  %vm1957_vm9 = vcmp.lt.s32.totalorder %v13687_v39, 4  ;;  %vm1956_vm10 = vcmp.lt.s32.totalorder %v13687_v39, 3 }
 0x234   : > { %v1953_v25 = vor.u32 %v1952_v43, %v1951_v55  ;;  %v1962_v45 = vsel %vm1954_vm8, %v1941_v41, %v1944_v58  ;;  %v1963_v24 = vsel %vm1957_vm9, %v1950_v32, 920167782  ;;  %v11912_v28 = vpop.eup %11911  ;;  %vm11196_vm11 = vcmp.lt.s32.totalorder %v11195_v40, 0 }
 0x235   : > { %vm1955_vm12 = vcmp.lt.s32.totalorder %v13687_v39, 2  ;;  %v1958_v15 = vsel %vm1954_vm8, %v1938_v38, %v1941_v41  ;;  %v1964_v47 = vsel %vm1956_vm10, %v1947_v6, %v1963_v24  ;;  %v11914_v63 = vpop.eup %11913  ;;  %v1815_v46 = vxor.u32 2147483648, %v11912_v28 }
 0x236   : > { %v1890_v42 = vsel %vm11196_vm11, 0, %v11195_v40  ;;  %v1959_v5 = vsel %vm1957_vm9, %v1947_v6, 2102212464  ;;  %v1966_v57 = vsel %vm1954_vm8, %v1944_v58, %v1947_v6  ;;  %v1812_v54 = vxor.u32 2147483648, %v11914_v63 }
 0x237   : > { %v1891_v62 = vsub.s32 32, %v1890_v42  ;;  %v1895_v51 = vsub.s32 4294967266, %v1890_v42  ;;  %v1965_v49 = vsel %vm1955_vm12, %v1962_v45, %v1964_v47  ;;  %v1816_v29 = vsel %vm1814_vm1, %v1815_v46, %v11914_v63 }
 0x238   : > { %v7028_v35 = vsel %vm7026_vm3, %v1815_v46, %v11914_v63  ;;  %v1892_v31 = vshll.u32 %v13682_v23, %v1890_v42  ;;  %v1967_v14 = vsel %vm1957_vm9, %v1953_v25, 1326507024  ;;  %v1813_v53 = vsel %vm1811_vm0, %v11912_v28, %v1812_v54 }
 0x239   : > { %v7025_v3 = vsel %vm7023_vm2, %v11912_v28, %v1812_v54  ;;  %v1893_v48 = vshrl.u32 %v1875_v22, %v1891_v62  ;;  %v1896_v19 = vadd.s32 127, %v1895_v51  ;;  %v1817_v26 = vsel %vm1810_vm4, %v1813_v53, %v1816_v29 }
 0x23a   : > { %v7029_v18 = vsel %vm7022_vm5, %v7025_v3, %v7028_v35  ;;  %v1960_v23 = vsel %vm1956_vm10, %v1944_v58, %v1959_v5  ;;  %v1968_v13 = vsel %vm1956_vm10, %v1950_v32, %v1967_v14  ;;  %v1818_v36 = vsel %vm1808_vm7, nan, %v1817_v26 }
 0x23b   : > { %v7030_v2 = vsel %vm1808_vm7, nan, %v7029_v18  ;;  %v1894_v22 = vor.u32 %v1893_v48, %v1892_v31  ;;  %v1897_v41 = vshll.u32 %v1896_v19, 23  ;;  %5744 = vst [vmem:[%s12696_s30 + $0x58] sm:$0xff] %v1818_v36  ;;  %v1906_v27 = vsel %vm1821_vm6, %v1905_v10, %v13660_v44 }
 0x23c   : > { %11556 = vst [vmem:[%s12696_s30 + $0x1e8] sm:$0xff] %v7030_v2  ;;  %v1969_v17 = vsel %vm1955_vm12, %v1966_v57, %v1968_v13  ;;  %v13760_v0 = vmul.u32.u64.low %v13705_v34, %v1965_v49  ;;  %v13761_v58 = vmul.u32.u64.high %v13705_v34, %v1965_v49, %v13760_v0  ;;  %vm13769_vm13 = vcmp.le.f32.partialorder %v1819_v30, 0.7853982 }
 0x23d   : > { %v1898_v6 = vor.u32 4788187, %v1897_v41  ;;  %v13764_v32 = vmul.u32.u64.low %v13705_v34, %v1969_v17  ;;  %v13765_v7 = vmul.u32.u64.high %v13705_v34, %v1969_v17, %v13764_v32  ;;  %v1961_v44 = vsel %vm1955_vm12, %v1958_v15, %v1960_v23 }
 0x23e   : > { %v13776_v10 = vadd.f32 %v498_v11, %v12259_v52  ;;  %v11201_v43 = vadd.s32 4294967169, %v2029_v12  ;;  %v1901_v38 = vcvt.s32.f32 %v1894_v22  ;;  %v1908_v25 = vsel %vm13769_vm13, 0, %v1906_v27 }
 0x23f   : > { %v1899_v40 = vand.u32 2147483647, %v1898_v6  ;;  %v2025_v45 = vand.u32 2147483647, %v13664_v8  ;;  %v1980_v24 = vadd.s32 1, %v13761_v58  ;;  %v1977_v47 = vmul.u32 %v13705_v34, %v1961_v44 }
 0x240   : > { %v2035_v30 = vadd.s32 1, %v11201_v43  ;;  %vm1979_vm14 = vc.u32 %v13765_v7, %v13760_v0  ;;  %v7124_v52 = vadd.s32 3, %v1908_v25  ;;  %v2128_v11 = vand.u32 2147483647, %v13776_v10 }
 0x241   : > { %v1902_v28 = vmul.f32 %v1901_v38, %v1899_v40  ;;  %v1981_v39 = vsel %vm1979_vm14, %v1980_v24, %v13761_v58  ;;  %v2032_v63 = vand.u32 8388607, %v2025_v45  ;;  %v2131_v5 = vand.u32 2139095040, %v13776_v10  ;;  %v13820_v58 = vpop.permute.xlu0 %398 }
 0x242   : > { %vm2036_vm15 = vcmp.gt.s32.totalorder %v2035_v30, 0  ;;  %v1982_v15 = vadd.s32 %v1981_v39, %v1977_v47  ;;  %v13794_v62 = vand.u32 3, %v1908_v25  ;;  %v13796_v51 = vand.u32 3, %v7124_v52 }
 0x243   : > { %v1903_v12 = vxor.u32 2147483648, %v1902_v28  ;;  %v2037_v46 = vsel %vm2036_vm15, %v2035_v30, 0  ;;  %v2033_v35 = vor.u32 8388608, %v2032_v63  ;;  %v13800_v31 = vand.u32 8388607, %v2128_v11 }
 0x244   : > { %v2039_v42 = vand.u32 31, %v2037_v46  ;;  %v1983_v57 = vadd.s32 536870912, %v1982_v15  ;;  %v2132_v3 = vshrl.u32 %v2131_v5, 23  ;;  %vm1924_vm1 = vcmp.lt.s32.totalorder %v13588_v1, 0 }
 0x245   : > { %v1904_v34 = vsel %vm1821_vm6, %v1903_v12, %v1902_v28  ;;  %vm1917_vm3 = vcmp.eq.s32.totalorder %v13794_v62, 2  ;;  %v13814_v22 = vadd.s32 %v13760_v0, %v13765_v7  ;;  %vm7130_vm0 = vcmp.eq.s32.totalorder %v13796_v51, 2 }
 0x246   : > { %v1907_v54 = vsel %vm13769_vm13, %v13417_v21, %v1904_v34  ;;  %v2040_v49 = vsub.s32 32, %v2039_v42  ;;  %v1984_v29 = vshrl.u32 %v1983_v57, 30  ;;  %v2042_v19 = vshll.u32 %v17729_v16, %v2039_v42 }
 0x247   : > { %11915 = vcosq.f32 %v1907_v54  ;;  %v2045_v23 = vshll.u32 %v17730_v61, %v2039_v42  ;;  %v2048_v13 = vshll.u32 %v17731_v20, %v2039_v42  ;;  %v2051_v36 = vshll.u32 %v17732_v33, %v2039_v42 }
 0x248   : > { %11917 = vsinq.f32 %v1907_v54  ;;  %v2043_v14 = vshrl.u32 %v17730_v61, %v2040_v49  ;;  %v2046_v53 = vshrl.u32 %v17731_v20, %v2040_v49  ;;  %v1985_v48 = vshll.u32 %v1984_v29, 30 }
 0x249   : > { %v2049_v26 = vshrl.u32 %v17732_v33, %v2040_v49  ;;  %v2052_v18 = vshrl.u32 %v17733_v56, %v2040_v49  ;;  %v2055_v2 = vshrl.u32 %v17734_v50, %v2040_v49  ;;  %v2038_v27 = vshrl.u32 %v2037_v46, 5 }
 0x24a   : > { %v13816_v41 = vsub.s32 %v1982_v15, %v1985_v48  ;;  %v2054_v17 = vshll.u32 %v17733_v56, %v2039_v42  ;;  %vm1914_vm2 = vcmp.eq.s32.totalorder %v13794_v62, 0  ;;  %vm7127_vm4 = vcmp.eq.s32.totalorder %v13796_v51, 0 }
 0x24b   : > { %v2044_v6 = vor.u32 %v2043_v14, %v2042_v19  ;;  %v2047_v32 = vor.u32 %v2046_v53, %v2045_v23  ;;  %v2050_v55 = vor.u32 %v2049_v26, %v2048_v13  ;;  %v2053_v44 = vor.u32 %v2052_v18, %v2051_v36 }
 0x24c   : > { %vm1913_vm5 = vcmp.lt.s32.totalorder %v13794_v62, 2  ;;  %v1988_v0 = vsub.s32 0, %v13816_v41  ;;  %vm7126_vm7 = vcmp.lt.s32.totalorder %v13796_v51, 2  ;;  %v2056_v7 = vor.u32 %v2055_v2, %v2054_v17 }
 0x24d   : > { %v13827_v43 = vshll.u32 %v2033_v35, 8  ;;  %v2136_v40 = vor.u32 8388608, %v13800_v31  ;;  %vm1911_vm6 = vweird.f32 %v13417_v21  ;;  %v2008_v38 = vsub.s32 4, %v1984_v29 }
 0x24e   : > { %v2041_v25 = vshrl.u32 %v17729_v16, %v2040_v49  ;;  %v11205_v24 = vadd.s32 4294967169, %v2132_v3  ;;  %v499_v30 = vmul.f32 %v12367_v4, %v13820_v58  ;;  %v11198_v28 = vmin.u32 %v1988_v0, %v13816_v41 }
 0x24f   : > { %vm2057_vm8 = vcmp.lt.s32.totalorder %v2038_v27, 1  ;;  %vm2059_vm9 = vcmp.lt.s32.totalorder %v2038_v27, 3  ;;  %vm2060_vm10 = vcmp.lt.s32.totalorder %v2038_v27, 4  ;;  %vm2058_vm11 = vcmp.lt.s32.totalorder %v2038_v27, 2 }
 0x250   : > { %v2061_v47 = vsel %vm2057_vm8, %v2041_v25, %v2044_v6  ;;  %v2062_v39 = vsel %vm2060_vm10, %v2050_v55, 2102212464  ;;  %v2065_v52 = vsel %vm2057_vm8, %v2044_v6, %v2047_v32  ;;  %v2066_v12 = vsel %vm2060_vm10, %v2053_v44, 920167782 }
 0x251   : > { %v11916_v15 = vpop.eup %11915  ;;  %v1990_v63 = vclz %v11198_v28  ;;  %v2063_v46 = vsel %vm2059_vm9, %v2047_v32, %v2062_v39  ;;  %v2067_v42 = vsel %vm2059_vm9, %v2050_v55, %v2066_v12  ;;  %v2070_v5 = vsel %vm2060_vm10, %v2056_v7, 1326507024 }
 0x252   : > { %v11918_v34 = vpop.eup %11917  ;;  %v1918_v57 = vxor.u32 2147483648, %v11916_v15  ;;  %v2069_v54 = vsel %vm2057_vm8, %v2047_v32, %v2050_v55  ;;  %v2138_v49 = vadd.s32 1, %v11205_v24  ;;  %v2009_v14 = vsel %vm1924_vm1, %v2008_v38, %v1984_v29 }
 0x253   : > { %v1915_v35 = vxor.u32 2147483648, %v11918_v34  ;;  %v11199_v31 = vadd.s32 4294967294, %v1990_v63  ;;  %v2064_v53 = vsel %vm2058_vm11, %v2061_v47, %v2063_v46  ;;  %v2068_v19 = vsel %vm2058_vm11, %v2065_v52, %v2067_v42 }
 0x254   : > { %v1919_v3 = vsel %vm1917_vm3, %v1918_v57, %v11918_v34  ;;  %v7132_v48 = vsel %vm7130_vm0, %v1918_v57, %v11918_v34  ;;  %v2071_v26 = vsel %vm2059_vm9, %v2053_v44, %v2070_v5  ;;  %vm2139_vm13 = vcmp.gt.s32.totalorder %v2138_v49, 0 }
 0x255   : > { %v1916_v18 = vsel %vm1914_vm2, %v11916_v15, %v1915_v35  ;;  %vm11200_vm12 = vcmp.lt.s32.totalorder %v11199_v31, 0  ;;  %v7129_v23 = vsel %vm7127_vm4, %v11916_v15, %v1915_v35  ;;  %v2072_v29 = vsel %vm2058_vm11, %v2069_v54, %v2071_v26 }
 0x256   : > { %v1920_v13 = vsel %vm1913_vm5, %v1916_v18, %v1919_v3  ;;  %v1993_v36 = vsel %vm11200_vm12, 0, %v11199_v31  ;;  %v7133_v2 = vsel %vm7126_vm7, %v7129_v23, %v7132_v48  ;;  %v2140_v0 = vsel %vm2139_vm13, %v2138_v49, 0 }
 0x257   : > { %v1921_v27 = vsel %vm1911_vm6, nan, %v1920_v13  ;;  %v1994_v17 = vsub.s32 32, %v1993_v36  ;;  %v1995_v6 = vshll.u32 %v13816_v41, %v1993_v36  ;;  %v1998_v32 = vsub.s32 4294967266, %v1993_v36 }
 0x258   : > { %5745 = vst [vmem:[%s12696_s30 + $0x60] sm:$0xff] %v1921_v27  ;;  %v7134_v55 = vsel %vm1911_vm6, nan, %v7133_v2  ;;  %v13859_v44 = vmul.u32.u64.low %v13827_v43, %v2072_v29  ;;  %v13860_v62 = vmul.u32.u64.high %v13827_v43, %v2072_v29, %v13859_v44  ;;  %vm13871_vm14 = vcmp.le.f32.partialorder %v1922_v37, 0.7853982 }
 0x259   : > { %v1996_v51 = vshrl.u32 %v13814_v22, %v1994_v17  ;;  %v1999_v7 = vadd.s32 127, %v1998_v32  ;;  %11557 = vst [vmem:[%s12696_s30 + $0x1f0] sm:$0xff] %v7134_v55  ;;  %v13865_v38 = vmul.u32.u64.low %v13827_v43, %v2068_v19  ;;  %v13866_v25 = vmul.u32.u64.high %v13827_v43, %v2068_v19, %v13865_v38 }
 0x25a   : > { %v2142_v21 = vand.u32 31, %v2140_v0  ;;  %v13875_v47 = vshll.u32 %v2136_v40, 8  ;;  %v13878_v22 = vadd.f32 %v499_v30, %v12274_v59  ;;  %v2011_v39 = vsel %vm13871_vm14, 0, %v2009_v14 }
 0x25b   : > { %v1997_v24 = vor.u32 %v1996_v51, %v1995_v6  ;;  %v2000_v28 = vshll.u32 %v1999_v7, 23  ;;  %v2080_v52 = vmul.u32 %v13827_v43, %v2064_v53  ;;  %vm2082_vm15 = vc.u32 %v13860_v62, %v13865_v38 }
 0x25c   : > { %v2143_v37 = vsub.s32 32, %v2142_v21  ;;  %v2083_v15 = vadd.s32 1, %v13866_v25  ;;  %v2141_v63 = vshrl.u32 %v2140_v0, 5  ;;  %v2145_v46 = vshll.u32 %v17729_v16, %v2142_v21 }
 0x25d   : > { %v2001_v12 = vor.u32 4788187, %v2000_v28  ;;  %v2004_v40 = vcvt.s32.f32 %v1997_v24  ;;  %v2148_v59 = vshll.u32 %v17730_v61, %v2142_v21  ;;  %v2151_v34 = vshll.u32 %v17731_v20, %v2142_v21 }
 0x25e   : > { %v2146_v42 = vshrl.u32 %v17730_v61, %v2143_v37  ;;  %v2149_v30 = vshrl.u32 %v17731_v20, %v2143_v37  ;;  %v2084_v43 = vsel %vm2082_vm15, %v2083_v15, %v13866_v25  ;;  %v2152_v57 = vshrl.u32 %v17732_v33, %v2143_v37 }
 0x25f   : > { %v2002_v5 = vand.u32 2147483647, %v2001_v12  ;;  %v2085_v54 = vadd.s32 %v2084_v43, %v2080_v52  ;;  %v2154_v35 = vshll.u32 %v17732_v33, %v2142_v21  ;;  %v2155_v31 = vshrl.u32 %v17733_v56, %v2143_v37 }
 0x260   : > { %v2147_v49 = vor.u32 %v2146_v42, %v2145_v46  ;;  %v2150_v53 = vor.u32 %v2149_v30, %v2148_v59  ;;  %v2157_v3 = vshll.u32 %v17733_v56, %v2142_v21  ;;  %v2158_v48 = vshrl.u32 %v17734_v50, %v2143_v37 }
 0x261   : > { %v2005_v14 = vmul.f32 %v2004_v40, %v2002_v5  ;;  %v13897_v19 = vand.u32 3, %v2011_v39  ;;  %v2086_v26 = vadd.s32 536870912, %v2085_v54  ;;  %v2153_v18 = vor.u32 %v2152_v57, %v2151_v34 }
 0x262   : > { %v2156_v23 = vor.u32 %v2155_v31, %v2154_v35  ;;  %v7228_v13 = vadd.s32 3, %v2011_v39  ;;  %v2159_v36 = vor.u32 %v2158_v48, %v2157_v3  ;;  %v2234_v2 = vand.u32 2139095040, %v13878_v22 }
 0x263   : > { %v2006_v29 = vxor.u32 2147483648, %v2005_v14  ;;  %v2087_v27 = vshrl.u32 %v2086_v26, 30  ;;  %v2144_v17 = vshrl.u32 %v17729_v16, %v2143_v37  ;;  %vm2160_vm3 = vcmp.lt.s32.totalorder %v2141_v63, 1 }
 0x264   : > { %vm2163_vm0 = vcmp.lt.s32.totalorder %v2141_v63, 4  ;;  %vm2161_vm2 = vcmp.lt.s32.totalorder %v2141_v63, 2  ;;  %v2168_v32 = vsel %vm2160_vm3, %v2147_v49, %v2150_v53  ;;  %vm2162_vm4 = vcmp.lt.s32.totalorder %v2141_v63, 3 }
 0x265   : > { %v2007_v6 = vsel %vm1924_vm1, %v2006_v29, %v2005_v14  ;;  %v2169_v55 = vsel %vm2163_vm0, %v2156_v23, 920167782  ;;  %v2088_v0 = vshll.u32 %v2087_v27, 30  ;;  %v2165_v51 = vsel %vm2163_vm0, %v2153_v18, 2102212464 }
 0x266   : > { %v2010_v44 = vsel %vm13871_vm14, %v13588_v1, %v2007_v6  ;;  %v2170_v7 = vsel %vm2162_vm4, %v2153_v18, %v2169_v55  ;;  %v2172_v25 = vsel %vm2160_vm3, %v2150_v53, %v2153_v18  ;;  %v2173_v21 = vsel %vm2163_vm0, %v2159_v36, 1326507024 }
 0x267   : > { %11919 = vcosq.f32 %v2010_v44  ;;  %v13908_v24 = vsub.s32 %v2085_v54, %v2088_v0  ;;  %v2164_v28 = vsel %vm2160_vm3, %v2144_v17, %v2147_v49  ;;  %v2171_v39 = vsel %vm2161_vm2, %v2168_v32, %v2170_v7 }
 0x268   : > { %11921 = vsinq.f32 %v2010_v44  ;;  %v2166_v52 = vsel %vm2162_vm4, %v2150_v53, %v2165_v51  ;;  %v2174_v37 = vsel %vm2162_vm4, %v2156_v23, %v2173_v21  ;;  %v7229_v15 = vand.u32 3, %v7228_v13 }
 0x269   : > { %v13913_v41 = vmul.u32.u64.low %v13875_v47, %v2171_v39  ;;  %v13914_v12 = vmul.u32.u64.high %v13875_v47, %v2171_v39, %v13913_v41  ;;  %v2091_v46 = vsub.s32 0, %v13908_v24  ;;  %v2175_v40 = vsel %vm2161_vm2, %v2172_v25, %v2174_v37 }
 0x26a   : > { %v2111_v42 = vsub.s32 4, %v2087_v27  ;;  %v13920_v59 = vmul.u32.u64.low %v13875_v47, %v2175_v40  ;;  %v13921_v30 = vmul.u32.u64.high %v13875_v47, %v2175_v40, %v13920_v59  ;;  %v2235_v5 = vshrl.u32 %v2234_v2, 23 }
 0x26b   : > { %vm13925_vm1 = vcmp.le.f32.partialorder %v2025_v45, 0.7853982  ;;  %vm2027_vm5 = vcmp.lt.s32.totalorder %v13664_v8, 0  ;;  %v11202_v34 = vmin.u32 %v2091_v46, %v13908_v24  ;;  %v2167_v57 = vsel %vm2161_vm2, %v2164_v28, %v2166_v52 }
 0x26c   : > { %vm2016_vm7 = vcmp.lt.s32.totalorder %v13897_v19, 2  ;;  %v2186_v54 = vadd.s32 1, %v13914_v12  ;;  %v500_v49 = vmul.f32 %v12369_v9, %v13820_v58  ;;  %v11209_v35 = vadd.s32 4294967169, %v2235_v5 }
 0x26d   : > { %vm2014_vm6 = vweird.f32 %v13588_v1  ;;  %vm2017_vm8 = vcmp.eq.s32.totalorder %v13897_v19, 0  ;;  %vm2020_vm9 = vcmp.eq.s32.totalorder %v13897_v19, 2  ;;  %v2093_v45 = vclz %v11202_v34 }
 0x26e   : > { %v2231_v31 = vand.u32 2147483647, %v13878_v22  ;;  %vm7230_vm10 = vcmp.lt.s32.totalorder %v7229_v15, 2  ;;  %v2112_v63 = vsel %vm2027_vm5, %v2111_v42, %v2087_v27  ;;  %v2183_v14 = vmul.u32 %v13875_v47, %v2167_v57 }
 0x26f   : > { %vm2185_vm11 = vc.u32 %v13921_v30, %v13913_v41  ;;  %vm7231_vm12 = vcmp.eq.s32.totalorder %v7229_v15, 0  ;;  %vm7234_vm13 = vcmp.eq.s32.totalorder %v7229_v15, 2  ;;  %v11203_v58 = vadd.s32 4294967294, %v2093_v45 }
 0x270   : > { %v2187_v53 = vsel %vm2185_vm11, %v2186_v54, %v13914_v12  ;;  %v2081_v48 = vadd.s32 %v13865_v38, %v13860_v62  ;;  %v13949_v18 = vadd.f32 %v500_v49, %v12277_v60  ;;  %v2241_v23 = vadd.s32 1, %v11209_v35 }
 0x271   : > { %v11920_v3 = vpop.eup %11919  ;;  %v2188_v26 = vadd.s32 %v2187_v53, %v2183_v14  ;;  %vm11204_vm14 = vcmp.lt.s32.totalorder %v11203_v58, 0  ;;  %v2114_v47 = vsel %vm13925_vm1, 0, %v2112_v63  ;;  %v2238_v36 = vand.u32 8388607, %v2231_v31 }
 0x272   : > { %v11922_v29 = vpop.eup %11921  ;;  %v2021_v13 = vxor.u32 2147483648, %v11920_v3  ;;  %v2096_v27 = vsel %vm11204_vm14, 0, %v11203_v58  ;;  %vm2242_vm15 = vcmp.gt.s32.totalorder %v2241_v23, 0  ;;  %v7332_v37 = vadd.s32 3, %v2114_v47 }
 0x273   : > { %v2018_v2 = vxor.u32 2147483648, %v11922_v29  ;;  %v2189_v17 = vadd.s32 536870912, %v2188_v26  ;;  %v2097_v38 = vsub.s32 32, %v2096_v27  ;;  %v2098_v6 = vshll.u32 %v13908_v24, %v2096_v27 }
 0x274   : > { %v2022_v62 = vsel %vm2020_vm9, %v2021_v13, %v11922_v29  ;;  %v7236_v60 = vsel %vm7234_vm13, %v2021_v13, %v11922_v29  ;;  %v2101_v44 = vsub.s32 4294967266, %v2096_v27  ;;  %v2243_v21 = vsel %vm2242_vm15, %v2241_v23, 0 }
 0x275   : > { %v2019_v32 = vsel %vm2017_vm8, %v11920_v3, %v2018_v2  ;;  %v7233_v55 = vsel %vm7231_vm12, %v11920_v3, %v2018_v2  ;;  %v13962_v0 = vshrl.u32 %v2189_v17, 30  ;;  %v2099_v25 = vshrl.u32 %v2081_v48, %v2097_v38 }
 0x276   : > { %v2023_v51 = vsel %vm2016_vm7, %v2019_v32, %v2022_v62  ;;  %v7237_v7 = vsel %vm7230_vm10, %v7233_v55, %v7236_v60  ;;  %v2102_v39 = vadd.s32 127, %v2101_v44  ;;  %v2239_v12 = vor.u32 8388608, %v2238_v36 }
 0x277   : > { %v2024_v28 = vsel %vm2014_vm6, nan, %v2023_v51  ;;  %v7238_v24 = vsel %vm2014_vm6, nan, %v7237_v7  ;;  %v2191_v52 = vshll.u32 %v13962_v0, 30  ;;  %v2245_v46 = vand.u32 31, %v2243_v21 }
 0x278   : > { %5746 = vst [vmem:[%s12696_s30 + $0x68] sm:$0xff] %v2024_v28  ;;  %11558 = vst [vmem:[%s12696_s30 + $0x1f8] sm:$0xff] %v7238_v24  ;;  %v2100_v19 = vor.u32 %v2099_v25, %v2098_v6  ;;  %v2103_v40 = vshll.u32 %v2102_v39, 23  ;;  %v2334_v42 = vand.u32 2147483647, %v13949_v18  ;;  %v2337_v57 = vand.u32 2139095040, %v13949_v18 }
 0x279   : > { %v2192_v15 = vsub.s32 %v2188_v26, %v2191_v52  ;;  %v2246_v59 = vsub.s32 32, %v2245_v46  ;;  %v13976_v1 = vand.u32 3, %v2114_v47  ;;  %v2184_v54 = vadd.s32 %v13913_v41, %v13921_v30 }
 0x27a   : > { %v2104_v5 = vor.u32 4788187, %v2103_v40  ;;  %v13980_v49 = vand.u32 3, %v7332_v37  ;;  %v13982_v35 = vshll.u32 %v2239_v12, 8  ;;  %v2107_v63 = vcvt.s32.f32 %v2100_v19 }
 0x27b   : > { %v2194_v34 = vsub.s32 0, %v2192_v15  ;;  %v13986_v58 = vand.u32 8388607, %v2334_v42  ;;  %v2214_v53 = vsub.s32 4, %v13962_v0  ;;  %v13989_v3 = vshrl.u32 %v2243_v21, 5 }
 0x27c   : > { %v2105_v45 = vand.u32 2147483647, %v2104_v5  ;;  %v2249_v48 = vshrl.u32 %v17730_v61, %v2246_v59  ;;  %v2252_v26 = vshrl.u32 %v17731_v20, %v2246_v59  ;;  %v2248_v23 = vshll.u32 %v17729_v16, %v2245_v46 }
 0x27d   : > { %v11206_v14 = vmin.u32 %v2194_v34, %v2192_v15  ;;  %v2338_v29 = vshrl.u32 %v2337_v57, 23  ;;  %v2247_v13 = vshrl.u32 %v17729_v16, %v2246_v59  ;;  %v2251_v47 = vshll.u32 %v17730_v61, %v2245_v46 }
 0x27e   : > { %v2108_v41 = vmul.f32 %v2107_v63, %v2105_v45  ;;  %v2254_v36 = vshll.u32 %v17731_v20, %v2245_v46  ;;  %v2255_v2 = vshrl.u32 %v17732_v33, %v2246_v59  ;;  %v2257_v62 = vshll.u32 %v17732_v33, %v2245_v46 }
 0x27f   : > { %v2196_v30 = vclz %v11206_v14  ;;  %v2258_v60 = vshrl.u32 %v17733_v56, %v2246_v59  ;;  %vm2130_vm3 = vcmp.lt.s32.totalorder %v13776_v10, 0  ;;  %v2250_v38 = vor.u32 %v2249_v48, %v2248_v23 }
 0x280   : > { %v2109_v27 = vxor.u32 2147483648, %v2108_v41  ;;  %v2253_v6 = vor.u32 %v2252_v26, %v2251_v47  ;;  %v2260_v32 = vshll.u32 %v17733_v56, %v2245_v46  ;;  %v2261_v55 = vshrl.u32 %v17734_v50, %v2246_v59 }
 0x281   : > { %v11207_v17 = vadd.s32 4294967294, %v2196_v30  ;;  %v2256_v51 = vor.u32 %v2255_v2, %v2254_v36  ;;  %v2259_v7 = vor.u32 %v2258_v60, %v2257_v62  ;;  %vm2263_vm2 = vcmp.lt.s32.totalorder %v13989_v3, 1 }
 0x282   : > { %v2110_v44 = vsel %vm2027_vm5, %v2109_v27, %v2108_v41  ;;  %v2262_v28 = vor.u32 %v2261_v55, %v2260_v32  ;;  %vm14011_vm4 = vcmp.le.f32.partialorder %v2128_v11, 0.7853982  ;;  %vm2265_vm5 = vcmp.lt.s32.totalorder %v13989_v3, 3 }
 0x283   : > { %vm11208_vm0 = vcmp.lt.s32.totalorder %v11207_v17, 0  ;;  %v2113_v25 = vsel %vm13925_vm1, %v13664_v8, %v2110_v44  ;;  %vm2266_vm7 = vcmp.lt.s32.totalorder %v13989_v3, 4  ;;  %v2271_v43 = vsel %vm2263_vm2, %v2250_v38, %v2253_v6 }
 0x284   : > { %v2199_v21 = vsel %vm11208_vm0, 0, %v11207_v17  ;;  %11923 = vcosq.f32 %v2113_v25  ;;  %v2268_v19 = vsel %vm2266_vm7, %v2256_v51, 2102212464  ;;  %v2272_v40 = vsel %vm2266_vm7, %v2259_v7, 920167782 }
 0x285   : > { %v2200_v39 = vsub.s32 32, %v2199_v21  ;;  %v2204_v52 = vsub.s32 4294967266, %v2199_v21  ;;  %11925 = vsinq.f32 %v2113_v25  ;;  %v2201_v37 = vshll.u32 %v2192_v15, %v2199_v21 }
 0x286   : > { %vm2264_vm1 = vcmp.lt.s32.totalorder %v13989_v3, 2  ;;  %v2273_v11 = vsel %vm2265_vm5, %v2256_v51, %v2272_v40  ;;  %v2275_v59 = vsel %vm2263_vm2, %v2253_v6, %v2256_v51  ;;  %v2276_v5 = vsel %vm2266_vm7, %v2262_v28, 1326507024 }
 0x287   : > { %v2202_v12 = vshrl.u32 %v2184_v54, %v2200_v39  ;;  %v2205_v46 = vadd.s32 127, %v2204_v52  ;;  %v2267_v57 = vsel %vm2263_vm2, %v2247_v13, %v2250_v38  ;;  %v2274_v54 = vsel %vm2264_vm1, %v2271_v43, %v2273_v11  ;;  %v14073_v43 = vpop.permute.xlu1 %402 }
 0x288   : > { %v2269_v45 = vsel %vm2265_vm5, %v2253_v6, %v2268_v19  ;;  %v2277_v63 = vsel %vm2265_vm5, %v2259_v7, %v2276_v5  ;;  %v14033_v14 = vmul.u32.u64.low %v13982_v35, %v2274_v54  ;;  %v14034_v48 = vmul.u32.u64.high %v13982_v35, %v2274_v54, %v14033_v14 }
 0x289   : > { %v2203_v34 = vor.u32 %v2202_v12, %v2201_v37  ;;  %v2206_v15 = vshll.u32 %v2205_v46, 23  ;;  %vm2119_vm6 = vcmp.lt.s32.totalorder %v13976_v1, 2  ;;  %v2215_v41 = vsel %vm2130_vm3, %v2214_v53, %v13962_v0 }
 0x28a   : > { %v2278_v30 = vsel %vm2264_vm1, %v2275_v59, %v2277_v63  ;;  %v11213_v23 = vadd.s32 4294967169, %v2338_v29  ;;  %vm2117_vm8 = vweird.f32 %v13664_v8  ;;  %vm2120_vm9 = vcmp.eq.s32.totalorder %v13976_v1, 0 }
 0x28b   : > { %v2207_v26 = vor.u32 4788187, %v2206_v15  ;;  %vm2123_vm10 = vcmp.eq.s32.totalorder %v13976_v1, 2  ;;  %v14047_v13 = vmul.u32.u64.low %v13982_v35, %v2278_v30  ;;  %v14048_v47 = vmul.u32.u64.high %v13982_v35, %v2278_v30, %v14047_v13 }
 0x28c   : > { %v2210_v2 = vcvt.s32.f32 %v2203_v34  ;;  %v2270_v27 = vsel %vm2264_vm1, %v2267_v57, %v2269_v45  ;;  %v2344_v0 = vadd.s32 1, %v11213_v23  ;;  %v2217_v53 = vsel %vm14011_vm4, 0, %v2215_v41 }
 0x28d   : > { %v2208_v36 = vand.u32 2147483647, %v2207_v26  ;;  %vm7334_vm11 = vcmp.lt.s32.totalorder %v13980_v49, 2  ;;  %vm7335_vm12 = vcmp.eq.s32.totalorder %v13980_v49, 0  ;;  %v2289_v29 = vadd.s32 1, %v14034_v48 }
 0x28e   : > { %v11924_v17 = vpop.eup %11923  ;;  %vm7338_vm13 = vcmp.eq.s32.totalorder %v13980_v49, 2  ;;  %v2342_v60 = vor.u32 8388608, %v13986_v58  ;;  %vm2345_vm14 = vcmp.gt.s32.totalorder %v2344_v0, 0  ;;  %v2286_v6 = vmul.u32 %v13982_v35, %v2270_v27 }
 0x28f   : > { %v2211_v62 = vmul.f32 %v2210_v2, %v2208_v36  ;;  %v11926_v38 = vpop.eup %11925  ;;  %v2124_v3 = vxor.u32 2147483648, %v11924_v17  ;;  %vm2288_vm15 = vc.u32 %v14048_v47, %v14033_v14  ;;  %v2346_v32 = vsel %vm2345_vm14, %v2344_v0, 0 }
 0x290   : > { %v2121_v55 = vxor.u32 2147483648, %v11926_v38  ;;  %v7436_v51 = vadd.s32 3, %v2217_v53  ;;  %v2290_v7 = vsel %vm2288_vm15, %v2289_v29, %v14034_v48  ;;  %v2348_v58 = vand.u32 31, %v2346_v32 }
 0x291   : > { %v2212_v44 = vxor.u32 2147483648, %v2211_v62  ;;  %v2125_v25 = vsel %vm2123_vm10, %v2124_v3, %v11926_v38  ;;  %v7340_v21 = vsel %vm7338_vm13, %v2124_v3, %v11926_v38  ;;  %v2291_v28 = vadd.s32 %v2290_v7, %v2286_v6 }
 0x292   : > { %v2122_v39 = vsel %vm2120_vm9, %v11924_v17, %v2121_v55  ;;  %v14069_v52 = vand.u32 3, %v2217_v53  ;;  %v7337_v37 = vsel %vm7335_vm12, %v11924_v17, %v2121_v55  ;;  %v2349_v5 = vsub.s32 32, %v2348_v58  ;;  %v17773_v55 = vld [vmem:[#allocation7_spill] sm:$0xff] }
 0x293   : > { %v2213_v35 = vsel %vm2130_vm3, %v2212_v44, %v2211_v62  ;;  %v2126_v12 = vsel %vm2119_vm6, %v2122_v39, %v2125_v25  ;;  %v7341_v19 = vsel %vm7334_vm11, %v7337_v37, %v7340_v21  ;;  %v2292_v40 = vadd.s32 536870912, %v2291_v28 }
 0x294   : > { %v2216_v46 = vsel %vm14011_vm4, %v13776_v10, %v2213_v35  ;;  %v2127_v11 = vsel %vm2117_vm8, nan, %v2126_v12  ;;  %v7342_v59 = vsel %vm2117_vm8, nan, %v7341_v19  ;;  %v14087_v1 = vand.u32 3, %v7436_v51 }
 0x295   : > { %11927 = vcosq.f32 %v2216_v46  ;;  %5747 = vst [vmem:[%s12696_s30 + $0x70] sm:$0xff] %v2127_v11  ;;  %11559 = vst [vmem:[%s12696_s30 + $0x200] sm:$0xff] %v7342_v59  ;;  %v14090_v34 = vshrl.u32 %v2292_v40, 30  ;;  %v501_v49 = vmul.f32 %v12367_v4, %v14073_v43  ;;  %v2351_v24 = vshll.u32 %v17729_v16, %v2348_v58 }
 0x296   : > { %11929 = vsinq.f32 %v2216_v46  ;;  %v2352_v15 = vshrl.u32 %v17730_v61, %v2349_v5  ;;  %v2354_v57 = vshll.u32 %v17730_v61, %v2348_v58  ;;  %v2355_v8 = vshrl.u32 %v17731_v20, %v2349_v5 }
 0x297   : > { %v2294_v54 = vshll.u32 %v14090_v34, 30  ;;  %v2347_v45 = vshrl.u32 %v2346_v32, 5  ;;  %v2357_v63 = vshll.u32 %v17731_v20, %v2348_v58  ;;  %v2358_v48 = vshrl.u32 %v17732_v33, %v2349_v5 }
 0x298   : > { %vm2226_vm3 = vcmp.eq.s32.totalorder %v14069_v52, 2  ;;  %v2353_v26 = vor.u32 %v2352_v15, %v2351_v24  ;;  %v2356_v41 = vor.u32 %v2355_v8, %v2354_v57  ;;  %v2360_v30 = vshll.u32 %v17732_v33, %v2348_v58 }
 0x299   : > { %v2361_v23 = vshrl.u32 %v17733_v56, %v2349_v5  ;;  %vm2223_vm0 = vcmp.eq.s32.totalorder %v14069_v52, 0  ;;  %v14105_v13 = vsub.s32 %v2291_v28, %v2294_v54  ;;  %v2359_v36 = vor.u32 %v2358_v48, %v2357_v63 }
 0x29a   : > { %v2363_v2 = vshll.u32 %v17733_v56, %v2348_v58  ;;  %v2364_v27 = vshrl.u32 %v17734_v50, %v2349_v5  ;;  %vm2222_vm2 = vcmp.lt.s32.totalorder %v14069_v52, 2  ;;  %vm7438_vm4 = vcmp.lt.s32.totalorder %v14087_v1, 2 }
 0x29b   : > { %vm7439_vm5 = vcmp.eq.s32.totalorder %v14087_v1, 0  ;;  %vm7442_vm7 = vcmp.eq.s32.totalorder %v14087_v1, 2  ;;  %v2362_v0 = vor.u32 %v2361_v23, %v2360_v30  ;;  %v2382_v53 = vshll.u32 %v2342_v60, 8 }
 0x29c   : > { %vm2220_vm1 = vweird.f32 %v13776_v10  ;;  %v2297_v29 = vsub.s32 0, %v14105_v13  ;;  %v2365_v17 = vor.u32 %v2364_v27, %v2363_v2  ;;  %vm2366_vm6 = vcmp.lt.s32.totalorder %v2347_v45, 1 }
 0x29d   : > { %vm2369_vm8 = vcmp.lt.s32.totalorder %v2347_v45, 4  ;;  %v2350_v62 = vshrl.u32 %v17729_v16, %v2349_v5  ;;  %v2374_v3 = vsel %vm2366_vm6, %v2353_v26, %v2356_v41  ;;  %vm2367_vm9 = vcmp.lt.s32.totalorder %v2347_v45, 2 }
 0x29e   : > { %v2371_v38 = vsel %vm2369_vm8, %v2359_v36, 2102212464  ;;  %v2375_v6 = vsel %vm2369_vm8, %v2362_v0, 920167782  ;;  %v11210_v32 = vmin.u32 %v2297_v29, %v14105_v13  ;;  %vm2368_vm10 = vcmp.lt.s32.totalorder %v2347_v45, 3 }
 0x29f   : > { %v14118_v44 = vadd.f32 %v501_v49, %v17773_v55  ;;  %v11928_v60 = vpop.eup %11927  ;;  %v2370_v51 = vsel %vm2366_vm6, %v2350_v62, %v2353_v26  ;;  %v2376_v7 = vsel %vm2368_vm10, %v2359_v36, %v2375_v6  ;;  %v2378_v25 = vsel %vm2366_vm6, %v2356_v41, %v2359_v36 }
 0x2a0   : > { %v2379_v21 = vsel %vm2369_vm8, %v2365_v17, 1326507024  ;;  %v11930_v28 = vpop.eup %11929  ;;  %v2227_v58 = vxor.u32 2147483648, %v11928_v60  ;;  %v2299_v39 = vclz %v11210_v32  ;;  %v2372_v35 = vsel %vm2368_vm10, %v2356_v41, %v2371_v38 }
 0x2a1   : > { %v2377_v37 = vsel %vm2367_vm9, %v2374_v3, %v2376_v7  ;;  %v2224_v12 = vxor.u32 2147483648, %v11930_v28  ;;  %v2380_v46 = vsel %vm2368_vm10, %v2362_v0, %v2379_v21  ;;  %v2373_v48 = vsel %vm2367_vm9, %v2370_v51, %v2372_v35  ;;  %v17774_v3 = vld [vmem:[#allocation8_spill] sm:$0xff] }
 0x2a2   : > { %v14121_v19 = vmul.u32.u64.low %v2382_v53, %v2377_v37  ;;  %v14122_v40 = vmul.u32.u64.high %v2382_v53, %v2377_v37, %v14121_v19  ;;  %v2228_v11 = vsel %vm2226_vm3, %v2227_v58, %v11930_v28  ;;  %v7444_v59 = vsel %vm7442_vm7, %v2227_v58, %v11930_v28 }
 0x2a3   : > { %v11211_v5 = vadd.s32 4294967294, %v2299_v39  ;;  %v2381_v49 = vsel %vm2367_vm9, %v2378_v25, %v2380_v46  ;;  %v2225_v24 = vsel %vm2223_vm0, %v11928_v60, %v2224_v12  ;;  %v7441_v15 = vsel %vm7439_vm5, %v11928_v60, %v2224_v12  ;;  %v14178_v46 = vpop.permute.xlu0 %406 }
 0x2a4   : > { %v14134_v57 = vmul.u32.u64.low %v2382_v53, %v2381_v49  ;;  %v14135_v8 = vmul.u32.u64.high %v2382_v53, %v2381_v49, %v14134_v57  ;;  %v2229_v54 = vsel %vm2222_vm2, %v2225_v24, %v2228_v11  ;;  %v7445_v63 = vsel %vm7438_vm4, %v7441_v15, %v7444_v59 }
 0x2a5   : > { %vm11212_vm11 = vcmp.lt.s32.totalorder %v11211_v5, 0  ;;  %v2230_v26 = vsel %vm2220_vm1, nan, %v2229_v54  ;;  %v7446_v41 = vsel %vm2220_vm1, nan, %v7445_v63  ;;  %v2392_v23 = vadd.s32 1, %v14122_v40 }
 0x2a6   : > { %v2302_v30 = vsel %vm11212_vm11, 0, %v11211_v5  ;;  %5748 = vst [vmem:[%s12696_s30 + $0x78] sm:$0xff] %v2230_v26  ;;  %11560 = vst [vmem:[%s12696_s30 + $0x208] sm:$0xff] %v7446_v41  ;;  %v2287_v52 = vadd.s32 %v14033_v14, %v14048_v47  ;;  %v502_v45 = vmul.f32 %v12369_v9, %v14073_v43  ;;  %v2317_v2 = vsub.s32 4, %v14090_v34 }
 0x2a7   : > { %v2303_v36 = vsub.s32 32, %v2302_v30  ;;  %v2307_v1 = vsub.s32 4294967266, %v2302_v30  ;;  %v2389_v27 = vmul.u32 %v2382_v53, %v2373_v48  ;;  %vm2391_vm12 = vc.u32 %v14135_v8, %v14121_v19 }
 0x2a8   : > { %v2304_v10 = vshll.u32 %v14105_v13, %v2302_v30  ;;  %v2393_v17 = vsel %vm2391_vm12, %v2392_v23, %v14122_v40  ;;  %v2440_v14 = vand.u32 2139095040, %v14118_v44  ;;  %v14160_v6 = vadd.f32 %v502_v45, %v17774_v3 }
 0x2a9   : > { %v2305_v0 = vshrl.u32 %v2287_v52, %v2303_v36  ;;  %v2308_v29 = vadd.s32 127, %v2307_v1  ;;  %v2394_v62 = vadd.s32 %v2393_v17, %v2389_v27  ;;  %v2437_v43 = vand.u32 2147483647, %v14118_v44 }
 0x2aa   : > { %vm2233_vm13 = vcmp.lt.s32.totalorder %v13878_v22, 0  ;;  %v2441_v32 = vshrl.u32 %v2440_v14, 23  ;;  %vm14169_vm14 = vcmp.le.f32.partialorder %v2231_v31, 0.7853982  ;;  %v2543_v58 = vand.u32 2139095040, %v14160_v6 }
 0x2ab   : > { %v2306_v47 = vor.u32 %v2305_v0, %v2304_v10  ;;  %v2309_v38 = vshll.u32 %v2308_v29, 23  ;;  %v2395_v53 = vadd.s32 536870912, %v2394_v62  ;;  %v2318_v13 = vsel %vm2233_vm13, %v2317_v2, %v14090_v34 }
 0x2ac   : > { %v11217_v7 = vadd.s32 4294967169, %v2441_v32  ;;  %v2444_v28 = vand.u32 8388607, %v2437_v43  ;;  %v2320_v39 = vsel %vm14169_vm14, 0, %v2318_v13  ;;  %v2544_v31 = vshrl.u32 %v2543_v58, 23 }
 0x2ad   : > { %v2310_v55 = vor.u32 4788187, %v2309_v38  ;;  %v2396_v51 = vshrl.u32 %v2395_v53, 30  ;;  %v2313_v21 = vcvt.s32.f32 %v2306_v47  ;;  %vm2336_vm15 = vcmp.lt.s32.totalorder %v13949_v18, 0 }
 0x2ae   : > { %v2447_v34 = vadd.s32 1, %v11217_v7  ;;  %v7540_v59 = vadd.s32 3, %v2320_v39  ;;  %v2445_v5 = vor.u32 8388608, %v2444_v28  ;;  %vm14185_vm0 = vcmp.le.f32.partialorder %v2334_v42, 0.7853982 }
 0x2af   : > { %v2311_v25 = vand.u32 2147483647, %v2310_v55  ;;  %v2397_v35 = vshll.u32 %v2396_v51, 30  ;;  %v2420_v12 = vsub.s32 4, %v2396_v51  ;;  %v2540_v57 = vand.u32 2147483647, %v14160_v6 }
 0x2b0   : > { %vm2448_vm3 = vcmp.gt.s32.totalorder %v2447_v34, 0  ;;  %v14193_v54 = vmul.f32 %v12367_v4, %v14178_v46  ;;  %v11221_v41 = vadd.s32 4294967169, %v2544_v31  ;;  %v14202_v30 = vand.u32 3, %v2320_v39 }
 0x2b1   : > { %v2314_v37 = vmul.f32 %v2313_v21, %v2311_v25  ;;  %v14181_v40 = vsub.s32 %v2394_v62, %v2397_v35  ;;  %v2449_v49 = vsel %vm2448_vm3, %v2447_v34, 0  ;;  %v2421_v48 = vsel %vm2336_vm15, %v2420_v12, %v2396_v51 }
 0x2b2   : > { %v2451_v26 = vand.u32 31, %v2449_v49  ;;  %v2390_v23 = vadd.s32 %v14121_v19, %v14135_v8  ;;  %v14207_v36 = vand.u32 3, %v7540_v59  ;;  %v14209_v45 = vshll.u32 %v2445_v5, 8 }
 0x2b3   : > { %v2315_v11 = vxor.u32 2147483648, %v2314_v37  ;;  %v2400_v15 = vsub.s32 0, %v14181_v40  ;;  %v14213_v27 = vsel %vm14185_vm0, 0, %v2421_v48  ;;  %v14217_v10 = vand.u32 8388607, %v2540_v57 }
 0x2b4   : > { %v2452_v1 = vsub.s32 32, %v2451_v26  ;;  %v2450_v0 = vshrl.u32 %v2449_v49, 5  ;;  %v2454_v19 = vshll.u32 %v17729_v16, %v2451_v26  ;;  %v2457_v8 = vshll.u32 %v17730_v61, %v2451_v26 }
 0x2b5   : > { %v2316_v63 = vsel %vm2233_vm13, %v2315_v11, %v2314_v37  ;;  %v11214_v52 = vmin.u32 %v2400_v15, %v14181_v40  ;;  %v14221_v29 = vadd.s32 1, %v11221_v41  ;;  %vm2329_vm2 = vcmp.eq.s32.totalorder %v14202_v30, 2 }
 0x2b6   : > { %v2319_v42 = vsel %vm14169_vm14, %v13878_v22, %v2316_v63  ;;  %v2453_v62 = vshrl.u32 %v17729_v16, %v2452_v1  ;;  %v2455_v14 = vshrl.u32 %v17730_v61, %v2452_v1  ;;  %v2458_v47 = vshrl.u32 %v17731_v20, %v2452_v1 }
 0x2b7   : > { %11931 = vcosq.f32 %v2319_v42  ;;  %v2402_v2 = vclz %v11214_v52  ;;  %vm7546_vm4 = vcmp.eq.s32.totalorder %v14207_v36, 2  ;;  %v2460_v38 = vshll.u32 %v17731_v20, %v2451_v26 }
 0x2b8   : > { %11933 = vsinq.f32 %v2319_v42  ;;  %v2461_v3 = vshrl.u32 %v17732_v33, %v2452_v1  ;;  %v2463_v53 = vshll.u32 %v17732_v33, %v2451_v26  ;;  %v2464_v32 = vshrl.u32 %v17733_v56, %v2452_v1 }
 0x2b9   : > { %v11215_v17 = vadd.s32 4294967294, %v2402_v2  ;;  %vm2326_vm5 = vcmp.eq.s32.totalorder %v14202_v30, 0  ;;  %vm7543_vm1 = vcmp.eq.s32.totalorder %v14207_v36, 0  ;;  %v2456_v55 = vor.u32 %v2455_v14, %v2454_v19 }
 0x2ba   : > { %v2466_v13 = vshll.u32 %v17733_v56, %v2451_v26  ;;  %v2467_v60 = vshrl.u32 %v17734_v50, %v2452_v1  ;;  %vm2325_vm6 = vcmp.lt.s32.totalorder %v14202_v30, 2  ;;  %vm7542_vm8 = vcmp.lt.s32.totalorder %v14207_v36, 2 }
 0x2bb   : > { %vm11216_vm7 = vcmp.lt.s32.totalorder %v11215_v17, 0  ;;  %v2459_v7 = vor.u32 %v2458_v47, %v2457_v8  ;;  %v2462_v25 = vor.u32 %v2461_v3, %v2460_v38  ;;  %v2465_v21 = vor.u32 %v2464_v32, %v2463_v53 }
 0x2bc   : > { %v2405_v51 = vsel %vm11216_vm7, 0, %v11215_v17  ;;  %vm2323_vm9 = vweird.f32 %v13878_v22  ;;  %v2468_v39 = vor.u32 %v2467_v60, %v2466_v13  ;;  %vm2469_vm10 = vcmp.lt.s32.totalorder %v2450_v0, 1  ;;  %v17779_v22 = vld [vmem:[#allocation11_spill] sm:$0xff] }
 0x2bd   : > { %v2406_v28 = vsub.s32 32, %v2405_v51  ;;  %v2410_v58 = vsub.s32 4294967266, %v2405_v51  ;;  %v2407_v35 = vshll.u32 %v14181_v40, %v2405_v51  ;;  %vm2470_vm11 = vcmp.lt.s32.totalorder %v2450_v0, 2 }
 0x2be   : > { %vm2471_vm12 = vcmp.lt.s32.totalorder %v2450_v0, 3  ;;  %vm2472_vm13 = vcmp.lt.s32.totalorder %v2450_v0, 4  ;;  %v2473_v12 = vsel %vm2469_vm10, %v2453_v62, %v2456_v55  ;;  %v2477_v5 = vsel %vm2469_vm10, %v2456_v55, %v2459_v7 }
 0x2bf   : > { %v2408_v34 = vshrl.u32 %v2390_v23, %v2406_v28  ;;  %v2411_v37 = vadd.s32 127, %v2410_v58  ;;  %v2474_v31 = vsel %vm2472_vm13, %v2462_v25, 2102212464  ;;  %v2478_v49 = vsel %vm2472_vm13, %v2465_v21, 920167782 }
 0x2c0   : > { %v2475_v59 = vsel %vm2471_vm12, %v2459_v7, %v2474_v31  ;;  %v2482_v15 = vsel %vm2472_vm13, %v2468_v39, 1326507024  ;;  %v2481_v40 = vsel %vm2469_vm10, %v2459_v7, %v2462_v25  ;;  %v2479_v52 = vsel %vm2471_vm12, %v2462_v25, %v2478_v49 }
 0x2c1   : > { %v11932_v11 = vpop.eup %11931  ;;  %v2409_v26 = vor.u32 %v2408_v34, %v2407_v35  ;;  %v2412_v41 = vshll.u32 %v2411_v37, 23  ;;  %v2476_v23 = vsel %vm2470_vm11, %v2473_v12, %v2475_v59  ;;  %v2483_v1 = vsel %vm2471_vm12, %v2465_v21, %v2482_v15 }
 0x2c2   : > { %v11934_v63 = vpop.eup %11933  ;;  %v2330_v48 = vxor.u32 2147483648, %v11932_v11  ;;  %v2480_v47 = vsel %vm2470_vm11, %v2477_v5, %v2479_v52  ;;  %v2484_v38 = vsel %vm2470_vm11, %v2481_v40, %v2483_v1  ;;  %vm2551_vm14 = vcmp.gt.s32.totalorder %v14221_v29, 0  ;;  %v17780_v1 = vld [vmem:[#allocation12_spill] sm:$0xff] }
 0x2c3   : > { %v2327_v42 = vxor.u32 2147483648, %v11934_v63  ;;  %v2413_v19 = vor.u32 4788187, %v2412_v41  ;;  %v2416_v8 = vcvt.s32.f32 %v2409_v26  ;;  %v2552_v36 = vsel %vm2551_vm14, %v14221_v29, 0 }
 0x2c4   : > { %v2331_v2 = vsel %vm2329_vm2, %v2330_v48, %v11934_v63  ;;  %v7548_v17 = vsel %vm7546_vm4, %v2330_v48, %v11934_v63  ;;  %v14267_v60 = vmul.u32.u64.low %v14209_v45, %v2484_v38  ;;  %v14268_v51 = vmul.u32.u64.high %v14209_v45, %v2484_v38, %v14267_v60 }
 0x2c5   : > { %v2328_v62 = vsel %vm2326_vm5, %v11932_v11, %v2327_v42  ;;  %v7545_v14 = vsel %vm7543_vm1, %v11932_v11, %v2327_v42  ;;  %v2414_v53 = vand.u32 2147483647, %v2413_v19  ;;  %v2554_v25 = vand.u32 31, %v2552_v36 }
 0x2c6   : > { %v2332_v3 = vsel %vm2325_vm6, %v2328_v62, %v2331_v2  ;;  %v7549_v32 = vsel %vm7542_vm8, %v7545_v14, %v7548_v17  ;;  %v14273_v30 = vmul.u32.u64.low %v14209_v45, %v2480_v47  ;;  %v14274_v7 = vmul.u32.u64.high %v14209_v45, %v2480_v47, %v14273_v30 }
 0x2c7   : > { %v2333_v55 = vsel %vm2323_vm9, nan, %v2332_v3  ;;  %v7550_v13 = vsel %vm2323_vm9, nan, %v7549_v32  ;;  %v2417_v0 = vmul.f32 %v2416_v8, %v2414_v53  ;;  %v504_v21 = vmul.f32 %v12369_v9, %v14178_v46 }
 0x2c8   : > { %5749 = vst [vmem:[%s12696_s30 + $0x80] sm:$0xff] %v2333_v55  ;;  %11561 = vst [vmem:[%s12696_s30 + $0x210] sm:$0xff] %v7550_v13  ;;  %v14282_v28 = vadd.f32 %v14193_v54, %v17779_v22  ;;  %v14285_v39 = vand.u32 3, %v14213_v27  ;;  %v7644_v35 = vadd.s32 3, %v14213_v27  ;;  %v2548_v34 = vor.u32 8388608, %v14217_v10 }
 0x2c9   : > { %v2418_v58 = vxor.u32 2147483648, %v2417_v0  ;;  %v2492_v37 = vmul.u32 %v14209_v45, %v2476_v23  ;;  %vm2494_vm3 = vc.u32 %v14268_v51, %v14273_v30  ;;  %v14292_v29 = vshrl.u32 %v2552_v36, 5 }
 0x2ca   : > { %v2555_v46 = vsub.s32 32, %v2554_v25  ;;  %v2495_v12 = vadd.s32 1, %v14274_v7  ;;  %v2557_v31 = vshll.u32 %v17729_v16, %v2554_v25  ;;  %v2560_v11 = vshll.u32 %v17730_v61, %v2554_v25 }
 0x2cb   : > { %v2419_v54 = vsel %vm2336_vm15, %v2418_v58, %v2417_v0  ;;  %v2563_v59 = vshll.u32 %v17731_v20, %v2554_v25  ;;  %v2566_v15 = vshll.u32 %v17732_v33, %v2554_v25  ;;  %v2569_v40 = vshll.u32 %v17733_v56, %v2554_v25 }
 0x2cc   : > { %v2422_v27 = vsel %vm14185_vm0, %v13949_v18, %v2419_v54  ;;  %v2558_v45 = vshrl.u32 %v17730_v61, %v2555_v46  ;;  %v2561_v10 = vshrl.u32 %v17731_v20, %v2555_v46  ;;  %v2496_v5 = vsel %vm2494_vm3, %v2495_v12, %v14274_v7 }
 0x2cd   : > { %11935 = vcosq.f32 %v2422_v27  ;;  %v2564_v49 = vshrl.u32 %v17732_v33, %v2555_v46  ;;  %v2497_v63 = vadd.s32 %v2496_v5, %v2492_v37  ;;  %v2567_v24 = vshrl.u32 %v17733_v56, %v2555_v46 }
 0x2ce   : > { %11937 = vsinq.f32 %v2422_v27  ;;  %v2559_v48 = vor.u32 %v2558_v45, %v2557_v31  ;;  %v2562_v26 = vor.u32 %v2561_v10, %v2560_v11  ;;  %v2570_v42 = vshrl.u32 %v17734_v50, %v2555_v46 }
 0x2cf   : > { %v2565_v41 = vor.u32 %v2564_v49, %v2563_v59  ;;  %v2498_v23 = vadd.s32 536870912, %v2497_v63  ;;  %v14311_v52 = vshll.u32 %v2548_v34, 8  ;;  %v14314_v2 = vadd.f32 %v504_v21, %v17780_v1 }
 0x2d0   : > { %v7645_v19 = vand.u32 3, %v7644_v35  ;;  %v2568_v8 = vor.u32 %v2567_v24, %v2566_v15  ;;  %v2571_v17 = vor.u32 %v2570_v42, %v2569_v40  ;;  %v2646_v62 = vand.u32 2139095040, %v14282_v28 }
 0x2d1   : > { %v2499_v14 = vshrl.u32 %v2498_v23, 30  ;;  %vm2572_vm15 = vcmp.lt.s32.totalorder %v14292_v29, 1  ;;  %vm2574_vm0 = vcmp.lt.s32.totalorder %v14292_v29, 3  ;;  %vm2575_vm2 = vcmp.lt.s32.totalorder %v14292_v29, 4 }
 0x2d2   : > { %vm2428_vm4 = vcmp.lt.s32.totalorder %v14285_v39, 2  ;;  %v2580_v47 = vsel %vm2572_vm15, %v2559_v48, %v2562_v26  ;;  %v2581_v38 = vsel %vm2575_vm2, %v2568_v8, 920167782  ;;  %v2584_v3 = vsel %vm2572_vm15, %v2562_v26, %v2565_v41 }
 0x2d3   : > { %v2585_v53 = vsel %vm2575_vm2, %v2571_v17, 1326507024  ;;  %vm2426_vm5 = vweird.f32 %v13949_v18  ;;  %vm2429_vm7 = vcmp.eq.s32.totalorder %v14285_v39, 0  ;;  %vm2432_vm1 = vcmp.eq.s32.totalorder %v14285_v39, 2 }
 0x2d4   : > { %v2500_v32 = vshll.u32 %v2499_v14, 30  ;;  %v2582_v55 = vsel %vm2574_vm0, %v2565_v41, %v2581_v38  ;;  %v2556_v13 = vshrl.u32 %v17729_v16, %v2555_v46  ;;  %vm2573_vm6 = vcmp.lt.s32.totalorder %v14292_v29, 2 }
 0x2d5   : > { %v2577_v60 = vsel %vm2575_vm2, %v2565_v41, 2102212464  ;;  %v2586_v0 = vsel %vm2574_vm0, %v2568_v8, %v2585_v53  ;;  %v2583_v36 = vsel %vm2573_vm6, %v2580_v47, %v2582_v55  ;;  %v2647_v21 = vshrl.u32 %v2646_v62, 23 }
 0x2d6   : > { %v14334_v7 = vsub.s32 %v2497_v63, %v2500_v32  ;;  %v2587_v25 = vsel %vm2573_vm6, %v2584_v3, %v2586_v0  ;;  %vm7646_vm8 = vcmp.lt.s32.totalorder %v7645_v19, 2  ;;  %vm7647_vm9 = vcmp.eq.s32.totalorder %v7645_v19, 0 }
 0x2d7   : > { %v11936_v22 = vpop.eup %11935  ;;  %v14341_v58 = vmul.u32.u64.low %v14311_v52, %v2587_v25  ;;  %v14342_v35 = vmul.u32.u64.high %v14311_v52, %v2587_v25, %v14341_v58  ;;  %v2576_v54 = vsel %vm2572_vm15, %v2556_v13, %v2559_v48  ;;  %v2578_v12 = vsel %vm2574_vm0, %v2562_v26, %v2577_v60 }
 0x2d8   : > { %v11938_v34 = vpop.eup %11937  ;;  %v2433_v37 = vxor.u32 2147483648, %v11936_v22  ;;  %v2503_v46 = vsub.s32 0, %v14334_v7  ;;  %vm7650_vm10 = vcmp.eq.s32.totalorder %v7645_v19, 2  ;;  %v11225_v5 = vadd.s32 4294967169, %v2647_v21  ;;  %v14392_v21 = vpop.permute.xlu1 %410 }
 0x2d9   : > { %v2430_v31 = vxor.u32 2147483648, %v11938_v34  ;;  %v14350_v11 = vmul.u32.u64.low %v14311_v52, %v2583_v36  ;;  %v14351_v27 = vmul.u32.u64.high %v14311_v52, %v2583_v36, %v14350_v11  ;;  %v2523_v63 = vsub.s32 4, %v2499_v14 }
 0x2da   : > { %v2434_v45 = vsel %vm2432_vm1, %v2433_v37, %v11938_v34  ;;  %v7652_v10 = vsel %vm7650_vm10, %v2433_v37, %v11938_v34  ;;  %v11218_v59 = vmin.u32 %v2503_v46, %v14334_v7  ;;  %v2579_v48 = vsel %vm2573_vm6, %v2576_v54, %v2578_v12 }
 0x2db   : > { %v2431_v49 = vsel %vm2429_vm7, %v11936_v22, %v2430_v31  ;;  %v7649_v15 = vsel %vm7647_vm9, %v11936_v22, %v2430_v31  ;;  %v2643_v40 = vand.u32 2147483647, %v14282_v28  ;;  %vm2597_vm11 = vc.u32 %v14342_v35, %v14350_v11 }
 0x2dc   : > { %v2435_v26 = vsel %vm2428_vm4, %v2431_v49, %v2434_v45  ;;  %v7653_v41 = vsel %vm7646_vm8, %v7649_v15, %v7652_v10  ;;  %v2505_v24 = vclz %v11218_v59  ;;  %v2598_v1 = vadd.s32 1, %v14351_v27 }
 0x2dd   : > { %v2436_v42 = vsel %vm2426_vm5, nan, %v2435_v26  ;;  %v7654_v23 = vsel %vm2426_vm5, nan, %v7653_v41  ;;  %vm2439_vm12 = vcmp.lt.s32.totalorder %v14118_v44, 0  ;;  %v2595_v29 = vmul.u32 %v14311_v52, %v2579_v48 }
 0x2de   : > { %5750 = vst [vmem:[%s12696_s30 + $0x88] sm:$0xff] %v2436_v42  ;;  %11562 = vst [vmem:[%s12696_s30 + $0x218] sm:$0xff] %v7654_v23  ;;  %v11219_v39 = vadd.s32 4294967294, %v2505_v24  ;;  %v2653_v19 = vadd.s32 1, %v11225_v5  ;;  %v2524_v8 = vsel %vm2439_vm12, %v2523_v63, %v2499_v14  ;;  %v2599_v17 = vsel %vm2597_vm11, %v2598_v1, %v14351_v27 }
 0x2df   : > { %v2749_v18 = vand.u32 2139095040, %v14314_v2  ;;  %vm14381_vm13 = vcmp.le.f32.partialorder %v2437_v43, 0.7853982  ;;  %v2600_v47 = vadd.s32 %v2599_v17, %v2595_v29  ;;  %v2493_v38 = vadd.s32 %v14273_v30, %v14268_v51 }
 0x2e0   : > { %vm11220_vm14 = vcmp.lt.s32.totalorder %v11219_v39, 0  ;;  %v2650_v3 = vand.u32 8388607, %v2643_v40  ;;  %vm2654_vm3 = vcmp.gt.s32.totalorder %v2653_v19, 0  ;;  %v2526_v32 = vsel %vm14381_vm13, 0, %v2524_v8 }
 0x2e1   : > { %v2508_v52 = vsel %vm11220_vm14, 0, %v11219_v39  ;;  %v2601_v55 = vadd.s32 536870912, %v2600_v47  ;;  %v2655_v43 = vsel %vm2654_vm3, %v2653_v19, 0  ;;  %v2750_v13 = vshrl.u32 %v2749_v18, 23 }
 0x2e2   : > { %v2509_v14 = vsub.s32 32, %v2508_v52  ;;  %v2513_v53 = vsub.s32 4294967266, %v2508_v52  ;;  %v2510_v60 = vshll.u32 %v14334_v7, %v2508_v52  ;;  %v7748_v51 = vadd.s32 3, %v2526_v32 }
 0x2e3   : > { %v2602_v25 = vshrl.u32 %v2601_v55, 30  ;;  %v2651_v30 = vor.u32 8388608, %v2650_v3  ;;  %v2657_v22 = vand.u32 31, %v2655_v43  ;;  %v2746_v46 = vand.u32 2147483647, %v14314_v2 }
 0x2e4   : > { %v2511_v0 = vshrl.u32 %v2493_v38, %v2509_v14  ;;  %v2514_v36 = vadd.s32 127, %v2513_v53  ;;  %v11229_v31 = vadd.s32 4294967169, %v2750_v13  ;;  %v14397_v27 = vmul.f32 %v12367_v4, %v14392_v21 }
 0x2e5   : > { %v2603_v37 = vshll.u32 %v2602_v25, 30  ;;  %v2626_v54 = vsub.s32 4, %v2602_v25  ;;  %v2658_v12 = vsub.s32 32, %v2657_v22  ;;  %vm14401_vm15 = vcmp.le.f32.partialorder %v2540_v57, 0.7853982 }
 0x2e6   : > { %v2512_v58 = vor.u32 %v2511_v0, %v2510_v60  ;;  %v2515_v34 = vshll.u32 %v2514_v36, 23  ;;  %vm2542_vm0 = vcmp.lt.s32.totalorder %v14160_v6, 0  ;;  %v14408_v59 = vand.u32 3, %v2526_v32 }
 0x2e7   : > { %v14406_v10 = vsub.s32 %v2600_v47, %v2603_v37  ;;  %v2596_v5 = vadd.s32 %v14350_v11, %v14342_v35  ;;  %v14411_v49 = vand.u32 3, %v7748_v51  ;;  %v14413_v15 = vshll.u32 %v2651_v30, 8 }
 0x2e8   : > { %v2516_v7 = vor.u32 4788187, %v2515_v34  ;;  %v2519_v48 = vcvt.s32.f32 %v2512_v58  ;;  %v14418_v57 = vand.u32 8388607, %v2746_v46  ;;  %v2627_v41 = vsel %vm2542_vm0, %v2626_v54, %v2602_v25 }
 0x2e9   : > { %v2606_v26 = vsub.s32 0, %v14406_v10  ;;  %v14422_v24 = vshrl.u32 %v2655_v43, 5  ;;  %v2661_v42 = vshrl.u32 %v17730_v61, %v2658_v12  ;;  %v2756_v35 = vadd.s32 1, %v11229_v31 }
 0x2ea   : > { %v2517_v63 = vand.u32 2147483647, %v2516_v7  ;;  %v2664_v1 = vshrl.u32 %v17731_v20, %v2658_v12  ;;  %v2667_v39 = vshrl.u32 %v17732_v33, %v2658_v12  ;;  %v2660_v29 = vshll.u32 %v17729_v16, %v2657_v22 }
 0x2eb   : > { %v11222_v23 = vmin.u32 %v2606_v26, %v14406_v10  ;;  %v2663_v19 = vshll.u32 %v17730_v61, %v2657_v22  ;;  %v2666_v8 = vshll.u32 %v17731_v20, %v2657_v22  ;;  %v2670_v17 = vshrl.u32 %v17733_v56, %v2658_v12 }
 0x2ec   : > { %v2520_v11 = vmul.f32 %v2519_v48, %v2517_v63  ;;  %v14434_v38 = vsel %vm14401_vm15, 0, %v2627_v41  ;;  %v2673_v52 = vshrl.u32 %v17734_v50, %v2658_v12  ;;  %v2659_v3 = vshrl.u32 %v17729_v16, %v2658_v12 }
 0x2ed   : > { %v2608_v47 = vclz %v11222_v23  ;;  %v2662_v14 = vor.u32 %v2661_v42, %v2660_v29  ;;  %v2669_v53 = vshll.u32 %v17732_v33, %v2657_v22  ;;  %v2672_v32 = vshll.u32 %v17733_v56, %v2657_v22 }
 0x2ee   : > { %v2521_v18 = vxor.u32 2147483648, %v2520_v11  ;;  %v2665_v13 = vor.u32 %v2664_v1, %v2663_v19  ;;  %v2668_v60 = vor.u32 %v2667_v39, %v2666_v8  ;;  %vm2675_vm2 = vcmp.lt.s32.totalorder %v14422_v24, 1 }
 0x2ef   : > { %v11223_v43 = vadd.s32 4294967294, %v2608_v47  ;;  %v2671_v36 = vor.u32 %v2670_v17, %v2669_v53  ;;  %v2674_v25 = vor.u32 %v2673_v52, %v2672_v32  ;;  %vm2676_vm5 = vcmp.lt.s32.totalorder %v14422_v24, 2 }
 0x2f0   : > { %v2522_v55 = vsel %vm2439_vm12, %v2521_v18, %v2520_v11  ;;  %vm2677_vm7 = vcmp.lt.s32.totalorder %v14422_v24, 3  ;;  %vm2678_vm1 = vcmp.lt.s32.totalorder %v14422_v24, 4  ;;  %v2679_v30 = vsel %vm2675_vm2, %v2659_v3, %v2662_v14 }
 0x2f1   : > { %v2525_v0 = vsel %vm14381_vm13, %v14118_v44, %v2522_v55  ;;  %vm11224_vm4 = vcmp.lt.s32.totalorder %v11223_v43, 0  ;;  %v2680_v34 = vsel %vm2678_vm1, %v2668_v60, 2102212464  ;;  %v2683_v62 = vsel %vm2675_vm2, %v2662_v14, %v2665_v13 }
 0x2f2   : > { %11939 = vcosq.f32 %v2525_v0  ;;  %v2611_v51 = vsel %vm11224_vm4, 0, %v11223_v43  ;;  %v2684_v54 = vsel %vm2678_vm1, %v2671_v36, 920167782  ;;  %v2687_v12 = vsel %vm2675_vm2, %v2665_v13, %v2668_v60 }
 0x2f3   : > { %11941 = vsinq.f32 %v2525_v0  ;;  %v2612_v22 = vsub.s32 32, %v2611_v51  ;;  %v2616_v58 = vsub.s32 4294967266, %v2611_v51  ;;  %v2613_v37 = vshll.u32 %v14406_v10, %v2611_v51 }
 0x2f4   : > { %v2688_v31 = vsel %vm2678_vm1, %v2674_v25, 1326507024  ;;  %v2685_v48 = vsel %vm2677_vm7, %v2668_v60, %v2684_v54  ;;  %vm2532_vm6 = vcmp.eq.s32.totalorder %v14408_v59, 0  ;;  %v2681_v41 = vsel %vm2677_vm7, %v2665_v13, %v2680_v34 }
 0x2f5   : > { %v2614_v7 = vshrl.u32 %v2596_v5, %v2612_v22  ;;  %v2617_v63 = vadd.s32 127, %v2616_v58  ;;  %v2689_v26 = vsel %vm2677_vm7, %v2671_v36, %v2688_v31  ;;  %v2686_v42 = vsel %vm2676_vm5, %v2683_v62, %v2685_v48 }
 0x2f6   : > { %v2690_v10 = vsel %vm2676_vm5, %v2687_v12, %v2689_v26  ;;  %vm2757_vm8 = vcmp.gt.s32.totalorder %v2756_v35, 0  ;;  %vm2531_vm9 = vcmp.lt.s32.totalorder %v14408_v59, 2  ;;  %vm2529_vm10 = vweird.f32 %v14118_v44 }
 0x2f7   : > { %v2615_v5 = vor.u32 %v2614_v7, %v2613_v37  ;;  %v2618_v11 = vshll.u32 %v2617_v63, 23  ;;  %v14463_v23 = vmul.u32.u64.low %v14413_v15, %v2690_v10  ;;  %v14464_v1 = vmul.u32.u64.high %v14413_v15, %v2690_v10, %v14463_v23 }
 0x2f8   : > { %vm2535_vm11 = vcmp.eq.s32.totalorder %v14408_v59, 2  ;;  %v14469_v39 = vmul.u32.u64.low %v14413_v15, %v2686_v42  ;;  %v14470_v29 = vmul.u32.u64.high %v14413_v15, %v2686_v42, %v14469_v39  ;;  %v2758_v19 = vsel %vm2757_vm8, %v2756_v35, 0  ;;  %v17785_v23 = vld [vmem:[#allocation9_spill] sm:$0xff] }
 0x2f9   : > { %v2619_v8 = vor.u32 4788187, %v2618_v11  ;;  %vm7750_vm12 = vcmp.lt.s32.totalorder %v14411_v49, 2  ;;  %v2682_v17 = vsel %vm2676_vm5, %v2679_v30, %v2681_v41  ;;  %v2760_v18 = vand.u32 31, %v2758_v19 }
 0x2fa   : > { %vm7751_vm13 = vcmp.eq.s32.totalorder %v14411_v49, 0  ;;  %vm7754_vm14 = vcmp.eq.s32.totalorder %v14411_v49, 2  ;;  %v7852_v47 = vadd.s32 3, %v14434_v38  ;;  %v2754_v52 = vor.u32 8388608, %v14418_v57 }
 0x2fb   : > { %v2620_v14 = vand.u32 2147483647, %v2619_v8  ;;  %v2622_v53 = vcvt.s32.f32 %v2615_v5  ;;  %vm2700_vm3 = vc.u32 %v14464_v1, %v14469_v39  ;;  %v2761_v35 = vsub.s32 32, %v2760_v18 }
 0x2fc   : > { %v11940_v3 = vpop.eup %11939  ;;  %v2698_v24 = vmul.u32 %v14413_v15, %v2682_v17  ;;  %v2701_v43 = vadd.s32 1, %v14470_v29  ;;  %v14484_v13 = vshrl.u32 %v2758_v19, 5  ;;  %v2763_v36 = vshll.u32 %v17729_v16, %v2760_v18 }
 0x2fd   : > { %v11942_v32 = vpop.eup %11941  ;;  %v2536_v55 = vxor.u32 2147483648, %v11940_v3  ;;  %v2623_v0 = vmul.f32 %v2622_v53, %v2620_v14  ;;  %v2764_v57 = vshrl.u32 %v17730_v61, %v2761_v35  ;;  %v2767_v15 = vshrl.u32 %v17731_v20, %v2761_v35 }
 0x2fe   : > { %v2533_v60 = vxor.u32 2147483648, %v11942_v32  ;;  %v2702_v30 = vsel %vm2700_vm3, %v2701_v43, %v14470_v29  ;;  %v2766_v31 = vshll.u32 %v17730_v61, %v2760_v18  ;;  %v2769_v41 = vshll.u32 %v17731_v20, %v2760_v18 }
 0x2ff   : > { %v2537_v25 = vsel %vm2535_vm11, %v2536_v55, %v11942_v32  ;;  %v7756_v51 = vsel %vm7754_vm14, %v2536_v55, %v11942_v32  ;;  %v2624_v58 = vxor.u32 2147483648, %v2623_v0  ;;  %v2703_v62 = vadd.s32 %v2702_v30, %v2698_v24 }
 0x300   : > { %v2534_v22 = vsel %vm2532_vm6, %v11940_v3, %v2533_v60  ;;  %v7753_v34 = vsel %vm7751_vm13, %v11940_v3, %v2533_v60  ;;  %v2765_v12 = vor.u32 %v2764_v57, %v2763_v36  ;;  %v2768_v49 = vor.u32 %v2767_v15, %v2766_v31 }
 0x301   : > { %v2538_v37 = vsel %vm2531_vm9, %v2534_v22, %v2537_v25  ;;  %v7757_v54 = vsel %vm7750_vm12, %v7753_v34, %v7756_v51  ;;  %v2625_v63 = vsel %vm2542_vm0, %v2624_v58, %v2623_v0  ;;  %v2704_v26 = vadd.s32 536870912, %v2703_v62 }
 0x302   : > { %v2539_v7 = vsel %vm2529_vm10, nan, %v2538_v37  ;;  %v7758_v48 = vsel %vm2529_vm10, nan, %v7757_v54  ;;  %v2628_v59 = vsel %vm14401_vm15, %v14160_v6, %v2625_v63  ;;  %v2770_v42 = vshrl.u32 %v17732_v33, %v2761_v35 }
 0x303   : > { %5751 = vst [vmem:[%s12696_s30 + $0x90] sm:$0xff] %v2539_v7  ;;  %11563 = vst [vmem:[%s12696_s30 + $0x220] sm:$0xff] %v7758_v48  ;;  %11943 = vcosq.f32 %v2628_v59  ;;  %v14516_v10 = vshrl.u32 %v2704_v26, 30  ;;  %v2772_v5 = vshll.u32 %v17732_v33, %v2760_v18  ;;  %v2773_v44 = vshrl.u32 %v17733_v56, %v2761_v35 }
 0x304   : > { %11945 = vsinq.f32 %v2628_v59  ;;  %v2775_v11 = vshll.u32 %v17733_v56, %v2760_v18  ;;  %v2776_v45 = vshrl.u32 %v17734_v50, %v2761_v35  ;;  %v14524_v29 = vadd.f32 %v14397_v27, %v17785_v23 }
 0x305   : > { %v2633_v19 = vand.u32 3, %v14434_v38  ;;  %v2706_v8 = vshll.u32 %v14516_v10, 30  ;;  %v2771_v17 = vor.u32 %v2770_v42, %v2769_v41  ;;  %v2774_v3 = vor.u32 %v2773_v44, %v2772_v5 }
 0x306   : > { %v2777_v14 = vor.u32 %v2776_v45, %v2775_v11  ;;  %vm2778_vm15 = vcmp.lt.s32.totalorder %v14484_v13, 1  ;;  %v7853_v53 = vand.u32 3, %v7852_v47  ;;  %vm2781_vm0 = vcmp.lt.s32.totalorder %v14484_v13, 4 }
 0x307   : > { %v14529_v32 = vsub.s32 %v2703_v62, %v2706_v8  ;;  %v2786_v18 = vsel %vm2778_vm15, %v2765_v12, %v2768_v49  ;;  %vm2780_vm2 = vcmp.lt.s32.totalorder %v14484_v13, 3  ;;  %v2787_v27 = vsel %vm2781_vm0, %v2774_v3, 920167782 }
 0x308   : > { %v14537_v38 = vshll.u32 %v2754_v52, 8  ;;  %v2852_v55 = vand.u32 2139095040, %v14524_v29  ;;  %vm2634_vm4 = vcmp.lt.s32.totalorder %v2633_v19, 2  ;;  %vm2645_vm5 = vcmp.lt.s32.totalorder %v14282_v28, 0 }
 0x309   : > { %v2709_v47 = vsub.s32 0, %v14529_v32  ;;  %v2762_v24 = vshrl.u32 %v17729_v16, %v2761_v35  ;;  %vm2779_vm7 = vcmp.lt.s32.totalorder %v14484_v13, 2  ;;  %v2788_v43 = vsel %vm2780_vm2, %v2771_v17, %v2787_v27 }
 0x30a   : > { %vm2632_vm1 = vweird.f32 %v14160_v6  ;;  %v2783_v52 = vsel %vm2781_vm0, %v2771_v17, 2102212464  ;;  %v2789_v60 = vsel %vm2779_vm7, %v2786_v18, %v2788_v43  ;;  %v2790_v0 = vsel %vm2778_vm15, %v2768_v49, %v2771_v17 }
 0x30b   : > { %v2791_v36 = vsel %vm2781_vm0, %v2777_v14, 1326507024  ;;  %vm2635_vm6 = vcmp.eq.s32.totalorder %v2633_v19, 0  ;;  %vm2638_vm8 = vcmp.eq.s32.totalorder %v2633_v19, 2  ;;  %vm7854_vm9 = vcmp.lt.s32.totalorder %v7853_v53, 2 }
 0x30c   : > { %v11226_v35 = vmin.u32 %v2709_v47, %v14529_v32  ;;  %vm14558_vm10 = vcmp.le.f32.partialorder %v2643_v40, 0.7853982  ;;  %v2782_v25 = vsel %vm2778_vm15, %v2762_v24, %v2765_v12  ;;  %v2792_v51 = vsel %vm2780_vm2, %v2774_v3, %v2791_v36 }
 0x30d   : > { %v14567_v30 = vmul.u32.u64.low %v14537_v38, %v2789_v60  ;;  %v14568_v15 = vmul.u32.u64.high %v14537_v38, %v2789_v60, %v14567_v30  ;;  %v11944_v22 = vpop.eup %11943  ;;  %v2784_v34 = vsel %vm2780_vm2, %v2768_v49, %v2783_v52  ;;  %v2793_v40 = vsel %vm2779_vm7, %v2790_v0, %v2792_v51 }
 0x30e   : > { %v2711_v58 = vclz %v11226_v35  ;;  %v2853_v62 = vshrl.u32 %v2852_v55, 23  ;;  %v11946_v37 = vpop.eup %11945  ;;  %v2639_v54 = vxor.u32 2147483648, %v11944_v22  ;;  %v2729_v12 = vsub.s32 4, %v14516_v10 }
 0x30f   : > { %v14577_v31 = vmul.u32.u64.low %v14537_v38, %v2793_v40  ;;  %v14578_v7 = vmul.u32.u64.high %v14537_v38, %v2793_v40, %v14577_v31  ;;  %v2636_v63 = vxor.u32 2147483648, %v11946_v37  ;;  %vm7855_vm11 = vcmp.eq.s32.totalorder %v7853_v53, 0 }
 0x310   : > { %vm7858_vm12 = vcmp.eq.s32.totalorder %v7853_v53, 2  ;;  %v11227_v48 = vadd.s32 4294967294, %v2711_v58  ;;  %v2640_v26 = vsel %vm2638_vm8, %v2639_v54, %v11946_v37  ;;  %v2785_v49 = vsel %vm2779_vm7, %v2782_v25, %v2784_v34 }
 0x311   : > { %v7860_v59 = vsel %vm7858_vm12, %v2639_v54, %v11946_v37  ;;  %v11233_v41 = vadd.s32 4294967169, %v2853_v62  ;;  %v2637_v42 = vsel %vm2635_vm6, %v11944_v22, %v2636_v63  ;;  %v7857_v5 = vsel %vm7855_vm11, %v11944_v22, %v2636_v63 }
 0x312   : > { %vm11228_vm13 = vcmp.lt.s32.totalorder %v11227_v48, 0  ;;  %v2804_v44 = vadd.s32 1, %v14568_v15  ;;  %v2641_v11 = vsel %vm2634_vm4, %v2637_v42, %v2640_v26  ;;  %v7861_v45 = vsel %vm7854_vm9, %v7857_v5, %v7860_v59 }
 0x313   : > { %v2714_v23 = vsel %vm11228_vm13, 0, %v11227_v48  ;;  %v2730_v8 = vsel %vm2645_vm5, %v2729_v12, %v14516_v10  ;;  %v2642_v13 = vsel %vm2632_vm1, nan, %v2641_v11  ;;  %v7862_v17 = vsel %vm2632_vm1, nan, %v7861_v45 }
 0x314   : > { %v2699_v3 = vadd.s32 %v14469_v39, %v14464_v1  ;;  %v2715_v14 = vsub.s32 32, %v2714_v23  ;;  %5752 = vst [vmem:[%s12696_s30 + $0x98] sm:$0xff] %v2642_v13  ;;  %11564 = vst [vmem:[%s12696_s30 + $0x228] sm:$0xff] %v7862_v17  ;;  %v2719_v19 = vsub.s32 4294967266, %v2714_v23  ;;  %v2801_v53 = vmul.u32 %v14537_v38, %v2785_v49 }
 0x315   : > { %vm2803_vm14 = vc.u32 %v14578_v7, %v14567_v30  ;;  %v2859_v18 = vadd.s32 1, %v11233_v41  ;;  %v2732_v27 = vsel %vm14558_vm10, 0, %v2730_v8  ;;  %v2849_v55 = vand.u32 2147483647, %v14524_v29 }
 0x316   : > { %v2717_v10 = vshrl.u32 %v2699_v3, %v2715_v14  ;;  %v2805_v6 = vsel %vm2803_vm14, %v2804_v44, %v14568_v15  ;;  %v2716_v1 = vshll.u32 %v14529_v32, %v2714_v23  ;;  %v2720_v39 = vadd.s32 127, %v2719_v19  ;;  %v17788_v32 = vld [vmem:[#allocation10_spill] sm:$0xff] }
 0x317   : > { %v2806_v47 = vadd.s32 %v2805_v6, %v2801_v53  ;;  %vm2860_vm3 = vcmp.gt.s32.totalorder %v2859_v18, 0  ;;  %v506_v38 = vmul.f32 %v12369_v9, %v14392_v21  ;;  %v7956_v36 = vadd.s32 3, %v2732_v27 }
 0x318   : > { %v2861_v24 = vsel %vm2860_vm3, %v2859_v18, 0  ;;  %v2718_v43 = vor.u32 %v2717_v10, %v2716_v1  ;;  %v2721_v52 = vshll.u32 %v2720_v39, 23  ;;  %v2856_v35 = vand.u32 8388607, %v2849_v55 }
 0x319   : > { %v2807_v60 = vadd.s32 536870912, %v2806_v47  ;;  %v2863_v0 = vand.u32 31, %v2861_v24  ;;  %v14613_v22 = vadd.f32 %v506_v38, %v17788_v32  ;;  %v14615_v40 = vand.u32 3, %v2732_v27 }
 0x31a   : > { %v2722_v25 = vor.u32 4788187, %v2721_v52  ;;  %v2725_v34 = vcvt.s32.f32 %v2718_v43  ;;  %v14618_v62 = vand.u32 3, %v7956_v36  ;;  %v2857_v37 = vor.u32 8388608, %v2856_v35 }
 0x31b   : > { %v14610_v51 = vshrl.u32 %v2807_v60, 30  ;;  %v2864_v15 = vsub.s32 32, %v2863_v0  ;;  %v14626_v59 = vshrl.u32 %v2861_v24, 5  ;;  %v2866_v49 = vshll.u32 %v17729_v16, %v2863_v0 }
 0x31c   : > { %v2723_v58 = vand.u32 2147483647, %v2722_v25  ;;  %v2869_v41 = vshll.u32 %v17730_v61, %v2863_v0  ;;  %v2872_v11 = vshll.u32 %v17731_v20, %v2863_v0  ;;  %v2875_v45 = vshll.u32 %v17732_v33, %v2863_v0 }
 0x31d   : > { %v2809_v21 = vshll.u32 %v14610_v51, 30  ;;  %v2867_v54 = vshrl.u32 %v17730_v61, %v2864_v15  ;;  %v2870_v12 = vshrl.u32 %v17731_v20, %v2864_v15  ;;  %v2873_v48 = vshrl.u32 %v17732_v33, %v2864_v15 }
 0x31e   : > { %v2726_v31 = vmul.f32 %v2725_v34, %v2723_v58  ;;  %v2876_v26 = vshrl.u32 %v17733_v56, %v2864_v15  ;;  %v2879_v42 = vshrl.u32 %v17734_v50, %v2864_v15  ;;  %v2878_v13 = vshll.u32 %v17733_v56, %v2863_v0 }
 0x31f   : > { %v14622_v63 = vsub.s32 %v2806_v47, %v2809_v21  ;;  %v2868_v23 = vor.u32 %v2867_v54, %v2866_v49  ;;  %v2871_v8 = vor.u32 %v2870_v12, %v2869_v41  ;;  %v14635_v17 = vshll.u32 %v2857_v37, 8 }
 0x320   : > { %v2727_v5 = vxor.u32 2147483648, %v2726_v31  ;;  %vm2748_vm15 = vcmp.lt.s32.totalorder %v14314_v2, 0  ;;  %v2874_v19 = vor.u32 %v2873_v48, %v2872_v11  ;;  %v2877_v53 = vor.u32 %v2876_v26, %v2875_v45 }
 0x321   : > { %v2812_v44 = vsub.s32 0, %v14622_v63  ;;  %v2832_v10 = vsub.s32 4, %v14610_v51  ;;  %v2880_v27 = vor.u32 %v2879_v42, %v2878_v13  ;;  %v2955_v6 = vand.u32 2139095040, %v14613_v22 }
 0x322   : > { %v2728_v3 = vsel %vm2645_vm5, %v2727_v5, %v2726_v31  ;;  %v2865_v39 = vshrl.u32 %v17729_v16, %v2864_v15  ;;  %vm2881_vm0 = vcmp.lt.s32.totalorder %v14626_v59, 1  ;;  %vm14650_vm2 = vcmp.le.f32.partialorder %v2746_v46, 0.7853982 }
 0x323   : > { %v11230_v14 = vmin.u32 %v2812_v44, %v14622_v63  ;;  %v2731_v18 = vsel %vm14558_vm10, %v14282_v28, %v2728_v3  ;;  %vm2882_vm4 = vcmp.lt.s32.totalorder %v14626_v59, 2  ;;  %vm2883_vm5 = vcmp.lt.s32.totalorder %v14626_v59, 3 }
 0x324   : > { %11947 = vcosq.f32 %v2731_v18  ;;  %vm2884_vm7 = vcmp.lt.s32.totalorder %v14626_v59, 4  ;;  %v2889_v24 = vsel %vm2881_vm0, %v2868_v23, %v2871_v8  ;;  %v2885_v52 = vsel %vm2881_vm0, %v2865_v39, %v2868_v23 }
 0x325   : > { %v2814_v1 = vclz %v11230_v14  ;;  %11949 = vsinq.f32 %v2731_v18  ;;  %v2886_v38 = vsel %vm2884_vm7, %v2874_v19, 2102212464  ;;  %v2890_v43 = vsel %vm2884_vm7, %v2877_v53, 920167782 }
 0x326   : > { %v2891_v60 = vsel %vm2883_vm5, %v2874_v19, %v2890_v43  ;;  %v2893_v0 = vsel %vm2881_vm0, %v2871_v8, %v2874_v19  ;;  %v2894_v36 = vsel %vm2884_vm7, %v2880_v27, 1326507024  ;;  %vm2741_vm1 = vcmp.eq.s32.totalorder %v14615_v40, 2 }
 0x327   : > { %v11231_v57 = vadd.s32 4294967294, %v2814_v1  ;;  %v2887_v46 = vsel %vm2883_vm5, %v2871_v8, %v2886_v38  ;;  %v2892_v35 = vsel %vm2882_vm4, %v2889_v24, %v2891_v60  ;;  %v2895_v25 = vsel %vm2883_vm5, %v2877_v53, %v2894_v36 }
 0x328   : > { %vm2738_vm8 = vcmp.eq.s32.totalorder %v14615_v40, 0  ;;  %v2896_v32 = vsel %vm2882_vm4, %v2893_v0, %v2895_v25  ;;  %v14664_v58 = vmul.u32.u64.low %v14635_v17, %v2892_v35  ;;  %v14665_v34 = vmul.u32.u64.high %v14635_v17, %v2892_v35, %v14664_v58 }
 0x329   : > { %vm11232_vm6 = vcmp.lt.s32.totalorder %v11231_v57, 0  ;;  %vm2737_vm9 = vcmp.lt.s32.totalorder %v14615_v40, 2  ;;  %v2802_v21 = vadd.s32 %v14567_v30, %v14578_v7  ;;  %vm7958_vm10 = vcmp.lt.s32.totalorder %v14618_v62, 2 }
 0x32a   : > { %v2817_v15 = vsel %vm11232_vm6, 0, %v11231_v57  ;;  %v2952_v12 = vand.u32 2147483647, %v14613_v22  ;;  %vm2735_vm11 = vweird.f32 %v14282_v28  ;;  %v2833_v31 = vsel %vm2748_vm15, %v2832_v10, %v14610_v51 }
 0x32b   : > { %v2818_v37 = vsub.s32 32, %v2817_v15  ;;  %v2822_v54 = vsub.s32 4294967266, %v2817_v15  ;;  %v14678_v48 = vmul.u32.u64.low %v14635_v17, %v2896_v32  ;;  %v14679_v26 = vmul.u32.u64.high %v14635_v17, %v2896_v32, %v14678_v48 }
 0x32c   : > { %v2956_v49 = vshrl.u32 %v2955_v6, 23  ;;  %v2819_v41 = vshll.u32 %v14622_v63, %v2817_v15  ;;  %v2888_v42 = vsel %vm2882_vm4, %v2885_v52, %v2887_v46  ;;  %vm7959_vm12 = vcmp.eq.s32.totalorder %v14618_v62, 0 }
 0x32d   : > { %v2820_v30 = vshrl.u32 %v2802_v21, %v2818_v37  ;;  %v2823_v7 = vadd.s32 127, %v2822_v54  ;;  %vm7962_vm13 = vcmp.eq.s32.totalorder %v14618_v62, 2  ;;  %v2907_v5 = vadd.s32 1, %v14665_v34  ;;  %v415_v37 = vpop.permute.xlu0 %414 }
 0x32e   : > { %v11237_v44 = vadd.s32 4294967169, %v2956_v49  ;;  %v11948_v51 = vpop.eup %11947  ;;  %v2835_v23 = vsel %vm14650_vm2, 0, %v2833_v31  ;;  %v14691_v63 = vand.u32 8388607, %v2952_v12  ;;  %v2904_v13 = vmul.u32 %v14635_v17, %v2888_v42 }
 0x32f   : > { %v2821_v11 = vor.u32 %v2820_v30, %v2819_v41  ;;  %v2824_v45 = vshll.u32 %v2823_v7, 23  ;;  %v11950_v8 = vpop.eup %11949  ;;  %v2742_v59 = vxor.u32 2147483648, %v11948_v51  ;;  %vm2906_vm14 = vc.u32 %v14679_v26, %v14664_v58 }
 0x330   : > { %v2962_v3 = vadd.s32 1, %v11237_v44  ;;  %v2739_v14 = vxor.u32 2147483648, %v11950_v8  ;;  %v2908_v18 = vsel %vm2906_vm14, %v2907_v5, %v14665_v34  ;;  %v8060_v43 = vadd.s32 3, %v2835_v23 }
 0x331   : > { %v2825_v19 = vor.u32 4788187, %v2824_v45  ;;  %v2828_v53 = vcvt.s32.f32 %v2821_v11  ;;  %v2743_v10 = vsel %vm2741_vm1, %v2742_v59, %v11950_v8  ;;  %v7964_v27 = vsel %vm7962_vm13, %v2742_v59, %v11950_v8 }
 0x332   : > { %v2909_v6 = vadd.s32 %v2908_v18, %v2904_v13  ;;  %vm2963_vm3 = vcmp.gt.s32.totalorder %v2962_v3, 0  ;;  %v2740_v17 = vsel %vm2738_vm8, %v11948_v51, %v2739_v14  ;;  %v7961_v39 = vsel %vm7959_vm12, %v11948_v51, %v2739_v14 }
 0x333   : > { %v2826_v1 = vand.u32 2147483647, %v2825_v19  ;;  %v2964_v57 = vsel %vm2963_vm3, %v2962_v3, 0  ;;  %v2744_v38 = vsel %vm2737_vm9, %v2740_v17, %v2743_v10  ;;  %v7965_v24 = vsel %vm7958_vm10, %v7961_v39, %v7964_v27  ;;  %v17791_v17 = vld [vmem:[#allocation15_spill] sm:$0xff] }
 0x334   : > { %v2910_v52 = vadd.s32 536870912, %v2909_v6  ;;  %v2745_v60 = vsel %vm2735_vm11, nan, %v2744_v38  ;;  %v7966_v36 = vsel %vm2735_vm11, nan, %v7965_v24  ;;  %v2966_v46 = vand.u32 31, %v2964_v57 }
 0x335   : > { %v2829_v0 = vmul.f32 %v2828_v53, %v2826_v1  ;;  %5753 = vst [vmem:[%s12696_s30 + $0xa0] sm:$0xff] %v2745_v60  ;;  %11565 = vst [vmem:[%s12696_s30 + $0x230] sm:$0xff] %v7966_v36  ;;  %v14717_v40 = vand.u32 3, %v2835_v23  ;;  %v14719_v62 = vand.u32 3, %v8060_v43  ;;  %v2960_v34 = vor.u32 8388608, %v14691_v63 }
 0x336   : > { %v14715_v35 = vshrl.u32 %v2910_v52, 30  ;;  %v2967_v15 = vsub.s32 32, %v2966_v46  ;;  %v2969_v21 = vshll.u32 %v17729_v16, %v2966_v46  ;;  %v2972_v31 = vshll.u32 %v17730_v61, %v2966_v46 }
 0x337   : > { %v2830_v25 = vxor.u32 2147483648, %v2829_v0  ;;  %v2975_v30 = vshll.u32 %v17731_v20, %v2966_v46  ;;  %v14736_v42 = vshrl.u32 %v2964_v57, 5  ;;  %v507_v44 = vmul.f32 %v12367_v4, %v415_v37 }
 0x338   : > { %v2912_v32 = vshll.u32 %v14715_v35, 30  ;;  %v2970_v54 = vshrl.u32 %v17730_v61, %v2967_v15  ;;  %v2973_v48 = vshrl.u32 %v17731_v20, %v2967_v15  ;;  %v2976_v7 = vshrl.u32 %v17732_v33, %v2967_v15 }
 0x339   : > { %v2831_v28 = vsel %vm2748_vm15, %v2830_v25, %v2829_v0  ;;  %v2978_v47 = vshll.u32 %v17732_v33, %v2966_v46  ;;  %v2979_v23 = vshrl.u32 %v17733_v56, %v2967_v15  ;;  %v2981_v63 = vshll.u32 %v17733_v56, %v2966_v46 }
 0x33a   : > { %v2834_v49 = vsel %vm14650_vm2, %v14314_v2, %v2831_v28  ;;  %v14732_v41 = vsub.s32 %v2909_v6, %v2912_v32  ;;  %v2971_v5 = vor.u32 %v2970_v54, %v2969_v21  ;;  %v2974_v11 = vor.u32 %v2973_v48, %v2972_v31 }
 0x33b   : > { %11951 = vcosq.f32 %v2834_v49  ;;  %v2977_v45 = vor.u32 %v2976_v7, %v2975_v30  ;;  %v2982_v8 = vshrl.u32 %v17734_v50, %v2967_v15  ;;  %v508_v13 = vmul.f32 %v12369_v9, %v415_v37  ;;  %v17792_v30 = vld [vmem:[#allocation16_spill] sm:$0xff] }
 0x33c   : > { %11953 = vsinq.f32 %v2834_v49  ;;  %v2915_v51 = vsub.s32 0, %v14732_v41  ;;  %vm2844_vm15 = vcmp.eq.s32.totalorder %v14717_v40, 2  ;;  %vm8066_vm0 = vcmp.eq.s32.totalorder %v14719_v62, 2 }
 0x33d   : > { %v2980_v3 = vor.u32 %v2979_v23, %v2978_v47  ;;  %v2983_v14 = vor.u32 %v2982_v8, %v2981_v63  ;;  %vm2984_vm2 = vcmp.lt.s32.totalorder %v14736_v42, 1  ;;  %v14749_v19 = vshll.u32 %v2960_v34, 8 }
 0x33e   : > { %v11234_v59 = vmin.u32 %v2915_v51, %v14732_v41  ;;  %vm2841_vm4 = vcmp.eq.s32.totalorder %v14717_v40, 0  ;;  %vm8063_vm5 = vcmp.eq.s32.totalorder %v14719_v62, 0  ;;  %vm2987_vm7 = vcmp.lt.s32.totalorder %v14736_v42, 4 }
 0x33f   : > { %v2992_v18 = vsel %vm2984_vm2, %v2971_v5, %v2974_v11  ;;  %v2996_v10 = vsel %vm2984_vm2, %v2974_v11, %v2977_v45  ;;  %vm2840_vm1 = vcmp.lt.s32.totalorder %v14717_v40, 2  ;;  %vm8062_vm6 = vcmp.lt.s32.totalorder %v14719_v62, 2 }
 0x340   : > { %v2917_v53 = vclz %v11234_v59  ;;  %vm2986_vm8 = vcmp.lt.s32.totalorder %v14736_v42, 3  ;;  %v2993_v27 = vsel %vm2987_vm7, %v2980_v3, 920167782  ;;  %v2997_v6 = vsel %vm2987_vm7, %v2983_v14, 1326507024 }
 0x341   : > { %v14766_v1 = vadd.f32 %v507_v44, %v17791_v17  ;;  %vm2838_vm9 = vweird.f32 %v14314_v2  ;;  %vm2985_vm10 = vcmp.lt.s32.totalorder %v14736_v42, 2  ;;  %v2994_v57 = vsel %vm2986_vm8, %v2977_v45, %v2993_v27 }
 0x342   : > { %v11235_v39 = vadd.s32 4294967294, %v2917_v53  ;;  %v2998_v38 = vsel %vm2986_vm8, %v2980_v3, %v2997_v6  ;;  %vm2851_vm11 = vcmp.lt.s32.totalorder %v14524_v29, 0  ;;  %v2968_v24 = vshrl.u32 %v17729_v16, %v2967_v15 }
 0x343   : > { %v2989_v43 = vsel %vm2987_vm7, %v2977_v45, 2102212464  ;;  %v2995_v52 = vsel %vm2985_vm10, %v2992_v18, %v2994_v57  ;;  %v2999_v60 = vsel %vm2985_vm10, %v2996_v10, %v2998_v38  ;;  %v2905_v0 = vadd.s32 %v14664_v58, %v14679_v26 }
 0x344   : > { %vm11236_vm12 = vcmp.lt.s32.totalorder %v11235_v39, 0  ;;  %v14785_v36 = vmul.u32.u64.low %v14749_v19, %v2999_v60  ;;  %v14786_v46 = vmul.u32.u64.high %v14749_v19, %v2999_v60, %v14785_v36  ;;  %v2988_v15 = vsel %vm2984_vm2, %v2968_v24, %v2971_v5 }
 0x345   : > { %v11952_v25 = vpop.eup %11951  ;;  %v2920_v32 = vsel %vm11236_vm12, 0, %v11235_v39  ;;  %v14791_v34 = vmul.u32.u64.low %v14749_v19, %v2995_v52  ;;  %v14792_v21 = vmul.u32.u64.high %v14749_v19, %v2995_v52, %v14791_v34  ;;  %v2990_v58 = vsel %vm2986_vm8, %v2974_v11, %v2989_v43 }
 0x346   : > { %v11954_v37 = vpop.eup %11953  ;;  %v2845_v28 = vxor.u32 2147483648, %v11952_v25  ;;  %v2921_v54 = vsub.s32 32, %v2920_v32  ;;  %v2925_v31 = vsub.s32 4294967266, %v2920_v32  ;;  %v2922_v48 = vshll.u32 %v14732_v41, %v2920_v32 }
 0x347   : > { %v2842_v26 = vxor.u32 2147483648, %v11954_v37  ;;  %v2935_v49 = vsub.s32 4, %v14715_v35  ;;  %v14800_v7 = vadd.f32 %v508_v13, %v17792_v30  ;;  %v2991_v47 = vsel %vm2985_vm10, %v2988_v15, %v2990_v58 }
 0x348   : > { %v2846_v5 = vsel %vm2844_vm15, %v2845_v28, %v11954_v37  ;;  %v8068_v44 = vsel %vm8066_vm0, %v2845_v28, %v11954_v37  ;;  %v2923_v51 = vshrl.u32 %v2905_v0, %v2921_v54  ;;  %v2926_v45 = vadd.s32 127, %v2925_v31 }
 0x349   : > { %v2843_v11 = vsel %vm2841_vm4, %v11952_v25, %v2842_v26  ;;  %v8065_v41 = vsel %vm8063_vm5, %v11952_v25, %v2842_v26  ;;  %vm3009_vm13 = vc.u32 %v14786_v46, %v14791_v34  ;;  %v3010_v42 = vadd.s32 1, %v14792_v21  ;;  %v14844_v25 = vpop.permute.xlu1 %418 }
 0x34a   : > { %v2847_v23 = vsel %vm2840_vm1, %v2843_v11, %v2846_v5  ;;  %v8069_v63 = vsel %vm8062_vm6, %v8065_v41, %v8068_v44  ;;  %v2924_v8 = vor.u32 %v2923_v51, %v2922_v48  ;;  %v2927_v59 = vshll.u32 %v2926_v45, 23 }
 0x34b   : > { %v2848_v13 = vsel %vm2838_vm9, nan, %v2847_v23  ;;  %v8070_v3 = vsel %vm2838_vm9, nan, %v8069_v63  ;;  %v3058_v14 = vand.u32 2139095040, %v14766_v1  ;;  %v2936_v40 = vsel %vm2851_vm11, %v2935_v49, %v14715_v35 }
 0x34c   : > { %5754 = vst [vmem:[%s12696_s30 + $0xa8] sm:$0xff] %v2848_v13  ;;  %11566 = vst [vmem:[%s12696_s30 + $0x238] sm:$0xff] %v8070_v3  ;;  %v2928_v53 = vor.u32 4788187, %v2927_v59  ;;  %v3007_v62 = vmul.u32 %v14749_v19, %v2991_v47  ;;  %v3055_v18 = vand.u32 2147483647, %v14766_v1  ;;  %v3011_v10 = vsel %vm3009_vm13, %v3010_v42, %v14792_v21 }
 0x34d   : > { %v3059_v27 = vshrl.u32 %v3058_v14, 23  ;;  %vm14834_vm14 = vcmp.le.f32.partialorder %v2849_v55, 0.7853982  ;;  %v2931_v17 = vcvt.s32.f32 %v2924_v8  ;;  %v3161_v19 = vand.u32 2139095040, %v14800_v7 }
 0x34e   : > { %v2929_v6 = vand.u32 2147483647, %v2928_v53  ;;  %v3012_v39 = vadd.s32 %v3011_v10, %v3007_v62  ;;  %v2938_v57 = vsel %vm14834_vm14, 0, %v2936_v40  ;;  %v3062_v43 = vand.u32 8388607, %v3055_v18 }
 0x34f   : > { %v11241_v35 = vadd.s32 4294967169, %v3059_v27  ;;  %v3158_v55 = vand.u32 2147483647, %v14800_v7  ;;  %v8164_v36 = vadd.s32 3, %v2938_v57  ;;  %v3162_v32 = vshrl.u32 %v3161_v19, 23 }
 0x350   : > { %v2932_v38 = vmul.f32 %v2931_v17, %v2929_v6  ;;  %v3013_v24 = vadd.s32 536870912, %v3012_v39  ;;  %v3063_v37 = vor.u32 8388608, %v3062_v43  ;;  %v509_v26 = vmul.f32 %v12367_v4, %v14844_v25 }
 0x351   : > { %v3065_v52 = vadd.s32 1, %v11241_v35  ;;  %v14853_v58 = vand.u32 8388607, %v3158_v55  ;;  %v14857_v48 = vand.u32 3, %v2938_v57  ;;  %v14861_v30 = vand.u32 3, %v8164_v36 }
 0x352   : > { %v2933_v60 = vxor.u32 2147483648, %v2932_v38  ;;  %v3014_v0 = vshrl.u32 %v3013_v24, 30  ;;  %v11245_v44 = vadd.s32 4294967169, %v3162_v32  ;;  %vm2954_vm15 = vcmp.lt.s32.totalorder %v14613_v22, 0 }
 0x353   : > { %vm3066_vm3 = vcmp.gt.s32.totalorder %v3065_v52, 0  ;;  %v3008_v51 = vadd.s32 %v14791_v34, %v14786_v46  ;;  %v14867_v11 = vshll.u32 %v3063_v37, 8  ;;  %v3166_v63 = vor.u32 8388608, %v14853_v58  ;;  %v17795_v34 = vld [vmem:[#allocation13_spill] sm:$0xff] }
 0x354   : > { %v2934_v15 = vsel %vm2851_vm11, %v2933_v60, %v2932_v38  ;;  %v3015_v21 = vshll.u32 %v3014_v0, 30  ;;  %v3067_v28 = vsel %vm3066_vm3, %v3065_v52, 0  ;;  %v3038_v41 = vsub.s32 4, %v3014_v0 }
 0x355   : > { %v2937_v54 = vsel %vm14834_vm14, %v14524_v29, %v2934_v15  ;;  %v3069_v31 = vand.u32 31, %v3067_v28  ;;  %vm2947_vm0 = vcmp.eq.s32.totalorder %v14857_v48, 2  ;;  %vm8170_vm2 = vcmp.eq.s32.totalorder %v14861_v30, 2 }
 0x356   : > { %11955 = vcosq.f32 %v2937_v54  ;;  %v14859_v49 = vsub.s32 %v3012_v39, %v3015_v21  ;;  %v14875_v59 = vshrl.u32 %v3067_v28, 5  ;;  %v14879_v13 = vadd.f32 %v509_v26, %v17795_v34 }
 0x357   : > { %11957 = vsinq.f32 %v2937_v54  ;;  %v3070_v5 = vsub.s32 32, %v3069_v31  ;;  %v3072_v46 = vshll.u32 %v17729_v16, %v3069_v31  ;;  %vm2944_vm4 = vcmp.eq.s32.totalorder %v14857_v48, 0 }
 0x358   : > { %v3018_v45 = vsub.s32 0, %v14859_v49  ;;  %vm8167_vm5 = vcmp.eq.s32.totalorder %v14861_v30, 0  ;;  %v3075_v3 = vshll.u32 %v17730_v61, %v3069_v31  ;;  %v3078_v42 = vshll.u32 %v17731_v20, %v3069_v31 }
 0x359   : > { %v3073_v47 = vshrl.u32 %v17730_v61, %v3070_v5  ;;  %v3076_v23 = vshrl.u32 %v17731_v20, %v3070_v5  ;;  %v3079_v14 = vshrl.u32 %v17732_v33, %v3070_v5  ;;  %v14886_v53 = vadd.s32 1, %v11245_v44 }
 0x35a   : > { %v11238_v8 = vmin.u32 %v3018_v45, %v14859_v49  ;;  %vm2943_vm7 = vcmp.lt.s32.totalorder %v14857_v48, 2  ;;  %vm8166_vm1 = vcmp.lt.s32.totalorder %v14861_v30, 2  ;;  %v3081_v10 = vshll.u32 %v17732_v33, %v3069_v31 }
 0x35b   : > { %v3074_v62 = vor.u32 %v3073_v47, %v3072_v46  ;;  %v3082_v27 = vshrl.u32 %v17733_v56, %v3070_v5  ;;  %vm2941_vm6 = vweird.f32 %v14524_v29  ;;  %v3039_v2 = vsel %vm2954_vm15, %v3038_v41, %v3014_v0 }
 0x35c   : > { %v3020_v40 = vclz %v11238_v8  ;;  %v3071_v6 = vshrl.u32 %v17729_v16, %v3070_v5  ;;  %v3077_v17 = vor.u32 %v3076_v23, %v3075_v3  ;;  %v3080_v39 = vor.u32 %v3079_v14, %v3078_v42 }
 0x35d   : > { %vm14898_vm8 = vcmp.le.f32.partialorder %v2952_v12, 0.7853982  ;;  %v3083_v19 = vor.u32 %v3082_v27, %v3081_v10  ;;  %v3084_v38 = vshll.u32 %v17733_v56, %v3069_v31  ;;  %v3085_v24 = vshrl.u32 %v17734_v50, %v3070_v5 }
 0x35e   : > { %v11239_v35 = vadd.s32 4294967294, %v3020_v40  ;;  %vm3087_vm9 = vcmp.lt.s32.totalorder %v14875_v59, 1  ;;  %vm3088_vm10 = vcmp.lt.s32.totalorder %v14875_v59, 2  ;;  %vm3089_vm11 = vcmp.lt.s32.totalorder %v14875_v59, 3 }
 0x35f   : > { %vm3090_vm12 = vcmp.lt.s32.totalorder %v14875_v59, 4  ;;  %v3086_v12 = vor.u32 %v3085_v24, %v3084_v38  ;;  %v3091_v52 = vsel %vm3087_vm9, %v3071_v6, %v3074_v62  ;;  %v3095_v15 = vsel %vm3087_vm9, %v3074_v62, %v3077_v17 }
 0x360   : > { %v11956_v43 = vpop.eup %11955  ;;  %vm11240_vm13 = vcmp.lt.s32.totalorder %v11239_v35, 0  ;;  %v3092_v60 = vsel %vm3090_vm12, %v3080_v39, 2102212464  ;;  %v3096_v21 = vsel %vm3090_vm12, %v3083_v19, 920167782  ;;  %v3099_v3 = vsel %vm3087_vm9, %v3077_v17, %v3080_v39 }
 0x361   : > { %v11958_v0 = vpop.eup %11957  ;;  %v2948_v36 = vxor.u32 2147483648, %v11956_v43  ;;  %v3023_v32 = vsel %vm11240_vm13, 0, %v11239_v35  ;;  %v3093_v31 = vsel %vm3089_vm11, %v3077_v17, %v3092_v60  ;;  %v3097_v45 = vsel %vm3089_vm11, %v3080_v39, %v3096_v21 }
 0x362   : > { %v2945_v37 = vxor.u32 2147483648, %v11958_v0  ;;  %v3024_v28 = vsub.s32 32, %v3023_v32  ;;  %v3028_v54 = vsub.s32 4294967266, %v3023_v32  ;;  %v3025_v5 = vshll.u32 %v14859_v49, %v3023_v32 }
 0x363   : > { %v2949_v26 = vsel %vm2947_vm0, %v2948_v36, %v11958_v0  ;;  %v8172_v44 = vsel %vm8170_vm2, %v2948_v36, %v11958_v0  ;;  %v3098_v34 = vsel %vm3088_vm10, %v3095_v15, %v3097_v45  ;;  %v3041_v48 = vsel %vm14898_vm8, 0, %v3039_v2 }
 0x364   : > { %v2946_v41 = vsel %vm2944_vm4, %v11956_v43, %v2945_v37  ;;  %v3026_v47 = vshrl.u32 %v3008_v51, %v3024_v28  ;;  %v3029_v23 = vadd.s32 127, %v3028_v54  ;;  %v8169_v8 = vsel %vm8167_vm5, %v11956_v43, %v2945_v37 }
 0x365   : > { %v2950_v46 = vsel %vm2943_vm7, %v2946_v41, %v2949_v26  ;;  %v8173_v49 = vsel %vm8166_vm1, %v8169_v8, %v8172_v44  ;;  %v3100_v30 = vsel %vm3090_vm12, %v3086_v12, 1326507024  ;;  %v3094_v6 = vsel %vm3088_vm10, %v3091_v52, %v3093_v31 }
 0x366   : > { %v2951_v42 = vsel %vm2941_vm6, nan, %v2950_v46  ;;  %v3027_v51 = vor.u32 %v3026_v47, %v3025_v5  ;;  %v3030_v14 = vshll.u32 %v3029_v23, 23  ;;  %v8174_v40 = vsel %vm2941_vm6, nan, %v8173_v49 }
 0x367   : > { %5755 = vst [vmem:[%s12696_s30 + $0xb0] sm:$0xff] %v2951_v42  ;;  %11567 = vst [vmem:[%s12696_s30 + $0x240] sm:$0xff] %v8174_v40  ;;  %v14948_v62 = vmul.u32.u64.low %v14867_v11, %v3098_v34  ;;  %v14949_v10 = vmul.u32.u64.high %v14867_v11, %v3098_v34, %v14948_v62  ;;  %v3101_v29 = vsel %vm3089_vm11, %v3083_v19, %v3100_v30  ;;  %vm3169_vm14 = vcmp.gt.s32.totalorder %v14886_v53, 0 }
 0x368   : > { %v3031_v27 = vor.u32 4788187, %v3030_v14  ;;  %v3034_v2 = vcvt.s32.f32 %v3027_v51  ;;  %v3102_v17 = vsel %vm3088_vm10, %v3099_v3, %v3101_v29  ;;  %v3170_v39 = vsel %vm3169_vm14, %v14886_v53, 0 }
 0x369   : > { %v3264_v35 = vand.u32 2139095040, %v14879_v13  ;;  %v14962_v24 = vmul.u32.u64.low %v14867_v11, %v3102_v17  ;;  %v14963_v43 = vmul.u32.u64.high %v14867_v11, %v3102_v17, %v14962_v24  ;;  %v14965_v12 = vshrl.u32 %v3170_v39, 5 }
 0x36a   : > { %v3032_v38 = vand.u32 2147483647, %v3031_v27  ;;  %v3113_v52 = vadd.s32 1, %v14949_v10  ;;  %v3172_v19 = vand.u32 31, %v3170_v39  ;;  %v14970_v60 = vshll.u32 %v3166_v63, 8 }
 0x36b   : > { %v8268_v0 = vadd.s32 3, %v3041_v48  ;;  %v3110_v53 = vmul.u32 %v14867_v11, %v3094_v6  ;;  %v3265_v36 = vshrl.u32 %v3264_v35, 23  ;;  %vm3190_vm3 = vcmp.lt.s32.totalorder %v14965_v12, 1 }
 0x36c   : > { %v3035_v59 = vmul.f32 %v3034_v2, %v3032_v38  ;;  %v3173_v32 = vsub.s32 32, %v3172_v19  ;;  %v3175_v15 = vshll.u32 %v17729_v16, %v3172_v19  ;;  %vm3192_vm0 = vcmp.lt.s32.totalorder %v14965_v12, 3 }
 0x36d   : > { %vm3112_vm2 = vc.u32 %v14963_v43, %v14948_v62  ;;  %v3178_v58 = vshll.u32 %v17730_v61, %v3172_v19  ;;  %v3181_v63 = vshll.u32 %v17731_v20, %v3172_v19  ;;  %v3184_v54 = vshll.u32 %v17732_v33, %v3172_v19 }
 0x36e   : > { %v3036_v21 = vxor.u32 2147483648, %v3035_v59  ;;  %v3114_v37 = vsel %vm3112_vm2, %v3113_v52, %v14949_v10  ;;  %v3176_v11 = vshrl.u32 %v17730_v61, %v3173_v32  ;;  %v3179_v28 = vshrl.u32 %v17731_v20, %v3173_v32 }
 0x36f   : > { %v3115_v26 = vadd.s32 %v3114_v37, %v3110_v53  ;;  %v3182_v5 = vshrl.u32 %v17732_v33, %v3173_v32  ;;  %v3185_v44 = vshrl.u32 %v17733_v56, %v3173_v32  ;;  %v3174_v41 = vshrl.u32 %v17729_v16, %v3173_v32 }
 0x370   : > { %v3037_v31 = vsel %vm2954_vm15, %v3036_v21, %v3035_v59  ;;  %v3177_v47 = vor.u32 %v3176_v11, %v3175_v15  ;;  %v3180_v23 = vor.u32 %v3179_v28, %v3178_v58  ;;  %v3187_v34 = vshll.u32 %v17733_v56, %v3172_v19 }
 0x371   : > { %v3040_v45 = vsel %vm14898_vm8, %v14613_v22, %v3037_v31  ;;  %v3116_v8 = vadd.s32 536870912, %v3115_v26  ;;  %v3183_v46 = vor.u32 %v3182_v5, %v3181_v63  ;;  %v3186_v49 = vor.u32 %v3185_v44, %v3184_v54 }
 0x372   : > { %11959 = vcosq.f32 %v3040_v45  ;;  %v3188_v3 = vshrl.u32 %v17734_v50, %v3173_v32  ;;  %vm3193_vm15 = vcmp.lt.s32.totalorder %v14965_v12, 4  ;;  %v3198_v57 = vsel %vm3190_vm3, %v3177_v47, %v3180_v23 }
 0x373   : > { %11961 = vsinq.f32 %v3040_v45  ;;  %v3117_v42 = vshrl.u32 %v3116_v8, 30  ;;  %v3195_v51 = vsel %vm3193_vm15, %v3183_v46, 2102212464  ;;  %v3199_v14 = vsel %vm3193_vm15, %v3186_v49, 920167782 }
 0x374   : > { %v3045_v40 = vand.u32 3, %v3041_v48  ;;  %v3189_v30 = vor.u32 %v3188_v3, %v3187_v34  ;;  %vm3191_vm4 = vcmp.lt.s32.totalorder %v14965_v12, 2  ;;  %v3200_v10 = vsel %vm3192_vm0, %v3183_v46, %v3199_v14 }
 0x375   : > { %v3118_v27 = vshll.u32 %v3117_v42, 30  ;;  %v3194_v6 = vsel %vm3190_vm3, %v3174_v41, %v3177_v47  ;;  %v3201_v29 = vsel %vm3191_vm4, %v3198_v57, %v3200_v10  ;;  %v3202_v2 = vsel %vm3190_vm3, %v3180_v23, %v3183_v46 }
 0x376   : > { %v3196_v17 = vsel %vm3192_vm0, %v3180_v23, %v3195_v51  ;;  %v3203_v48 = vsel %vm3193_vm15, %v3189_v30, 1326507024  ;;  %v15009_v39 = vmul.u32.u64.low %v14970_v60, %v3201_v29  ;;  %v15010_v35 = vmul.u32.u64.high %v14970_v60, %v3201_v29, %v15009_v39 }
 0x377   : > { %v8269_v38 = vand.u32 3, %v8268_v0  ;;  %v15013_v24 = vsub.s32 %v3115_v26, %v3118_v27  ;;  %v3204_v52 = vsel %vm3192_vm0, %v3186_v49, %v3203_v48  ;;  %v11249_v19 = vadd.s32 4294967169, %v3265_v36 }
 0x378   : > { %vm3044_vm5 = vweird.f32 %v14613_v22  ;;  %vm15020_vm7 = vcmp.le.f32.partialorder %v3055_v18, 0.7853982  ;;  %vm3057_vm1 = vcmp.lt.s32.totalorder %v14766_v1, 0  ;;  %v3141_v53 = vsub.s32 4, %v3117_v42 }
 0x379   : > { %v3205_v0 = vsel %vm3191_vm4, %v3202_v2, %v3204_v52  ;;  %v3121_v32 = vsub.s32 0, %v15013_v24  ;;  %v3197_v15 = vsel %vm3191_vm4, %v3194_v6, %v3196_v17  ;;  %vm3046_vm6 = vcmp.lt.s32.totalorder %v3045_v40, 2 }
 0x37a   : > { %v15031_v36 = vmul.u32.u64.low %v14970_v60, %v3205_v0  ;;  %v15032_v21 = vmul.u32.u64.high %v14970_v60, %v3205_v0, %v15031_v36  ;;  %v3216_v18 = vadd.s32 1, %v15010_v35  ;;  %v3261_v58 = vand.u32 2147483647, %v14879_v13 }
 0x37b   : > { %v3271_v63 = vadd.s32 1, %v11249_v19  ;;  %vm3047_vm8 = vcmp.eq.s32.totalorder %v3045_v40, 0  ;;  %vm3050_vm9 = vcmp.eq.s32.totalorder %v3045_v40, 2  ;;  %vm8270_vm10 = vcmp.lt.s32.totalorder %v8269_v38, 2 }
 0x37c   : > { %v11960_v37 = vpop.eup %11959  ;;  %v11242_v11 = vmin.u32 %v3121_v32, %v15013_v24  ;;  %vm8271_vm11 = vcmp.eq.s32.totalorder %v8269_v38, 0  ;;  %vm8274_vm12 = vcmp.eq.s32.totalorder %v8269_v38, 2  ;;  %v3213_v12 = vmul.u32 %v14970_v60, %v3197_v15  ;;  %v17800_v32 = vld [vmem:[#allocation14_spill] sm:$0xff] }
 0x37d   : > { %v11962_v28 = vpop.eup %11961  ;;  %v3051_v54 = vxor.u32 2147483648, %v11960_v37  ;;  %v3142_v5 = vsel %vm3057_vm1, %v3141_v53, %v3117_v42  ;;  %vm3215_vm13 = vc.u32 %v15032_v21, %v15009_v39  ;;  %vm3272_vm14 = vcmp.gt.s32.totalorder %v3271_v63, 0 }
 0x37e   : > { %v3048_v31 = vxor.u32 2147483648, %v11962_v28  ;;  %v3123_v26 = vclz %v11242_v11  ;;  %v3217_v41 = vsel %vm3215_vm13, %v3216_v18, %v15010_v35  ;;  %v3144_v34 = vsel %vm15020_vm7, 0, %v3142_v5 }
 0x37f   : > { %v3052_v44 = vsel %vm3050_vm9, %v3051_v54, %v11962_v28  ;;  %v8276_v45 = vsel %vm8274_vm12, %v3051_v54, %v11962_v28  ;;  %v3218_v60 = vadd.s32 %v3217_v41, %v3213_v12  ;;  %v3268_v3 = vand.u32 8388607, %v3261_v58 }
 0x380   : > { %v3049_v47 = vsel %vm3047_vm8, %v11960_v37, %v3048_v31  ;;  %v8273_v23 = vsel %vm8271_vm11, %v11960_v37, %v3048_v31  ;;  %v11243_v8 = vadd.s32 4294967294, %v3123_v26  ;;  %v3273_v40 = vsel %vm3272_vm14, %v3271_v63, 0 }
 0x381   : > { %v3053_v46 = vsel %vm3046_vm6, %v3049_v47, %v3052_v44  ;;  %v8277_v49 = vsel %vm8270_vm10, %v8273_v23, %v8276_v45  ;;  %v3219_v57 = vadd.s32 536870912, %v3218_v60  ;;  %v3111_v30 = vadd.s32 %v14948_v62, %v14963_v43 }
 0x382   : > { %v3054_v42 = vsel %vm3044_vm5, nan, %v3053_v46  ;;  %v8278_v51 = vsel %vm3044_vm5, nan, %v8277_v49  ;;  %vm11244_vm3 = vcmp.lt.s32.totalorder %v11243_v8, 0  ;;  %v8372_v29 = vadd.s32 3, %v3144_v34 }
 0x383   : > { %5756 = vst [vmem:[%s12696_s30 + $0xb8] sm:$0xff] %v3054_v42  ;;  %11568 = vst [vmem:[%s12696_s30 + $0x248] sm:$0xff] %v8278_v51  ;;  %v3126_v14 = vsel %vm11244_vm3, 0, %v11243_v8  ;;  %v15059_v6 = vshrl.u32 %v3219_v57, 30  ;;  %v510_v2 = vmul.f32 %v12369_v9, %v14844_v25  ;;  %v3269_v22 = vor.u32 8388608, %v3268_v3 }
 0x384   : > { %v3127_v10 = vsub.s32 32, %v3126_v14  ;;  %v3131_v27 = vsub.s32 4294967266, %v3126_v14  ;;  %v3275_v17 = vand.u32 31, %v3273_v40  ;;  %v3128_v48 = vshll.u32 %v15013_v24, %v3126_v14 }
 0x385   : > { %v3221_v52 = vshll.u32 %v15059_v6, 30  ;;  %v15065_v43 = vand.u32 3, %v3144_v34  ;;  %v15068_v15 = vadd.f32 %v510_v2, %v17800_v32  ;;  %v15070_v25 = vand.u32 3, %v8372_v29 }
 0x386   : > { %v3129_v35 = vshrl.u32 %v3111_v30, %v3127_v10  ;;  %v3132_v38 = vadd.s32 127, %v3131_v27  ;;  %v3276_v19 = vsub.s32 32, %v3275_v17  ;;  %v15072_v63 = vshll.u32 %v3269_v22, 8 }
 0x387   : > { %v3222_v62 = vsub.s32 %v3218_v60, %v3221_v52  ;;  %v3214_v24 = vadd.s32 %v15009_v39, %v15032_v21  ;;  %v15076_v37 = vshrl.u32 %v3273_v40, 5  ;;  %v3244_v5 = vsub.s32 4, %v15059_v6 }
 0x388   : > { %v3130_v53 = vor.u32 %v3129_v35, %v3128_v48  ;;  %v3133_v0 = vshll.u32 %v3132_v38, 23  ;;  %v3279_v11 = vshrl.u32 %v17730_v61, %v3276_v19  ;;  %v3285_v28 = vshrl.u32 %v17732_v33, %v3276_v19 }
 0x389   : > { %v3224_v18 = vsub.s32 0, %v3222_v62  ;;  %v3282_v26 = vshrl.u32 %v17731_v20, %v3276_v19  ;;  %v3278_v44 = vshll.u32 %v17729_v16, %v3275_v17  ;;  %v3284_v45 = vshll.u32 %v17731_v20, %v3275_v17 }
 0x38a   : > { %v3134_v36 = vor.u32 4788187, %v3133_v0  ;;  %v3137_v12 = vcvt.s32.f32 %v3130_v53  ;;  %v3367_v41 = vand.u32 2139095040, %v15068_v15  ;;  %v3281_v47 = vshll.u32 %v17730_v61, %v3275_v17 }
 0x38b   : > { %v11246_v31 = vmin.u32 %v3224_v18, %v3222_v62  ;;  %v3288_v23 = vshrl.u32 %v17733_v56, %v3276_v19  ;;  %v3286_v8 = vor.u32 %v3285_v28, %v3284_v45  ;;  %v3287_v60 = vshll.u32 %v17732_v33, %v3275_v17 }
 0x38c   : > { %v3135_v54 = vand.u32 2147483647, %v3134_v36  ;;  %v3290_v46 = vshll.u32 %v17733_v56, %v3275_v17  ;;  %v3291_v49 = vshrl.u32 %v17734_v50, %v3276_v19  ;;  %v3280_v42 = vor.u32 %v3279_v11, %v3278_v44 }
 0x38d   : > { %v3226_v21 = vclz %v11246_v31  ;;  %v3283_v51 = vor.u32 %v3282_v26, %v3281_v47  ;;  %vm3160_vm0 = vcmp.lt.s32.totalorder %v14800_v7, 0  ;;  %v3277_v57 = vshrl.u32 %v17729_v16, %v3276_v19 }
 0x38e   : > { %v3138_v39 = vmul.f32 %v3137_v12, %v3135_v54  ;;  %v3289_v14 = vor.u32 %v3288_v23, %v3287_v60  ;;  %v3292_v40 = vor.u32 %v3291_v49, %v3290_v46  ;;  %vm3293_vm2 = vcmp.lt.s32.totalorder %v15076_v37, 1 }
 0x38f   : > { %v11247_v3 = vadd.s32 4294967294, %v3226_v21  ;;  %vm3294_vm4 = vcmp.lt.s32.totalorder %v15076_v37, 2  ;;  %vm3296_vm5 = vcmp.lt.s32.totalorder %v15076_v37, 4  ;;  %vm3295_vm6 = vcmp.lt.s32.totalorder %v15076_v37, 3 }
 0x390   : > { %v3139_v34 = vxor.u32 2147483648, %v3138_v39  ;;  %v3298_v29 = vsel %vm3296_vm5, %v3286_v8, 2102212464  ;;  %vm15105_vm8 = vcmp.le.f32.partialorder %v3158_v55, 0.7853982  ;;  %v3301_v48 = vsel %vm3293_vm2, %v3280_v42, %v3283_v51 }
 0x391   : > { %vm11248_vm15 = vcmp.lt.s32.totalorder %v11247_v3, 0  ;;  %v3302_v35 = vsel %vm3296_vm5, %v3289_v14, 920167782  ;;  %v3305_v38 = vsel %vm3293_vm2, %v3283_v51, %v3286_v8  ;;  %v3306_v53 = vsel %vm3296_vm5, %v3292_v40, 1326507024 }
 0x392   : > { %v3140_v30 = vsel %vm3057_vm1, %v3139_v34, %v3138_v39  ;;  %v3229_v27 = vsel %vm11248_vm15, 0, %v11247_v3  ;;  %v3303_v55 = vsel %vm3295_vm6, %v3286_v8, %v3302_v35  ;;  %v3297_v0 = vsel %vm3293_vm2, %v3277_v57, %v3280_v42  ;;  %v423_v35 = vpop.permute.xlu0 %422 }
 0x393   : > { %v3143_v10 = vsel %vm15020_vm7, %v14766_v1, %v3140_v30  ;;  %v3230_v22 = vsub.s32 32, %v3229_v27  ;;  %v3234_v17 = vsub.s32 4294967266, %v3229_v27  ;;  %v3231_v59 = vshll.u32 %v3222_v62, %v3229_v27 }
 0x394   : > { %11963 = vcosq.f32 %v3143_v10  ;;  %v3304_v62 = vsel %vm3294_vm4, %v3301_v48, %v3303_v55  ;;  %v3307_v32 = vsel %vm3295_vm6, %v3289_v14, %v3306_v53  ;;  %v3368_v36 = vshrl.u32 %v3367_v41, 23 }
 0x395   : > { %11965 = vsinq.f32 %v3143_v10  ;;  %v3232_v52 = vshrl.u32 %v3214_v24, %v3230_v22  ;;  %v3235_v19 = vadd.s32 127, %v3234_v17  ;;  %v3299_v24 = vsel %vm3295_vm6, %v3283_v51, %v3298_v29 }
 0x396   : > { %v3308_v28 = vsel %vm3294_vm4, %v3305_v38, %v3307_v32  ;;  %v15134_v31 = vmul.u32.u64.low %v15072_v63, %v3304_v62  ;;  %v15135_v26 = vmul.u32.u64.high %v15072_v63, %v3304_v62, %v15134_v31  ;;  %vm3149_vm7 = vcmp.lt.s32.totalorder %v15065_v43, 2 }
 0x397   : > { %v3233_v18 = vor.u32 %v3232_v52, %v3231_v59  ;;  %v3236_v11 = vshll.u32 %v3235_v19, 23  ;;  %v15130_v54 = vmul.u32.u64.low %v15072_v63, %v3308_v28  ;;  %v15131_v12 = vmul.u32.u64.high %v15072_v63, %v3308_v28, %v15130_v54 }
 0x398   : > { %v3245_v45 = vsel %vm3160_vm0, %v3244_v5, %v15059_v6  ;;  %v11253_v41 = vadd.s32 4294967169, %v3368_v36  ;;  %vm3147_vm1 = vweird.f32 %v14766_v1  ;;  %vm3150_vm9 = vcmp.eq.s32.totalorder %v15065_v43, 0 }
 0x399   : > { %v3237_v44 = vor.u32 4788187, %v3236_v11  ;;  %vm3153_vm10 = vcmp.eq.s32.totalorder %v15065_v43, 2  ;;  %v3300_v39 = vsel %vm3294_vm4, %v3297_v0, %v3299_v24  ;;  %v3364_v21 = vand.u32 2147483647, %v15068_v15 }
 0x39a   : > { %v3240_v23 = vcvt.s32.f32 %v3233_v18  ;;  %vm8374_vm11 = vcmp.lt.s32.totalorder %v15070_v25, 2  ;;  %v3374_v8 = vadd.s32 1, %v11253_v41  ;;  %v3247_v6 = vsel %vm15105_vm8, 0, %v3245_v45 }
 0x39b   : > { %v3238_v47 = vand.u32 2147483647, %v3237_v44  ;;  %vm8375_vm12 = vcmp.eq.s32.totalorder %v15070_v25, 0  ;;  %vm3318_vm13 = vc.u32 %v15131_v12, %v15134_v31  ;;  %v3319_v5 = vadd.s32 1, %v15135_v26 }
 0x39c   : > { %vm8378_vm14 = vcmp.eq.s32.totalorder %v15070_v25, 2  ;;  %v3316_v46 = vmul.u32 %v15072_v63, %v3300_v39  ;;  %vm3375_vm3 = vcmp.gt.s32.totalorder %v3374_v8, 0  ;;  %v3371_v42 = vand.u32 8388607, %v3364_v21 }
 0x39d   : > { %v3241_v37 = vmul.f32 %v3240_v23, %v3238_v47  ;;  %v3320_v3 = vsel %vm3318_vm13, %v3319_v5, %v15135_v26  ;;  %v3376_v51 = vsel %vm3375_vm3, %v3374_v8, 0  ;;  %v15160_v40 = vand.u32 3, %v3247_v6  ;;  %v17803_v23 = vld [vmem:[#allocation19_spill] sm:$0xff] }
 0x39e   : > { %v11964_v60 = vpop.eup %11963  ;;  %v3321_v30 = vadd.s32 %v3320_v3, %v3316_v46  ;;  %v8476_v29 = vadd.s32 3, %v3247_v6  ;;  %v3378_v63 = vand.u32 31, %v3376_v51  ;;  %v511_v32 = vmul.f32 %v12367_v4, %v423_v35 }
 0x39f   : > { %v11966_v49 = vpop.eup %11965  ;;  %v3154_v34 = vxor.u32 2147483648, %v11964_v60  ;;  %v3242_v14 = vxor.u32 2147483648, %v3241_v37  ;;  %v3372_v36 = vor.u32 8388608, %v3371_v42  ;;  %v15189_v11 = vshrl.u32 %v3376_v51, 5 }
 0x3a0   : > { %v3151_v57 = vxor.u32 2147483648, %v11966_v49  ;;  %v3322_v59 = vadd.s32 536870912, %v3321_v30  ;;  %v3379_v55 = vsub.s32 32, %v3378_v63  ;;  %v15182_v43 = vand.u32 3, %v8476_v29 }
 0x3a1   : > { %v3155_v10 = vsel %vm3153_vm10, %v3154_v34, %v11966_v49  ;;  %v8380_v27 = vsel %vm8378_vm14, %v3154_v34, %v11966_v49  ;;  %v3243_v17 = vsel %vm3160_vm0, %v3242_v14, %v3241_v37  ;;  %vm3263_vm0 = vcmp.lt.s32.totalorder %v14879_v13, 0 }
 0x3a2   : > { %v3152_v22 = vsel %vm3150_vm9, %v11964_v60, %v3151_v57  ;;  %v8377_v48 = vsel %vm8375_vm12, %v11964_v60, %v3151_v57  ;;  %v3246_v52 = vsel %vm15105_vm8, %v14800_v7, %v3243_v17  ;;  %v3323_v62 = vshrl.u32 %v3322_v59, 30 }
 0x3a3   : > { %v3156_v38 = vsel %vm3149_vm7, %v3152_v22, %v3155_v10  ;;  %v8381_v19 = vsel %vm8374_vm11, %v8377_v48, %v8380_v27  ;;  %11967 = vcosq.f32 %v3246_v52  ;;  %v3382_v2 = vshrl.u32 %v17730_v61, %v3379_v55 }
 0x3a4   : > { %v3157_v53 = vsel %vm3147_vm1, nan, %v3156_v38  ;;  %v8382_v0 = vsel %vm3147_vm1, nan, %v8381_v19  ;;  %11969 = vsinq.f32 %v3246_v52  ;;  %v3324_v25 = vshll.u32 %v3323_v62, 30 }
 0x3a5   : > { %5757 = vst [vmem:[%s12696_s30 + $0xc0] sm:$0xff] %v3157_v53  ;;  %11569 = vst [vmem:[%s12696_s30 + $0x250] sm:$0xff] %v8382_v0  ;;  %v3385_v18 = vshrl.u32 %v17731_v20, %v3379_v55  ;;  %v3381_v1 = vshll.u32 %v17729_v16, %v3378_v63  ;;  %v3384_v24 = vshll.u32 %v17730_v61, %v3378_v63  ;;  %vm3256_vm2 = vcmp.eq.s32.totalorder %v15160_v40, 2 }
 0x3a6   : > { %v3388_v28 = vshrl.u32 %v17732_v33, %v3379_v55  ;;  %v15195_v54 = vsub.s32 %v3321_v30, %v3324_v25  ;;  %v3387_v26 = vshll.u32 %v17731_v20, %v3378_v63  ;;  %v3390_v44 = vshll.u32 %v17732_v33, %v3378_v63 }
 0x3a7   : > { %v3391_v45 = vshrl.u32 %v17733_v56, %v3379_v55  ;;  %vm3253_vm15 = vcmp.eq.s32.totalorder %v15160_v40, 0  ;;  %vm8479_vm4 = vcmp.eq.s32.totalorder %v15182_v43, 0  ;;  %v3383_v41 = vor.u32 %v3382_v2, %v3381_v1 }
 0x3a8   : > { %v3393_v39 = vshll.u32 %v17733_v56, %v3378_v63  ;;  %v3394_v47 = vshrl.u32 %v17734_v50, %v3379_v55  ;;  %v15205_v8 = vadd.f32 %v511_v32, %v17803_v23  ;;  %vm3252_vm5 = vcmp.lt.s32.totalorder %v15160_v40, 2 }
 0x3a9   : > { %vm8478_vm6 = vcmp.lt.s32.totalorder %v15182_v43, 2  ;;  %v3327_v6 = vsub.s32 0, %v15195_v54  ;;  %v3386_v5 = vor.u32 %v3385_v18, %v3384_v24  ;;  %v3389_v60 = vor.u32 %v3388_v28, %v3387_v26 }
 0x3aa   : > { %v3392_v37 = vor.u32 %v3391_v45, %v3390_v44  ;;  %vm3250_vm8 = vweird.f32 %v14800_v7  ;;  %vm8482_vm7 = vcmp.eq.s32.totalorder %v15182_v43, 2  ;;  %v3347_v46 = vsub.s32 4, %v3323_v62 }
 0x3ab   : > { %v3395_v49 = vor.u32 %v3394_v47, %v3393_v39  ;;  %v15212_v34 = vshll.u32 %v3372_v36, 8  ;;  %v3317_v3 = vadd.s32 %v15134_v31, %v15131_v12  ;;  %v11250_v42 = vmin.u32 %v3327_v6, %v15195_v54 }
 0x3ac   : > { %vm3399_vm1 = vcmp.lt.s32.totalorder %v15189_v11, 4  ;;  %v512_v51 = vmul.f32 %v12369_v9, %v423_v35  ;;  %vm3396_vm9 = vcmp.lt.s32.totalorder %v15189_v11, 1  ;;  %vm3398_vm10 = vcmp.lt.s32.totalorder %v15189_v11, 3 }
 0x3ad   : > { %v3405_v57 = vsel %vm3399_vm1, %v3392_v37, 920167782  ;;  %v3470_v14 = vand.u32 2139095040, %v15205_v8  ;;  %v11968_v30 = vpop.eup %11967  ;;  %v3329_v10 = vclz %v11250_v42  ;;  %v3380_v27 = vshrl.u32 %v17729_v16, %v3379_v55 }
 0x3ae   : > { %v3404_v12 = vsel %vm3396_vm9, %v3383_v41, %v3386_v5  ;;  %v3406_v31 = vsel %vm3398_vm10, %v3389_v60, %v3405_v57  ;;  %v11970_v29 = vpop.eup %11969  ;;  %v3257_v63 = vxor.u32 2147483648, %v11968_v30  ;;  %v3348_v22 = vsel %vm3263_vm0, %v3347_v46, %v3323_v62 }
 0x3af   : > { %v3408_v17 = vsel %vm3396_vm9, %v3386_v5, %v3389_v60  ;;  %v3409_v48 = vsel %vm3399_vm1, %v3395_v49, 1326507024  ;;  %v3254_v59 = vxor.u32 2147483648, %v11970_v29  ;;  %v11251_v35 = vadd.s32 4294967294, %v3329_v10  ;;  %v17806_v49 = vld [vmem:[#allocation20_spill] sm:$0xff] }
 0x3b0   : > { %vm3397_vm11 = vcmp.lt.s32.totalorder %v15189_v11, 2  ;;  %v3410_v38 = vsel %vm3398_vm10, %v3392_v37, %v3409_v48  ;;  %v3258_v52 = vsel %vm3256_vm2, %v3257_v63, %v11970_v29  ;;  %v8484_v19 = vsel %vm8482_vm7, %v3257_v63, %v11970_v29 }
 0x3b1   : > { %v3401_v55 = vsel %vm3399_vm1, %v3389_v60, 2102212464  ;;  %v3407_v53 = vsel %vm3397_vm11, %v3404_v12, %v3406_v31  ;;  %v3255_v0 = vsel %vm3253_vm15, %v11968_v30, %v3254_v59  ;;  %v8481_v62 = vsel %vm8479_vm4, %v11968_v30, %v3254_v59 }
 0x3b2   : > { %vm11252_vm12 = vcmp.lt.s32.totalorder %v11251_v35, 0  ;;  %v3411_v2 = vsel %vm3397_vm11, %v3408_v17, %v3410_v38  ;;  %v3259_v32 = vsel %vm3252_vm5, %v3255_v0, %v3258_v52  ;;  %v8485_v25 = vsel %vm8478_vm6, %v8481_v62, %v8484_v19 }
 0x3b3   : > { %v3332_v36 = vsel %vm11252_vm12, 0, %v11251_v35  ;;  %v3471_v18 = vshrl.u32 %v3470_v14, 23  ;;  %v3260_v1 = vsel %vm3250_vm8, nan, %v3259_v32  ;;  %v8486_v24 = vsel %vm3250_vm8, nan, %v8485_v25 }
 0x3b4   : > { %v3333_v28 = vsub.s32 32, %v3332_v36  ;;  %v3400_v26 = vsel %vm3396_vm9, %v3380_v27, %v3383_v41  ;;  %5758 = vst [vmem:[%s12696_s30 + $0xc8] sm:$0xff] %v3260_v1  ;;  %11570 = vst [vmem:[%s12696_s30 + $0x258] sm:$0xff] %v8486_v24  ;;  %v3337_v44 = vsub.s32 4294967266, %v3332_v36  ;;  %v3402_v40 = vsel %vm3398_vm10, %v3386_v5, %v3401_v55 }
 0x3b5   : > { %v15267_v43 = vmul.u32.u64.low %v15212_v34, %v3411_v2  ;;  %v15268_v45 = vmul.u32.u64.high %v15212_v34, %v3411_v2, %v15267_v43  ;;  %v3334_v39 = vshll.u32 %v15195_v54, %v3332_v36  ;;  %v11257_v41 = vadd.s32 4294967169, %v3471_v18 }
 0x3b6   : > { %v3335_v47 = vshrl.u32 %v3317_v3, %v3333_v28  ;;  %v15272_v7 = vmul.u32.u64.low %v15212_v34, %v3407_v53  ;;  %v15273_v23 = vmul.u32.u64.high %v15212_v34, %v3407_v53, %v15272_v7  ;;  %v3338_v6 = vadd.s32 127, %v3337_v44  ;;  %v15320_v43 = vpop.permute.xlu1 %426 }
 0x3b7   : > { %vm15278_vm13 = vcmp.le.f32.partialorder %v3261_v58, 0.7853982  ;;  %v3403_v37 = vsel %vm3397_vm11, %v3400_v26, %v3402_v40  ;;  %v15289_v3 = vadd.f32 %v512_v51, %v17806_v49  ;;  %v3477_v58 = vadd.s32 1, %v11257_v41 }
 0x3b8   : > { %v3336_v5 = vor.u32 %v3335_v47, %v3334_v39  ;;  %v3339_v46 = vshll.u32 %v3338_v6, 23  ;;  %v3350_v54 = vsel %vm15278_vm13, 0, %v3348_v22  ;;  %vm3421_vm14 = vc.u32 %v15268_v45, %v15272_v7 }
 0x3b9   : > { %v3422_v42 = vadd.s32 1, %v15273_v23  ;;  %v3419_v14 = vmul.u32 %v15212_v34, %v3403_v37  ;;  %v3467_v30 = vand.u32 2147483647, %v15205_v8  ;;  %v8580_v27 = vadd.s32 3, %v3350_v54 }
 0x3ba   : > { %v3340_v57 = vor.u32 4788187, %v3339_v46  ;;  %v3343_v11 = vcvt.s32.f32 %v3336_v5  ;;  %vm3478_vm3 = vcmp.gt.s32.totalorder %v3477_v58, 0  ;;  %v3573_v63 = vand.u32 2139095040, %v15289_v3 }
 0x3bb   : > { %v3423_v10 = vsel %vm3421_vm14, %v3422_v42, %v15273_v23  ;;  %v3479_v29 = vsel %vm3478_vm3, %v3477_v58, 0  ;;  %v15296_v48 = vand.u32 3, %v3350_v54  ;;  %v15298_v59 = vand.u32 3, %v8580_v27 }
 0x3bc   : > { %v3341_v12 = vand.u32 2147483647, %v3340_v57  ;;  %v3424_v31 = vadd.s32 %v3423_v10, %v3419_v14  ;;  %v3481_v51 = vand.u32 31, %v3479_v29  ;;  %v3474_v52 = vand.u32 8388607, %v3467_v30 }
 0x3bd   : > { %v3574_v19 = vshrl.u32 %v3573_v63, 23  ;;  %v3480_v1 = vshrl.u32 %v3479_v29, 5  ;;  %v3570_v37 = vand.u32 2147483647, %v15289_v3  ;;  %v15330_v54 = vmul.f32 %v12367_v4, %v15320_v43 }
 0x3be   : > { %v3344_v22 = vmul.f32 %v3343_v11, %v3341_v12  ;;  %v3425_v17 = vadd.s32 536870912, %v3424_v31  ;;  %v3482_v34 = vsub.s32 32, %v3481_v51  ;;  %v3484_v55 = vshll.u32 %v17729_v16, %v3481_v51 }
 0x3bf   : > { %v3487_v25 = vshll.u32 %v17730_v61, %v3481_v51  ;;  %v3490_v24 = vshll.u32 %v17731_v20, %v3481_v51  ;;  %v3493_v28 = vshll.u32 %v17732_v33, %v3481_v51  ;;  %v3475_v41 = vor.u32 8388608, %v3474_v52 }
 0x3c0   : > { %v3345_v35 = vxor.u32 2147483648, %v3344_v22  ;;  %v15300_v38 = vshrl.u32 %v3425_v17, 30  ;;  %v3485_v53 = vshrl.u32 %v17730_v61, %v3482_v34  ;;  %v3488_v0 = vshrl.u32 %v17731_v20, %v3482_v34 }
 0x3c1   : > { %v3491_v62 = vshrl.u32 %v17732_v33, %v3482_v34  ;;  %v3494_v36 = vshrl.u32 %v17733_v56, %v3482_v34  ;;  %v3497_v23 = vshrl.u32 %v17734_v50, %v3482_v34  ;;  %v3496_v60 = vshll.u32 %v17733_v56, %v3481_v51 }
 0x3c2   : > { %v3346_v2 = vsel %vm3263_vm0, %v3345_v35, %v3344_v22  ;;  %v3427_v32 = vshll.u32 %v15300_v38, 30  ;;  %v3486_v44 = vor.u32 %v3485_v53, %v3484_v55  ;;  %v3489_v40 = vor.u32 %v3488_v0, %v3487_v25 }
 0x3c3   : > { %v3349_v18 = vsel %vm15278_vm13, %v14879_v13, %v3346_v2  ;;  %v3492_v39 = vor.u32 %v3491_v62, %v3490_v24  ;;  %v3495_v47 = vor.u32 %v3494_v36, %v3493_v28  ;;  %vm3366_vm0 = vcmp.lt.s32.totalorder %v15068_v15, 0 }
 0x3c4   : > { %11971 = vcosq.f32 %v3349_v18  ;;  %v15318_v26 = vsub.s32 %v3424_v31, %v3427_v32  ;;  %v3483_v5 = vshrl.u32 %v17729_v16, %v3482_v34  ;;  %v11261_v46 = vadd.s32 4294967169, %v3574_v19 }
 0x3c5   : > { %11973 = vsinq.f32 %v3349_v18  ;;  %vm3359_vm2 = vcmp.eq.s32.totalorder %v15296_v48, 2  ;;  %vm8586_vm15 = vcmp.eq.s32.totalorder %v15298_v59, 2  ;;  %v3498_v42 = vor.u32 %v3497_v23, %v3496_v60 }
 0x3c6   : > { %v3430_v6 = vsub.s32 0, %v15318_v26  ;;  %vm3499_vm4 = vcmp.lt.s32.totalorder %v3480_v1, 1  ;;  %vm3502_vm5 = vcmp.lt.s32.totalorder %v3480_v1, 4  ;;  %vm3356_vm6 = vcmp.eq.s32.totalorder %v15296_v48, 0 }
 0x3c7   : > { %vm8583_vm8 = vcmp.eq.s32.totalorder %v15298_v59, 0  ;;  %vm3501_vm7 = vcmp.lt.s32.totalorder %v3480_v1, 3  ;;  %v3504_v58 = vsel %vm3502_vm5, %v3492_v39, 2102212464  ;;  %v3507_v57 = vsel %vm3499_vm4, %v3486_v44, %v3489_v40 }
 0x3c8   : > { %v11254_v49 = vmin.u32 %v3430_v6, %v15318_v26  ;;  %v3508_v14 = vsel %vm3502_vm5, %v3495_v47, 920167782  ;;  %vm3355_vm1 = vcmp.lt.s32.totalorder %v15296_v48, 2  ;;  %v3450_v10 = vsub.s32 4, %v15300_v38 }
 0x3c9   : > { %vm8582_vm9 = vcmp.lt.s32.totalorder %v15298_v59, 2  ;;  %v3509_v27 = vsel %vm3501_vm7, %v3492_v39, %v3508_v14  ;;  %v3515_v12 = vshll.u32 %v3475_v41, 8  ;;  %vm3353_vm10 = vweird.f32 %v14879_v13 }
 0x3ca   : > { %v3432_v11 = vclz %v11254_v49  ;;  %vm3500_vm11 = vcmp.lt.s32.totalorder %v3480_v1, 2  ;;  %v3503_v31 = vsel %vm3499_vm4, %v3483_v5, %v3486_v44  ;;  %v3505_v29 = vsel %vm3501_vm7, %v3489_v40, %v3504_v58 }
 0x3cb   : > { %v3511_v63 = vsel %vm3499_vm4, %v3489_v40, %v3492_v39  ;;  %v3420_v51 = vadd.s32 %v15272_v7, %v15268_v45  ;;  %v3510_v17 = vsel %vm3500_vm11, %v3507_v57, %v3509_v27  ;;  %v3512_v34 = vsel %vm3502_vm5, %v3498_v42, 1326507024 }
 0x3cc   : > { %v11255_v22 = vadd.s32 4294967294, %v3432_v11  ;;  %v3513_v35 = vsel %vm3501_vm7, %v3495_v47, %v3512_v34  ;;  %v15352_v52 = vmul.u32.u64.low %v3515_v12, %v3510_v17  ;;  %v15353_v19 = vmul.u32.u64.high %v3515_v12, %v3510_v17, %v15352_v52 }
 0x3cd   : > { %v3580_v55 = vadd.s32 1, %v11261_v46  ;;  %v3451_v0 = vsel %vm3366_vm0, %v3450_v10, %v15300_v38  ;;  %v3506_v62 = vsel %vm3500_vm11, %v3503_v31, %v3505_v29  ;;  %v3514_v2 = vsel %vm3500_vm11, %v3511_v63, %v3513_v35  ;;  %v17809_v10 = vld [vmem:[#allocation17_spill] sm:$0xff] }
 0x3ce   : > { %v11972_v53 = vpop.eup %11971  ;;  %vm11256_vm12 = vcmp.lt.s32.totalorder %v11255_v22, 0  ;;  %v15359_v25 = vmul.u32.u64.low %v3515_v12, %v3514_v2  ;;  %v15360_v36 = vmul.u32.u64.high %v3515_v12, %v3514_v2, %v15359_v25  ;;  %v3525_v38 = vadd.s32 1, %v15353_v19 }
 0x3cf   : > { %v11974_v45 = vpop.eup %11973  ;;  %v3360_v7 = vxor.u32 2147483648, %v11972_v53  ;;  %v3435_v32 = vsel %vm11256_vm12, 0, %v11255_v22  ;;  %vm3581_vm13 = vcmp.gt.s32.totalorder %v3580_v55, 0  ;;  %v3522_v60 = vmul.u32 %v3515_v12, %v3506_v62 }
 0x3d0   : > { %v3357_v18 = vxor.u32 2147483648, %v11974_v45  ;;  %v3436_v1 = vsub.s32 32, %v3435_v32  ;;  %v3437_v24 = vshll.u32 %v15318_v26, %v3435_v32  ;;  %v3440_v28 = vsub.s32 4294967266, %v3435_v32 }
 0x3d1   : > { %v3361_v44 = vsel %vm3359_vm2, %v3360_v7, %v11974_v45  ;;  %v8588_v40 = vsel %vm8586_vm15, %v3360_v7, %v11974_v45  ;;  %vm3524_vm14 = vc.u32 %v15360_v36, %v15352_v52  ;;  %vm15384_vm3 = vcmp.le.f32.partialorder %v3364_v21, 0.7853982 }
 0x3d2   : > { %v3358_v39 = vsel %vm3356_vm6, %v11972_v53, %v3357_v18  ;;  %v3438_v47 = vshrl.u32 %v3420_v51, %v3436_v1  ;;  %v3441_v23 = vadd.s32 127, %v3440_v28  ;;  %v8585_v26 = vsel %vm8583_vm8, %v11972_v53, %v3357_v18 }
 0x3d3   : > { %v3362_v6 = vsel %vm3355_vm1, %v3358_v39, %v3361_v44  ;;  %v8589_v41 = vsel %vm8582_vm9, %v8585_v26, %v8588_v40  ;;  %v3526_v59 = vsel %vm3524_vm14, %v3525_v38, %v15353_v19  ;;  %v3577_v58 = vand.u32 8388607, %v3570_v37 }
 0x3d4   : > { %v3363_v5 = vsel %vm3353_vm10, nan, %v3362_v6  ;;  %v3439_v46 = vor.u32 %v3438_v47, %v3437_v24  ;;  %v3442_v49 = vshll.u32 %v3441_v23, 23  ;;  %v8590_v42 = vsel %vm3353_vm10, nan, %v8589_v41 }
 0x3d5   : > { %5759 = vst [vmem:[%s12696_s30 + $0xd0] sm:$0xff] %v3363_v5  ;;  %11571 = vst [vmem:[%s12696_s30 + $0x260] sm:$0xff] %v8590_v42  ;;  %v3582_v57 = vsel %vm3581_vm13, %v3580_v55, 0  ;;  %v3453_v13 = vsel %vm15384_vm3, 0, %v3451_v0  ;;  %v3527_v11 = vadd.s32 %v3526_v59, %v3522_v60  ;;  %v15398_v21 = vadd.f32 %v15330_v54, %v17809_v10 }
 0x3d6   : > { %v3443_v14 = vor.u32 4788187, %v3442_v49  ;;  %v3584_v27 = vand.u32 31, %v3582_v57  ;;  %v3446_v31 = vcvt.s32.f32 %v3439_v46  ;;  %v8684_v63 = vadd.s32 3, %v3453_v13 }
 0x3d7   : > { %v3528_v29 = vadd.s32 536870912, %v3527_v11  ;;  %v3578_v51 = vor.u32 8388608, %v3577_v58  ;;  %v15402_v17 = vmul.f32 %v12369_v9, %v15320_v43  ;;  %v15406_v19 = vshrl.u32 %v3582_v57, 5 }
 0x3d8   : > { %v3444_v12 = vand.u32 2147483647, %v3443_v14  ;;  %v3585_v22 = vsub.s32 32, %v3584_v27  ;;  %v3676_v55 = vand.u32 2139095040, %v15398_v21  ;;  %v3587_v54 = vshll.u32 %v17729_v16, %v3584_v27 }
 0x3d9   : > { %v15404_v35 = vshrl.u32 %v3528_v29, 30  ;;  %v3590_v43 = vshll.u32 %v17730_v61, %v3584_v27  ;;  %v3593_v32 = vshll.u32 %v17731_v20, %v3584_v27  ;;  %v3596_v25 = vshll.u32 %v17732_v33, %v3584_v27 }
 0x3da   : > { %v3447_v34 = vmul.f32 %v3446_v31, %v3444_v12  ;;  %v3588_v53 = vshrl.u32 %v17730_v61, %v3585_v22  ;;  %v3591_v0 = vshrl.u32 %v17731_v20, %v3585_v22  ;;  %v3594_v62 = vshrl.u32 %v17732_v33, %v3585_v22 }
 0x3db   : > { %v3530_v45 = vshll.u32 %v15404_v35, 30  ;;  %v3597_v7 = vshrl.u32 %v17733_v56, %v3585_v22  ;;  %v3599_v18 = vshll.u32 %v17733_v56, %v3584_v27  ;;  %v3600_v1 = vshrl.u32 %v17734_v50, %v3585_v22 }
 0x3dc   : > { %v3448_v2 = vxor.u32 2147483648, %v3447_v34  ;;  %v3589_v44 = vor.u32 %v3588_v53, %v3587_v54  ;;  %v3592_v40 = vor.u32 %v3591_v0, %v3590_v43  ;;  %v3595_v39 = vor.u32 %v3594_v62, %v3593_v32 }
 0x3dd   : > { %v15422_v28 = vsub.s32 %v3527_v11, %v3530_v45  ;;  %v3598_v47 = vor.u32 %v3597_v7, %v3596_v25  ;;  %v3601_v23 = vor.u32 %v3600_v1, %v3599_v18  ;;  %v15427_v26 = vand.u32 3, %v3453_v13 }
 0x3de   : > { %v3449_v24 = vsel %vm3366_vm0, %v3448_v2, %v3447_v34  ;;  %v15429_v6 = vand.u32 3, %v8684_v63  ;;  %vm3602_vm0 = vcmp.lt.s32.totalorder %v15406_v19, 1  ;;  %v15433_v60 = vshll.u32 %v3578_v51, 8 }
 0x3df   : > { %v3452_v38 = vsel %vm15384_vm3, %v15068_v15, %v3449_v24  ;;  %v3533_v41 = vsub.s32 0, %v15422_v28  ;;  %v3677_v5 = vshrl.u32 %v3676_v55, 23  ;;  %vm3603_vm2 = vcmp.lt.s32.totalorder %v15406_v19, 2 }
 0x3e0   : > { %11975 = vcosq.f32 %v3452_v38  ;;  %vm3605_vm15 = vcmp.lt.s32.totalorder %v15406_v19, 4  ;;  %v3610_v49 = vsel %vm3602_vm0, %v3589_v44, %v3592_v40  ;;  %vm3604_vm4 = vcmp.lt.s32.totalorder %v15406_v19, 3 }
 0x3e1   : > { %11977 = vsinq.f32 %v3452_v38  ;;  %v11258_v46 = vmin.u32 %v3533_v41, %v15422_v28  ;;  %v3611_v42 = vsel %vm3605_vm15, %v3598_v47, 920167782  ;;  %v3614_v48 = vsel %vm3602_vm0, %v3592_v40, %v3595_v39 }
 0x3e2   : > { %v3615_v59 = vsel %vm3605_vm15, %v3601_v23, 1326507024  ;;  %v3607_v57 = vsel %vm3605_vm15, %v3595_v39, 2102212464  ;;  %v3612_v14 = vsel %vm3604_vm4, %v3595_v39, %v3611_v42  ;;  %vm3459_vm5 = vcmp.eq.s32.totalorder %v15427_v26, 0 }
 0x3e3   : > { %v3535_v58 = vclz %v11258_v46  ;;  %v3616_v13 = vsel %vm3604_vm4, %v3598_v47, %v3615_v59  ;;  %vm3462_vm6 = vcmp.eq.s32.totalorder %v15427_v26, 2  ;;  %v3586_v11 = vshrl.u32 %v17729_v16, %v3585_v22 }
 0x3e4   : > { %v3613_v10 = vsel %vm3603_vm2, %v3610_v49, %v3612_v14  ;;  %v3617_v27 = vsel %vm3603_vm2, %v3614_v48, %v3616_v13  ;;  %vm3458_vm8 = vcmp.lt.s32.totalorder %v15427_v26, 2  ;;  %v11265_v63 = vadd.s32 4294967169, %v3677_v5 }
 0x3e5   : > { %v11259_v12 = vadd.s32 4294967294, %v3535_v58  ;;  %v15456_v31 = vmul.u32.u64.low %v15433_v60, %v3617_v27  ;;  %v15457_v29 = vmul.u32.u64.high %v15433_v60, %v3617_v27, %v15456_v31  ;;  %vm3456_vm7 = vweird.f32 %v15068_v15 }
 0x3e6   : > { %v3606_v51 = vsel %vm3602_vm0, %v3586_v11, %v3589_v44  ;;  %v3608_v22 = vsel %vm3604_vm4, %v3592_v40, %v3607_v57  ;;  %v15465_v34 = vmul.u32.u64.low %v15433_v60, %v3613_v10  ;;  %v15466_v55 = vmul.u32.u64.high %v15433_v60, %v3613_v10, %v15465_v34  ;;  %v17812_v10 = vld [vmem:[#allocation18_spill] sm:$0xff] }
 0x3e7   : > { %vm8686_vm1 = vcmp.lt.s32.totalorder %v15429_v6, 2  ;;  %vm8687_vm9 = vcmp.eq.s32.totalorder %v15429_v6, 0  ;;  %vm3469_vm10 = vcmp.lt.s32.totalorder %v15205_v8, 0  ;;  %vm11260_vm11 = vcmp.lt.s32.totalorder %v11259_v12, 0 }
 0x3e8   : > { %v3683_v54 = vadd.s32 1, %v11265_v63  ;;  %vm8690_vm12 = vcmp.eq.s32.totalorder %v15429_v6, 2  ;;  %v3523_v53 = vadd.s32 %v15352_v52, %v15360_v36  ;;  %v3538_v0 = vsel %vm11260_vm11, 0, %v11259_v12 }
 0x3e9   : > { %v3553_v62 = vsub.s32 4, %v15404_v35  ;;  %v3539_v45 = vsub.s32 32, %v3538_v0  ;;  %v3540_v43 = vshll.u32 %v15422_v28, %v3538_v0  ;;  %v3543_v7 = vsub.s32 4294967266, %v3538_v0 }
 0x3ea   : > { %v11976_v2 = vpop.eup %11975  ;;  %v3609_v32 = vsel %vm3603_vm2, %v3606_v51, %v3608_v22  ;;  %vm3627_vm13 = vc.u32 %v15457_v29, %v15465_v34  ;;  %v3628_v1 = vadd.s32 1, %v15466_v55  ;;  %vm3684_vm14 = vcmp.gt.s32.totalorder %v3683_v54, 0 }
 0x3eb   : > { %v11978_v25 = vpop.eup %11977  ;;  %v3463_v18 = vxor.u32 2147483648, %v11976_v2  ;;  %v3541_v36 = vshrl.u32 %v3523_v53, %v3539_v45  ;;  %v3544_v24 = vadd.s32 127, %v3543_v7  ;;  %v3685_v44 = vsel %vm3684_vm14, %v3683_v54, 0 }
 0x3ec   : > { %v3460_v52 = vxor.u32 2147483648, %v11978_v25  ;;  %v3625_v28 = vmul.u32 %v15433_v60, %v3609_v32  ;;  %v3629_v38 = vsel %vm3627_vm13, %v3628_v1, %v15466_v55  ;;  %v3687_v42 = vand.u32 31, %v3685_v44 }
 0x3ed   : > { %v3464_v40 = vsel %vm3462_vm6, %v3463_v18, %v11978_v25  ;;  %v8692_v19 = vsel %vm8690_vm12, %v3463_v18, %v11978_v25  ;;  %v3542_v23 = vor.u32 %v3541_v36, %v3540_v43  ;;  %v3545_v41 = vshll.u32 %v3544_v24, 23 }
 0x3ee   : > { %v3461_v39 = vsel %vm3459_vm5, %v11976_v2, %v3460_v52  ;;  %v8689_v47 = vsel %vm8687_vm9, %v11976_v2, %v3460_v52  ;;  %v3630_v49 = vadd.s32 %v3629_v38, %v3625_v28  ;;  %v3673_v58 = vand.u32 2147483647, %v15398_v21 }
 0x3ef   : > { %v3465_v5 = vsel %vm3458_vm8, %v3461_v39, %v3464_v40  ;;  %v8693_v46 = vsel %vm8686_vm1, %v8689_v47, %v8692_v19  ;;  %v3546_v59 = vor.u32 4788187, %v3545_v41  ;;  %v3554_v26 = vsel %vm3469_vm10, %v3553_v62, %v15404_v35 }
 0x3f0   : > { %v3466_v60 = vsel %vm3456_vm7, nan, %v3465_v5  ;;  %v8694_v48 = vsel %vm3456_vm7, nan, %v8693_v46  ;;  %v3631_v57 = vadd.s32 536870912, %v3630_v49  ;;  %v3688_v6 = vsub.s32 32, %v3687_v42 }
 0x3f1   : > { %5760 = vst [vmem:[%s12696_s30 + $0xd8] sm:$0xff] %v3466_v60  ;;  %11572 = vst [vmem:[%s12696_s30 + $0x268] sm:$0xff] %v8694_v48  ;;  %vm15508_vm3 = vcmp.le.f32.partialorder %v3467_v30, 0.7853982  ;;  %v3547_v13 = vand.u32 2147483647, %v3546_v59  ;;  %v3549_v15 = vcvt.s32.f32 %v3542_v23  ;;  %v15516_v27 = vadd.f32 %v15402_v17, %v17812_v10 }
 0x3f2   : > { %v15512_v11 = vshrl.u32 %v3631_v57, 30  ;;  %v3691_v12 = vshrl.u32 %v17730_v61, %v3688_v6  ;;  %v3694_v35 = vshrl.u32 %v17731_v20, %v3688_v6  ;;  %v3556_v63 = vsel %vm15508_vm3, 0, %v3554_v26 }
 0x3f3   : > { %v3550_v31 = vmul.f32 %v3549_v15, %v3547_v13  ;;  %v3680_v30 = vand.u32 8388607, %v3673_v58  ;;  %v3700_v51 = vshrl.u32 %v17733_v56, %v3688_v6  ;;  %v3690_v55 = vshll.u32 %v17729_v16, %v3687_v42 }
 0x3f4   : > { %v3633_v22 = vshll.u32 %v15512_v11, 30  ;;  %v3693_v17 = vshll.u32 %v17730_v61, %v3687_v42  ;;  %v3697_v54 = vshrl.u32 %v17732_v33, %v3688_v6  ;;  %v3686_v0 = vshrl.u32 %v3685_v44, 5 }
 0x3f5   : > { %v3551_v53 = vxor.u32 2147483648, %v3550_v31  ;;  %v3699_v62 = vshll.u32 %v17732_v33, %v3687_v42  ;;  %v3703_v2 = vshrl.u32 %v17734_v50, %v3688_v6  ;;  %v3692_v43 = vor.u32 %v3691_v12, %v3690_v55 }
 0x3f6   : > { %v15531_v45 = vsub.s32 %v3630_v49, %v3633_v22  ;;  %v3695_v7 = vor.u32 %v3694_v35, %v3693_v17  ;;  %v3696_v32 = vshll.u32 %v17731_v20, %v3687_v42  ;;  %v8788_v18 = vadd.s32 3, %v3556_v63 }
 0x3f7   : > { %v3552_v25 = vsel %vm3469_vm10, %v3551_v53, %v3550_v31  ;;  %v3701_v1 = vor.u32 %v3700_v51, %v3699_v62  ;;  %v3702_v52 = vshll.u32 %v17733_v56, %v3687_v42  ;;  %v15540_v24 = vand.u32 3, %v3556_v63 }
 0x3f8   : > { %v3555_v36 = vsel %vm15508_vm3, %v15205_v8, %v3552_v25  ;;  %v3636_v44 = vsub.s32 0, %v15531_v45  ;;  %v3698_v40 = vor.u32 %v3697_v54, %v3696_v32  ;;  %v3681_v19 = vor.u32 8388608, %v3680_v30 }
 0x3f9   : > { %11979 = vcosq.f32 %v3555_v36  ;;  %v3704_v28 = vor.u32 %v3703_v2, %v3702_v52  ;;  %vm3705_vm0 = vcmp.lt.s32.totalorder %v3686_v0, 1  ;;  %vm3708_vm2 = vcmp.lt.s32.totalorder %v3686_v0, 4 }
 0x3fa   : > { %11981 = vsinq.f32 %v3555_v36  ;;  %v11262_v38 = vmin.u32 %v3636_v44, %v15531_v45  ;;  %v3713_v39 = vsel %vm3705_vm0, %v3692_v43, %v3695_v7  ;;  %vm3572_vm15 = vcmp.lt.s32.totalorder %v15289_v3, 0 }
 0x3fb   : > { %v15546_v47 = vand.u32 3, %v8788_v18  ;;  %vm3707_vm4 = vcmp.lt.s32.totalorder %v3686_v0, 3  ;;  %v3714_v23 = vsel %vm3708_vm2, %v3701_v1, 920167782  ;;  %vm3706_vm5 = vcmp.lt.s32.totalorder %v3686_v0, 2 }
 0x3fc   : > { %v3638_v41 = vclz %v11262_v38  ;;  %v3710_v5 = vsel %vm3708_vm2, %v3698_v40, 2102212464  ;;  %v3715_v46 = vsel %vm3707_vm4, %v3698_v40, %v3714_v23  ;;  %vm3565_vm6 = vcmp.eq.s32.totalorder %v15540_v24, 2 }
 0x3fd   : > { %v3689_v49 = vshrl.u32 %v17729_v16, %v3688_v6  ;;  %v3716_v42 = vsel %vm3706_vm5, %v3713_v39, %v3715_v46  ;;  %v3717_v60 = vsel %vm3705_vm0, %v3695_v7, %v3698_v40  ;;  %v3776_v48 = vand.u32 2147483647, %v15516_v27 }
 0x3fe   : > { %vm3562_vm8 = vcmp.eq.s32.totalorder %v15540_v24, 0  ;;  %v11263_v59 = vadd.s32 4294967294, %v3638_v41  ;;  %v3656_v26 = vsub.s32 4, %v15512_v11  ;;  %v3718_v57 = vsel %vm3708_vm2, %v3704_v28, 1326507024 }
 0x3ff   : > { %v3721_v14 = vshll.u32 %v3681_v19, 8  ;;  %vm3561_vm7 = vcmp.lt.s32.totalorder %v15540_v24, 2  ;;  %vm15562_vm1 = vcmp.le.f32.partialorder %v3570_v37, 0.7853982  ;;  %vm8790_vm9 = vcmp.lt.s32.totalorder %v15546_v47, 2 }
 0x400   : > { %v3709_v13 = vsel %vm3705_vm0, %v3689_v49, %v3692_v43  ;;  %v3711_v15 = vsel %vm3707_vm4, %v3695_v7, %v3710_v5  ;;  %v3719_v10 = vsel %vm3707_vm4, %v3701_v1, %v3718_v57  ;;  %v3779_v12 = vand.u32 2139095040, %v15516_v27 }
 0x401   : > { %vm3559_vm10 = vweird.f32 %v15205_v8  ;;  %vm11264_vm11 = vcmp.lt.s32.totalorder %v11263_v59, 0  ;;  %v3720_v35 = vsel %vm3706_vm5, %v3717_v60, %v3719_v10  ;;  %v3626_v63 = vadd.s32 %v15465_v34, %v15457_v29 }
 0x402   : > { %v15573_v31 = vmul.u32.u64.low %v3721_v14, %v3716_v42  ;;  %v15574_v37 = vmul.u32.u64.high %v3721_v14, %v3716_v42, %v15573_v31  ;;  %v3641_v30 = vsel %vm11264_vm11, 0, %v11263_v59  ;;  %v3712_v54 = vsel %vm3706_vm5, %v3709_v13, %v3711_v15 }
 0x403   : > { %v15579_v51 = vmul.u32.u64.low %v3721_v14, %v3720_v35  ;;  %v15580_v22 = vmul.u32.u64.high %v3721_v14, %v3720_v35, %v15579_v51  ;;  %v3642_v55 = vsub.s32 32, %v3641_v30  ;;  %v3646_v17 = vsub.s32 4294967266, %v3641_v30  ;;  %v11980_v62 = vpop.eup %11979 }
 0x404   : > { %v3780_v53 = vshrl.u32 %v3779_v12, 23  ;;  %v3643_v2 = vshll.u32 %v15531_v45, %v3641_v30  ;;  %v3657_v43 = vsel %vm3572_vm15, %v3656_v26, %v15512_v11  ;;  %vm8791_vm12 = vcmp.eq.s32.totalorder %v15546_v47, 0  ;;  %v11982_v29 = vpop.eup %11981  ;;  %v431_v26 = vpop.permute.xlu0 %430 }
 0x405   : > { %vm8794_vm13 = vcmp.eq.s32.totalorder %v15546_v47, 2  ;;  %v3566_v34 = vxor.u32 2147483648, %v11980_v62  ;;  %v3644_v7 = vshrl.u32 %v3626_v63, %v3642_v55  ;;  %v3647_v32 = vadd.s32 127, %v3646_v17 }
 0x406   : > { %v3731_v25 = vadd.s32 1, %v15574_v37  ;;  %v3563_v0 = vxor.u32 2147483648, %v11982_v29  ;;  %v3728_v18 = vmul.u32 %v3721_v14, %v3712_v54  ;;  %vm3730_vm14 = vc.u32 %v15580_v22, %v15573_v31 }
 0x407   : > { %v11269_v45 = vadd.s32 4294967169, %v3780_v53  ;;  %v3567_v1 = vsel %vm3565_vm6, %v3566_v34, %v11982_v29  ;;  %v3645_v11 = vor.u32 %v3644_v7, %v3643_v2  ;;  %v3648_v52 = vshll.u32 %v3647_v32, 23 }
 0x408   : > { %v8796_v36 = vsel %vm8794_vm13, %v3566_v34, %v11982_v29  ;;  %v3564_v44 = vsel %vm3562_vm8, %v11980_v62, %v3563_v0  ;;  %v8793_v40 = vsel %vm8791_vm12, %v11980_v62, %v3563_v0  ;;  %v3732_v19 = vsel %vm3730_vm14, %v3731_v25, %v15574_v37 }
 0x409   : > { %v3786_v28 = vadd.s32 1, %v11269_v45  ;;  %v3568_v38 = vsel %vm3561_vm7, %v3564_v44, %v3567_v1  ;;  %v3649_v39 = vor.u32 4788187, %v3648_v52  ;;  %v3659_v23 = vsel %vm15562_vm1, 0, %v3657_v43 }
 0x40a   : > { %v8797_v41 = vsel %vm8790_vm9, %v8793_v40, %v8796_v36  ;;  %v3569_v5 = vsel %vm3559_vm10, nan, %v3568_v38  ;;  %v3733_v49 = vadd.s32 %v3732_v19, %v3728_v18  ;;  %v3652_v60 = vcvt.s32.f32 %v3645_v11  ;;  %v17815_v36 = vld [vmem:[#allocation23_spill] sm:$0xff] }
 0x40b   : > { %v8798_v46 = vsel %vm3559_vm10, nan, %v8797_v41  ;;  %vm3787_vm3 = vcmp.gt.s32.totalorder %v3786_v28, 0  ;;  %v3650_v42 = vand.u32 2147483647, %v3649_v39  ;;  %5761 = vst [vmem:[%s12696_s30 + $0xe0] sm:$0xff] %v3569_v5  ;;  %v15613_v13 = vand.u32 3, %v3659_v23 }
 0x40c   : > { %11573 = vst [vmem:[%s12696_s30 + $0x270] sm:$0xff] %v8798_v46  ;;  %v3783_v24 = vand.u32 8388607, %v3776_v48  ;;  %v3788_v59 = vsel %vm3787_vm3, %v3786_v28, 0  ;;  %v3734_v57 = vadd.s32 536870912, %v3733_v49  ;;  %v515_v10 = vmul.f32 %v12367_v4, %v431_v26 }
 0x40d   : > { %v3790_v47 = vand.u32 31, %v3788_v59  ;;  %v3653_v14 = vmul.f32 %v3652_v60, %v3650_v42  ;;  %v8892_v35 = vadd.s32 3, %v3659_v23  ;;  %v15618_v63 = vshrl.u32 %v3788_v59, 5 }
 0x40e   : > { %v15615_v15 = vshrl.u32 %v3734_v57, 30  ;;  %v3784_v37 = vor.u32 8388608, %v3783_v24  ;;  %v516_v52 = vmul.f32 %v12369_v9, %v431_v26  ;;  %v15643_v44 = vadd.f32 %v515_v10, %v17815_v36 }
 0x40f   : > { %v3791_v8 = vsub.s32 32, %v3790_v47  ;;  %v3654_v12 = vxor.u32 2147483648, %v3653_v14  ;;  %v3793_v51 = vshll.u32 %v17729_v16, %v3790_v47  ;;  %v3796_v17 = vshll.u32 %v17730_v61, %v3790_v47 }
 0x410   : > { %v3736_v30 = vshll.u32 %v15615_v15, 30  ;;  %v3799_v34 = vshll.u32 %v17731_v20, %v3790_v47  ;;  %v3802_v7 = vshll.u32 %v17732_v33, %v3790_v47  ;;  %v15636_v32 = vand.u32 3, %v8892_v35 }
 0x411   : > { %v3794_v55 = vshrl.u32 %v17730_v61, %v3791_v8  ;;  %v3655_v54 = vsel %vm3572_vm15, %v3654_v12, %v3653_v14  ;;  %v3797_v53 = vshrl.u32 %v17731_v20, %v3791_v8  ;;  %v3800_v62 = vshrl.u32 %v17732_v33, %v3791_v8 }
 0x412   : > { %v3803_v2 = vshrl.u32 %v17733_v56, %v3791_v8  ;;  %v3658_v43 = vsel %vm15562_vm1, %v15289_v3, %v3655_v54  ;;  %v15632_v29 = vsub.s32 %v3733_v49, %v3736_v30  ;;  %v3805_v11 = vshll.u32 %v17733_v56, %v3790_v47 }
 0x413   : > { %11983 = vcosq.f32 %v3658_v43  ;;  %v3795_v25 = vor.u32 %v3794_v55, %v3793_v51  ;;  %v3798_v0 = vor.u32 %v3797_v53, %v3796_v17  ;;  %v3801_v45 = vor.u32 %v3800_v62, %v3799_v34  ;;  %v17816_v17 = vld [vmem:[#allocation24_spill] sm:$0xff] }
 0x414   : > { %11985 = vsinq.f32 %v3658_v43  ;;  %v3739_v18 = vsub.s32 0, %v15632_v29  ;;  %v3804_v1 = vor.u32 %v3803_v2, %v3802_v7  ;;  %v3806_v6 = vshrl.u32 %v17734_v50, %v3791_v8 }
 0x415   : > { %v3792_v19 = vshrl.u32 %v17729_v16, %v3791_v8  ;;  %vm3808_vm0 = vcmp.lt.s32.totalorder %v15618_v63, 1  ;;  %v15648_v28 = vshll.u32 %v3784_v37, 8  ;;  %vm3668_vm2 = vcmp.eq.s32.totalorder %v15613_v13, 2 }
 0x416   : > { %v11266_v40 = vmin.u32 %v3739_v18, %v15632_v29  ;;  %v3807_v38 = vor.u32 %v3806_v6, %v3805_v11  ;;  %vm3810_vm15 = vcmp.lt.s32.totalorder %v15618_v63, 3  ;;  %vm3811_vm4 = vcmp.lt.s32.totalorder %v15618_v63, 4 }
 0x417   : > { %v3816_v39 = vsel %vm3808_vm0, %v3795_v25, %v3798_v0  ;;  %vm3665_vm5 = vcmp.eq.s32.totalorder %v15613_v13, 0  ;;  %vm8895_vm6 = vcmp.eq.s32.totalorder %v15636_v32, 0  ;;  %v3813_v41 = vsel %vm3811_vm4, %v3801_v45, 2102212464 }
 0x418   : > { %v3741_v23 = vclz %v11266_v40  ;;  %v3817_v5 = vsel %vm3811_vm4, %v3804_v1, 920167782  ;;  %v3820_v46 = vsel %vm3808_vm0, %v3798_v0, %v3801_v45  ;;  %vm3664_vm8 = vcmp.lt.s32.totalorder %v15613_v13, 2 }
 0x419   : > { %vm8894_vm7 = vcmp.lt.s32.totalorder %v15636_v32, 2  ;;  %vm3809_vm1 = vcmp.lt.s32.totalorder %v15618_v63, 2  ;;  %v3818_v49 = vsel %vm3810_vm15, %v3801_v45, %v3817_v5  ;;  %v3821_v42 = vsel %vm3811_vm4, %v3807_v38, 1326507024 }
 0x41a   : > { %v3882_v60 = vand.u32 2139095040, %v15643_v44  ;;  %vm3662_vm9 = vweird.f32 %v15289_v3  ;;  %v11267_v24 = vadd.s32 4294967294, %v3741_v23  ;;  %v3812_v59 = vsel %vm3808_vm0, %v3792_v19, %v3795_v25 }
 0x41b   : > { %v3819_v26 = vsel %vm3809_vm1, %v3816_v39, %v3818_v49  ;;  %v3822_v57 = vsel %vm3810_vm15, %v3804_v1, %v3821_v42  ;;  %vm3675_vm10 = vcmp.lt.s32.totalorder %v15398_v21, 0  ;;  %v3814_v47 = vsel %vm3810_vm15, %v3798_v0, %v3813_v41 }
 0x41c   : > { %v3823_v14 = vsel %vm3809_vm1, %v3820_v46, %v3822_v57  ;;  %v15678_v8 = vmul.u32.u64.low %v15648_v28, %v3819_v26  ;;  %v15679_v10 = vmul.u32.u64.high %v15648_v28, %v3819_v26, %v15678_v8  ;;  %vm8898_vm11 = vcmp.eq.s32.totalorder %v15636_v32, 2 }
 0x41d   : > { %vm11268_vm12 = vcmp.lt.s32.totalorder %v11267_v24, 0  ;;  %v15684_v12 = vmul.u32.u64.low %v15648_v28, %v3823_v14  ;;  %v15685_v35 = vmul.u32.u64.high %v15648_v28, %v3823_v14, %v15684_v12  ;;  %v11984_v37 = vpop.eup %11983  ;;  %v3729_v30 = vadd.s32 %v15573_v31, %v15580_v22 }
 0x41e   : > { %v3744_v51 = vsel %vm11268_vm12, 0, %v11267_v24  ;;  %v3759_v55 = vsub.s32 4, %v15615_v15  ;;  %v15691_v54 = vadd.f32 %v516_v52, %v17816_v17  ;;  %v11986_v53 = vpop.eup %11985  ;;  %v3669_v62 = vxor.u32 2147483648, %v11984_v37 }
 0x41f   : > { %v3745_v2 = vsub.s32 32, %v3744_v51  ;;  %v3749_v43 = vsub.s32 4294967266, %v3744_v51  ;;  %v3815_v34 = vsel %vm3809_vm1, %v3812_v59, %v3814_v47  ;;  %v3666_v7 = vxor.u32 2147483648, %v11986_v53 }
 0x420   : > { %v3746_v25 = vshll.u32 %v15632_v29, %v3744_v51  ;;  %v3834_v0 = vadd.s32 1, %v15679_v10  ;;  %v3883_v18 = vshrl.u32 %v3882_v60, 23  ;;  %v3670_v31 = vsel %vm3668_vm2, %v3669_v62, %v11986_v53 }
 0x421   : > { %v8900_v22 = vsel %vm8898_vm11, %v3669_v62, %v11986_v53  ;;  %v3747_v45 = vshrl.u32 %v3729_v30, %v3745_v2  ;;  %v3750_v1 = vadd.s32 127, %v3749_v43  ;;  %v3667_v63 = vsel %vm3665_vm5, %v11984_v37, %v3666_v7 }
 0x422   : > { %v8897_v11 = vsel %vm8895_vm6, %v11984_v37, %v3666_v7  ;;  %v3831_v29 = vmul.u32 %v15648_v28, %v3815_v34  ;;  %vm3833_vm13 = vc.u32 %v15685_v35, %v15678_v8  ;;  %v3671_v6 = vsel %vm3664_vm8, %v3667_v63, %v3670_v31  ;;  %v15735_v37 = vpop.permute.xlu1 %434 }
 0x423   : > { %v8901_v52 = vsel %vm8894_vm7, %v8897_v11, %v8900_v22  ;;  %v3748_v36 = vor.u32 %v3747_v45, %v3746_v25  ;;  %v3751_v40 = vshll.u32 %v3750_v1, 23  ;;  %v3672_v19 = vsel %vm3662_vm9, nan, %v3671_v6 }
 0x424   : > { %v8902_v38 = vsel %vm3662_vm9, nan, %v8901_v52  ;;  %v3835_v39 = vsel %vm3833_vm13, %v3834_v0, %v15679_v10  ;;  %v3879_v28 = vand.u32 2147483647, %v15643_v44  ;;  %5762 = vst [vmem:[%s12696_s30 + $0xe8] sm:$0xff] %v3672_v19  ;;  %v3760_v13 = vsel %vm3675_vm10, %v3759_v55, %v15615_v15 }
 0x425   : > { %11574 = vst [vmem:[%s12696_s30 + $0x278] sm:$0xff] %v8902_v38  ;;  %v3752_v23 = vor.u32 4788187, %v3751_v40  ;;  %v3836_v32 = vadd.s32 %v3835_v39, %v3831_v29  ;;  %v11273_v41 = vadd.s32 4294967169, %v3883_v18  ;;  %vm15725_vm14 = vcmp.le.f32.partialorder %v3673_v58, 0.7853982 }
 0x426   : > { %v3755_v3 = vcvt.s32.f32 %v3748_v36  ;;  %v3985_v60 = vand.u32 2139095040, %v15691_v54  ;;  %v3762_v24 = vsel %vm15725_vm14, 0, %v3760_v13  ;;  %v3886_v15 = vand.u32 8388607, %v3879_v28 }
 0x427   : > { %v3753_v46 = vand.u32 2147483647, %v3752_v23  ;;  %v3837_v49 = vadd.s32 536870912, %v3836_v32  ;;  %v3889_v42 = vadd.s32 1, %v11273_v41  ;;  %v3982_v58 = vand.u32 2147483647, %v15691_v54 }
 0x428   : > { %v8996_v10 = vadd.s32 3, %v3762_v24  ;;  %v3986_v12 = vshrl.u32 %v3985_v60, 23  ;;  %vm3778_vm0 = vcmp.lt.s32.totalorder %v15516_v27, 0  ;;  %v3887_v17 = vor.u32 8388608, %v3886_v15 }
 0x429   : > { %v3756_v59 = vmul.f32 %v3755_v3, %v3753_v46  ;;  %v3838_v26 = vshrl.u32 %v3837_v49, 30  ;;  %vm3890_vm3 = vcmp.gt.s32.totalorder %v3889_v42, 0  ;;  %v15744_v53 = vand.u32 8388607, %v3982_v58 }
 0x42a   : > { %v3891_v57 = vsel %vm3890_vm3, %v3889_v42, 0  ;;  %v15749_v2 = vand.u32 3, %v3762_v24  ;;  %v15753_v34 = vmul.f32 %v12367_v4, %v15735_v37  ;;  %v15756_v25 = vand.u32 3, %v8996_v10 }
 0x42b   : > { %v3757_v47 = vxor.u32 2147483648, %v3756_v59  ;;  %v3839_v14 = vshll.u32 %v3838_v26, 30  ;;  %v3893_v30 = vand.u32 31, %v3891_v57  ;;  %v11277_v0 = vadd.s32 4294967169, %v3986_v12 }
 0x42c   : > { %v3862_v18 = vsub.s32 4, %v3838_v26  ;;  %v15758_v31 = vshrl.u32 %v3891_v57, 5  ;;  %v3832_v45 = vadd.s32 %v15678_v8, %v15685_v35  ;;  %v15764_v63 = vshll.u32 %v3887_v17, 8 }
 0x42d   : > { %v3758_v51 = vsel %vm3675_vm10, %v3757_v47, %v3756_v59  ;;  %v15740_v55 = vsub.s32 %v3836_v32, %v3839_v14  ;;  %v3894_v43 = vsub.s32 32, %v3893_v30  ;;  %v3990_v11 = vor.u32 8388608, %v15744_v53 }
 0x42e   : > { %v3761_v62 = vsel %vm15725_vm14, %v15398_v21, %v3758_v51  ;;  %v3896_v29 = vshll.u32 %v17729_v16, %v3893_v30  ;;  %v3899_v6 = vshll.u32 %v17730_v61, %v3893_v30  ;;  %v3902_v36 = vshll.u32 %v17731_v20, %v3893_v30 }
 0x42f   : > { %11987 = vcosq.f32 %v3761_v62  ;;  %v3842_v7 = vsub.s32 0, %v15740_v55  ;;  %v3897_v22 = vshrl.u32 %v17730_v61, %v3894_v43  ;;  %v3900_v52 = vshrl.u32 %v17731_v20, %v3894_v43 }
 0x430   : > { %11989 = vsinq.f32 %v3761_v62  ;;  %vm3771_vm2 = vcmp.eq.s32.totalorder %v15749_v2, 2  ;;  %vm9002_vm15 = vcmp.eq.s32.totalorder %v15756_v25, 2  ;;  %v3903_v8 = vshrl.u32 %v17732_v33, %v3894_v43 }
 0x431   : > { %v11270_v1 = vmin.u32 %v3842_v7, %v15740_v55  ;;  %v3905_v35 = vshll.u32 %v17732_v33, %v3893_v30  ;;  %v3906_v19 = vshrl.u32 %v17733_v56, %v3894_v43  ;;  %vm3768_vm4 = vcmp.eq.s32.totalorder %v15749_v2, 0 }
 0x432   : > { %v3863_v38 = vsel %vm3778_vm0, %v3862_v18, %v3838_v26  ;;  %vm8999_vm5 = vcmp.eq.s32.totalorder %v15756_v25, 0  ;;  %v3898_v39 = vor.u32 %v3897_v22, %v3896_v29  ;;  %vm3911_vm6 = vcmp.lt.s32.totalorder %v15758_v31, 1 }
 0x433   : > { %v3844_v40 = vclz %v11270_v1  ;;  %v3992_v23 = vadd.s32 1, %v11277_v0  ;;  %vm3767_vm8 = vcmp.lt.s32.totalorder %v15749_v2, 2  ;;  %vm8998_vm7 = vcmp.lt.s32.totalorder %v15756_v25, 2 }
 0x434   : > { %v3901_v32 = vor.u32 %v3900_v52, %v3899_v6  ;;  %v3904_v41 = vor.u32 %v3903_v8, %v3902_v36  ;;  %v3907_v5 = vor.u32 %v3906_v19, %v3905_v35  ;;  %vm3765_vm1 = vweird.f32 %v15398_v21  ;;  %v17821_v21 = vld [vmem:[#allocation21_spill] sm:$0xff] }
 0x435   : > { %v11271_v13 = vadd.s32 4294967294, %v3844_v40  ;;  %vm15786_vm9 = vcmp.le.f32.partialorder %v3776_v48, 0.7853982  ;;  %v3895_v46 = vshrl.u32 %v17729_v16, %v3894_v43  ;;  %v3908_v49 = vshll.u32 %v17733_v56, %v3893_v30 }
 0x436   : > { %v3909_v42 = vshrl.u32 %v17734_v50, %v3894_v43  ;;  %vm3914_vm10 = vcmp.lt.s32.totalorder %v15758_v31, 4  ;;  %vm3912_vm12 = vcmp.lt.s32.totalorder %v15758_v31, 2  ;;  %vm3913_vm13 = vcmp.lt.s32.totalorder %v15758_v31, 3 }
 0x437   : > { %vm11272_vm11 = vcmp.lt.s32.totalorder %v11271_v13, 0  ;;  %v3916_v60 = vsel %vm3914_vm10, %v3904_v41, 2102212464  ;;  %v3915_v15 = vsel %vm3911_vm6, %v3895_v46, %v3898_v39  ;;  %v3920_v59 = vsel %vm3914_vm10, %v3907_v5, 920167782 }
 0x438   : > { %v3847_v48 = vsel %vm11272_vm11, 0, %v11271_v13  ;;  %v3910_v24 = vor.u32 %v3909_v42, %v3908_v49  ;;  %v3917_v14 = vsel %vm3913_vm13, %v3901_v32, %v3916_v60  ;;  %v3919_v10 = vsel %vm3911_vm6, %v3898_v39, %v3901_v32 }
 0x439   : > { %v11988_v26 = vpop.eup %11987  ;;  %v3848_v57 = vsub.s32 32, %v3847_v48  ;;  %v3852_v47 = vsub.s32 4294967266, %v3847_v48  ;;  %v3849_v51 = vshll.u32 %v15740_v55, %v3847_v48  ;;  %v3921_v17 = vsel %vm3913_vm13, %v3904_v41, %v3920_v59 }
 0x43a   : > { %v11990_v12 = vpop.eup %11989  ;;  %v3772_v30 = vxor.u32 2147483648, %v11988_v26  ;;  %v3924_v62 = vsel %vm3914_vm10, %v3910_v24, 1326507024  ;;  %v3923_v18 = vsel %vm3911_vm6, %v3901_v32, %v3904_v41  ;;  %v3922_v55 = vsel %vm3912_vm12, %v3919_v10, %v3921_v17 }
 0x43b   : > { %v3769_v43 = vxor.u32 2147483648, %v11990_v12  ;;  %v3850_v7 = vshrl.u32 %v3832_v45, %v3848_v57  ;;  %v3853_v0 = vadd.s32 127, %v3852_v47  ;;  %v3925_v29 = vsel %vm3913_vm13, %v3907_v5, %v3924_v62 }
 0x43c   : > { %v3773_v22 = vsel %vm3771_vm2, %v3772_v30, %v11990_v12  ;;  %v9004_v1 = vsel %vm9002_vm15, %v3772_v30, %v11990_v12  ;;  %v3926_v35 = vsel %vm3912_vm12, %v3923_v18, %v3925_v29  ;;  %vm3993_vm14 = vcmp.gt.s32.totalorder %v3992_v23, 0 }
 0x43d   : > { %v3770_v45 = vsel %vm3768_vm4, %v11988_v26, %v3769_v43  ;;  %v3851_v6 = vor.u32 %v3850_v7, %v3849_v51  ;;  %v3854_v52 = vshll.u32 %v3853_v0, 23  ;;  %v9001_v36 = vsel %vm8999_vm5, %v11988_v26, %v3769_v43 }
 0x43e   : > { %v3774_v40 = vsel %vm3767_vm8, %v3770_v45, %v3773_v22  ;;  %v9005_v8 = vsel %vm8998_vm7, %v9001_v36, %v9004_v1  ;;  %v3865_v13 = vsel %vm15786_vm9, 0, %v3863_v38  ;;  %v3918_v42 = vsel %vm3912_vm12, %v3915_v15, %v3917_v14 }
 0x43f   : > { %v3775_v19 = vsel %vm3765_vm1, nan, %v3774_v40  ;;  %v3855_v39 = vor.u32 4788187, %v3854_v52  ;;  %v9006_v32 = vsel %vm3765_vm1, nan, %v9005_v8  ;;  %v3858_v49 = vcvt.s32.f32 %v3851_v6 }
 0x440   : > { %5763 = vst [vmem:[%s12696_s30 + $0xf0] sm:$0xff] %v3775_v19  ;;  %11575 = vst [vmem:[%s12696_s30 + $0x280] sm:$0xff] %v9006_v32  ;;  %v15840_v2 = vmul.u32.u64.low %v15764_v63, %v3926_v35  ;;  %v15841_v25 = vmul.u32.u64.high %v15764_v63, %v3926_v35, %v15840_v2  ;;  %v15844_v41 = vmul.u32.u64.low %v15764_v63, %v3922_v55  ;;  %v15845_v5 = vmul.u32.u64.high %v15764_v63, %v3922_v55, %v15844_v41 }
 0x441   : > { %v3856_v46 = vand.u32 2147483647, %v3855_v39  ;;  %v3994_v38 = vsel %vm3993_vm14, %v3992_v23, 0  ;;  %v15852_v48 = vadd.f32 %v15753_v34, %v17821_v21  ;;  %v15854_v59 = vand.u32 3, %v3865_v13 }
 0x442   : > { %v3996_v60 = vand.u32 31, %v3994_v38  ;;  %v9100_v26 = vadd.s32 3, %v3865_v13  ;;  %v15858_v57 = vshll.u32 %v3990_v11, 8  ;;  %v3934_v47 = vmul.u32 %v15764_v63, %v3918_v42 }
 0x443   : > { %v3859_v24 = vmul.f32 %v3858_v49, %v3856_v46  ;;  %vm3936_vm3 = vc.u32 %v15841_v25, %v15844_v41  ;;  %v3937_v31 = vadd.s32 1, %v15845_v5  ;;  %v3995_v14 = vshrl.u32 %v3994_v38, 5 }
 0x444   : > { %v3997_v23 = vsub.s32 32, %v3996_v60  ;;  %v3999_v34 = vshll.u32 %v17729_v16, %v3996_v60  ;;  %v4002_v10 = vshll.u32 %v17730_v61, %v3996_v60  ;;  %v4005_v63 = vshll.u32 %v17731_v20, %v3996_v60 }
 0x445   : > { %v3860_v15 = vxor.u32 2147483648, %v3859_v24  ;;  %v3938_v12 = vsel %vm3936_vm3, %v3937_v31, %v15845_v5  ;;  %v4008_v62 = vshll.u32 %v17732_v33, %v3996_v60  ;;  %v15878_v22 = vand.u32 3, %v9100_v26 }
 0x446   : > { %v4000_v53 = vshrl.u32 %v17730_v61, %v3997_v23  ;;  %v4003_v11 = vshrl.u32 %v17731_v20, %v3997_v23  ;;  %v3939_v51 = vadd.s32 %v3938_v12, %v3934_v47  ;;  %v4006_v17 = vshrl.u32 %v17732_v33, %v3997_v23 }
 0x447   : > { %v3861_v30 = vsel %vm3778_vm0, %v3860_v15, %v3859_v24  ;;  %v4009_v18 = vshrl.u32 %v17733_v56, %v3997_v23  ;;  %v4011_v45 = vshll.u32 %v17733_v56, %v3996_v60  ;;  %v4012_v6 = vshrl.u32 %v17734_v50, %v3997_v23 }
 0x448   : > { %v3864_v43 = vsel %vm15786_vm9, %v15516_v27, %v3861_v30  ;;  %v4001_v7 = vor.u32 %v4000_v53, %v3999_v34  ;;  %v4004_v0 = vor.u32 %v4003_v11, %v4002_v10  ;;  %v3940_v1 = vadd.s32 536870912, %v3939_v51 }
 0x449   : > { %11991 = vcosq.f32 %v3864_v43  ;;  %v4007_v55 = vor.u32 %v4006_v17, %v4005_v63  ;;  %v4010_v29 = vor.u32 %v4009_v18, %v4008_v62  ;;  %vm4014_vm0 = vcmp.lt.s32.totalorder %v3995_v14, 1 }
 0x44a   : > { %11993 = vsinq.f32 %v3864_v43  ;;  %v3941_v52 = vshrl.u32 %v3940_v1, 30  ;;  %vm4017_vm2 = vcmp.lt.s32.totalorder %v3995_v14, 4  ;;  %v4088_v3 = vand.u32 2139095040, %v15852_v48 }
 0x44b   : > { %v3998_v36 = vshrl.u32 %v17729_v16, %v3997_v23  ;;  %v4013_v40 = vor.u32 %v4012_v6, %v4011_v45  ;;  %v4019_v8 = vsel %vm4017_vm2, %v4007_v55, 2102212464  ;;  %v4022_v35 = vsel %vm4014_vm0, %v4001_v7, %v4004_v0 }
 0x44c   : > { %v3942_v19 = vshll.u32 %v3941_v52, 30  ;;  %vm4015_vm15 = vcmp.lt.s32.totalorder %v3995_v14, 2  ;;  %vm4016_vm4 = vcmp.lt.s32.totalorder %v3995_v14, 3  ;;  %v4023_v39 = vsel %vm4017_vm2, %v4010_v29, 920167782 }
 0x44d   : > { %v4018_v13 = vsel %vm4014_vm0, %v3998_v36, %v4001_v7  ;;  %v4024_v32 = vsel %vm4016_vm4, %v4007_v55, %v4023_v39  ;;  %v4026_v2 = vsel %vm4014_vm0, %v4004_v0, %v4007_v55  ;;  %v4027_v5 = vsel %vm4017_vm2, %v4013_v40, 1326507024 }
 0x44e   : > { %v15884_v46 = vsub.s32 %v3939_v51, %v3942_v19  ;;  %v4020_v49 = vsel %vm4016_vm4, %v4004_v0, %v4019_v8  ;;  %v4025_v42 = vsel %vm4015_vm15, %v4022_v35, %v4024_v32  ;;  %v4028_v38 = vsel %vm4016_vm4, %v4010_v29, %v4027_v5  ;;  %v17824_v8 = vld [vmem:[#allocation22_spill] sm:$0xff] }
 0x44f   : > { %vm3868_vm5 = vweird.f32 %v15516_v27  ;;  %vm3881_vm6 = vcmp.lt.s32.totalorder %v15643_v44, 0  ;;  %v4029_v60 = vsel %vm4015_vm15, %v4026_v2, %v4028_v38  ;;  %v518_v23 = vmul.f32 %v12369_v9, %v15735_v37 }
 0x450   : > { %v15891_v21 = vmul.u32.u64.low %v15858_v57, %v4025_v42  ;;  %v15892_v24 = vmul.u32.u64.high %v15858_v57, %v4025_v42, %v15891_v21  ;;  %v3945_v26 = vsub.s32 0, %v15884_v46  ;;  %vm3870_vm8 = vcmp.lt.s32.totalorder %v15854_v59, 2 }
 0x451   : > { %v15897_v47 = vmul.u32.u64.low %v15858_v57, %v4029_v60  ;;  %v15898_v31 = vmul.u32.u64.high %v15858_v57, %v4029_v60, %v15897_v47  ;;  %vm3871_vm7 = vcmp.eq.s32.totalorder %v15854_v59, 0  ;;  %vm15906_vm1 = vcmp.le.f32.partialorder %v3879_v28, 0.7853982 }
 0x452   : > { %v4021_v34 = vsel %vm4015_vm15, %v4018_v13, %v4020_v49  ;;  %v4089_v10 = vshrl.u32 %v4088_v3, 23  ;;  %vm3874_vm9 = vcmp.eq.s32.totalorder %v15854_v59, 2  ;;  %vm9102_vm10 = vcmp.lt.s32.totalorder %v15878_v22, 2 }
 0x453   : > { %v11992_v12 = vpop.eup %11991  ;;  %vm9103_vm11 = vcmp.eq.s32.totalorder %v15878_v22, 0  ;;  %v11274_v37 = vmin.u32 %v3945_v26, %v15884_v46  ;;  %vm9106_vm12 = vcmp.eq.s32.totalorder %v15878_v22, 2  ;;  %v3965_v28 = vsub.s32 4, %v3941_v52 }
 0x454   : > { %v11994_v53 = vpop.eup %11993  ;;  %v3875_v11 = vxor.u32 2147483648, %v11992_v12  ;;  %v4040_v63 = vadd.s32 1, %v15892_v24  ;;  %v4037_v51 = vmul.u32 %v15858_v57, %v4021_v34  ;;  %vm4039_vm13 = vc.u32 %v15898_v31, %v15891_v21 }
 0x455   : > { %v3872_v30 = vxor.u32 2147483648, %v11994_v53  ;;  %v3947_v14 = vclz %v11274_v37  ;;  %v11281_v7 = vadd.s32 4294967169, %v4089_v10  ;;  %v3966_v45 = vsel %vm3881_vm6, %v3965_v28, %v3941_v52 }
 0x456   : > { %v3876_v17 = vsel %vm3874_vm9, %v3875_v11, %v11994_v53  ;;  %v9108_v62 = vsel %vm9106_vm12, %v3875_v11, %v11994_v53  ;;  %v4041_v43 = vsel %vm4039_vm13, %v4040_v63, %v15892_v24  ;;  %v4085_v6 = vand.u32 2147483647, %v15852_v48 }
 0x457   : > { %v3873_v0 = vsel %vm3871_vm7, %v11992_v12, %v3872_v30  ;;  %v9105_v18 = vsel %vm9103_vm11, %v11992_v12, %v3872_v30  ;;  %v11275_v1 = vadd.s32 4294967294, %v3947_v14  ;;  %v4042_v55 = vadd.s32 %v4041_v43, %v4037_v51 }
 0x458   : > { %v3877_v57 = vsel %vm3870_vm8, %v3873_v0, %v3876_v17  ;;  %v9109_v29 = vsel %vm9102_vm10, %v9105_v18, %v9108_v62  ;;  %v3935_v59 = vadd.s32 %v15844_v41, %v15841_v25  ;;  %v15941_v35 = vadd.f32 %v518_v23, %v17824_v8 }
 0x459   : > { %v3878_v3 = vsel %vm3868_vm5, nan, %v3877_v57  ;;  %v9110_v36 = vsel %vm3868_vm5, nan, %v9109_v29  ;;  %vm11276_vm14 = vcmp.lt.s32.totalorder %v11275_v1, 0  ;;  %v4043_v40 = vadd.s32 536870912, %v4042_v55 }
 0x45a   : > { %5764 = vst [vmem:[%s12696_s30 + $0xf8] sm:$0xff] %v3878_v3  ;;  %11576 = vst [vmem:[%s12696_s30 + $0x288] sm:$0xff] %v9110_v36  ;;  %v3950_v22 = vsel %vm11276_vm14, 0, %v11275_v1  ;;  %v4095_v52 = vadd.s32 1, %v11281_v7  ;;  %v3968_v13 = vsel %vm15906_vm1, 0, %v3966_v45  ;;  %v4191_v60 = vand.u32 2139095040, %v15941_v35 }
 0x45b   : > { %v3951_v19 = vsub.s32 32, %v3950_v22  ;;  %v3955_v39 = vsub.s32 4294967266, %v3950_v22  ;;  %v4044_v32 = vshrl.u32 %v4043_v40, 30  ;;  %v3952_v27 = vshll.u32 %v15884_v46, %v3950_v22 }
 0x45c   : > { %v4092_v2 = vand.u32 8388607, %v4085_v6  ;;  %vm4096_vm3 = vcmp.gt.s32.totalorder %v4095_v52, 0  ;;  %v9204_v42 = vadd.s32 3, %v3968_v13  ;;  %vm15953_vm0 = vcmp.le.f32.partialorder %v3982_v58, 0.7853982 }
 0x45d   : > { %v3953_v5 = vshrl.u32 %v3935_v59, %v3951_v19  ;;  %v3956_v49 = vadd.s32 127, %v3955_v39  ;;  %v4045_v25 = vshll.u32 %v4044_v32, 30  ;;  %v4068_v41 = vsub.s32 4, %v4044_v32 }
 0x45e   : > { %v4097_v38 = vsel %vm4096_vm3, %v4095_v52, 0  ;;  %vm3984_vm2 = vcmp.lt.s32.totalorder %v15691_v54, 0  ;;  %v4093_v23 = vor.u32 8388608, %v4092_v2  ;;  %v4188_v53 = vand.u32 2147483647, %v15941_v35 }
 0x45f   : > { %v3954_v24 = vor.u32 %v3953_v5, %v3952_v27  ;;  %v3957_v26 = vshll.u32 %v3956_v49, 23  ;;  %v15949_v47 = vsub.s32 %v4042_v55, %v4045_v25  ;;  %v4099_v34 = vand.u32 31, %v4097_v38 }
 0x460   : > { %v4069_v37 = vsel %vm3984_vm2, %v4068_v41, %v4044_v32  ;;  %v15962_v11 = vand.u32 3, %v3968_v13  ;;  %v15964_v28 = vand.u32 3, %v9204_v42  ;;  %v4192_v63 = vshrl.u32 %v4191_v60, 23 }
 0x461   : > { %v3958_v10 = vor.u32 4788187, %v3957_v26  ;;  %v4048_v12 = vsub.s32 0, %v15949_v47  ;;  %v4100_v58 = vsub.s32 32, %v4099_v34  ;;  %v3961_v14 = vcvt.s32.f32 %v3954_v24 }
 0x462   : > { %v4038_v51 = vadd.s32 %v15891_v21, %v15898_v31  ;;  %v15971_v62 = vsel %vm15953_vm0, 0, %v4069_v37  ;;  %v4098_v43 = vshrl.u32 %v4097_v38, 5  ;;  %v15974_v0 = vshll.u32 %v4093_v23, 8 }
 0x463   : > { %v3959_v30 = vand.u32 2147483647, %v3958_v10  ;;  %v11278_v17 = vmin.u32 %v4048_v12, %v15949_v47  ;;  %v4103_v7 = vshrl.u32 %v17730_v61, %v4100_v58  ;;  %v4102_v55 = vshll.u32 %v17729_v16, %v4099_v34 }
 0x464   : > { %v4106_v57 = vshrl.u32 %v17731_v20, %v4100_v58  ;;  %v4101_v29 = vshrl.u32 %v17729_v16, %v4100_v58  ;;  %v4105_v21 = vshll.u32 %v17730_v61, %v4099_v34  ;;  %v4108_v31 = vshll.u32 %v17731_v20, %v4099_v34 }
 0x465   : > { %v3962_v18 = vmul.f32 %v3961_v14, %v3959_v30  ;;  %v4050_v1 = vclz %v11278_v17  ;;  %v11285_v45 = vadd.s32 4294967169, %v4192_v63  ;;  %v4104_v40 = vor.u32 %v4103_v7, %v4102_v55 }
 0x466   : > { %v4109_v59 = vshrl.u32 %v17732_v33, %v4100_v58  ;;  %v4107_v22 = vor.u32 %v4106_v57, %v4105_v21  ;;  %v4111_v8 = vshll.u32 %v17732_v33, %v4099_v34  ;;  %v4112_v52 = vshrl.u32 %v17733_v56, %v4100_v58 }
 0x467   : > { %v3963_v3 = vxor.u32 2147483648, %v3962_v18  ;;  %v11279_v36 = vadd.s32 4294967294, %v4050_v1  ;;  %v4115_v19 = vshrl.u32 %v17734_v50, %v4100_v58  ;;  %v4114_v32 = vshll.u32 %v17733_v56, %v4099_v34 }
 0x468   : > { %v4110_v13 = vor.u32 %v4109_v59, %v4108_v31  ;;  %v4113_v5 = vor.u32 %v4112_v52, %v4111_v8  ;;  %vm4117_vm4 = vcmp.lt.s32.totalorder %v4098_v43, 1  ;;  %vm4118_vm5 = vcmp.lt.s32.totalorder %v4098_v43, 2 }
 0x469   : > { %v3964_v39 = vsel %vm3881_vm6, %v3963_v3, %v3962_v18  ;;  %vm11280_vm15 = vcmp.lt.s32.totalorder %v11279_v36, 0  ;;  %v4116_v41 = vor.u32 %v4115_v19, %v4114_v32  ;;  %vm4120_vm6 = vcmp.lt.s32.totalorder %v4098_v43, 4 }
 0x46a   : > { %v3967_v27 = vsel %vm15906_vm1, %v15643_v44, %v3964_v39  ;;  %v4053_v2 = vsel %vm11280_vm15, 0, %v11279_v36  ;;  %vm4119_vm8 = vcmp.lt.s32.totalorder %v4098_v43, 3  ;;  %v4122_v24 = vsel %vm4120_vm6, %v4110_v13, 2102212464 }
 0x46b   : > { %11995 = vcosq.f32 %v3967_v27  ;;  %v4054_v49 = vsub.s32 32, %v4053_v2  ;;  %v4058_v25 = vsub.s32 4294967266, %v4053_v2  ;;  %v4055_v42 = vshll.u32 %v15949_v47, %v4053_v2 }
 0x46c   : > { %11997 = vsinq.f32 %v3967_v27  ;;  %v4121_v15 = vsel %vm4117_vm4, %v4101_v29, %v4104_v40  ;;  %v4123_v26 = vsel %vm4119_vm8, %v4107_v22, %v4122_v24  ;;  %v4125_v23 = vsel %vm4117_vm4, %v4104_v40, %v4107_v22 }
 0x46d   : > { %v4056_v38 = vshrl.u32 %v4038_v51, %v4054_v49  ;;  %v4059_v60 = vadd.s32 127, %v4058_v25  ;;  %v4126_v34 = vsel %vm4120_vm6, %v4113_v5, 920167782  ;;  %vm3977_vm7 = vcmp.eq.s32.totalorder %v15962_v11, 2 }
 0x46e   : > { %v4127_v47 = vsel %vm4119_vm8, %v4110_v13, %v4126_v34  ;;  %v4129_v37 = vsel %vm4117_vm4, %v4107_v22, %v4110_v13  ;;  %vm3974_vm1 = vcmp.eq.s32.totalorder %v15962_v11, 0  ;;  %v9308_v58 = vadd.s32 3, %v15971_v62 }
 0x46f   : > { %v4057_v10 = vor.u32 %v4056_v38, %v4055_v42  ;;  %v4060_v12 = vshll.u32 %v4059_v60, 23  ;;  %v4128_v63 = vsel %vm4118_vm5, %v4125_v23, %v4127_v47  ;;  %v4130_v30 = vsel %vm4120_vm6, %v4116_v41, 1326507024 }
 0x470   : > { %v4198_v14 = vadd.s32 1, %v11285_v45  ;;  %vm3973_vm9 = vcmp.lt.s32.totalorder %v15962_v11, 2  ;;  %v4124_v7 = vsel %vm4118_vm5, %v4121_v15, %v4123_v26  ;;  %v4131_v18 = vsel %vm4119_vm8, %v4113_v5, %v4130_v30 }
 0x471   : > { %v4061_v51 = vor.u32 4788187, %v4060_v12  ;;  %v4064_v17 = vcvt.s32.f32 %v4057_v10  ;;  %vm3971_vm10 = vweird.f32 %v15643_v44  ;;  %v4132_v1 = vsel %vm4118_vm5, %v4129_v37, %v4131_v18 }
 0x472   : > { %v16010_v55 = vmul.u32.u64.low %v15974_v0, %v4128_v63  ;;  %v16011_v57 = vmul.u32.u64.high %v15974_v0, %v4128_v63, %v16010_v55  ;;  %vm4199_vm11 = vcmp.gt.s32.totalorder %v4198_v14, 0  ;;  %vm9206_vm12 = vcmp.lt.s32.totalorder %v15964_v28, 2 }
 0x473   : > { %v4062_v29 = vand.u32 2147483647, %v4061_v51  ;;  %v16015_v21 = vmul.u32.u64.low %v15974_v0, %v4132_v1  ;;  %v16016_v31 = vmul.u32.u64.high %v15974_v0, %v4132_v1, %v16015_v21  ;;  %v4200_v45 = vsel %vm4199_vm11, %v4198_v14, 0 }
 0x474   : > { %vm9207_vm13 = vcmp.eq.s32.totalorder %v15964_v28, 0  ;;  %vm9210_vm14 = vcmp.eq.s32.totalorder %v15964_v28, 2  ;;  %v4202_v43 = vand.u32 31, %v4200_v45  ;;  %v16022_v40 = vand.u32 3, %v15971_v62 }
 0x475   : > { %v11996_v3 = vpop.eup %11995  ;;  %v4065_v36 = vmul.f32 %v4064_v17, %v4062_v29  ;;  %v16024_v59 = vand.u32 3, %v9308_v58  ;;  %v16028_v22 = vand.u32 8388607, %v4188_v53  ;;  %v4140_v19 = vmul.u32 %v15974_v0, %v4124_v7 }
 0x476   : > { %v11998_v8 = vpop.eup %11997  ;;  %v3978_v52 = vxor.u32 2147483648, %v11996_v3  ;;  %v4143_v39 = vadd.s32 1, %v16011_v57  ;;  %v4203_v13 = vsub.s32 32, %v4202_v43  ;;  %vm4142_vm3 = vc.u32 %v16016_v31, %v16010_v55 }
 0x477   : > { %v3975_v32 = vxor.u32 2147483648, %v11998_v8  ;;  %v4066_v27 = vxor.u32 2147483648, %v4065_v36  ;;  %v16034_v62 = vshrl.u32 %v4200_v45, 5  ;;  %v4205_v0 = vshll.u32 %v17729_v16, %v4202_v43 }
 0x478   : > { %v3979_v2 = vsel %vm3977_vm7, %v3978_v52, %v11998_v8  ;;  %v9212_v5 = vsel %vm9210_vm14, %v3978_v52, %v11998_v8  ;;  %v4144_v49 = vsel %vm4142_vm3, %v4143_v39, %v16011_v57  ;;  %v4206_v26 = vshrl.u32 %v17730_v61, %v4203_v13  ;;  %v439_v39 = vpop.permute.xlu0 %438 }
 0x479   : > { %v3976_v25 = vsel %vm3974_vm1, %v11996_v3, %v3975_v32  ;;  %v4067_v41 = vsel %vm3984_vm2, %v4066_v27, %v4065_v36  ;;  %v9209_v42 = vsel %vm9207_vm13, %v11996_v3, %v3975_v32  ;;  %v4145_v38 = vadd.s32 %v4144_v49, %v4140_v19 }
 0x47a   : > { %v3980_v60 = vsel %vm3973_vm9, %v3976_v25, %v3979_v2  ;;  %v4070_v24 = vsel %vm15953_vm0, %v15691_v54, %v4067_v41  ;;  %v9213_v15 = vsel %vm9206_vm12, %v9209_v42, %v9212_v5  ;;  %v4207_v11 = vor.u32 %v4206_v26, %v4205_v0 }
 0x47b   : > { %v3981_v23 = vsel %vm3971_vm10, nan, %v3980_v60  ;;  %11999 = vcosq.f32 %v4070_v24  ;;  %v9214_v34 = vsel %vm3971_vm10, nan, %v9213_v15  ;;  %v4146_v10 = vadd.s32 536870912, %v4145_v38 }
 0x47c   : > { %12001 = vsinq.f32 %v4070_v24  ;;  %5765 = vst [vmem:[%s12696_s30 + $0x100] sm:$0xff] %v3981_v23  ;;  %11577 = vst [vmem:[%s12696_s30 + $0x290] sm:$0xff] %v9214_v34  ;;  %v4208_v46 = vshll.u32 %v17730_v61, %v4202_v43  ;;  %v4209_v12 = vshrl.u32 %v17731_v20, %v4203_v13  ;;  %v4211_v47 = vshll.u32 %v17731_v20, %v4202_v43 }
 0x47d   : > { %v16064_v28 = vshrl.u32 %v4146_v10, 30  ;;  %v4212_v37 = vshrl.u32 %v17732_v33, %v4203_v13  ;;  %v4214_v58 = vshll.u32 %v17732_v33, %v4202_v43  ;;  %v4215_v44 = vshrl.u32 %v17733_v56, %v4203_v13 }
 0x47e   : > { %v4210_v63 = vor.u32 %v4209_v12, %v4208_v46  ;;  %v4217_v30 = vshll.u32 %v17733_v56, %v4202_v43  ;;  %v4218_v14 = vshrl.u32 %v17734_v50, %v4203_v13  ;;  %v4196_v17 = vor.u32 8388608, %v16028_v22 }
 0x47f   : > { %v4148_v51 = vshll.u32 %v16064_v28, 30  ;;  %v4213_v7 = vor.u32 %v4212_v37, %v4211_v47  ;;  %vm4077_vm0 = vcmp.eq.s32.totalorder %v16022_v40, 0  ;;  %vm4080_vm2 = vcmp.eq.s32.totalorder %v16022_v40, 2 }
 0x480   : > { %v4216_v18 = vor.u32 %v4215_v44, %v4214_v58  ;;  %v4219_v1 = vor.u32 %v4218_v14, %v4217_v30  ;;  %vm4076_vm15 = vcmp.lt.s32.totalorder %v16022_v40, 2  ;;  %vm9310_vm4 = vcmp.lt.s32.totalorder %v16024_v59, 2 }
 0x481   : > { %vm9311_vm5 = vcmp.eq.s32.totalorder %v16024_v59, 0  ;;  %v16079_v57 = vsub.s32 %v4145_v38, %v4148_v51  ;;  %vm4220_vm6 = vcmp.lt.s32.totalorder %v16034_v62, 1  ;;  %vm4223_vm8 = vcmp.lt.s32.totalorder %v16034_v62, 4 }
 0x482   : > { %vm4074_vm7 = vweird.f32 %v15691_v54  ;;  %vm4222_vm1 = vcmp.lt.s32.totalorder %v16034_v62, 3  ;;  %v4225_v29 = vsel %vm4223_vm8, %v4213_v7, 2102212464  ;;  %v4228_v21 = vsel %vm4220_vm6, %v4207_v11, %v4210_v63 }
 0x483   : > { %v4229_v45 = vsel %vm4223_vm8, %v4216_v18, 920167782  ;;  %v4151_v43 = vsub.s32 0, %v16079_v57  ;;  %v4204_v3 = vshrl.u32 %v17729_v16, %v4203_v13  ;;  %vm4221_vm9 = vcmp.lt.s32.totalorder %v16034_v62, 2 }
 0x484   : > { %v4230_v36 = vsel %vm4222_vm1, %v4213_v7, %v4229_v45  ;;  %v4232_v8 = vsel %vm4220_vm6, %v4210_v63, %v4213_v7  ;;  %v4233_v52 = vsel %vm4223_vm8, %v4219_v1, 1326507024  ;;  %v4236_v19 = vshll.u32 %v4196_v17, 8 }
 0x485   : > { %v4231_v22 = vsel %vm4221_vm9, %v4228_v21, %v4230_v36  ;;  %v12000_v32 = vpop.eup %11999  ;;  %vm9314_vm10 = vcmp.eq.s32.totalorder %v16024_v59, 2  ;;  %v11282_v27 = vmin.u32 %v4151_v43, %v16079_v57  ;;  %v4224_v13 = vsel %vm4220_vm6, %v4204_v3, %v4207_v11  ;;  %v17827_v59 = vld [vmem:[#allocation27_spill] sm:$0xff]  ;;  %v17828_v21 = vld [vmem:[#allocation28_spill] sm:$0xff] }
 0x486   : > { %v4226_v2 = vsel %vm4222_vm1, %v4210_v63, %v4225_v29  ;;  %v12002_v5 = vpop.eup %12001  ;;  %v4081_v49 = vxor.u32 2147483648, %v12000_v32  ;;  %v4234_v0 = vsel %vm4222_vm1, %v4216_v18, %v4233_v52  ;;  %v519_v24 = vmul.f32 %v12367_v4, %v439_v39 }
 0x487   : > { %v16104_v25 = vmul.u32.u64.low %v4236_v19, %v4231_v22  ;;  %v16105_v41 = vmul.u32.u64.high %v4236_v19, %v4231_v22, %v16104_v25  ;;  %v4078_v42 = vxor.u32 2147483648, %v12002_v5  ;;  %v4153_v38 = vclz %v11282_v27 }
 0x488   : > { %v4235_v60 = vsel %vm4221_vm9, %v4232_v8, %v4234_v0  ;;  %v4082_v15 = vsel %vm4080_vm2, %v4081_v49, %v12002_v5  ;;  %v9316_v26 = vsel %vm9314_vm10, %v4081_v49, %v12002_v5  ;;  %v4227_v12 = vsel %vm4221_vm9, %v4224_v13, %v4226_v2 }
 0x489   : > { %v16113_v23 = vmul.u32.u64.low %v4236_v19, %v4235_v60  ;;  %v16114_v34 = vmul.u32.u64.high %v4236_v19, %v4235_v60, %v16113_v23  ;;  %v4079_v10 = vsel %vm4077_vm0, %v12000_v32, %v4078_v42  ;;  %v9313_v11 = vsel %vm9311_vm5, %v12000_v32, %v4078_v42 }
 0x48a   : > { %v11283_v46 = vadd.s32 4294967294, %v4153_v38  ;;  %v4083_v47 = vsel %vm4076_vm15, %v4079_v10, %v4082_v15  ;;  %v9317_v37 = vsel %vm9310_vm4, %v9313_v11, %v9316_v26  ;;  %v4246_v58 = vadd.s32 1, %v16105_v41  ;;  %v16166_v15 = vpop.permute.xlu1 %442 }
 0x48b   : > { %v520_v63 = vmul.f32 %v12369_v9, %v439_v39  ;;  %v4084_v44 = vsel %vm4074_vm7, nan, %v4083_v47  ;;  %v9318_v30 = vsel %vm4074_vm7, nan, %v9317_v37  ;;  %v4141_v62 = vadd.s32 %v16010_v55, %v16016_v31 }
 0x48c   : > { %vm11284_vm11 = vcmp.lt.s32.totalorder %v11283_v46, 0  ;;  %5766 = vst [vmem:[%s12696_s30 + $0x108] sm:$0xff] %v4084_v44  ;;  %11578 = vst [vmem:[%s12696_s30 + $0x298] sm:$0xff] %v9318_v30  ;;  %v4243_v14 = vmul.u32 %v4236_v19, %v4227_v12  ;;  %vm4245_vm12 = vc.u32 %v16114_v34, %v16104_v25  ;;  %v16139_v51 = vadd.f32 %v519_v24, %v17827_v59 }
 0x48d   : > { %v4156_v40 = vsel %vm11284_vm11, 0, %v11283_v46  ;;  %v4171_v18 = vsub.s32 4, %v16064_v28  ;;  %v4247_v54 = vsel %vm4245_vm12, %v4246_v58, %v16105_v41  ;;  %v16145_v45 = vadd.f32 %v520_v63, %v17828_v21 }
 0x48e   : > { %v4157_v17 = vsub.s32 32, %v4156_v40  ;;  %v4161_v7 = vsub.s32 4294967266, %v4156_v40  ;;  %v4248_v1 = vadd.s32 %v4247_v54, %v4243_v14  ;;  %v4158_v55 = vshll.u32 %v16079_v57, %v4156_v40 }
 0x48f   : > { %vm4087_vm13 = vcmp.lt.s32.totalorder %v15852_v48, 0  ;;  %v4294_v3 = vand.u32 2139095040, %v16139_v51  ;;  %v4291_v52 = vand.u32 2147483647, %v16139_v51  ;;  %vm16155_vm14 = vcmp.le.f32.partialorder %v4085_v6, 0.7853982 }
 0x490   : > { %v4159_v31 = vshrl.u32 %v4141_v62, %v4157_v17  ;;  %v4162_v29 = vadd.s32 127, %v4161_v7  ;;  %v4249_v43 = vadd.s32 536870912, %v4248_v1  ;;  %v4172_v8 = vsel %vm4087_vm13, %v4171_v18, %v16064_v28 }
 0x491   : > { %v4295_v57 = vshrl.u32 %v4294_v3, 23  ;;  %v4397_v27 = vand.u32 2139095040, %v16145_v45  ;;  %v4174_v13 = vsel %vm16155_vm14, 0, %v4172_v8  ;;  %v4298_v0 = vand.u32 8388607, %v4291_v52 }
 0x492   : > { %v4160_v36 = vor.u32 %v4159_v31, %v4158_v55  ;;  %v4163_v22 = vshll.u32 %v4162_v29, 23  ;;  %v4250_v19 = vshrl.u32 %v4249_v43, 30  ;;  %v9412_v24 = vadd.s32 3, %v4174_v13 }
 0x493   : > { %v11289_v5 = vadd.s32 4294967169, %v4295_v57  ;;  %v4398_v41 = vshrl.u32 %v4397_v27, 23  ;;  %vm4190_vm3 = vcmp.lt.s32.totalorder %v15941_v35, 0  ;;  %v4394_v23 = vand.u32 2147483647, %v16145_v45 }
 0x494   : > { %v4164_v32 = vor.u32 4788187, %v4163_v22  ;;  %v4251_v2 = vshll.u32 %v4250_v19, 30  ;;  %v4167_v28 = vcvt.s32.f32 %v4160_v36  ;;  %v4274_v6 = vsub.s32 4, %v4250_v19 }
 0x495   : > { %v4301_v38 = vadd.s32 1, %v11289_v5  ;;  %v4299_v11 = vor.u32 8388608, %v4298_v0  ;;  %v11293_v12 = vadd.s32 4294967169, %v4398_v41  ;;  %vm16173_vm2 = vcmp.le.f32.partialorder %v4188_v53, 0.7853982 }
 0x496   : > { %v4165_v49 = vand.u32 2147483647, %v4164_v32  ;;  %v16164_v42 = vsub.s32 %v4248_v1, %v4251_v2  ;;  %v4275_v58 = vsel %vm4190_vm3, %v4274_v6, %v4250_v19  ;;  %v16182_v63 = vmul.f32 %v12367_v4, %v16166_v15 }
 0x497   : > { %vm4302_vm0 = vcmp.gt.s32.totalorder %v4301_v38, 0  ;;  %v16186_v30 = vand.u32 3, %v4174_v13  ;;  %v16188_v62 = vand.u32 3, %v9412_v24  ;;  %v4244_v14 = vadd.s32 %v16104_v25, %v16114_v34 }
 0x498   : > { %v4168_v60 = vmul.f32 %v4167_v28, %v4165_v49  ;;  %v4254_v26 = vsub.s32 0, %v16164_v42  ;;  %v4303_v46 = vsel %vm4302_vm0, %v4301_v38, 0  ;;  %v16197_v17 = vand.u32 8388607, %v4394_v23 }
 0x499   : > { %v4305_v53 = vand.u32 31, %v4303_v46  ;;  %v16201_v7 = vsel %vm16173_vm2, 0, %v4275_v58  ;;  %v16203_v18 = vshll.u32 %v4299_v11, 8  ;;  %v16205_v54 = vadd.s32 1, %v11293_v12 }
 0x49a   : > { %v4169_v10 = vxor.u32 2147483648, %v4168_v60  ;;  %v11286_v37 = vmin.u32 %v4254_v26, %v16164_v42  ;;  %v4304_v55 = vshrl.u32 %v4303_v46, 5  ;;  %vm4183_vm4 = vcmp.eq.s32.totalorder %v16186_v30, 2 }
 0x49b   : > { %v4306_v31 = vsub.s32 32, %v4305_v53  ;;  %v4308_v25 = vshll.u32 %v17729_v16, %v4305_v53  ;;  %v4311_v34 = vshll.u32 %v17730_v61, %v4305_v53  ;;  %v4314_v29 = vshll.u32 %v17731_v20, %v4305_v53 }
 0x49c   : > { %v4170_v44 = vsel %vm4087_vm13, %v4169_v10, %v4168_v60  ;;  %v4256_v59 = vclz %v11286_v37  ;;  %v4317_v21 = vshll.u32 %v17732_v33, %v4305_v53  ;;  %v4320_v36 = vshll.u32 %v17733_v56, %v4305_v53 }
 0x49d   : > { %v4173_v40 = vsel %vm16155_vm14, %v15852_v48, %v4170_v44  ;;  %v4309_v43 = vshrl.u32 %v17730_v61, %v4306_v31  ;;  %v4312_v3 = vshrl.u32 %v17731_v20, %v4306_v31  ;;  %vm9418_vm5 = vcmp.eq.s32.totalorder %v16188_v62, 2 }
 0x49e   : > { %12003 = vcosq.f32 %v4173_v40  ;;  %v11287_v1 = vadd.s32 4294967294, %v4256_v59  ;;  %v4315_v8 = vshrl.u32 %v17732_v33, %v4306_v31  ;;  %v4318_v19 = vshrl.u32 %v17733_v56, %v4306_v31 }
 0x49f   : > { %12005 = vsinq.f32 %v4173_v40  ;;  %v4321_v57 = vshrl.u32 %v17734_v50, %v4306_v31  ;;  %vm4405_vm6 = vcmp.gt.s32.totalorder %v16205_v54, 0  ;;  %vm4180_vm8 = vcmp.eq.s32.totalorder %v16186_v30, 0 }
 0x4a0   : > { %vm11288_vm15 = vcmp.lt.s32.totalorder %v11287_v1, 0  ;;  %vm9415_vm7 = vcmp.eq.s32.totalorder %v16188_v62, 0  ;;  %v4307_v27 = vshrl.u32 %v17729_v16, %v4306_v31  ;;  %v4310_v13 = vor.u32 %v4309_v43, %v4308_v25 }
 0x4a1   : > { %v4259_v22 = vsel %vm11288_vm15, 0, %v11287_v1  ;;  %vm4179_vm1 = vcmp.lt.s32.totalorder %v16186_v30, 2  ;;  %vm9414_vm9 = vcmp.lt.s32.totalorder %v16188_v62, 2  ;;  %v4313_v2 = vor.u32 %v4312_v3, %v4311_v34 }
 0x4a2   : > { %v4260_v39 = vsub.s32 32, %v4259_v22  ;;  %v4264_v32 = vsub.s32 4294967266, %v4259_v22  ;;  %v4316_v5 = vor.u32 %v4315_v8, %v4314_v29  ;;  %v4319_v49 = vor.u32 %v4318_v19, %v4317_v21 }
 0x4a3   : > { %v4322_v28 = vor.u32 %v4321_v57, %v4320_v36  ;;  %vm4177_vm10 = vweird.f32 %v15852_v48  ;;  %v4261_v0 = vshll.u32 %v16164_v42, %v4259_v22  ;;  %vm4323_vm11 = vcmp.lt.s32.totalorder %v4304_v55, 1 }
 0x4a4   : > { %v4262_v41 = vshrl.u32 %v4244_v14, %v4260_v39  ;;  %v4265_v6 = vadd.s32 127, %v4264_v32  ;;  %vm4325_vm12 = vcmp.lt.s32.totalorder %v4304_v55, 3  ;;  %vm4326_vm13 = vcmp.lt.s32.totalorder %v4304_v55, 4 }
 0x4a5   : > { %v4327_v38 = vsel %vm4323_vm11, %v4307_v27, %v4310_v13  ;;  %v4331_v60 = vsel %vm4323_vm11, %v4310_v13, %v4313_v2  ;;  %v4328_v10 = vsel %vm4326_vm13, %v4316_v5, 2102212464  ;;  %v4332_v11 = vsel %vm4326_vm13, %v4319_v49, 920167782 }
 0x4a6   : > { %v4263_v24 = vor.u32 %v4262_v41, %v4261_v0  ;;  %v4266_v26 = vshll.u32 %v4265_v6, 23  ;;  %v4329_v12 = vsel %vm4325_vm12, %v4313_v2, %v4328_v10  ;;  %v4333_v37 = vsel %vm4325_vm12, %v4316_v5, %v4332_v11 }
 0x4a7   : > { %v4335_v58 = vsel %vm4323_vm11, %v4313_v2, %v4316_v5  ;;  %v4336_v44 = vsel %vm4326_vm13, %v4322_v28, 1326507024  ;;  %vm4324_vm14 = vcmp.lt.s32.totalorder %v4304_v55, 2  ;;  %v4406_v39 = vsel %vm4405_vm6, %v16205_v54, 0 }
 0x4a8   : > { %v12004_v46 = vpop.eup %12003  ;;  %v4267_v40 = vor.u32 4788187, %v4266_v26  ;;  %v4270_v14 = vcvt.s32.f32 %v4263_v24  ;;  %v4330_v1 = vsel %vm4324_vm14, %v4327_v38, %v4329_v12  ;;  %v4334_v31 = vsel %vm4324_vm14, %v4331_v60, %v4333_v37 }
 0x4a9   : > { %v12006_v53 = vpop.eup %12005  ;;  %v4184_v42 = vxor.u32 2147483648, %v12004_v46  ;;  %v4337_v25 = vsel %vm4325_vm12, %v4319_v49, %v4336_v44  ;;  %v16254_v13 = vmul.u32.u64.low %v16203_v18, %v4334_v31  ;;  %v16255_v2 = vmul.u32.u64.high %v16203_v18, %v4334_v31, %v16254_v13  ;;  %v17833_v49 = vld [vmem:[#allocation25_spill] sm:$0xff] }
 0x4aa   : > { %v4181_v59 = vxor.u32 2147483648, %v12006_v53  ;;  %v4268_v29 = vand.u32 2147483647, %v4267_v40  ;;  %v4338_v43 = vsel %vm4324_vm14, %v4335_v58, %v4337_v25  ;;  %v4402_v62 = vor.u32 8388608, %v16197_v17 }
 0x4ab   : > { %v4185_v34 = vsel %vm4183_vm4, %v4184_v42, %v12006_v53  ;;  %v9420_v21 = vsel %vm9418_vm5, %v4184_v42, %v12006_v53  ;;  %v16239_v22 = vmul.u32.u64.low %v16203_v18, %v4338_v43  ;;  %v16240_v55 = vmul.u32.u64.high %v16203_v18, %v4338_v43, %v16239_v22 }
 0x4ac   : > { %v4182_v3 = vsel %vm4180_vm8, %v12004_v46, %v4181_v59  ;;  %v9417_v36 = vsel %vm9415_vm7, %v12004_v46, %v4181_v59  ;;  %v4271_v19 = vmul.f32 %v4270_v14, %v4268_v29  ;;  %v4408_v5 = vand.u32 31, %v4406_v39 }
 0x4ad   : > { %v4186_v8 = vsel %vm4179_vm1, %v4182_v3, %v4185_v34  ;;  %v9421_v57 = vsel %vm9414_vm9, %v9417_v36, %v9420_v21  ;;  %v16263_v54 = vadd.f32 %v16182_v63, %v17833_v49  ;;  %v16266_v28 = vand.u32 3, %v16201_v7 }
 0x4ae   : > { %v4187_v32 = vsel %vm4177_vm10, nan, %v4186_v8  ;;  %v9422_v27 = vsel %vm4177_vm10, nan, %v9421_v57  ;;  %v4272_v30 = vxor.u32 2147483648, %v4271_v19  ;;  %v9516_v48 = vadd.s32 3, %v16201_v7 }
 0x4af   : > { %5767 = vst [vmem:[%s12696_s30 + $0x110] sm:$0xff] %v4187_v32  ;;  %11579 = vst [vmem:[%s12696_s30 + $0x2a0] sm:$0xff] %v9422_v27  ;;  %v4346_v0 = vmul.u32 %v16203_v18, %v4330_v1  ;;  %v16270_v41 = vshrl.u32 %v4406_v39, 5  ;;  %vm4348_vm0 = vc.u32 %v16240_v55, %v16254_v13  ;;  %v4409_v17 = vsub.s32 32, %v4408_v5 }
 0x4b0   : > { %v4273_v6 = vsel %vm4190_vm3, %v4272_v30, %v4271_v19  ;;  %v4411_v38 = vshll.u32 %v17729_v16, %v4408_v5  ;;  %v4349_v60 = vadd.s32 1, %v16255_v2  ;;  %v4414_v7 = vshll.u32 %v17730_v61, %v4408_v5 }
 0x4b1   : > { %v4276_v63 = vsel %vm16173_vm2, %v15941_v35, %v4273_v6  ;;  %v4417_v18 = vshll.u32 %v17731_v20, %v4408_v5  ;;  %v4412_v24 = vshrl.u32 %v17730_v61, %v4409_v17  ;;  %v4415_v26 = vshrl.u32 %v17731_v20, %v4409_v17 }
 0x4b2   : > { %12007 = vcosq.f32 %v4276_v63  ;;  %v4420_v10 = vshll.u32 %v17732_v33, %v4408_v5  ;;  %v4350_v11 = vsel %vm4348_vm0, %v4349_v60, %v16255_v2  ;;  %v4418_v46 = vshrl.u32 %v17732_v33, %v4409_v17 }
 0x4b3   : > { %12009 = vsinq.f32 %v4276_v63  ;;  %v4421_v47 = vshrl.u32 %v17733_v56, %v4409_v17  ;;  %v4351_v12 = vadd.s32 %v4350_v11, %v4346_v0  ;;  %v4413_v37 = vor.u32 %v4412_v24, %v4411_v38 }
 0x4b4   : > { %v4416_v58 = vor.u32 %v4415_v26, %v4414_v7  ;;  %v16289_v44 = vshll.u32 %v4402_v62, 8  ;;  %v4419_v53 = vor.u32 %v4418_v46, %v4417_v18  ;;  %v4423_v40 = vshll.u32 %v17733_v56, %v4408_v5 }
 0x4b5   : > { %v4422_v42 = vor.u32 %v4421_v47, %v4420_v10  ;;  %v4424_v14 = vshrl.u32 %v17734_v50, %v4409_v17  ;;  %v9517_v59 = vand.u32 3, %v9516_v48  ;;  %v4352_v1 = vadd.s32 536870912, %v4351_v12 }
 0x4b6   : > { %v4410_v31 = vshrl.u32 %v17729_v16, %v4409_v17  ;;  %vm4426_vm3 = vcmp.lt.s32.totalorder %v16270_v41, 1  ;;  %vm4283_vm2 = vcmp.eq.s32.totalorder %v16266_v28, 0  ;;  %vm4428_vm15 = vcmp.lt.s32.totalorder %v16270_v41, 3 }
 0x4b7   : > { %v4425_v25 = vor.u32 %v4424_v14, %v4423_v40  ;;  %vm4429_vm4 = vcmp.lt.s32.totalorder %v16270_v41, 4  ;;  %v4434_v34 = vsel %vm4426_vm3, %v4413_v37, %v4416_v58  ;;  %vm4282_vm5 = vcmp.lt.s32.totalorder %v16266_v28, 2 }
 0x4b8   : > { %v4353_v29 = vshrl.u32 %v4352_v1, 30  ;;  %v4431_v21 = vsel %vm4429_vm4, %v4419_v53, 2102212464  ;;  %v4435_v43 = vsel %vm4429_vm4, %v4422_v42, 920167782  ;;  %v4438_v3 = vsel %vm4426_vm3, %v4416_v58, %v4419_v53 }
 0x4b9   : > { %vm4427_vm6 = vcmp.lt.s32.totalorder %v16270_v41, 2  ;;  %v4436_v36 = vsel %vm4428_vm15, %v4419_v53, %v4435_v43  ;;  %v4439_v22 = vsel %vm4429_vm4, %v4425_v25, 1326507024  ;;  %v4500_v8 = vand.u32 2139095040, %v16263_v54 }
 0x4ba   : > { %v4354_v19 = vshll.u32 %v4353_v29, 30  ;;  %v4430_v57 = vsel %vm4426_vm3, %v4410_v31, %v4413_v37  ;;  %v4437_v39 = vsel %vm4427_vm6, %v4434_v34, %v4436_v36  ;;  %v4440_v32 = vsel %vm4428_vm15, %v4422_v42, %v4439_v22 }
 0x4bb   : > { %v4432_v27 = vsel %vm4428_vm15, %v4416_v58, %v4431_v21  ;;  %v4441_v2 = vsel %vm4427_vm6, %v4438_v3, %v4440_v32  ;;  %v16318_v30 = vmul.u32.u64.low %v16289_v44, %v4437_v39  ;;  %v16319_v62 = vmul.u32.u64.high %v16289_v44, %v4437_v39, %v16318_v30 }
 0x4bc   : > { %v12008_v5 = vpop.eup %12007  ;;  %vm4286_vm8 = vcmp.eq.s32.totalorder %v16266_v28, 2  ;;  %v4355_v49 = vsub.s32 %v4351_v12, %v4354_v19  ;;  %v16324_v48 = vmul.u32.u64.low %v16289_v44, %v4441_v2  ;;  %v16325_v0 = vmul.u32.u64.high %v16289_v44, %v4441_v2, %v16324_v48 }
 0x4bd   : > { %v12010_v6 = vpop.eup %12009  ;;  %v4287_v17 = vxor.u32 2147483648, %v12008_v5  ;;  %vm9518_vm7 = vcmp.lt.s32.totalorder %v9517_v59, 2  ;;  %vm9519_vm1 = vcmp.eq.s32.totalorder %v9517_v59, 0  ;;  %v4501_v38 = vshrl.u32 %v4500_v8, 23 }
 0x4be   : > { %v4284_v63 = vxor.u32 2147483648, %v12010_v6  ;;  %vm9522_vm9 = vcmp.eq.s32.totalorder %v9517_v59, 2  ;;  %v4357_v60 = vsub.s32 0, %v4355_v49  ;;  %v4433_v7 = vsel %vm4427_vm6, %v4430_v57, %v4432_v27  ;;  %v16362_v57 = vpop.permute.xlu0 %446 }
 0x4bf   : > { %v4288_v18 = vsel %vm4286_vm8, %v4287_v17, %v12010_v6  ;;  %v9524_v24 = vsel %vm9522_vm9, %v4287_v17, %v12010_v6  ;;  %v4377_v26 = vsub.s32 4, %v4353_v29  ;;  %v11297_v10 = vadd.s32 4294967169, %v4501_v38  ;;  %v17836_v38 = vld [vmem:[#allocation26_spill] sm:$0xff] }
 0x4c0   : > { %v4285_v11 = vsel %vm4283_vm2, %v12008_v5, %v4284_v63  ;;  %v9521_v46 = vsel %vm9519_vm1, %v12008_v5, %v4284_v63  ;;  %v11290_v47 = vmin.u32 %v4357_v60, %v4355_v49  ;;  %v4452_v12 = vadd.s32 1, %v16319_v62 }
 0x4c1   : > { %vm4280_vm10 = vweird.f32 %v15941_v35  ;;  %v4289_v37 = vsel %vm4282_vm5, %v4285_v11, %v4288_v18  ;;  %v9525_v41 = vsel %vm9518_vm7, %v9521_v46, %v9524_v24  ;;  %vm4293_vm11 = vcmp.lt.s32.totalorder %v16139_v51, 0 }
 0x4c2   : > { %v4290_v58 = vsel %vm4280_vm10, nan, %v4289_v37  ;;  %v9526_v53 = vsel %vm4280_vm10, nan, %v9525_v41  ;;  %v4359_v42 = vclz %v11290_v47  ;;  %v4497_v40 = vand.u32 2147483647, %v16263_v54 }
 0x4c3   : > { %5768 = vst [vmem:[%s12696_s30 + $0x118] sm:$0xff] %v4290_v58  ;;  %11580 = vst [vmem:[%s12696_s30 + $0x2a8] sm:$0xff] %v9526_v53  ;;  %v4378_v14 = vsel %vm4293_vm11, %v4377_v26, %v4353_v29  ;;  %v4449_v1 = vmul.u32 %v16289_v44, %v4433_v7  ;;  %vm4451_vm12 = vc.u32 %v16325_v0, %v16318_v30  ;;  %v4507_v35 = vadd.s32 1, %v11297_v10 }
 0x4c4   : > { %v11291_v28 = vadd.s32 4294967294, %v4359_v42  ;;  %v4453_v59 = vsel %vm4451_vm12, %v4452_v12, %v16319_v62  ;;  %vm16348_vm13 = vcmp.le.f32.partialorder %v4291_v52, 0.7853982  ;;  %v4504_v21 = vand.u32 8388607, %v4497_v40 }
 0x4c5   : > { %v4454_v25 = vadd.s32 %v4453_v59, %v4449_v1  ;;  %v4380_v34 = vsel %vm16348_vm13, 0, %v4378_v14  ;;  %vm4508_vm0 = vcmp.gt.s32.totalorder %v4507_v35, 0  ;;  %v4347_v3 = vadd.s32 %v16254_v13, %v16240_v55 }
 0x4c6   : > { %vm11292_vm14 = vcmp.lt.s32.totalorder %v11291_v28, 0  ;;  %v4509_v43 = vsel %vm4508_vm0, %v4507_v35, 0  ;;  %v522_v8 = vmul.f32 %v12369_v9, %v16166_v15  ;;  %v9620_v2 = vadd.s32 3, %v4380_v34 }
 0x4c7   : > { %v4362_v44 = vsel %vm11292_vm14, 0, %v11291_v28  ;;  %v4455_v29 = vadd.s32 536870912, %v4454_v25  ;;  %v4511_v19 = vand.u32 31, %v4509_v43  ;;  %v4505_v5 = vor.u32 8388608, %v4504_v21 }
 0x4c8   : > { %v4363_v36 = vsub.s32 32, %v4362_v44  ;;  %v4367_v52 = vsub.s32 4294967266, %v4362_v44  ;;  %v4364_v39 = vshll.u32 %v4355_v49, %v4362_v44  ;;  %v16367_v13 = vmul.f32 %v12367_v4, %v16362_v57 }
 0x4c9   : > { %v16358_v22 = vshrl.u32 %v4455_v29, 30  ;;  %v4512_v48 = vsub.s32 32, %v4511_v19  ;;  %v16369_v17 = vand.u32 3, %v4380_v34  ;;  %v16374_v63 = vadd.f32 %v522_v8, %v17836_v38 }
 0x4ca   : > { %v4365_v32 = vshrl.u32 %v4347_v3, %v4363_v36  ;;  %v4368_v27 = vadd.s32 127, %v4367_v52  ;;  %v16376_v49 = vshrl.u32 %v4509_v43, 5  ;;  %v4450_v7 = vadd.s32 %v16318_v30, %v16325_v0 }
 0x4cb   : > { %v4457_v62 = vshll.u32 %v16358_v22, 30  ;;  %v16380_v18 = vand.u32 3, %v9620_v2  ;;  %v4515_v24 = vshrl.u32 %v17730_v61, %v4512_v48  ;;  %v4514_v10 = vshll.u32 %v17729_v16, %v4511_v19 }
 0x4cc   : > { %v4366_v6 = vor.u32 %v4365_v32, %v4364_v39  ;;  %v4369_v55 = vshll.u32 %v4368_v27, 23  ;;  %v4518_v11 = vshrl.u32 %v17731_v20, %v4512_v48  ;;  %v16386_v46 = vshll.u32 %v4505_v5, 8 }
 0x4cd   : > { %v16371_v15 = vsub.s32 %v4454_v25, %v4457_v62  ;;  %v4520_v37 = vshll.u32 %v17731_v20, %v4511_v19  ;;  %v4521_v41 = vshrl.u32 %v17732_v33, %v4512_v48  ;;  %v4517_v0 = vshll.u32 %v17730_v61, %v4511_v19 }
 0x4ce   : > { %v4370_v60 = vor.u32 4788187, %v4369_v55  ;;  %v4373_v12 = vcvt.s32.f32 %v4366_v6  ;;  %vm4529_vm3 = vcmp.lt.s32.totalorder %v16376_v49, 1  ;;  %v4603_v58 = vand.u32 2139095040, %v16374_v63 }
 0x4cf   : > { %v4460_v26 = vsub.s32 0, %v16371_v15  ;;  %v4516_v42 = vor.u32 %v4515_v24, %v4514_v10  ;;  %v4522_v14 = vor.u32 %v4521_v41, %v4520_v37  ;;  %v4524_v1 = vshrl.u32 %v17733_v56, %v4512_v48 }
 0x4d0   : > { %v4371_v47 = vand.u32 2147483647, %v4370_v60  ;;  %vm4396_vm2 = vcmp.lt.s32.totalorder %v16145_v45, 0  ;;  %v4519_v28 = vor.u32 %v4518_v11, %v4517_v0  ;;  %v4523_v59 = vshll.u32 %v17732_v33, %v4511_v19 }
 0x4d1   : > { %v11294_v30 = vmin.u32 %v4460_v26, %v16371_v15  ;;  %v4527_v25 = vshrl.u32 %v17734_v50, %v4512_v48  ;;  %v4480_v44 = vsub.s32 4, %v16358_v22  ;;  %v4526_v29 = vshll.u32 %v17733_v56, %v4511_v19 }
 0x4d2   : > { %v4374_v53 = vmul.f32 %v4373_v12, %v4371_v47  ;;  %vm4530_vm15 = vcmp.lt.s32.totalorder %v16376_v49, 2  ;;  %v4513_v43 = vshrl.u32 %v17729_v16, %v4512_v48  ;;  %v4525_v3 = vor.u32 %v4524_v1, %v4523_v59 }
 0x4d3   : > { %v4462_v35 = vclz %v11294_v30  ;;  %vm4532_vm4 = vcmp.lt.s32.totalorder %v16376_v49, 4  ;;  %vm16407_vm5 = vcmp.le.f32.partialorder %v4394_v23, 0.7853982  ;;  %v4528_v8 = vor.u32 %v4527_v25, %v4526_v29 }
 0x4d4   : > { %v4375_v34 = vxor.u32 2147483648, %v4374_v53  ;;  %vm4531_vm6 = vcmp.lt.s32.totalorder %v16376_v49, 3  ;;  %v4534_v19 = vsel %vm4532_vm4, %v4522_v14, 2102212464  ;;  %v4537_v32 = vsel %vm4529_vm3, %v4516_v42, %v4519_v28 }
 0x4d5   : > { %v11295_v21 = vadd.s32 4294967294, %v4462_v35  ;;  %v4538_v23 = vsel %vm4532_vm4, %v4525_v3, 920167782  ;;  %v4533_v2 = vsel %vm4529_vm3, %v4513_v43, %v4516_v42  ;;  %v4535_v31 = vsel %vm4531_vm6, %v4519_v28, %v4534_v19 }
 0x4d6   : > { %v4376_v36 = vsel %vm4293_vm11, %v4375_v34, %v4374_v53  ;;  %v4539_v62 = vsel %vm4531_vm6, %v4522_v14, %v4538_v23  ;;  %v4541_v38 = vsel %vm4529_vm3, %v4519_v28, %v4522_v14  ;;  %v4542_v60 = vsel %vm4532_vm4, %v4528_v8, 1326507024 }
 0x4d7   : > { %v4379_v39 = vsel %vm16348_vm13, %v16139_v51, %v4376_v36  ;;  %vm11296_vm8 = vcmp.lt.s32.totalorder %v11295_v21, 0  ;;  %v4540_v55 = vsel %vm4530_vm15, %v4537_v32, %v4539_v62  ;;  %v4543_v10 = vsel %vm4531_vm6, %v4525_v3, %v4542_v60 }
 0x4d8   : > { %12011 = vcosq.f32 %v4379_v39  ;;  %v4465_v27 = vsel %vm11296_vm8, 0, %v11295_v21  ;;  %v4604_v11 = vshrl.u32 %v4603_v58, 23  ;;  %v4481_v47 = vsel %vm4396_vm2, %v4480_v44, %v16358_v22 }
 0x4d9   : > { %12013 = vsinq.f32 %v4379_v39  ;;  %v4466_v5 = vsub.s32 32, %v4465_v27  ;;  %v4470_v48 = vsub.s32 4294967266, %v4465_v27  ;;  %v4467_v6 = vshll.u32 %v16371_v15, %v4465_v27 }
 0x4da   : > { %v4544_v15 = vsel %vm4530_vm15, %v4541_v38, %v4543_v10  ;;  %v16442_v12 = vmul.u32.u64.low %v16386_v46, %v4540_v55  ;;  %v16443_v37 = vmul.u32.u64.high %v16386_v46, %v4540_v55, %v16442_v12  ;;  %vm4385_vm7 = vcmp.lt.s32.totalorder %v16369_v17, 2 }
 0x4db   : > { %v4468_v24 = vshrl.u32 %v4450_v7, %v4466_v5  ;;  %v4471_v26 = vadd.s32 127, %v4470_v48  ;;  %v16447_v7 = vmul.u32.u64.low %v16386_v46, %v4544_v15  ;;  %v16448_v0 = vmul.u32.u64.high %v16386_v46, %v4544_v15, %v16447_v7 }
 0x4dc   : > { %vm4386_vm1 = vcmp.eq.s32.totalorder %v16369_v17, 0  ;;  %v4536_v22 = vsel %vm4530_vm15, %v4533_v2, %v4535_v31  ;;  %v11301_v58 = vadd.s32 4294967169, %v4604_v11  ;;  %vm4383_vm9 = vweird.f32 %v16139_v51 }
 0x4dd   : > { %v4469_v41 = vor.u32 %v4468_v24, %v4467_v6  ;;  %v4472_v30 = vshll.u32 %v4471_v26, 23  ;;  %vm4389_vm10 = vcmp.eq.s32.totalorder %v16369_v17, 2  ;;  %v4483_v42 = vsel %vm16407_vm5, 0, %v4481_v47  ;;  %v17839_v47 = vld [vmem:[#allocation31_spill] sm:$0xff] }
 0x4de   : > { %v4600_v14 = vand.u32 2147483647, %v16374_v63  ;;  %vm9622_vm11 = vcmp.lt.s32.totalorder %v16380_v18, 2  ;;  %vm9623_vm12 = vcmp.eq.s32.totalorder %v16380_v18, 0  ;;  %v4555_v1 = vadd.s32 1, %v16443_v37 }
 0x4df   : > { %v4473_v53 = vor.u32 4788187, %v4472_v30  ;;  %v4610_v35 = vadd.s32 1, %v11301_v58  ;;  %v4476_v28 = vcvt.s32.f32 %v4469_v41  ;;  %v4552_v59 = vmul.u32 %v16386_v46, %v4536_v22 }
 0x4e0   : > { %vm4554_vm13 = vc.u32 %v16448_v0, %v16442_v12  ;;  %vm9626_vm14 = vcmp.eq.s32.totalorder %v16380_v18, 2  ;;  %v9724_v34 = vadd.s32 3, %v4483_v42  ;;  %v16467_v19 = vand.u32 3, %v4483_v42 }
 0x4e1   : > { %v4474_v49 = vand.u32 2147483647, %v4473_v53  ;;  %v4556_v44 = vsel %vm4554_vm13, %v4555_v1, %v16443_v37  ;;  %vm4611_vm0 = vcmp.gt.s32.totalorder %v4610_v35, 0  ;;  %v4607_v46 = vand.u32 8388607, %v4600_v14 }
 0x4e2   : > { %v12012_v25 = vpop.eup %12011  ;;  %v4557_v3 = vadd.s32 %v4556_v44, %v4552_v59  ;;  %v4612_v36 = vsel %vm4611_vm0, %v4610_v35, 0  ;;  %v16477_v48 = vand.u32 3, %v9724_v34  ;;  %v16500_v15 = vadd.f32 %v16367_v13, %v17839_v47 }
 0x4e3   : > { %v12014_v29 = vpop.eup %12013  ;;  %v4390_v21 = vxor.u32 2147483648, %v12012_v25  ;;  %v4477_v43 = vmul.f32 %v4476_v28, %v4474_v49  ;;  %v4614_v39 = vand.u32 31, %v4612_v36  ;;  %v4608_v17 = vor.u32 8388608, %v4607_v46 }
 0x4e4   : > { %v4387_v8 = vxor.u32 2147483648, %v12014_v29  ;;  %v4558_v2 = vadd.s32 536870912, %v4557_v3  ;;  %v4613_v37 = vshrl.u32 %v4612_v36, 5  ;;  %vm4492_vm3 = vcmp.eq.s32.totalorder %v16467_v19, 2 }
 0x4e5   : > { %v4391_v32 = vsel %vm4389_vm10, %v4390_v21, %v12014_v29  ;;  %v4478_v23 = vxor.u32 2147483648, %v4477_v43  ;;  %v9628_v27 = vsel %vm9626_vm14, %v4390_v21, %v12014_v29  ;;  %v4615_v31 = vsub.s32 32, %v4614_v39 }
 0x4e6   : > { %v4388_v62 = vsel %vm4386_vm1, %v12012_v25, %v4387_v8  ;;  %v9625_v5 = vsel %vm9623_vm12, %v12012_v25, %v4387_v8  ;;  %v16485_v60 = vshrl.u32 %v4558_v2, 30  ;;  %v4617_v52 = vshll.u32 %v17729_v16, %v4614_v39 }
 0x4e7   : > { %v4392_v6 = vsel %vm4385_vm7, %v4388_v62, %v4391_v32  ;;  %v4479_v55 = vsel %vm4396_vm2, %v4478_v23, %v4477_v43  ;;  %v9629_v38 = vsel %vm9622_vm11, %v9625_v5, %v9628_v27  ;;  %v4618_v18 = vshrl.u32 %v17730_v61, %v4615_v31 }
 0x4e8   : > { %v4393_v24 = vsel %vm4383_vm9, nan, %v4392_v6  ;;  %v4482_v26 = vsel %vm16407_vm5, %v16145_v45, %v4479_v55  ;;  %v9630_v10 = vsel %vm4383_vm9, nan, %v9629_v38  ;;  %v4560_v11 = vshll.u32 %v16485_v60, 30 }
 0x4e9   : > { %12015 = vcosq.f32 %v4482_v26  ;;  %5769 = vst [vmem:[%s12696_s30 + $0x120] sm:$0xff] %v4393_v24  ;;  %11581 = vst [vmem:[%s12696_s30 + $0x2b0] sm:$0xff] %v9630_v10  ;;  %v4621_v41 = vshrl.u32 %v17731_v20, %v4615_v31  ;;  %v4620_v30 = vshll.u32 %v17730_v61, %v4614_v39  ;;  %v4623_v7 = vshll.u32 %v17731_v20, %v4614_v39 }
 0x4ea   : > { %12017 = vsinq.f32 %v4482_v26  ;;  %v16504_v51 = vsub.s32 %v4557_v3, %v4560_v11  ;;  %v4624_v22 = vshrl.u32 %v17732_v33, %v4615_v31  ;;  %v4626_v58 = vshll.u32 %v17732_v33, %v4614_v39 }
 0x4eb   : > { %v4627_v53 = vshrl.u32 %v17733_v56, %v4615_v31  ;;  %v16511_v13 = vshll.u32 %v4608_v17, 8  ;;  %vm9730_vm2 = vcmp.eq.s32.totalorder %v16477_v48, 2  ;;  %v4619_v1 = vor.u32 %v4618_v18, %v4617_v52 }
 0x4ec   : > { %v4563_v42 = vsub.s32 0, %v16504_v51  ;;  %v4622_v35 = vor.u32 %v4621_v41, %v4620_v30  ;;  %v4625_v49 = vor.u32 %v4624_v22, %v4623_v7  ;;  %vm4489_vm15 = vcmp.eq.s32.totalorder %v16467_v19, 0 }
 0x4ed   : > { %vm9727_vm4 = vcmp.eq.s32.totalorder %v16477_v48, 0  ;;  %v4553_v28 = vadd.s32 %v16442_v12, %v16448_v0  ;;  %v4628_v59 = vor.u32 %v4627_v53, %v4626_v58  ;;  %v4629_v25 = vshll.u32 %v17733_v56, %v4614_v39 }
 0x4ee   : > { %v4630_v34 = vshrl.u32 %v17734_v50, %v4615_v31  ;;  %vm4488_vm5 = vcmp.lt.s32.totalorder %v16467_v19, 2  ;;  %vm9726_vm6 = vcmp.lt.s32.totalorder %v16477_v48, 2  ;;  %v11298_v44 = vmin.u32 %v4563_v42, %v16504_v51 }
 0x4ef   : > { %v4616_v29 = vshrl.u32 %v17729_v16, %v4615_v31  ;;  %vm4632_vm8 = vcmp.lt.s32.totalorder %v4613_v37, 1  ;;  %v4706_v21 = vand.u32 2139095040, %v16500_v15  ;;  %vm4486_vm7 = vweird.f32 %v16145_v45 }
 0x4f0   : > { %v4631_v43 = vor.u32 %v4630_v34, %v4629_v25  ;;  %vm4633_vm1 = vcmp.lt.s32.totalorder %v4613_v37, 2  ;;  %vm4634_vm9 = vcmp.lt.s32.totalorder %v4613_v37, 3  ;;  %vm4635_vm10 = vcmp.lt.s32.totalorder %v4613_v37, 4 }
 0x4f1   : > { %v4565_v12 = vclz %v11298_v44  ;;  %v4637_v0 = vsel %vm4635_vm10, %v4625_v49, 2102212464  ;;  %v4640_v3 = vsel %vm4632_vm8, %v4619_v1, %v4622_v35  ;;  %v4641_v36 = vsel %vm4635_vm10, %v4628_v59, 920167782 }
 0x4f2   : > { %v4636_v8 = vsel %vm4632_vm8, %v4616_v29, %v4619_v1  ;;  %v4642_v46 = vsel %vm4634_vm9, %v4625_v49, %v4641_v36  ;;  %v4644_v39 = vsel %vm4632_vm8, %v4622_v35, %v4625_v49  ;;  %v4645_v32 = vsel %vm4635_vm10, %v4631_v43, 1326507024 }
 0x4f3   : > { %v12016_v23 = vpop.eup %12015  ;;  %v11299_v27 = vadd.s32 4294967294, %v4565_v12  ;;  %v4638_v2 = vsel %vm4634_vm9, %v4622_v35, %v4637_v0  ;;  %v4643_v62 = vsel %vm4633_vm1, %v4640_v3, %v4642_v46  ;;  %v4646_v5 = vsel %vm4634_vm9, %v4628_v59, %v4645_v32 }
 0x4f4   : > { %v12018_v31 = vpop.eup %12017  ;;  %v4493_v6 = vxor.u32 2147483648, %v12016_v23  ;;  %v4647_v55 = vsel %vm4633_vm1, %v4644_v39, %v4646_v5  ;;  %v16531_v38 = vmul.u32.u64.low %v16511_v13, %v4643_v62  ;;  %v16532_v24 = vmul.u32.u64.high %v16511_v13, %v4643_v62, %v16531_v38 }
 0x4f5   : > { %v4490_v26 = vxor.u32 2147483648, %v12018_v31  ;;  %vm11300_vm11 = vcmp.lt.s32.totalorder %v11299_v27, 0  ;;  %v16535_v10 = vmul.u32.u64.low %v16511_v13, %v4647_v55  ;;  %v16536_v17 = vmul.u32.u64.high %v16511_v13, %v4647_v55, %v16535_v10 }
 0x4f6   : > { %v4494_v11 = vsel %vm4492_vm3, %v4493_v6, %v12018_v31  ;;  %v9732_v18 = vsel %vm9730_vm2, %v4493_v6, %v12018_v31  ;;  %v4568_v47 = vsel %vm11300_vm11, 0, %v11299_v27  ;;  %v4639_v52 = vsel %vm4633_vm1, %v4636_v8, %v4638_v2  ;;  %v16583_v2 = vpop.permute.xlu1 %450 }
 0x4f7   : > { %v4491_v41 = vsel %vm4489_vm15, %v12016_v23, %v4490_v26  ;;  %v9729_v30 = vsel %vm9727_vm4, %v12016_v23, %v4490_v26  ;;  %v4569_v7 = vsub.s32 32, %v4568_v47  ;;  %v4583_v22 = vsub.s32 4, %v16485_v60 }
 0x4f8   : > { %v4495_v58 = vsel %vm4488_vm5, %v4491_v41, %v4494_v11  ;;  %v9733_v53 = vsel %vm9726_vm6, %v9729_v30, %v9732_v18  ;;  %v4573_v42 = vsub.s32 4294967266, %v4568_v47  ;;  %v4658_v1 = vadd.s32 1, %v16532_v24 }
 0x4f9   : > { %v4496_v37 = vsel %vm4486_vm7, nan, %v4495_v58  ;;  %v9734_v35 = vsel %vm4486_vm7, nan, %v9733_v53  ;;  %v4571_v49 = vshrl.u32 %v4553_v28, %v4569_v7  ;;  %v4655_v59 = vmul.u32 %v16511_v13, %v4639_v52 }
 0x4fa   : > { %5770 = vst [vmem:[%s12696_s30 + $0x128] sm:$0xff] %v4496_v37  ;;  %11582 = vst [vmem:[%s12696_s30 + $0x2b8] sm:$0xff] %v9734_v35  ;;  %v4570_v19 = vshll.u32 %v16504_v51, %v4568_v47  ;;  %v4574_v25 = vadd.s32 127, %v4573_v42  ;;  %vm4657_vm12 = vc.u32 %v16536_v17, %v16531_v38  ;;  %v4707_v48 = vshrl.u32 %v4706_v21, 23 }
 0x4fb   : > { %v4659_v34 = vsel %vm4657_vm12, %v4658_v1, %v16532_v24  ;;  %v4703_v44 = vand.u32 2147483647, %v16500_v15  ;;  %vm4499_vm13 = vcmp.lt.s32.totalorder %v16263_v54, 0  ;;  %v524_v0 = vmul.f32 %v12369_v9, %v16362_v57  ;;  %v17842_v57 = vld [vmem:[#allocation32_spill] sm:$0xff] }
 0x4fc   : > { %v4572_v29 = vor.u32 %v4571_v49, %v4570_v19  ;;  %v4575_v43 = vshll.u32 %v4574_v25, 23  ;;  %v4660_v12 = vadd.s32 %v4659_v34, %v4655_v59  ;;  %v11305_v45 = vadd.s32 4294967169, %v4707_v48 }
 0x4fd   : > { %v4584_v13 = vsel %vm4499_vm13, %v4583_v22, %v16485_v60  ;;  %vm16572_vm14 = vcmp.le.f32.partialorder %v4497_v40, 0.7853982  ;;  %v4710_v39 = vand.u32 8388607, %v4703_v44  ;;  %v16581_v27 = vadd.f32 %v524_v0, %v17842_v57 }
 0x4fe   : > { %v4576_v28 = vor.u32 4788187, %v4575_v43  ;;  %v4661_v51 = vadd.s32 536870912, %v4660_v12  ;;  %v4713_v3 = vadd.s32 1, %v11305_v45  ;;  %v4579_v8 = vcvt.s32.f32 %v4572_v29 }
 0x4ff   : > { %v4586_v60 = vsel %vm16572_vm14, 0, %v4584_v13  ;;  %vm4602_vm3 = vcmp.lt.s32.totalorder %v16374_v63, 0  ;;  %v4711_v55 = vor.u32 8388608, %v4710_v39  ;;  %v4656_v26 = vadd.s32 %v16531_v38, %v16536_v17 }
 0x500   : > { %v4577_v36 = vand.u32 2147483647, %v4576_v28  ;;  %v4662_v46 = vshrl.u32 %v4661_v51, 30  ;;  %vm4714_vm0 = vcmp.gt.s32.totalorder %v4713_v3, 0  ;;  %v9828_v6 = vadd.s32 3, %v4586_v60 }
 0x501   : > { %v4715_v40 = vsel %vm4714_vm0, %v4713_v3, 0  ;;  %v16588_v24 = vand.u32 3, %v4586_v60  ;;  %v16593_v11 = vmul.f32 %v12367_v4, %v16583_v2  ;;  %v4806_v52 = vand.u32 2147483647, %v16581_v27 }
 0x502   : > { %v4580_v32 = vmul.f32 %v4579_v8, %v4577_v36  ;;  %v4663_v23 = vshll.u32 %v4662_v46, 30  ;;  %v4717_v62 = vand.u32 31, %v4715_v40  ;;  %v4809_v41 = vand.u32 2139095040, %v16581_v27 }
 0x503   : > { %v4686_v7 = vsub.s32 4, %v4662_v46  ;;  %v16606_v58 = vand.u32 3, %v9828_v6  ;;  %v16608_v53 = vshll.u32 %v4711_v55, 8  ;;  %v16610_v42 = vshrl.u32 %v4715_v40, 5 }
 0x504   : > { %v4581_v5 = vxor.u32 2147483648, %v4580_v32  ;;  %v16586_v31 = vsub.s32 %v4660_v12, %v4663_v23  ;;  %v4718_v10 = vsub.s32 32, %v4717_v62  ;;  %v4720_v1 = vshll.u32 %v17729_v16, %v4717_v62 }
 0x505   : > { %v4723_v37 = vshll.u32 %v17730_v61, %v4717_v62  ;;  %v4726_v49 = vshll.u32 %v17731_v20, %v4717_v62  ;;  %v16618_v19 = vand.u32 8388607, %v4806_v52  ;;  %v16622_v25 = vsel %vm4602_vm3, %v4686_v7, %v4662_v46 }
 0x506   : > { %v4582_v18 = vsel %vm4499_vm13, %v4581_v5, %v4580_v32  ;;  %v4666_v47 = vsub.s32 0, %v16586_v31  ;;  %v4721_v38 = vshrl.u32 %v17730_v61, %v4718_v10  ;;  %v4724_v17 = vshrl.u32 %v17731_v20, %v4718_v10 }
 0x507   : > { %v4585_v30 = vsel %vm16572_vm14, %v16263_v54, %v4582_v18  ;;  %v4727_v59 = vshrl.u32 %v17732_v33, %v4718_v10  ;;  %v4810_v29 = vshrl.u32 %v4809_v41, 23  ;;  %vm4595_vm2 = vcmp.eq.s32.totalorder %v16588_v24, 2 }
 0x508   : > { %12019 = vcosq.f32 %v4585_v30  ;;  %v11302_v22 = vmin.u32 %v4666_v47, %v16586_v31  ;;  %v4722_v48 = vor.u32 %v4721_v38, %v4720_v1  ;;  %v4725_v34 = vor.u32 %v4724_v17, %v4723_v37 }
 0x509   : > { %12021 = vsinq.f32 %v4585_v30  ;;  %vm9834_vm15 = vcmp.eq.s32.totalorder %v16606_v58, 2  ;;  %v4728_v12 = vor.u32 %v4727_v59, %v4726_v49  ;;  %v4729_v45 = vshll.u32 %v17732_v33, %v4717_v62 }
 0x50a   : > { %v4668_v35 = vclz %v11302_v22  ;;  %v4730_v28 = vshrl.u32 %v17733_v56, %v4718_v10  ;;  %vm4592_vm4 = vcmp.eq.s32.totalorder %v16588_v24, 0  ;;  %vm9831_vm5 = vcmp.eq.s32.totalorder %v16606_v58, 0 }
 0x50b   : > { %v4719_v13 = vshrl.u32 %v17729_v16, %v4718_v10  ;;  %v4732_v51 = vshll.u32 %v17733_v56, %v4717_v62  ;;  %v4733_v0 = vshrl.u32 %v17734_v50, %v4718_v10  ;;  %vm4735_vm6 = vcmp.lt.s32.totalorder %v16610_v42, 1 }
 0x50c   : > { %v11303_v43 = vadd.s32 4294967294, %v4668_v35  ;;  %vm4591_vm8 = vcmp.lt.s32.totalorder %v16588_v24, 2  ;;  %vm9830_vm1 = vcmp.lt.s32.totalorder %v16606_v58, 2  ;;  %v4731_v21 = vor.u32 %v4730_v28, %v4729_v45 }
 0x50d   : > { %vm4736_vm9 = vcmp.lt.s32.totalorder %v16610_v42, 2  ;;  %vm4737_vm10 = vcmp.lt.s32.totalorder %v16610_v42, 3  ;;  %vm4589_vm11 = vweird.f32 %v16263_v54  ;;  %v4734_v36 = vor.u32 %v4733_v0, %v4732_v51 }
 0x50e   : > { %vm11304_vm7 = vcmp.lt.s32.totalorder %v11303_v43, 0  ;;  %vm4738_vm12 = vcmp.lt.s32.totalorder %v16610_v42, 4  ;;  %v4739_v8 = vsel %vm4735_vm6, %v4719_v13, %v4722_v48  ;;  %v4743_v32 = vsel %vm4735_vm6, %v4722_v48, %v4725_v34 }
 0x50f   : > { %v4671_v3 = vsel %vm11304_vm7, 0, %v11303_v43  ;;  %v4740_v60 = vsel %vm4738_vm12, %v4728_v12, 2102212464  ;;  %v4744_v57 = vsel %vm4738_vm12, %v4731_v21, 920167782  ;;  %v4747_v40 = vsel %vm4735_vm6, %v4725_v34, %v4728_v12 }
 0x510   : > { %v4672_v46 = vsub.s32 32, %v4671_v3  ;;  %v4676_v39 = vsub.s32 4294967266, %v4671_v3  ;;  %v4673_v23 = vshll.u32 %v16586_v31, %v4671_v3  ;;  %v4748_v62 = vsel %vm4738_vm12, %v4734_v36, 1326507024  ;;  %v17845_v3 = vld [vmem:[#allocation29_spill] sm:$0xff] }
 0x511   : > { %v4745_v10 = vsel %vm4737_vm10, %v4728_v12, %v4744_v57  ;;  %v4749_v18 = vsel %vm4737_vm10, %v4731_v21, %v4748_v62  ;;  %v4741_v30 = vsel %vm4737_vm10, %v4725_v34, %v4740_v60  ;;  %v11309_v22 = vadd.s32 4294967169, %v4810_v29 }
 0x512   : > { %v12020_v5 = vpop.eup %12019  ;;  %v4674_v6 = vshrl.u32 %v4656_v26, %v4672_v46  ;;  %v4677_v55 = vadd.s32 127, %v4676_v39  ;;  %v4746_v31 = vsel %vm4736_vm9, %v4743_v32, %v4745_v10  ;;  %v4750_v7 = vsel %vm4736_vm9, %v4747_v40, %v4749_v18 }
 0x513   : > { %v12022_v47 = vpop.eup %12021  ;;  %v4596_v41 = vxor.u32 2147483648, %v12020_v5  ;;  %v16662_v35 = vmul.u32.u64.low %v16608_v53, %v4750_v7  ;;  %v16663_v49 = vmul.u32.u64.high %v16608_v53, %v4750_v7, %v16662_v35  ;;  %v4816_v21 = vadd.s32 1, %v11309_v22 }
 0x514   : > { %v4593_v38 = vxor.u32 2147483648, %v12022_v47  ;;  %v4675_v26 = vor.u32 %v4674_v6, %v4673_v23  ;;  %v4678_v17 = vshll.u32 %v4677_v55, 23  ;;  %vm16684_vm13 = vcmp.le.f32.partialorder %v4600_v14, 0.7853982 }
 0x515   : > { %v4597_v1 = vsel %vm4595_vm2, %v4596_v41, %v12022_v47  ;;  %v9836_v37 = vsel %vm9834_vm15, %v4596_v41, %v12022_v47  ;;  %v16674_v45 = vmul.u32.u64.low %v16608_v53, %v4746_v31  ;;  %v16675_v28 = vmul.u32.u64.high %v16608_v53, %v4746_v31, %v16674_v45 }
 0x516   : > { %v4594_v59 = vsel %vm4592_vm4, %v12020_v5, %v4593_v38  ;;  %v4679_v48 = vor.u32 4788187, %v4678_v17  ;;  %v4682_v34 = vcvt.s32.f32 %v4675_v26  ;;  %v9833_v29 = vsel %vm9831_vm5, %v12020_v5, %v4593_v38 }
 0x517   : > { %v4598_v43 = vsel %vm4591_vm8, %v4594_v59, %v4597_v1  ;;  %v9837_v12 = vsel %vm9830_vm1, %v9833_v29, %v9836_v37  ;;  %v4742_v58 = vsel %vm4736_vm9, %v4739_v8, %v4741_v30  ;;  %v16694_v36 = vadd.f32 %v16593_v11, %v17845_v3 }
 0x518   : > { %v4599_v13 = vsel %vm4589_vm11, nan, %v4598_v43  ;;  %v4680_v51 = vand.u32 2147483647, %v4679_v48  ;;  %v9838_v0 = vsel %vm4589_vm11, nan, %v9837_v12  ;;  %v4689_v54 = vsel %vm16684_vm13, 0, %v16622_v25 }
 0x519   : > { %5771 = vst [vmem:[%s12696_s30 + $0x130] sm:$0xff] %v4599_v13  ;;  %11583 = vst [vmem:[%s12696_s30 + $0x2c0] sm:$0xff] %v9838_v0  ;;  %vm4760_vm14 = vc.u32 %v16663_v49, %v16674_v45  ;;  %vm4817_vm0 = vcmp.gt.s32.totalorder %v4816_v21, 0  ;;  %v4761_v14 = vadd.s32 1, %v16675_v28  ;;  %v16704_v42 = vmul.f32 %v12369_v9, %v16583_v2 }
 0x51a   : > { %v4683_v46 = vmul.f32 %v4682_v34, %v4680_v51  ;;  %v4818_v39 = vsel %vm4817_vm0, %v4816_v21, 0  ;;  %v4758_v11 = vmul.u32 %v16608_v53, %v4742_v58  ;;  %v4814_v60 = vor.u32 8388608, %v16618_v19 }
 0x51b   : > { %v4820_v32 = vand.u32 31, %v4818_v39  ;;  %v16708_v23 = vand.u32 3, %v4689_v54  ;;  %v9932_v25 = vadd.s32 3, %v4689_v54  ;;  %v4762_v57 = vsel %vm4760_vm14, %v4761_v14, %v16675_v28 }
 0x51c   : > { %v4684_v8 = vxor.u32 2147483648, %v4683_v46  ;;  %v4909_v40 = vand.u32 2147483647, %v16694_v36  ;;  %v4763_v5 = vadd.s32 %v4762_v57, %v4758_v11  ;;  %v16714_v6 = vshrl.u32 %v4818_v39, 5 }
 0x51d   : > { %v4821_v2 = vsub.s32 32, %v4820_v32  ;;  %v4823_v19 = vshll.u32 %v17729_v16, %v4820_v32  ;;  %v4826_v55 = vshll.u32 %v17730_v61, %v4820_v32  ;;  %v4829_v10 = vshll.u32 %v17731_v20, %v4820_v32 }
 0x51e   : > { %v4685_v62 = vsel %vm4602_vm3, %v4684_v8, %v4683_v46  ;;  %v4764_v18 = vadd.s32 536870912, %v4763_v5  ;;  %v4832_v41 = vshll.u32 %v17732_v33, %v4820_v32  ;;  %v4912_v22 = vand.u32 2139095040, %v16694_v36 }
 0x51f   : > { %v4688_v53 = vsel %vm16684_vm13, %v16374_v63, %v4685_v62  ;;  %v4824_v47 = vshrl.u32 %v17730_v61, %v4821_v2  ;;  %v4827_v30 = vshrl.u32 %v17731_v20, %v4821_v2  ;;  %v4830_v31 = vshrl.u32 %v17732_v33, %v4821_v2 }
 0x520   : > { %12023 = vcosq.f32 %v4688_v53  ;;  %v4833_v7 = vshrl.u32 %v17733_v56, %v4821_v2  ;;  %v16727_v38 = vshrl.u32 %v4764_v18, 30  ;;  %v4836_v17 = vshrl.u32 %v17734_v50, %v4821_v2 }
 0x521   : > { %12025 = vsinq.f32 %v4688_v53  ;;  %v4825_v26 = vor.u32 %v4824_v47, %v4823_v19  ;;  %v4828_v1 = vor.u32 %v4827_v30, %v4826_v55  ;;  %v4831_v37 = vor.u32 %v4830_v31, %v4829_v10 }
 0x522   : > { %v4834_v35 = vor.u32 %v4833_v7, %v4832_v41  ;;  %v4835_v59 = vshll.u32 %v17733_v56, %v4820_v32  ;;  %vm4698_vm3 = vcmp.eq.s32.totalorder %v16708_v23, 2  ;;  %v9933_v48 = vand.u32 3, %v9932_v25 }
 0x523   : > { %v4766_v34 = vshll.u32 %v16727_v38, 30  ;;  %vm4838_vm2 = vcmp.lt.s32.totalorder %v16714_v6, 1  ;;  %vm4695_vm15 = vcmp.eq.s32.totalorder %v16708_v23, 0  ;;  %v4822_v29 = vshrl.u32 %v17729_v16, %v4821_v2 }
 0x524   : > { %v4837_v43 = vor.u32 %v4836_v17, %v4835_v59  ;;  %vm4841_vm4 = vcmp.lt.s32.totalorder %v16714_v6, 4  ;;  %v4846_v12 = vsel %vm4838_vm2, %v4825_v26, %v4828_v1  ;;  %vm4694_vm5 = vcmp.lt.s32.totalorder %v16708_v23, 2 }
 0x525   : > { %v16741_v28 = vsub.s32 %v4763_v5, %v4766_v34  ;;  %vm4840_vm6 = vcmp.lt.s32.totalorder %v16714_v6, 3  ;;  %v4843_v13 = vsel %vm4841_vm4, %v4831_v37, 2102212464  ;;  %v4847_v51 = vsel %vm4841_vm4, %v4834_v35, 920167782 }
 0x526   : > { %vm4692_vm8 = vweird.f32 %v16374_v63  ;;  %vm4705_vm7 = vcmp.lt.s32.totalorder %v16500_v15, 0  ;;  %vm4839_vm1 = vcmp.lt.s32.totalorder %v16714_v6, 2  ;;  %v4848_v0 = vsel %vm4840_vm6, %v4831_v37, %v4847_v51 }
 0x527   : > { %v4854_v21 = vshll.u32 %v4814_v60, 8  ;;  %v4913_v24 = vshrl.u32 %v4912_v22, 23  ;;  %v4769_v58 = vsub.s32 0, %v16741_v28  ;;  %v4842_v3 = vsel %vm4838_vm2, %v4822_v29, %v4825_v26 }
 0x528   : > { %v4844_v46 = vsel %vm4840_vm6, %v4828_v1, %v4843_v13  ;;  %v4849_v54 = vsel %vm4839_vm1, %v4846_v12, %v4848_v0  ;;  %v4850_v14 = vsel %vm4838_vm2, %v4828_v1, %v4831_v37  ;;  %v4851_v39 = vsel %vm4841_vm4, %v4837_v43, 1326507024 }
 0x529   : > { %v16764_v8 = vmul.u32.u64.low %v4854_v21, %v4849_v54  ;;  %v16765_v11 = vmul.u32.u64.high %v4854_v21, %v4849_v54, %v16764_v8  ;;  %vm9934_vm9 = vcmp.lt.s32.totalorder %v9933_v48, 2  ;;  %vm9935_vm10 = vcmp.eq.s32.totalorder %v9933_v48, 0 }
 0x52a   : > { %v12024_v60 = vpop.eup %12023  ;;  %vm9938_vm11 = vcmp.eq.s32.totalorder %v9933_v48, 2  ;;  %v11306_v32 = vmin.u32 %v4769_v58, %v16741_v28  ;;  %v4789_v62 = vsub.s32 4, %v16727_v38  ;;  %v4852_v5 = vsel %vm4840_vm6, %v4834_v35, %v4851_v39 }
 0x52b   : > { %v12026_v25 = vpop.eup %12025  ;;  %v4699_v57 = vxor.u32 2147483648, %v12024_v60  ;;  %v11313_v2 = vadd.s32 4294967169, %v4913_v24  ;;  %v4845_v55 = vsel %vm4839_vm1, %v4842_v3, %v4844_v46  ;;  %v4853_v10 = vsel %vm4839_vm1, %v4850_v14, %v4852_v5  ;;  %v17848_v3 = vld [vmem:[#allocation30_spill] sm:$0xff] }
 0x52c   : > { %v4696_v53 = vxor.u32 2147483648, %v12026_v25  ;;  %v4771_v19 = vclz %v11306_v32  ;;  %v16778_v41 = vmul.u32.u64.low %v4854_v21, %v4853_v10  ;;  %v16779_v30 = vmul.u32.u64.high %v4854_v21, %v4853_v10, %v16778_v41 }
 0x52d   : > { %v4700_v18 = vsel %vm4698_vm3, %v4699_v57, %v12026_v25  ;;  %v9940_v47 = vsel %vm9938_vm11, %v4699_v57, %v12026_v25  ;;  %v4864_v17 = vadd.s32 1, %v16765_v11  ;;  %vm16790_vm12 = vcmp.le.f32.partialorder %v4703_v44, 0.7853982 }
 0x52e   : > { %v4697_v31 = vsel %vm4695_vm15, %v12024_v60, %v4696_v53  ;;  %v9937_v7 = vsel %vm9935_vm10, %v12024_v60, %v4696_v53  ;;  %v11307_v26 = vadd.s32 4294967294, %v4771_v19  ;;  %v4919_v37 = vadd.s32 1, %v11313_v2 }
 0x52f   : > { %v4701_v6 = vsel %vm4694_vm5, %v4697_v31, %v4700_v18  ;;  %v9941_v22 = vsel %vm9934_vm9, %v9937_v7, %v9940_v47  ;;  %v4790_v23 = vsel %vm4705_vm7, %v4789_v62, %v16727_v38  ;;  %v4861_v34 = vmul.u32 %v4854_v21, %v4845_v55 }
 0x530   : > { %v4702_v35 = vsel %vm4692_vm8, nan, %v4701_v6  ;;  %v9942_v59 = vsel %vm4692_vm8, nan, %v9941_v22  ;;  %vm11308_vm13 = vcmp.lt.s32.totalorder %v11307_v26, 0  ;;  %vm4863_vm14 = vc.u32 %v16779_v30, %v16764_v8 }
 0x531   : > { %5772 = vst [vmem:[%s12696_s30 + $0x138] sm:$0xff] %v4702_v35  ;;  %11584 = vst [vmem:[%s12696_s30 + $0x2c8] sm:$0xff] %v9942_v59  ;;  %v4774_v48 = vsel %vm11308_vm13, 0, %v11307_v26  ;;  %v4916_v44 = vand.u32 8388607, %v4909_v40  ;;  %v4759_v29 = vadd.s32 %v16674_v45, %v16663_v49  ;;  %v4865_v12 = vsel %vm4863_vm14, %v4864_v17, %v16765_v11 }
 0x532   : > { %v4775_v63 = vsub.s32 32, %v4774_v48  ;;  %v4779_v43 = vsub.s32 4294967266, %v4774_v48  ;;  %v4792_v38 = vsel %vm16790_vm12, 0, %v4790_v23  ;;  %v4866_v13 = vadd.s32 %v4865_v12, %v4861_v34 }
 0x533   : > { %vm4920_vm0 = vcmp.gt.s32.totalorder %v4919_v37, 0  ;;  %v4776_v51 = vshll.u32 %v16741_v28, %v4774_v48  ;;  %v16815_v46 = vadd.f32 %v16704_v42, %v17848_v3  ;;  %v4917_v49 = vor.u32 8388608, %v4916_v44 }
 0x534   : > { %v4777_v0 = vshrl.u32 %v4759_v29, %v4775_v63  ;;  %v4780_v21 = vadd.s32 127, %v4779_v43  ;;  %v4921_v24 = vsel %vm4920_vm0, %v4919_v37, 0  ;;  %v4867_v58 = vadd.s32 536870912, %v4866_v13 }
 0x535   : > { %v4923_v45 = vand.u32 31, %v4921_v24  ;;  %v10036_v39 = vadd.s32 3, %v4792_v38  ;;  %v16817_v25 = vand.u32 3, %v4792_v38  ;;  %vm4808_vm3 = vcmp.lt.s32.totalorder %v16581_v27, 0 }
 0x536   : > { %v4778_v54 = vor.u32 %v4777_v0, %v4776_v51  ;;  %v4781_v14 = vshll.u32 %v4780_v21, 23  ;;  %v4868_v11 = vshrl.u32 %v4867_v58, 30  ;;  %v16820_v57 = vshll.u32 %v4917_v49, 8 }
 0x537   : > { %v4924_v60 = vsub.s32 32, %v4923_v45  ;;  %v5012_v62 = vand.u32 2147483647, %v16815_v46  ;;  %v16823_v2 = vand.u32 3, %v10036_v39  ;;  %v5015_v53 = vand.u32 2139095040, %v16815_v46 }
 0x538   : > { %v4782_v32 = vor.u32 4788187, %v4781_v14  ;;  %v4869_v28 = vshll.u32 %v4868_v11, 30  ;;  %v4785_v42 = vcvt.s32.f32 %v4778_v54  ;;  %v16828_v55 = vshrl.u32 %v4921_v24, 5 }
 0x539   : > { %v4927_v10 = vshrl.u32 %v17730_v61, %v4924_v60  ;;  %v4930_v18 = vshrl.u32 %v17731_v20, %v4924_v60  ;;  %v4926_v41 = vshll.u32 %v17729_v16, %v4923_v45  ;;  %v4933_v31 = vshrl.u32 %v17732_v33, %v4924_v60 }
 0x53a   : > { %v4783_v5 = vand.u32 2147483647, %v4782_v32  ;;  %v16826_v19 = vsub.s32 %v4866_v13, %v4869_v28  ;;  %v4936_v7 = vshrl.u32 %v17733_v56, %v4924_v60  ;;  %v4929_v17 = vshll.u32 %v17730_v61, %v4923_v45 }
 0x53b   : > { %v4932_v6 = vshll.u32 %v17731_v20, %v4923_v45  ;;  %v4935_v22 = vshll.u32 %v17732_v33, %v4923_v45  ;;  %v4892_v35 = vsub.s32 4, %v4868_v11  ;;  %v4938_v59 = vshll.u32 %v17733_v56, %v4923_v45 }
 0x53c   : > { %v4786_v47 = vmul.f32 %v4785_v42, %v4783_v5  ;;  %v4872_v26 = vsub.s32 0, %v16826_v19  ;;  %v4939_v23 = vshrl.u32 %v17734_v50, %v4924_v60  ;;  %v4862_v48 = vadd.s32 %v16764_v8, %v16779_v30 }
 0x53d   : > { %v4928_v44 = vor.u32 %v4927_v10, %v4926_v41  ;;  %v4931_v29 = vor.u32 %v4930_v18, %v4929_v17  ;;  %v4934_v43 = vor.u32 %v4933_v31, %v4932_v6  ;;  %v4937_v12 = vor.u32 %v4936_v7, %v4935_v22 }
 0x53e   : > { %v4787_v37 = vxor.u32 2147483648, %v4786_v47  ;;  %v11310_v34 = vmin.u32 %v4872_v26, %v16826_v19  ;;  %v4940_v38 = vor.u32 %v4939_v23, %v4938_v59  ;;  %vm16851_vm2 = vcmp.le.f32.partialorder %v4806_v52, 0.7853982 }
 0x53f   : > { %v4925_v30 = vshrl.u32 %v17729_v16, %v4924_v60  ;;  %v5016_v0 = vshrl.u32 %v5015_v53, 23  ;;  %v4893_v21 = vsel %vm4808_vm3, %v4892_v35, %v4868_v11  ;;  %vm4941_vm15 = vcmp.lt.s32.totalorder %v16828_v55, 1 }
 0x540   : > { %v4788_v63 = vsel %vm4705_vm7, %v4787_v37, %v4786_v47  ;;  %v4874_v8 = vclz %v11310_v34  ;;  %vm4943_vm4 = vcmp.lt.s32.totalorder %v16828_v55, 3  ;;  %vm4944_vm5 = vcmp.lt.s32.totalorder %v16828_v55, 4 }
 0x541   : > { %v4791_v13 = vsel %vm16790_vm12, %v16500_v15, %v4788_v63  ;;  %v4949_v52 = vsel %vm4941_vm15, %v4928_v44, %v4931_v29  ;;  %v4946_v24 = vsel %vm4944_vm5, %v4934_v43, 2102212464  ;;  %v4950_v58 = vsel %vm4944_vm5, %v4937_v12, 920167782 }
 0x542   : > { %12027 = vcosq.f32 %v4791_v13  ;;  %v11311_v1 = vadd.s32 4294967294, %v4874_v8  ;;  %v4953_v3 = vsel %vm4941_vm15, %v4931_v29, %v4934_v43  ;;  %v4954_v49 = vsel %vm4944_vm5, %v4940_v38, 1326507024 }
 0x543   : > { %12029 = vsinq.f32 %v4791_v13  ;;  %vm4942_vm8 = vcmp.lt.s32.totalorder %v16828_v55, 2  ;;  %v4951_v45 = vsel %vm4943_vm4, %v4934_v43, %v4950_v58  ;;  %v4955_v54 = vsel %vm4943_vm4, %v4937_v12, %v4954_v49 }
 0x544   : > { %vm11312_vm6 = vcmp.lt.s32.totalorder %v11311_v1, 0  ;;  %vm4801_vm7 = vcmp.eq.s32.totalorder %v16817_v25, 2  ;;  %v4945_v39 = vsel %vm4941_vm15, %v4925_v30, %v4928_v44  ;;  %v4952_v11 = vsel %vm4942_vm8, %v4949_v52, %v4951_v45  ;;  %v16920_v45 = vpop.permute.xlu0 %454 }
 0x545   : > { %v4877_v14 = vsel %vm11312_vm6, 0, %v11311_v1  ;;  %v4956_v60 = vsel %vm4942_vm8, %v4953_v3, %v4955_v54  ;;  %vm4798_vm1 = vcmp.eq.s32.totalorder %v16817_v25, 0  ;;  %v4947_v5 = vsel %vm4943_vm4, %v4931_v29, %v4946_v24 }
 0x546   : > { %v4878_v32 = vsub.s32 32, %v4877_v14  ;;  %v4882_v28 = vsub.s32 4294967266, %v4877_v14  ;;  %v11317_v42 = vadd.s32 4294967169, %v5016_v0  ;;  %vm4797_vm9 = vcmp.lt.s32.totalorder %v16817_v25, 2 }
 0x547   : > { %v16882_v53 = vmul.u32.u64.low %v16820_v57, %v4956_v60  ;;  %v16883_v10 = vmul.u32.u64.high %v16820_v57, %v4956_v60, %v16882_v53  ;;  %v16886_v18 = vmul.u32.u64.low %v16820_v57, %v4952_v11  ;;  %v16887_v47 = vmul.u32.u64.high %v16820_v57, %v4952_v11, %v16886_v18 }
 0x548   : > { %vm4795_vm10 = vweird.f32 %v16500_v15  ;;  %v4879_v41 = vshll.u32 %v16826_v19, %v4877_v14  ;;  %v4880_v31 = vshrl.u32 %v4862_v48, %v4878_v32  ;;  %v4883_v7 = vadd.s32 127, %v4882_v28 }
 0x549   : > { %v5022_v26 = vadd.s32 1, %v11317_v42  ;;  %v4895_v17 = vsel %vm16851_vm2, 0, %v4893_v21  ;;  %vm10038_vm11 = vcmp.lt.s32.totalorder %v16823_v2, 2  ;;  %vm10039_vm12 = vcmp.eq.s32.totalorder %v16823_v2, 0 }
 0x54a   : > { %v4948_v6 = vsel %vm4942_vm8, %v4945_v39, %v4947_v5  ;;  %v4881_v22 = vor.u32 %v4880_v31, %v4879_v41  ;;  %v4884_v37 = vshll.u32 %v4883_v7, 23  ;;  %vm10042_vm13 = vcmp.eq.s32.totalorder %v16823_v2, 2 }
 0x54b   : > { %vm5023_vm14 = vcmp.gt.s32.totalorder %v5022_v26, 0  ;;  %vm4966_vm0 = vc.u32 %v16883_v10, %v16886_v18  ;;  %v4967_v19 = vadd.s32 1, %v16887_v47  ;;  %v5019_v59 = vand.u32 8388607, %v5012_v62 }
 0x54c   : > { %v12028_v35 = vpop.eup %12027  ;;  %v5024_v23 = vsel %vm5023_vm14, %v5022_v26, 0  ;;  %v4885_v44 = vor.u32 4788187, %v4884_v37  ;;  %v16904_v55 = vand.u32 3, %v4895_v17  ;;  %v4964_v29 = vmul.u32 %v16820_v57, %v4948_v6 }
 0x54d   : > { %v12030_v48 = vpop.eup %12029  ;;  %v4802_v34 = vxor.u32 2147483648, %v12028_v35  ;;  %v4888_v43 = vcvt.s32.f32 %v4881_v22  ;;  %v4968_v12 = vsel %vm4966_vm0, %v4967_v19, %v16887_v47  ;;  %v5026_v38 = vand.u32 31, %v5024_v23 }
 0x54e   : > { %v4799_v63 = vxor.u32 2147483648, %v12030_v48  ;;  %v4886_v8 = vand.u32 2147483647, %v4885_v44  ;;  %v4969_v0 = vadd.s32 %v4968_v12, %v4964_v29  ;;  %v10140_v1 = vadd.s32 3, %v4895_v17  ;;  %v17851_v29 = vld [vmem:[#allocation35_spill] sm:$0xff] }
 0x54f   : > { %v4803_v13 = vsel %vm4801_vm7, %v4802_v34, %v12030_v48  ;;  %v10044_v30 = vsel %vm10042_vm13, %v4802_v34, %v12030_v48  ;;  %v5027_v52 = vsub.s32 32, %v5026_v38  ;;  %v5020_v39 = vor.u32 8388608, %v5019_v59 }
 0x550   : > { %v4800_v21 = vsel %vm4798_vm1, %v12028_v35, %v4799_v63  ;;  %v10041_v57 = vsel %vm10039_vm12, %v12028_v35, %v4799_v63  ;;  %v4889_v58 = vmul.f32 %v4888_v43, %v4886_v8  ;;  %v4970_v49 = vadd.s32 536870912, %v4969_v0 }
 0x551   : > { %v4804_v24 = vsel %vm4797_vm9, %v4800_v21, %v4803_v13  ;;  %v10045_v3 = vsel %vm10038_vm11, %v10041_v57, %v10044_v30  ;;  %v5030_v11 = vshrl.u32 %v17730_v61, %v5027_v52  ;;  %v5029_v2 = vshll.u32 %v17729_v16, %v5026_v38 }
 0x552   : > { %v4805_v54 = vsel %vm4795_vm10, nan, %v4804_v24  ;;  %v10046_v14 = vsel %vm4795_vm10, nan, %v10045_v3  ;;  %v4890_v60 = vxor.u32 2147483648, %v4889_v58  ;;  %v16929_v25 = vshrl.u32 %v4970_v49, 30 }
 0x553   : > { %5773 = vst [vmem:[%s12696_s30 + $0x140] sm:$0xff] %v4805_v54  ;;  %11585 = vst [vmem:[%s12696_s30 + $0x2d0] sm:$0xff] %v10046_v14  ;;  %v5033_v32 = vshrl.u32 %v17731_v20, %v5027_v52  ;;  %v16933_v28 = vshrl.u32 %v5024_v23, 5  ;;  %v5032_v5 = vshll.u32 %v17730_v61, %v5026_v38  ;;  %v5036_v42 = vshrl.u32 %v17732_v33, %v5027_v52 }
 0x554   : > { %v527_v15 = vmul.f32 %v12367_v4, %v16920_v45  ;;  %v4891_v53 = vsel %vm4808_vm3, %v4890_v60, %v4889_v58  ;;  %v4972_v47 = vshll.u32 %v16929_v25, 30  ;;  %v5031_v41 = vor.u32 %v5030_v11, %v5029_v2 }
 0x555   : > { %v5035_v31 = vshll.u32 %v17731_v20, %v5026_v38  ;;  %v4894_v7 = vsel %vm16851_vm2, %v16581_v27, %v4891_v53  ;;  %v5034_v26 = vor.u32 %v5033_v32, %v5032_v5  ;;  %v5038_v17 = vshll.u32 %v17732_v33, %v5026_v38 }
 0x556   : > { %v5039_v6 = vshrl.u32 %v17733_v56, %v5027_v52  ;;  %12031 = vcosq.f32 %v4894_v7  ;;  %v16948_v22 = vsub.s32 %v4969_v0, %v4972_v47  ;;  %v5041_v37 = vshll.u32 %v17733_v56, %v5026_v38 }
 0x557   : > { %v5042_v35 = vshrl.u32 %v17734_v50, %v5027_v52  ;;  %12033 = vsinq.f32 %v4894_v7  ;;  %v5037_v19 = vor.u32 %v5036_v42, %v5035_v31  ;;  %v10141_v23 = vand.u32 3, %v10140_v1 }
 0x558   : > { %v5040_v59 = vor.u32 %v5039_v6, %v5038_v17  ;;  %vm4911_vm3 = vcmp.lt.s32.totalorder %v16694_v36, 0  ;;  %v4975_v51 = vsub.s32 0, %v16948_v22  ;;  %v5028_v34 = vshrl.u32 %v17729_v16, %v5027_v52 }
 0x559   : > { %v5043_v48 = vor.u32 %v5042_v35, %v5041_v37  ;;  %vm5044_vm2 = vcmp.lt.s32.totalorder %v16933_v28, 1  ;;  %v16956_v44 = vshll.u32 %v5020_v39, 8  ;;  %v16959_v63 = vadd.f32 %v527_v15, %v17851_v29 }
 0x55a   : > { %vm4904_vm15 = vcmp.eq.s32.totalorder %v16904_v55, 2  ;;  %v11314_v43 = vmin.u32 %v4975_v51, %v16948_v22  ;;  %vm5046_vm4 = vcmp.lt.s32.totalorder %v16933_v28, 3  ;;  %vm5047_vm5 = vcmp.lt.s32.totalorder %v16933_v28, 4 }
 0x55b   : > { %v5052_v12 = vsel %vm5044_vm2, %v5031_v41, %v5034_v26  ;;  %vm4901_vm6 = vcmp.eq.s32.totalorder %v16904_v55, 0  ;;  %v5049_v38 = vsel %vm5047_vm5, %v5037_v19, 2102212464  ;;  %v5053_v13 = vsel %vm5047_vm5, %v5040_v59, 920167782 }
 0x55c   : > { %v5056_v8 = vsel %vm5044_vm2, %v5034_v26, %v5037_v19  ;;  %v5057_v30 = vsel %vm5047_vm5, %v5043_v48, 1326507024  ;;  %vm4900_vm8 = vcmp.lt.s32.totalorder %v16904_v55, 2  ;;  %v4977_v0 = vclz %v11314_v43 }
 0x55d   : > { %vm5045_vm7 = vcmp.lt.s32.totalorder %v16933_v28, 2  ;;  %v5054_v21 = vsel %vm5046_vm4, %v5037_v19, %v5053_v13  ;;  %v5058_v57 = vsel %vm5046_vm4, %v5040_v59, %v5057_v30  ;;  %vm4898_vm1 = vweird.f32 %v16581_v27 }
 0x55e   : > { %v4995_v1 = vsub.s32 4, %v16929_v25  ;;  %v5048_v52 = vsel %vm5044_vm2, %v5028_v34, %v5031_v41  ;;  %v5055_v24 = vsel %vm5045_vm7, %v5052_v12, %v5054_v21  ;;  %v5059_v58 = vsel %vm5045_vm7, %v5056_v8, %v5058_v57 }
 0x55f   : > { %v11315_v3 = vadd.s32 4294967294, %v4977_v0  ;;  %v5050_v49 = vsel %vm5046_vm4, %v5034_v26, %v5049_v38  ;;  %v16987_v54 = vmul.u32.u64.low %v16956_v44, %v5059_v58  ;;  %v16988_v14 = vmul.u32.u64.high %v16956_v44, %v5059_v58, %v16987_v54  ;;  %v17854_v0 = vld [vmem:[#allocation36_spill] sm:$0xff] }
 0x560   : > { %vm10142_vm9 = vcmp.lt.s32.totalorder %v10141_v23, 2  ;;  %vm10143_vm10 = vcmp.eq.s32.totalorder %v10141_v23, 0  ;;  %v16991_v39 = vmul.u32.u64.low %v16956_v44, %v5055_v24  ;;  %v16992_v11 = vmul.u32.u64.high %v16956_v44, %v5055_v24, %v16991_v39  ;;  %v12032_v60 = vpop.eup %12031  ;;  %v17040_v24 = vpop.permute.xlu1 %458 }
 0x561   : > { %vm10146_vm11 = vcmp.eq.s32.totalorder %v10141_v23, 2  ;;  %v4965_v2 = vadd.s32 %v16886_v18, %v16883_v10  ;;  %vm11316_vm12 = vcmp.lt.s32.totalorder %v11315_v3, 0  ;;  %v528_v32 = vmul.f32 %v12369_v9, %v16920_v45  ;;  %v12034_v5 = vpop.eup %12033 }
 0x562   : > { %v4905_v42 = vxor.u32 2147483648, %v12032_v60  ;;  %v4980_v15 = vsel %vm11316_vm12, 0, %v11315_v3  ;;  %v4996_v53 = vsel %vm4911_vm3, %v4995_v1, %v16929_v25  ;;  %v5051_v47 = vsel %vm5045_vm7, %v5048_v52, %v5050_v49 }
 0x563   : > { %v4902_v41 = vxor.u32 2147483648, %v12034_v5  ;;  %v4981_v31 = vsub.s32 32, %v4980_v15  ;;  %v4985_v7 = vsub.s32 4294967266, %v4980_v15  ;;  %v5118_v26 = vand.u32 2139095040, %v16959_v63 }
 0x564   : > { %v4906_v10 = vsel %vm4904_vm15, %v4905_v42, %v12034_v5  ;;  %v10148_v18 = vsel %vm10146_vm11, %v4905_v42, %v12034_v5  ;;  %v4982_v45 = vshll.u32 %v16948_v22, %v4980_v15  ;;  %vm5069_vm13 = vc.u32 %v16988_v14, %v16991_v39 }
 0x565   : > { %v4903_v25 = vsel %vm4901_vm6, %v12032_v60, %v4902_v41  ;;  %v10145_v28 = vsel %vm10143_vm10, %v12032_v60, %v4902_v41  ;;  %v4983_v17 = vshrl.u32 %v4965_v2, %v4981_v31  ;;  %v4986_v6 = vadd.s32 127, %v4985_v7 }
 0x566   : > { %v4907_v37 = vsel %vm4900_vm8, %v4903_v25, %v4906_v10  ;;  %v10149_v35 = vsel %vm10142_vm9, %v10145_v28, %v10148_v18  ;;  %v5067_v19 = vmul.u32 %v16956_v44, %v5051_v47  ;;  %v5070_v59 = vadd.s32 1, %v16992_v11 }
 0x567   : > { %v4908_v22 = vsel %vm4898_vm1, nan, %v4907_v37  ;;  %v10150_v51 = vsel %vm4898_vm1, nan, %v10149_v35  ;;  %v4984_v48 = vor.u32 %v4983_v17, %v4982_v45  ;;  %v4987_v34 = vshll.u32 %v4986_v6, 23 }
 0x568   : > { %5774 = vst [vmem:[%s12696_s30 + $0x148] sm:$0xff] %v4908_v22  ;;  %11586 = vst [vmem:[%s12696_s30 + $0x2d8] sm:$0xff] %v10150_v51  ;;  %v5071_v29 = vsel %vm5069_vm13, %v5070_v59, %v16992_v11  ;;  %v5119_v55 = vshrl.u32 %v5118_v26, 23  ;;  %vm17028_vm14 = vcmp.le.f32.partialorder %v4909_v40, 0.7853982  ;;  %v17036_v21 = vadd.f32 %v528_v32, %v17854_v0 }
 0x569   : > { %v4988_v44 = vor.u32 4788187, %v4987_v34  ;;  %v5072_v43 = vadd.s32 %v5071_v29, %v5067_v19  ;;  %v5115_v12 = vand.u32 2147483647, %v16959_v63  ;;  %v4998_v27 = vsel %vm17028_vm14, 0, %v4996_v53 }
 0x56a   : > { %v11321_v38 = vadd.s32 4294967169, %v5119_v55  ;;  %v4991_v8 = vcvt.s32.f32 %v4984_v48  ;;  %vm5014_vm0 = vcmp.lt.s32.totalorder %v16815_v46, 0  ;;  %v10244_v58 = vadd.s32 3, %v4998_v27 }
 0x56b   : > { %v4989_v13 = vand.u32 2147483647, %v4988_v44  ;;  %v5073_v30 = vadd.s32 536870912, %v5072_v43  ;;  %v5122_v52 = vand.u32 8388607, %v5115_v12  ;;  %v5221_v32 = vand.u32 2139095040, %v17036_v21 }
 0x56c   : > { %v5125_v57 = vadd.s32 1, %v11321_v38  ;;  %v5218_v11 = vand.u32 2147483647, %v17036_v21  ;;  %vm17046_vm15 = vcmp.le.f32.partialorder %v5012_v62, 0.7853982  ;;  %v17053_v5 = vmul.f32 %v12367_v4, %v17040_v24 }
 0x56d   : > { %v4992_v1 = vmul.f32 %v4991_v8, %v4989_v13  ;;  %v5074_v40 = vshrl.u32 %v5073_v30, 30  ;;  %v5123_v47 = vor.u32 8388608, %v5122_v52  ;;  %v17062_v41 = vand.u32 3, %v4998_v27 }
 0x56e   : > { %vm5126_vm2 = vcmp.gt.s32.totalorder %v5125_v57, 0  ;;  %v17064_v31 = vand.u32 3, %v10244_v58  ;;  %v5068_v26 = vadd.s32 %v16991_v39, %v16988_v14  ;;  %v17071_v18 = vand.u32 8388607, %v5218_v11 }
 0x56f   : > { %v4993_v3 = vxor.u32 2147483648, %v4992_v1  ;;  %v5075_v49 = vshll.u32 %v5074_v40, 30  ;;  %v5127_v54 = vsel %vm5126_vm2, %v5125_v57, 0  ;;  %v5098_v53 = vsub.s32 4, %v5074_v40 }
 0x570   : > { %v5129_v2 = vand.u32 31, %v5127_v54  ;;  %v5222_v28 = vshrl.u32 %v5221_v32, 23  ;;  %v17078_v37 = vshrl.u32 %v5127_v54, 5  ;;  %v17080_v14 = vshll.u32 %v5123_v47, 8 }
 0x571   : > { %v4994_v42 = vsel %vm4911_vm3, %v4993_v3, %v4992_v1  ;;  %v17057_v15 = vsub.s32 %v5072_v43, %v5075_v49  ;;  %v5099_v6 = vsel %vm5014_vm0, %v5098_v53, %v5074_v40  ;;  %vm5007_vm3 = vcmp.eq.s32.totalorder %v17062_v41, 2 }
 0x572   : > { %v4997_v62 = vsel %vm17028_vm14, %v16694_v36, %v4994_v42  ;;  %v5130_v7 = vsub.s32 32, %v5129_v2  ;;  %v5132_v45 = vshll.u32 %v17729_v16, %v5129_v2  ;;  %v5135_v35 = vshll.u32 %v17730_v61, %v5129_v2 }
 0x573   : > { %12035 = vcosq.f32 %v4997_v62  ;;  %v5078_v10 = vsub.s32 0, %v17057_v15  ;;  %v5138_v59 = vshll.u32 %v17731_v20, %v5129_v2  ;;  %vm10250_vm4 = vcmp.eq.s32.totalorder %v17064_v31, 2 }
 0x574   : > { %12037 = vsinq.f32 %v4997_v62  ;;  %v5133_v25 = vshrl.u32 %v17730_v61, %v5130_v7  ;;  %v5136_v19 = vshrl.u32 %v17731_v20, %v5130_v7  ;;  %v5139_v51 = vshrl.u32 %v17732_v33, %v5130_v7 }
 0x575   : > { %v11318_v17 = vmin.u32 %v5078_v10, %v17057_v15  ;;  %v5141_v48 = vshll.u32 %v17732_v33, %v5129_v2  ;;  %v5142_v34 = vshrl.u32 %v17733_v56, %v5130_v7  ;;  %vm5004_vm5 = vcmp.eq.s32.totalorder %v17062_v41, 0 }
 0x576   : > { %v5134_v39 = vor.u32 %v5133_v25, %v5132_v45  ;;  %v17093_v29 = vsel %vm17046_vm15, 0, %v5099_v6  ;;  %vm10247_vm6 = vcmp.eq.s32.totalorder %v17064_v31, 0  ;;  %v5131_v55 = vshrl.u32 %v17729_v16, %v5130_v7 }
 0x577   : > { %v5080_v22 = vclz %v11318_v17  ;;  %v11325_v23 = vadd.s32 4294967169, %v5222_v28  ;;  %v5226_v44 = vor.u32 8388608, %v17071_v18  ;;  %vm5003_vm8 = vcmp.lt.s32.totalorder %v17062_v41, 2 }
 0x578   : > { %vm10246_vm7 = vcmp.lt.s32.totalorder %v17064_v31, 2  ;;  %v5137_v27 = vor.u32 %v5136_v19, %v5135_v35  ;;  %v5140_v38 = vor.u32 %v5139_v51, %v5138_v59  ;;  %v5143_v13 = vor.u32 %v5142_v34, %v5141_v48 }
 0x579   : > { %v11319_v43 = vadd.s32 4294967294, %v5080_v22  ;;  %vm5001_vm1 = vweird.f32 %v16694_v36  ;;  %v5144_v8 = vshll.u32 %v17733_v56, %v5129_v2  ;;  %v5145_v30 = vshrl.u32 %v17734_v50, %v5130_v7  ;;  %v17857_v36 = vld [vmem:[#allocation33_spill] sm:$0xff] }
 0x57a   : > { %vm5147_vm9 = vcmp.lt.s32.totalorder %v17078_v37, 1  ;;  %vm5148_vm10 = vcmp.lt.s32.totalorder %v17078_v37, 2  ;;  %vm5149_vm12 = vcmp.lt.s32.totalorder %v17078_v37, 3  ;;  %vm5150_vm13 = vcmp.lt.s32.totalorder %v17078_v37, 4 }
 0x57b   : > { %vm11320_vm11 = vcmp.lt.s32.totalorder %v11319_v43, 0  ;;  %v5151_v0 = vsel %vm5147_vm9, %v5131_v55, %v5134_v39  ;;  %v5146_v1 = vor.u32 %v5145_v30, %v5144_v8  ;;  %v5152_v40 = vsel %vm5150_vm13, %v5140_v38, 2102212464 }
 0x57c   : > { %v5083_v57 = vsel %vm11320_vm11, 0, %v11319_v43  ;;  %v5156_v52 = vsel %vm5150_vm13, %v5143_v13, 920167782  ;;  %v5153_v54 = vsel %vm5149_vm12, %v5137_v27, %v5152_v40  ;;  %v5155_v2 = vsel %vm5147_vm9, %v5134_v39, %v5137_v27 }
 0x57d   : > { %v12036_v58 = vpop.eup %12035  ;;  %v5084_v3 = vsub.s32 32, %v5083_v57  ;;  %v5088_v49 = vsub.s32 4294967266, %v5083_v57  ;;  %v5085_v53 = vshll.u32 %v17057_v15, %v5083_v57  ;;  %v5154_v47 = vsel %vm5148_vm10, %v5151_v0, %v5153_v54 }
 0x57e   : > { %v12038_v32 = vpop.eup %12037  ;;  %v5008_v42 = vxor.u32 2147483648, %v12036_v58  ;;  %v5157_v62 = vsel %vm5149_vm12, %v5140_v38, %v5156_v52  ;;  %v5159_v25 = vsel %vm5147_vm9, %v5137_v27, %v5140_v38  ;;  %v5160_v6 = vsel %vm5150_vm13, %v5146_v1, 1326507024 }
 0x57f   : > { %v5005_v7 = vxor.u32 2147483648, %v12038_v32  ;;  %v5086_v10 = vshrl.u32 %v5068_v26, %v5084_v3  ;;  %v5089_v45 = vadd.s32 127, %v5088_v49  ;;  %v5158_v15 = vsel %vm5148_vm10, %v5155_v2, %v5157_v62 }
 0x580   : > { %v5009_v28 = vsel %vm5007_vm3, %v5008_v42, %v12038_v32  ;;  %v10252_v17 = vsel %vm10250_vm4, %v5008_v42, %v12038_v32  ;;  %v5161_v51 = vsel %vm5149_vm12, %v5143_v13, %v5160_v6  ;;  %v5228_v48 = vadd.s32 1, %v11325_v23 }
 0x581   : > { %v5006_v26 = vsel %vm5004_vm5, %v12036_v58, %v5005_v7  ;;  %v5087_v39 = vor.u32 %v5086_v10, %v5085_v53  ;;  %v5090_v35 = vshll.u32 %v5089_v45, 23  ;;  %v10249_v19 = vsel %vm10247_vm6, %v12036_v58, %v5005_v7 }
 0x582   : > { %v5010_v59 = vsel %vm5003_vm8, %v5006_v26, %v5009_v28  ;;  %v10253_v22 = vsel %vm10246_vm7, %v10249_v19, %v10252_v17  ;;  %v5162_v41 = vsel %vm5148_vm10, %v5159_v25, %v5161_v51  ;;  %vm5229_vm14 = vcmp.gt.s32.totalorder %v5228_v48, 0 }
 0x583   : > { %v5011_v34 = vsel %vm5001_vm1, nan, %v5010_v59  ;;  %v5091_v55 = vor.u32 4788187, %v5090_v35  ;;  %v5094_v43 = vcvt.s32.f32 %v5087_v39  ;;  %v10254_v27 = vsel %vm5001_vm1, nan, %v10253_v22 }
 0x584   : > { %5775 = vst [vmem:[%s12696_s30 + $0x150] sm:$0xff] %v5011_v34  ;;  %11587 = vst [vmem:[%s12696_s30 + $0x2e0] sm:$0xff] %v10254_v27  ;;  %v17151_v31 = vmul.u32.u64.low %v17080_v14, %v5158_v15  ;;  %v17152_v38 = vmul.u32.u64.high %v17080_v14, %v5158_v15, %v17151_v31  ;;  %v17156_v13 = vmul.u32.u64.low %v17080_v14, %v5162_v41  ;;  %v17157_v8 = vmul.u32.u64.high %v17080_v14, %v5162_v41, %v17156_v13 }
 0x585   : > { %v5092_v23 = vand.u32 2147483647, %v5091_v55  ;;  %v5230_v30 = vsel %vm5229_vm14, %v5228_v48, 0  ;;  %v17161_v57 = vadd.f32 %v17053_v5, %v17857_v36  ;;  %v17164_v37 = vand.u32 3, %v17093_v29 }
 0x586   : > { %v5232_v0 = vand.u32 31, %v5230_v30  ;;  %v10348_v40 = vadd.s32 3, %v17093_v29  ;;  %v17169_v52 = vshll.u32 %v5226_v44, 8  ;;  %v5170_v58 = vmul.u32 %v17080_v14, %v5154_v47 }
 0x587   : > { %v5095_v1 = vmul.f32 %v5094_v43, %v5092_v23  ;;  %v5173_v3 = vadd.s32 1, %v17152_v38  ;;  %v5231_v49 = vshrl.u32 %v5230_v30, 5  ;;  %vm5172_vm2 = vc.u32 %v17157_v8, %v17151_v31 }
 0x588   : > { %v5233_v54 = vsub.s32 32, %v5232_v0  ;;  %v5235_v5 = vshll.u32 %v17729_v16, %v5232_v0  ;;  %v5238_v32 = vshll.u32 %v17730_v61, %v5232_v0  ;;  %v5241_v14 = vshll.u32 %v17731_v20, %v5232_v0 }
 0x589   : > { %v5096_v2 = vxor.u32 2147483648, %v5095_v1  ;;  %v5174_v29 = vsel %vm5172_vm2, %v5173_v3, %v17152_v38  ;;  %v5244_v62 = vshll.u32 %v17732_v33, %v5232_v0  ;;  %v17189_v28 = vand.u32 3, %v10348_v40 }
 0x58a   : > { %v5236_v18 = vshrl.u32 %v17730_v61, %v5233_v54  ;;  %v5239_v44 = vshrl.u32 %v17731_v20, %v5233_v54  ;;  %v5175_v53 = vadd.s32 %v5174_v29, %v5170_v58  ;;  %v5242_v47 = vshrl.u32 %v17732_v33, %v5233_v54 }
 0x58b   : > { %v5097_v42 = vsel %vm5014_vm0, %v5096_v2, %v5095_v1  ;;  %v5245_v25 = vshrl.u32 %v17733_v56, %v5233_v54  ;;  %v5247_v26 = vshll.u32 %v17733_v56, %v5232_v0  ;;  %v5248_v39 = vshrl.u32 %v17734_v50, %v5233_v54 }
 0x58c   : > { %v5100_v7 = vsel %vm17046_vm15, %v16815_v46, %v5097_v42  ;;  %v5237_v10 = vor.u32 %v5236_v18, %v5235_v5  ;;  %v5240_v45 = vor.u32 %v5239_v44, %v5238_v32  ;;  %v5176_v17 = vadd.s32 536870912, %v5175_v53 }
 0x58d   : > { %12039 = vcosq.f32 %v5100_v7  ;;  %v5243_v15 = vor.u32 %v5242_v47, %v5241_v14  ;;  %v5246_v6 = vor.u32 %v5245_v25, %v5244_v62  ;;  %vm5250_vm0 = vcmp.lt.s32.totalorder %v5231_v49, 1 }
 0x58e   : > { %12041 = vsinq.f32 %v5100_v7  ;;  %v5177_v35 = vshrl.u32 %v5176_v17, 30  ;;  %vm5253_vm3 = vcmp.lt.s32.totalorder %v5231_v49, 4  ;;  %v5324_v60 = vand.u32 2139095040, %v17161_v57 }
 0x58f   : > { %v5234_v19 = vshrl.u32 %v17729_v16, %v5233_v54  ;;  %v5249_v59 = vor.u32 %v5248_v39, %v5247_v26  ;;  %v5255_v22 = vsel %vm5253_vm3, %v5243_v15, 2102212464  ;;  %v5258_v51 = vsel %vm5250_vm0, %v5237_v10, %v5240_v45 }
 0x590   : > { %v5178_v48 = vshll.u32 %v5177_v35, 30  ;;  %vm5251_vm15 = vcmp.lt.s32.totalorder %v5231_v49, 2  ;;  %vm5252_vm4 = vcmp.lt.s32.totalorder %v5231_v49, 3  ;;  %v5259_v34 = vsel %vm5253_vm3, %v5246_v6, 920167782 }
 0x591   : > { %v5254_v55 = vsel %vm5250_vm0, %v5234_v19, %v5237_v10  ;;  %v5260_v43 = vsel %vm5252_vm4, %v5243_v15, %v5259_v34  ;;  %v5262_v27 = vsel %vm5250_vm0, %v5240_v45, %v5243_v15  ;;  %v5263_v41 = vsel %vm5253_vm3, %v5249_v59, 1326507024 }
 0x592   : > { %v17195_v38 = vsub.s32 %v5175_v53, %v5178_v48  ;;  %v5256_v23 = vsel %vm5252_vm4, %v5240_v45, %v5255_v22  ;;  %v5261_v13 = vsel %vm5251_vm15, %v5258_v51, %v5260_v43  ;;  %v5264_v30 = vsel %vm5252_vm4, %v5246_v6, %v5263_v41 }
 0x593   : > { %vm5104_vm5 = vweird.f32 %v16815_v46  ;;  %v5265_v0 = vsel %vm5251_vm15, %v5262_v27, %v5264_v30  ;;  %v17201_v36 = vmul.u32.u64.low %v17169_v52, %v5261_v13  ;;  %v17202_v1 = vmul.u32.u64.high %v17169_v52, %v5261_v13, %v17201_v36 }
 0x594   : > { %v530_v40 = vmul.f32 %v12369_v9, %v17040_v24  ;;  %vm5117_vm6 = vcmp.lt.s32.totalorder %v16959_v63, 0  ;;  %v5181_v58 = vsub.s32 0, %v17195_v38  ;;  %vm5106_vm8 = vcmp.lt.s32.totalorder %v17164_v37, 2 }
 0x595   : > { %v17210_v3 = vmul.u32.u64.low %v17169_v52, %v5265_v0  ;;  %v17211_v54 = vmul.u32.u64.high %v17169_v52, %v5265_v0, %v17210_v3  ;;  %vm5107_vm7 = vcmp.eq.s32.totalorder %v17164_v37, 0  ;;  %v5257_v2 = vsel %vm5251_vm15, %v5254_v55, %v5256_v23 }
 0x596   : > { %v5325_v5 = vshrl.u32 %v5324_v60, 23  ;;  %vm5110_vm1 = vcmp.eq.s32.totalorder %v17164_v37, 2  ;;  %vm10350_vm9 = vcmp.lt.s32.totalorder %v17189_v28, 2  ;;  %vm10351_vm10 = vcmp.eq.s32.totalorder %v17189_v28, 0 }
 0x597   : > { %v12040_v32 = vpop.eup %12039  ;;  %v11322_v24 = vmin.u32 %v5181_v58, %v17195_v38  ;;  %vm10354_vm11 = vcmp.eq.s32.totalorder %v17189_v28, 2  ;;  %v5201_v44 = vsub.s32 4, %v5177_v35  ;;  %v5276_v14 = vadd.s32 1, %v17202_v1  ;;  %v17262_v58 = vpop.permute.xlu0 %462 }
 0x598   : > { %v12042_v29 = vpop.eup %12041  ;;  %v5111_v18 = vxor.u32 2147483648, %v12040_v32  ;;  %v5273_v53 = vmul.u32 %v17169_v52, %v5257_v2  ;;  %vm5275_vm12 = vc.u32 %v17211_v54, %v17201_v36  ;;  %v11329_v10 = vadd.s32 4294967169, %v5325_v5 }
 0x599   : > { %v5108_v42 = vxor.u32 2147483648, %v12042_v29  ;;  %v5183_v49 = vclz %v11322_v24  ;;  %v5277_v7 = vsel %vm5275_vm12, %v5276_v14, %v17202_v1  ;;  %v5202_v26 = vsel %vm5117_vm6, %v5201_v44, %v5177_v35  ;;  %v17860_v35 = vld [vmem:[#allocation34_spill] sm:$0xff] }
 0x59a   : > { %v5112_v47 = vsel %vm5110_vm1, %v5111_v18, %v12042_v29  ;;  %v10356_v62 = vsel %vm10354_vm11, %v5111_v18, %v12042_v29  ;;  %v5278_v15 = vadd.s32 %v5277_v7, %v5273_v53  ;;  %v5321_v39 = vand.u32 2147483647, %v17161_v57 }
 0x59b   : > { %v5109_v45 = vsel %vm5107_vm7, %v12040_v32, %v5108_v42  ;;  %v10353_v25 = vsel %vm10351_vm10, %v12040_v32, %v5108_v42  ;;  %v11323_v17 = vadd.s32 4294967294, %v5183_v49  ;;  %vm17245_vm14 = vcmp.le.f32.partialorder %v5115_v12, 0.7853982 }
 0x59c   : > { %v5113_v52 = vsel %vm5106_vm8, %v5109_v45, %v5112_v47  ;;  %v10357_v6 = vsel %vm10350_vm9, %v10353_v25, %v10356_v62  ;;  %v5279_v59 = vadd.s32 536870912, %v5278_v15  ;;  %v17250_v22 = vadd.f32 %v530_v40, %v17860_v35 }
 0x59d   : > { %v5114_v60 = vsel %vm5104_vm5, nan, %v5113_v52  ;;  %v10358_v19 = vsel %vm5104_vm5, nan, %v10357_v6  ;;  %vm11324_vm13 = vcmp.lt.s32.totalorder %v11323_v17, 0  ;;  %v5331_v51 = vadd.s32 1, %v11329_v10 }
 0x59e   : > { %5776 = vst [vmem:[%s12696_s30 + $0x158] sm:$0xff] %v5114_v60  ;;  %11588 = vst [vmem:[%s12696_s30 + $0x2e8] sm:$0xff] %v10358_v19  ;;  %v5186_v28 = vsel %vm11324_vm13, 0, %v11323_v17  ;;  %v5171_v48 = vadd.s32 %v17151_v31, %v17157_v8  ;;  %v5280_v55 = vshrl.u32 %v5279_v59, 30  ;;  %v5204_v43 = vsel %vm17245_vm14, 0, %v5202_v26 }
 0x59f   : > { %v5187_v46 = vsub.s32 32, %v5186_v28  ;;  %v5191_v34 = vsub.s32 4294967266, %v5186_v28  ;;  %v5328_v12 = vand.u32 8388607, %v5321_v39  ;;  %vm5332_vm2 = vcmp.gt.s32.totalorder %v5331_v51, 0 }
 0x5a0   : > { %v5188_v27 = vshll.u32 %v17195_v38, %v5186_v28  ;;  %v5281_v13 = vshll.u32 %v5280_v55, 30  ;;  %v5333_v30 = vsel %vm5332_vm2, %v5331_v51, 0  ;;  %v5427_v0 = vand.u32 2139095040, %v17250_v22 }
 0x5a1   : > { %v5189_v41 = vshrl.u32 %v5171_v48, %v5187_v46  ;;  %v5192_v23 = vadd.s32 127, %v5191_v34  ;;  %v10452_v40 = vadd.s32 3, %v5204_v43  ;;  %v5329_v3 = vor.u32 8388608, %v5328_v12 }
 0x5a2   : > { %v17260_v8 = vsub.s32 %v5278_v15, %v5281_v13  ;;  %v5335_v2 = vand.u32 31, %v5333_v30  ;;  %vm5220_vm0 = vcmp.lt.s32.totalorder %v17036_v21, 0  ;;  %v5304_v32 = vsub.s32 4, %v5280_v55 }
 0x5a3   : > { %v5190_v1 = vor.u32 %v5189_v41, %v5188_v27  ;;  %v5193_v31 = vshll.u32 %v5192_v23, 23  ;;  %v17266_v24 = vand.u32 3, %v5204_v43  ;;  %v5428_v18 = vshrl.u32 %v5427_v0, 23 }
 0x5a4   : > { %v5284_v38 = vsub.s32 0, %v17260_v8  ;;  %v5336_v29 = vsub.s32 32, %v5335_v2  ;;  %v17270_v44 = vmul.f32 %v12367_v4, %v17262_v58  ;;  %v17273_v53 = vand.u32 3, %v10452_v40 }
 0x5a5   : > { %v5194_v5 = vor.u32 4788187, %v5193_v31  ;;  %v5197_v42 = vcvt.s32.f32 %v5190_v1  ;;  %v5274_v47 = vadd.s32 %v17201_v36, %v17211_v54  ;;  %v17278_v7 = vshll.u32 %v5329_v3, 8 }
 0x5a6   : > { %v11326_v49 = vmin.u32 %v5284_v38, %v17260_v8  ;;  %v5339_v62 = vshrl.u32 %v17730_v61, %v5336_v29  ;;  %v5424_v10 = vand.u32 2147483647, %v17250_v22  ;;  %v5305_v4 = vsel %vm5220_vm0, %v5304_v32, %v5280_v55 }
 0x5a7   : > { %v5195_v14 = vand.u32 2147483647, %v5194_v5  ;;  %v5342_v17 = vshrl.u32 %v17731_v20, %v5336_v29  ;;  %v17284_v15 = vshrl.u32 %v5333_v30, 5  ;;  %v5338_v52 = vshll.u32 %v17729_v16, %v5335_v2 }
 0x5a8   : > { %v5286_v25 = vclz %v11326_v49  ;;  %v5341_v6 = vshll.u32 %v17730_v61, %v5335_v2  ;;  %v11333_v36 = vadd.s32 4294967169, %v5428_v18  ;;  %vm17290_vm3 = vcmp.le.f32.partialorder %v5218_v11, 0.7853982 }
 0x5a9   : > { %v5198_v45 = vmul.f32 %v5197_v42, %v5195_v14  ;;  %v5344_v19 = vshll.u32 %v17731_v20, %v5335_v2  ;;  %v5345_v59 = vshrl.u32 %v17732_v33, %v5336_v29  ;;  %v5340_v28 = vor.u32 %v5339_v62, %v5338_v52 }
 0x5aa   : > { %v11327_v60 = vadd.s32 4294967294, %v5286_v25  ;;  %v5347_v35 = vshll.u32 %v17732_v33, %v5335_v2  ;;  %v5348_v51 = vshrl.u32 %v17733_v56, %v5336_v29  ;;  %v5351_v48 = vshrl.u32 %v17734_v50, %v5336_v29 }
 0x5ab   : > { %v5199_v54 = vxor.u32 2147483648, %v5198_v45  ;;  %v5343_v11 = vor.u32 %v5342_v17, %v5341_v6  ;;  %v5350_v34 = vshll.u32 %v17733_v56, %v5335_v2  ;;  %v5346_v12 = vor.u32 %v5345_v59, %v5344_v19 }
 0x5ac   : > { %vm11328_vm15 = vcmp.lt.s32.totalorder %v11327_v60, 0  ;;  %v5349_v27 = vor.u32 %v5348_v51, %v5347_v35  ;;  %v5337_v13 = vshrl.u32 %v17729_v16, %v5336_v29  ;;  %vm5353_vm4 = vcmp.lt.s32.totalorder %v17284_v15, 1 }
 0x5ad   : > { %v5200_v46 = vsel %vm5117_vm6, %v5199_v54, %v5198_v45  ;;  %v5289_v43 = vsel %vm11328_vm15, 0, %v11327_v60  ;;  %v5352_v0 = vor.u32 %v5351_v48, %v5350_v34  ;;  %vm5354_vm5 = vcmp.lt.s32.totalorder %v17284_v15, 2 }
 0x5ae   : > { %v5203_v55 = vsel %vm17245_vm14, %v16959_v63, %v5200_v46  ;;  %v5290_v41 = vsub.s32 32, %v5289_v43  ;;  %v5294_v23 = vsub.s32 4294967266, %v5289_v43  ;;  %v5291_v30 = vshll.u32 %v17260_v8, %v5289_v43 }
 0x5af   : > { %12043 = vcosq.f32 %v5203_v55  ;;  %vm5356_vm6 = vcmp.lt.s32.totalorder %v17284_v15, 4  ;;  %vm5355_vm8 = vcmp.lt.s32.totalorder %v17284_v15, 3  ;;  %v5361_v40 = vsel %vm5353_vm4, %v5340_v28, %v5343_v11 }
 0x5b0   : > { %12045 = vsinq.f32 %v5203_v55  ;;  %v5292_v1 = vshrl.u32 %v5274_v47, %v5290_v41  ;;  %v5295_v31 = vadd.s32 127, %v5294_v23  ;;  %v5358_v37 = vsel %vm5356_vm6, %v5346_v12, 2102212464 }
 0x5b1   : > { %v5362_v3 = vsel %vm5356_vm6, %v5349_v27, 920167782  ;;  %vm5213_vm7 = vcmp.eq.s32.totalorder %v17266_v24, 2  ;;  %v5365_v38 = vsel %vm5353_vm4, %v5343_v11, %v5346_v12  ;;  %vm5210_vm1 = vcmp.eq.s32.totalorder %v17266_v24, 0 }
 0x5b2   : > { %v5293_v2 = vor.u32 %v5292_v1, %v5291_v30  ;;  %v5296_v8 = vshll.u32 %v5295_v31, 23  ;;  %v5363_v5 = vsel %vm5355_vm8, %v5346_v12, %v5362_v3  ;;  %v5307_v32 = vsel %vm17290_vm3, 0, %v5305_v4 }
 0x5b3   : > { %v5357_v29 = vsel %vm5353_vm4, %v5337_v13, %v5340_v28  ;;  %v5364_v18 = vsel %vm5354_vm5, %v5361_v40, %v5363_v5  ;;  %v5366_v14 = vsel %vm5356_vm6, %v5352_v0, 1326507024  ;;  %vm5209_vm9 = vcmp.lt.s32.totalorder %v17266_v24, 2 }
 0x5b4   : > { %v5297_v42 = vor.u32 4788187, %v5296_v8  ;;  %v5359_v49 = vsel %vm5355_vm8, %v5343_v11, %v5358_v37  ;;  %v5367_v47 = vsel %vm5355_vm8, %v5349_v27, %v5366_v14  ;;  %v5434_v62 = vadd.s32 1, %v11333_v36 }
 0x5b5   : > { %vm5207_vm10 = vweird.f32 %v16959_v63  ;;  %v5300_v45 = vcvt.s32.f32 %v5293_v2  ;;  %v5368_v25 = vsel %vm5354_vm5, %v5365_v38, %v5367_v47  ;;  %vm10454_vm12 = vcmp.lt.s32.totalorder %v17273_v53, 2 }
 0x5b6   : > { %v17334_v4 = vmul.u32.u64.low %v17278_v7, %v5364_v18  ;;  %v17335_v17 = vmul.u32.u64.high %v17278_v7, %v5364_v18, %v17334_v4  ;;  %v5298_v52 = vand.u32 2147483647, %v5297_v42  ;;  %vm5435_vm11 = vcmp.gt.s32.totalorder %v5434_v62, 0 }
 0x5b7   : > { %v17339_v6 = vmul.u32.u64.low %v17278_v7, %v5368_v25  ;;  %v17340_v54 = vmul.u32.u64.high %v17278_v7, %v5368_v25, %v17339_v6  ;;  %vm10455_vm13 = vcmp.eq.s32.totalorder %v17273_v53, 0  ;;  %v5360_v36 = vsel %vm5354_vm5, %v5357_v29, %v5359_v49 }
 0x5b8   : > { %v5436_v60 = vsel %vm5435_vm11, %v5434_v62, 0  ;;  %v5301_v59 = vmul.f32 %v5300_v45, %v5298_v52  ;;  %vm10458_vm14 = vcmp.eq.s32.totalorder %v17273_v53, 2  ;;  %v5431_v28 = vand.u32 8388607, %v5424_v10 }
 0x5b9   : > { %v12044_v19 = vpop.eup %12043  ;;  %v5438_v35 = vand.u32 31, %v5436_v60  ;;  %v17349_v46 = vand.u32 3, %v5307_v32  ;;  %v10556_v11 = vadd.s32 3, %v5307_v32  ;;  %v5379_v34 = vadd.s32 1, %v17335_v17 }
 0x5ba   : > { %v12046_v51 = vpop.eup %12045  ;;  %v5214_v48 = vxor.u32 2147483648, %v12044_v19  ;;  %v5302_v43 = vxor.u32 2147483648, %v5301_v59  ;;  %v5376_v15 = vmul.u32 %v17278_v7, %v5360_v36  ;;  %vm5378_vm2 = vc.u32 %v17340_v54, %v17334_v4 }
 0x5bb   : > { %v5211_v55 = vxor.u32 2147483648, %v12046_v51  ;;  %v5380_v41 = vsel %vm5378_vm2, %v5379_v34, %v17335_v17  ;;  %v5439_v23 = vsub.s32 32, %v5438_v35  ;;  %v17371_v40 = vand.u32 3, %v10556_v11 }
 0x5bc   : > { %v5215_v12 = vsel %vm5213_vm7, %v5214_v48, %v12046_v51  ;;  %v10460_v27 = vsel %vm10458_vm14, %v5214_v48, %v12046_v51  ;;  %v5303_v30 = vsel %vm5220_vm0, %v5302_v43, %v5301_v59  ;;  %v5381_v0 = vadd.s32 %v5380_v41, %v5376_v15 }
 0x5bd   : > { %v5212_v13 = vsel %vm5210_vm1, %v12044_v19, %v5211_v55  ;;  %v10457_v7 = vsel %vm10455_vm13, %v12044_v19, %v5211_v55  ;;  %v5306_v31 = vsel %vm17290_vm3, %v17036_v21, %v5303_v30  ;;  %v5432_v24 = vor.u32 8388608, %v5431_v28 }
 0x5be   : > { %v5216_v1 = vsel %vm5209_vm9, %v5212_v13, %v5215_v12  ;;  %v10461_v37 = vsel %vm10454_vm12, %v10457_v7, %v10460_v27  ;;  %12047 = vcosq.f32 %v5306_v31  ;;  %v5382_v8 = vadd.s32 536870912, %v5381_v0 }
 0x5bf   : > { %v5217_v3 = vsel %vm5207_vm10, nan, %v5216_v1  ;;  %v10462_v2 = vsel %vm5207_vm10, nan, %v10461_v37  ;;  %12049 = vsinq.f32 %v5306_v31  ;;  %v5441_v26 = vshll.u32 %v17729_v16, %v5438_v35 }
 0x5c0   : > { %5777 = vst [vmem:[%s12696_s30 + $0x160] sm:$0xff] %v5217_v3  ;;  %11589 = vst [vmem:[%s12696_s30 + $0x2f0] sm:$0xff] %v10462_v2  ;;  %v5442_v5 = vshrl.u32 %v17730_v61, %v5439_v23  ;;  %v17381_v53 = vshrl.u32 %v5382_v8, 30  ;;  %v5445_v38 = vshrl.u32 %v17731_v20, %v5439_v23  ;;  %v5447_v32 = vshll.u32 %v17731_v20, %v5438_v35 }
 0x5c1   : > { %v5448_v29 = vshrl.u32 %v17732_v33, %v5439_v23  ;;  %v5437_v18 = vshrl.u32 %v5436_v60, 5  ;;  %v5444_v63 = vshll.u32 %v17730_v61, %v5438_v35  ;;  %v5450_v14 = vshll.u32 %v17732_v33, %v5438_v35 }
 0x5c2   : > { %v5451_v42 = vshrl.u32 %v17733_v56, %v5439_v23  ;;  %vm5316_vm0 = vcmp.eq.s32.totalorder %v17349_v46, 2  ;;  %v5384_v49 = vshll.u32 %v17381_v53, 30  ;;  %v5443_v47 = vor.u32 %v5442_v5, %v5441_v26 }
 0x5c3   : > { %v5449_v62 = vor.u32 %v5448_v29, %v5447_v32  ;;  %vm5313_vm3 = vcmp.eq.s32.totalorder %v17349_v46, 0  ;;  %v5446_v45 = vor.u32 %v5445_v38, %v5444_v63  ;;  %v5453_v17 = vshll.u32 %v17733_v56, %v5438_v35 }
 0x5c4   : > { %v5452_v25 = vor.u32 %v5451_v42, %v5450_v14  ;;  %v5454_v52 = vshrl.u32 %v17734_v50, %v5439_v23  ;;  %vm5312_vm15 = vcmp.lt.s32.totalorder %v17349_v46, 2  ;;  %vm10558_vm4 = vcmp.lt.s32.totalorder %v17371_v40, 2 }
 0x5c5   : > { %vm10559_vm5 = vcmp.eq.s32.totalorder %v17371_v40, 0  ;;  %vm10562_vm6 = vcmp.eq.s32.totalorder %v17371_v40, 2  ;;  %v17398_v6 = vsub.s32 %v5381_v0, %v5384_v49  ;;  %vm5310_vm8 = vweird.f32 %v17036_v21 }
 0x5c6   : > { %v5455_v36 = vor.u32 %v5454_v52, %v5453_v17  ;;  %vm5459_vm7 = vcmp.lt.s32.totalorder %v5437_v18, 4  ;;  %v5472_v60 = vshll.u32 %v5432_v24, 8  ;;  %v532_v19 = vmul.f32 %v12369_v9, %v17262_v58  ;;  %v17863_v24 = vld [vmem:[#allocation37_spill] sm:$0xff] }
 0x5c7   : > { %v5387_v59 = vsub.s32 0, %v17398_v6  ;;  %v5440_v28 = vshrl.u32 %v17729_v16, %v5439_v23  ;;  %vm5456_vm1 = vcmp.lt.s32.totalorder %v5437_v18, 1  ;;  %v5461_v35 = vsel %vm5459_vm7, %v5449_v62, 2102212464 }
 0x5c8   : > { %v5464_v51 = vsel %vm5456_vm1, %v5443_v47, %v5446_v45  ;;  %v5465_v48 = vsel %vm5459_vm7, %v5452_v25, 920167782  ;;  %v5468_v11 = vsel %vm5456_vm1, %v5446_v45, %v5449_v62  ;;  %v5469_v34 = vsel %vm5459_vm7, %v5455_v36, 1326507024  ;;  %v12048_v55 = vpop.eup %12047 }
 0x5c9   : > { %v11330_v43 = vmin.u32 %v5387_v59, %v17398_v6  ;;  %vm5457_vm9 = vcmp.lt.s32.totalorder %v5437_v18, 2  ;;  %vm5458_vm10 = vcmp.lt.s32.totalorder %v5437_v18, 3  ;;  %v5460_v15 = vsel %vm5456_vm1, %v5440_v28, %v5443_v47  ;;  %v12050_v12 = vpop.eup %12049 }
 0x5ca   : > { %v5317_v27 = vxor.u32 2147483648, %v12048_v55  ;;  %v5462_v41 = vsel %vm5458_vm10, %v5446_v45, %v5461_v35  ;;  %v5466_v9 = vsel %vm5458_vm10, %v5449_v62, %v5465_v48  ;;  %v5470_v58 = vsel %vm5458_vm10, %v5452_v25, %v5469_v34  ;;  %v17864_v45 = vld [vmem:[#allocation38_spill] sm:$0xff] }
 0x5cb   : > { %v5314_v13 = vxor.u32 2147483648, %v12050_v12  ;;  %v5389_v30 = vclz %v11330_v43  ;;  %v5467_v23 = vsel %vm5457_vm9, %v5464_v51, %v5466_v9  ;;  %v5471_v7 = vsel %vm5457_vm9, %v5468_v11, %v5470_v58 }
 0x5cc   : > { %v5318_v0 = vsel %vm5316_vm0, %v5317_v27, %v12050_v12  ;;  %v10564_v1 = vsel %vm10562_vm6, %v5317_v27, %v12050_v12  ;;  %v17412_v31 = vmul.u32.u64.low %v5472_v60, %v5471_v7  ;;  %v17413_v37 = vmul.u32.u64.high %v5472_v60, %v5471_v7, %v17412_v31 }
 0x5cd   : > { %v5315_v3 = vsel %vm5313_vm3, %v12048_v55, %v5314_v13  ;;  %v10561_v2 = vsel %vm10559_vm5, %v12048_v55, %v5314_v13  ;;  %v11331_v8 = vadd.s32 4294967294, %v5389_v30  ;;  %v17421_v26 = vadd.f32 %v17270_v44, %v17863_v24 }
 0x5ce   : > { %v5319_v5 = vsel %vm5312_vm15, %v5315_v3, %v5318_v0  ;;  %v10565_v38 = vsel %vm10558_vm4, %v10561_v2, %v10564_v1  ;;  %v17427_v32 = vmul.u32.u64.low %v5472_v60, %v5467_v23  ;;  %v17428_v29 = vmul.u32.u64.high %v5472_v60, %v5467_v23, %v17427_v32 }
 0x5cf   : > { %v5320_v63 = vsel %vm5310_vm8, nan, %v5319_v5  ;;  %v10566_v14 = vsel %vm5310_vm8, nan, %v10565_v38  ;;  %vm11332_vm11 = vcmp.lt.s32.totalorder %v11331_v8, 0  ;;  %v5463_v42 = vsel %vm5457_vm9, %v5460_v15, %v5462_v41 }
 0x5d0   : > { %5778 = vst [vmem:[%s12696_s30 + $0x168] sm:$0xff] %v5320_v63  ;;  %11590 = vst [vmem:[%s12696_s30 + $0x2f8] sm:$0xff] %v10566_v14  ;;  %v5392_v44 = vsel %vm11332_vm11, 0, %v11331_v8  ;;  %v5407_v46 = vsub.s32 4, %v17381_v53  ;;  %v5377_v40 = vadd.s32 %v17334_v4, %v17340_v54  ;;  %vm5481_vm12 = vc.u32 %v17413_v37, %v17427_v32 }
 0x5d1   : > { %v5393_v49 = vsub.s32 32, %v5392_v44  ;;  %v5397_v47 = vsub.s32 4294967266, %v5392_v44  ;;  %vm5323_vm13 = vcmp.lt.s32.totalorder %v17161_v57, 0  ;;  %v5479_v62 = vmul.u32 %v5472_v60, %v5463_v42 }
 0x5d2   : > { %v5482_v21 = vadd.s32 1, %v17428_v29  ;;  %v17444_v18 = vadd.f32 %v532_v19, %v17864_v45  ;;  %v5394_v25 = vshll.u32 %v17398_v6, %v5392_v44  ;;  %v5530_v36 = vand.u32 2139095040, %v17421_v26 }
 0x5d3   : > { %v5395_v17 = vshrl.u32 %v5377_v40, %v5393_v49  ;;  %v5398_v52 = vadd.s32 127, %v5397_v47  ;;  %v5408_v4 = vsel %vm5323_vm13, %v5407_v46, %v17381_v53  ;;  %v5527_v59 = vand.u32 2147483647, %v17421_v26 }
 0x5d4   : > { %v5483_v54 = vsel %vm5481_vm12, %v5482_v21, %v17428_v29  ;;  %v5531_v51 = vshrl.u32 %v5530_v36, 23  ;;  %v5633_v19 = vand.u32 2139095040, %v17444_v18  ;;  %vm17456_vm14 = vcmp.le.f32.partialorder %v5321_v39, 0.7853982 }
 0x5d5   : > { %v5396_v60 = vor.u32 %v5395_v17, %v5394_v25  ;;  %v5399_v28 = vshll.u32 %v5398_v52, 23  ;;  %v5484_v35 = vadd.s32 %v5483_v54, %v5479_v62  ;;  %v5410_v53 = vsel %vm17456_vm14, 0, %v5408_v4 }
 0x5d6   : > { %v11337_v34 = vadd.s32 4294967169, %v5531_v51  ;;  %v5534_v55 = vand.u32 8388607, %v5527_v59  ;;  %v5634_v41 = vshrl.u32 %v5633_v19, 23  ;;  %v10660_v39 = vadd.s32 3, %v5410_v53 }
 0x5d7   : > { %v5400_v48 = vor.u32 4788187, %v5399_v28  ;;  %v5485_v11 = vadd.s32 536870912, %v5484_v35  ;;  %v5403_v15 = vcvt.s32.f32 %v5396_v60  ;;  %v5630_v30 = vand.u32 2147483647, %v17444_v18 }
 0x5d8   : > { %v5537_v27 = vadd.s32 1, %v11337_v34  ;;  %v5535_v1 = vor.u32 8388608, %v5534_v55  ;;  %vm17469_vm0 = vcmp.le.f32.partialorder %v5424_v10, 0.7853982  ;;  %vm5426_vm3 = vcmp.lt.s32.totalorder %v17250_v22, 0 }
 0x5d9   : > { %v5401_v43 = vand.u32 2147483647, %v5400_v48  ;;  %v5486_v12 = vshrl.u32 %v5485_v11, 30  ;;  %v11341_v2 = vadd.s32 4294967169, %v5634_v41  ;;  %v17476_v24 = vand.u32 3, %v5410_v53 }
 0x5da   : > { %vm5538_vm2 = vcmp.gt.s32.totalorder %v5537_v27, 0  ;;  %v17479_v38 = vand.u32 3, %v10660_v39  ;;  %v5480_v29 = vadd.s32 %v17427_v32, %v17413_v37  ;;  %v17487_v14 = vand.u32 8388607, %v5630_v30 }
 0x5db   : > { %v5404_v9 = vmul.f32 %v5403_v15, %v5401_v43  ;;  %v5487_v58 = vshll.u32 %v5486_v12, 30  ;;  %v5539_v13 = vsel %vm5538_vm2, %v5537_v27, 0  ;;  %v5510_v0 = vsub.s32 4, %v5486_v12 }
 0x5dc   : > { %v5541_v3 = vand.u32 31, %v5539_v13  ;;  %v17492_v46 = vshll.u32 %v5535_v1, 8  ;;  %v5540_v40 = vshrl.u32 %v5539_v13, 5  ;;  %v17495_v47 = vadd.s32 1, %v11341_v2 }
 0x5dd   : > { %v5405_v23 = vxor.u32 2147483648, %v5404_v9  ;;  %v17465_v7 = vsub.s32 %v5484_v35, %v5487_v58  ;;  %v5511_v44 = vsel %vm5426_vm3, %v5510_v0, %v5486_v12  ;;  %vm5419_vm15 = vcmp.eq.s32.totalorder %v17476_v24, 2 }
 0x5de   : > { %v5542_v63 = vsub.s32 32, %v5541_v3  ;;  %v5544_v49 = vshll.u32 %v17729_v16, %v5541_v3  ;;  %v5547_v62 = vshll.u32 %v17730_v61, %v5541_v3  ;;  %v17502_v45 = vsel %vm17469_vm0, 0, %v5511_v44 }
 0x5df   : > { %v5406_v8 = vsel %vm5323_vm13, %v5405_v23, %v5404_v9  ;;  %v5490_v5 = vsub.s32 0, %v17465_v7  ;;  %v5550_v17 = vshll.u32 %v17731_v20, %v5541_v3  ;;  %vm10666_vm4 = vcmp.eq.s32.totalorder %v17479_v38, 2 }
 0x5e0   : > { %v5409_v10 = vsel %vm17456_vm14, %v17161_v57, %v5406_v8  ;;  %v5545_v32 = vshrl.u32 %v17730_v61, %v5542_v63  ;;  %v5548_v21 = vshrl.u32 %v17731_v20, %v5542_v63  ;;  %v5543_v25 = vshrl.u32 %v17729_v16, %v5542_v63 }
 0x5e1   : > { %12051 = vcosq.f32 %v5409_v10  ;;  %v11334_v42 = vmin.u32 %v5490_v5, %v17465_v7  ;;  %v5551_v52 = vshrl.u32 %v17732_v33, %v5542_v63  ;;  %v5553_v60 = vshll.u32 %v17732_v33, %v5541_v3 }
 0x5e2   : > { %12053 = vsinq.f32 %v5409_v10  ;;  %v5546_v4 = vor.u32 %v5545_v32, %v5544_v49  ;;  %v5549_v54 = vor.u32 %v5548_v21, %v5547_v62  ;;  %vm5416_vm5 = vcmp.eq.s32.totalorder %v17476_v24, 0 }
 0x5e3   : > { %v5492_v37 = vclz %v11334_v42  ;;  %vm10663_vm6 = vcmp.eq.s32.totalorder %v17479_v38, 0  ;;  %v5552_v28 = vor.u32 %v5551_v52, %v5550_v17  ;;  %v5554_v35 = vshrl.u32 %v17733_v56, %v5542_v63 }
 0x5e4   : > { %v5556_v51 = vshll.u32 %v17733_v56, %v5541_v3  ;;  %v5557_v19 = vshrl.u32 %v17734_v50, %v5542_v63  ;;  %vm5415_vm8 = vcmp.lt.s32.totalorder %v17476_v24, 2  ;;  %vm10662_vm1 = vcmp.lt.s32.totalorder %v17479_v38, 2 }
 0x5e5   : > { %v11335_v36 = vadd.s32 4294967294, %v5492_v37  ;;  %vm5559_vm9 = vcmp.lt.s32.totalorder %v5540_v40, 1  ;;  %vm5560_vm10 = vcmp.lt.s32.totalorder %v5540_v40, 2  ;;  %vm5561_vm11 = vcmp.lt.s32.totalorder %v5540_v40, 3 }
 0x5e6   : > { %vm5413_vm12 = vweird.f32 %v17161_v57  ;;  %v5555_v48 = vor.u32 %v5554_v35, %v5553_v60  ;;  %v5558_v11 = vor.u32 %v5557_v19, %v5556_v51  ;;  %vm5562_vm13 = vcmp.lt.s32.totalorder %v5540_v40, 4 }
 0x5e7   : > { %vm11336_vm7 = vcmp.lt.s32.totalorder %v11335_v36, 0  ;;  %v5563_v43 = vsel %vm5559_vm9, %v5543_v25, %v5546_v4  ;;  %v5564_v15 = vsel %vm5562_vm13, %v5552_v28, 2102212464  ;;  %v5567_v12 = vsel %vm5559_vm9, %v5546_v4, %v5549_v54 }
 0x5e8   : > { %v5495_v6 = vsel %vm11336_vm7, 0, %v11335_v36  ;;  %v5568_v27 = vsel %vm5562_vm13, %v5555_v48, 920167782  ;;  %v5571_v41 = vsel %vm5559_vm9, %v5549_v54, %v5552_v28  ;;  %v5565_v13 = vsel %vm5561_vm11, %v5549_v54, %v5564_v15 }
 0x5e9   : > { %v5496_v34 = vsub.s32 32, %v5495_v6  ;;  %v5497_v53 = vshll.u32 %v17465_v7, %v5495_v6  ;;  %v5500_v55 = vsub.s32 4294967266, %v5495_v6  ;;  %v5569_v23 = vsel %vm5561_vm11, %v5552_v28, %v5568_v27 }
 0x5ea   : > { %v5566_v3 = vsel %vm5560_vm10, %v5563_v43, %v5565_v13  ;;  %v5572_v7 = vsel %vm5562_vm13, %v5558_v11, 1326507024  ;;  %vm5641_vm14 = vcmp.gt.s32.totalorder %v17495_v47, 0  ;;  %v5570_v42 = vsel %vm5560_vm10, %v5567_v12, %v5569_v23 }
 0x5eb   : > { %v12052_v9 = vpop.eup %12051  ;;  %v5498_v58 = vshrl.u32 %v5480_v29, %v5496_v34  ;;  %v5501_v39 = vadd.s32 127, %v5500_v55  ;;  %v5573_v10 = vsel %vm5561_vm11, %v5555_v48, %v5572_v7  ;;  %v5642_v54 = vsel %vm5641_vm14, %v17495_v47, 0 }
 0x5ec   : > { %v12054_v0 = vpop.eup %12053  ;;  %v5420_v1 = vxor.u32 2147483648, %v12052_v9  ;;  %v5574_v44 = vsel %vm5560_vm10, %v5571_v41, %v5573_v10  ;;  %v17555_v24 = vmul.u32.u64.low %v17492_v46, %v5570_v42  ;;  %v17556_v38 = vmul.u32.u64.high %v17492_v46, %v5570_v42, %v17555_v24 }
 0x5ed   : > { %v5417_v2 = vxor.u32 2147483648, %v12054_v0  ;;  %v5499_v8 = vor.u32 %v5498_v58, %v5497_v53  ;;  %v5502_v5 = vshll.u32 %v5501_v39, 23  ;;  %v5644_v60 = vand.u32 31, %v5642_v54 }
 0x5ee   : > { %v5421_v29 = vsel %vm5419_vm15, %v5420_v1, %v12054_v0  ;;  %v10668_v63 = vsel %vm10666_vm4, %v5420_v1, %v12054_v0  ;;  %v17542_v17 = vmul.u32.u64.low %v17492_v46, %v5574_v44  ;;  %v17543_v52 = vmul.u32.u64.high %v17492_v46, %v5574_v44, %v17542_v17 }
 0x5ef   : > { %v5418_v49 = vsel %vm5416_vm5, %v12052_v9, %v5417_v2  ;;  %v5503_v37 = vor.u32 4788187, %v5502_v5  ;;  %v5506_v32 = vcvt.s32.f32 %v5499_v8  ;;  %v10665_v62 = vsel %vm10663_vm6, %v12052_v9, %v5417_v2 }
 0x5f0   : > { %v5422_v21 = vsel %vm5415_vm8, %v5418_v49, %v5421_v29  ;;  %v10669_v25 = vsel %vm10662_vm1, %v10665_v62, %v10668_v63  ;;  %v5638_v35 = vor.u32 8388608, %v17487_v14  ;;  %v10764_v51 = vadd.s32 3, %v17502_v45 }
 0x5f1   : > { %v5423_v40 = vsel %vm5413_vm12, nan, %v5422_v21  ;;  %v5504_v36 = vand.u32 2147483647, %v5503_v37  ;;  %v10670_v4 = vsel %vm5413_vm12, nan, %v10669_v25  ;;  %v5582_v57 = vmul.u32 %v17492_v46, %v5566_v3 }
 0x5f2   : > { %5779 = vst [vmem:[%s12696_s30 + $0x170] sm:$0xff] %v5423_v40  ;;  %11591 = vst [vmem:[%s12696_s30 + $0x300] sm:$0xff] %v10670_v4  ;;  %v5643_v19 = vshrl.u32 %v5642_v54, 5  ;;  %v5645_v6 = vsub.s32 32, %v5644_v60  ;;  %vm5584_vm2 = vc.u32 %v17543_v52, %v17555_v24  ;;  %v5647_v47 = vshll.u32 %v17729_v16, %v5644_v60 }
 0x5f3   : > { %v5507_v28 = vmul.f32 %v5506_v32, %v5504_v36  ;;  %v5650_v11 = vshll.u32 %v17730_v61, %v5644_v60  ;;  %v5585_v34 = vadd.s32 1, %v17556_v38  ;;  %v5653_v55 = vshll.u32 %v17731_v20, %v5644_v60 }
 0x5f4   : > { %v5648_v53 = vshrl.u32 %v17730_v61, %v5645_v6  ;;  %v5651_v14 = vshrl.u32 %v17731_v20, %v5645_v6  ;;  %v5654_v43 = vshrl.u32 %v17732_v33, %v5645_v6  ;;  %v5656_v15 = vshll.u32 %v17732_v33, %v5644_v60 }
 0x5f5   : > { %v5508_v48 = vxor.u32 2147483648, %v5507_v28  ;;  %v5657_v12 = vshrl.u32 %v17733_v56, %v5645_v6  ;;  %v5586_v41 = vsel %vm5584_vm2, %v5585_v34, %v17556_v38  ;;  %v5646_v13 = vshrl.u32 %v17729_v16, %v5645_v6 }
 0x5f6   : > { %v5649_v61 = vor.u32 %v5648_v53, %v5647_v47  ;;  %v5652_v9 = vor.u32 %v5651_v14, %v5650_v11  ;;  %v5587_v58 = vadd.s32 %v5586_v41, %v5582_v57  ;;  %v5655_v20 = vor.u32 %v5654_v43, %v5653_v55 }
 0x5f7   : > { %v5509_v46 = vsel %vm5426_vm3, %v5508_v48, %v5507_v28  ;;  %v5658_v39 = vor.u32 %v5657_v12, %v5656_v15  ;;  %v5659_v23 = vshll.u32 %v17733_v56, %v5644_v60  ;;  %v5660_v33 = vshrl.u32 %v17734_v50, %v5645_v6 }
 0x5f8   : > { %v5512_v27 = vsel %vm17469_vm0, %v17250_v22, %v5509_v46  ;;  %v5588_v0 = vadd.s32 536870912, %v5587_v58  ;;  %vm5662_vm3 = vcmp.lt.s32.totalorder %v5643_v19, 1  ;;  %vm5663_vm15 = vcmp.lt.s32.totalorder %v5643_v19, 2 }
 0x5f9   : > { %12055 = vcosq.f32 %v5512_v27  ;;  %vm5665_vm4 = vcmp.lt.s32.totalorder %v5643_v19, 4  ;;  %v5661_v31 = vor.u32 %v5660_v33, %v5659_v23  ;;  %vm5664_vm0 = vcmp.lt.s32.totalorder %v5643_v19, 3 }
 0x5fa   : > { %12057 = vsinq.f32 %v5512_v27  ;;  %v5670_v1 = vsel %vm5662_vm3, %v5649_v61, %v5652_v9  ;;  %v5671_v3 = vsel %vm5665_vm4, %v5658_v39, 920167782  ;;  %v17583_v7 = vshrl.u32 %v5588_v0, 30 }
 0x5fb   : > { %v5667_v2 = vsel %vm5665_vm4, %v5655_v20, 2102212464  ;;  %v5672_v8 = vsel %vm5664_vm0, %v5655_v20, %v5671_v3  ;;  %v5674_v5 = vsel %vm5662_vm3, %v5652_v9, %v5655_v20  ;;  %v5675_v56 = vsel %vm5665_vm4, %v5661_v31, 1326507024 }
 0x5fc   : > { %v5673_v16 = vsel %vm5663_vm15, %v5670_v1, %v5672_v8  ;;  %v5678_v10 = vshll.u32 %v5638_v35, 8  ;;  %v5517_v50 = vand.u32 3, %v17502_v45  ;;  %v5590_v29 = vshll.u32 %v17583_v7, 30 }
 0x5fd   : > { %v5666_v63 = vsel %vm5662_vm3, %v5646_v13, %v5649_v61  ;;  %v5676_v42 = vsel %vm5664_vm0, %v5658_v39, %v5675_v56  ;;  %v5668_v44 = vsel %vm5664_vm0, %v5652_v9, %v5667_v2  ;;  %v10765_v62 = vand.u32 3, %v10764_v51 }
 0x5fe   : > { %v5677_v49 = vsel %vm5663_vm15, %v5674_v5, %v5676_v42  ;;  %v17591_v37 = vmul.u32.u64.low %v5678_v10, %v5673_v16  ;;  %v17592_v32 = vmul.u32.u64.high %v5678_v10, %v5673_v16, %v17591_v37  ;;  %v5591_v21 = vsub.s32 %v5587_v58, %v5590_v29 }
 0x5ff   : > { %v17595_v25 = vmul.u32.u64.low %v5678_v10, %v5677_v49  ;;  %v17596_v17 = vmul.u32.u64.high %v5678_v10, %v5677_v49, %v17595_v25  ;;  %vm5518_vm5 = vcmp.lt.s32.totalorder %v5517_v50, 2  ;;  %v5669_v36 = vsel %vm5663_vm15, %v5666_v63, %v5668_v44 }
 0x600   : > { %v5593_v45 = vsub.s32 0, %v5591_v21  ;;  %vm5519_vm6 = vcmp.eq.s32.totalorder %v5517_v50, 0  ;;  %vm5522_vm8 = vcmp.eq.s32.totalorder %v5517_v50, 2  ;;  %v5688_v38 = vadd.s32 1, %v17592_v32 }
 0x601   : > { %vm10766_vm7 = vcmp.lt.s32.totalorder %v10765_v62, 2  ;;  %vm10770_vm1 = vcmp.eq.s32.totalorder %v10765_v62, 2  ;;  %vm10767_vm9 = vcmp.eq.s32.totalorder %v10765_v62, 0  ;;  %v5685_v57 = vmul.u32 %v5678_v10, %v5669_v36 }
 0x602   : > { %v11338_v28 = vmin.u32 %v5593_v45, %v5591_v21  ;;  %vm5687_vm10 = vc.u32 %v17596_v17, %v17591_v37  ;;  %vm5516_vm11 = vweird.f32 %v17250_v22  ;;  %v5583_v12 = vadd.s32 %v17555_v24, %v17543_v52 }
 0x603   : > { %v12056_v40 = vpop.eup %12055  ;;  %v5689_v34 = vsel %vm5687_vm10, %v5688_v38, %v17592_v32  ;;  %v5613_v8 = vsub.s32 4, %v17583_v7  ;;  %vm5529_vm13 = vcmp.lt.s32.totalorder %v17421_v26, 0  ;;  %vm5528_vm14 = vcmp.le.f32.partialorder %v5527_v59, 0.7853982 }
 0x604   : > { %v12058_v4 = vpop.eup %12057  ;;  %v5523_v54 = vxor.u32 2147483648, %v12056_v40  ;;  %v5595_v19 = vclz %v11338_v28  ;;  %v5690_v46 = vadd.s32 %v5689_v34, %v5685_v57  ;;  %v5686_v29 = vadd.s32 %v17591_v37, %v17596_v17 }
 0x605   : > { %v5520_v60 = vxor.u32 2147483648, %v12058_v4  ;;  %v5614_v56 = vsel %vm5529_vm13, %v5613_v8, %v17583_v7  ;;  %vm5632_vm3 = vcmp.lt.s32.totalorder %v17444_v18, 0  ;;  %vm17620_vm0 = vcmp.le.f32.partialorder %v5630_v30, 0.7853982 }
 0x606   : > { %v5524_v35 = vsel %vm5522_vm8, %v5523_v54, %v12058_v4  ;;  %v10772_v51 = vsel %vm10770_vm1, %v5523_v54, %v12058_v4  ;;  %v11339_v55 = vadd.s32 4294967294, %v5595_v19  ;;  %v5691_v43 = vadd.s32 536870912, %v5690_v46 }
 0x607   : > { %v5521_v6 = vsel %vm5519_vm6, %v12056_v40, %v5520_v60  ;;  %v10769_v48 = vsel %vm10767_vm9, %v12056_v40, %v5520_v60  ;;  %v5616_v44 = vsel %vm5528_vm14, 0, %v5614_v56  ;;  %vm5619_vm1 = vweird.f32 %v17421_v26 }
 0x608   : > { %v5525_v47 = vsel %vm5518_vm5, %v5521_v6, %v5524_v35  ;;  %v10773_v11 = vsel %vm10766_vm7, %v10769_v48, %v10772_v51  ;;  %vm11340_vm12 = vcmp.lt.s32.totalorder %v11339_v55, 0  ;;  %v5692_v22 = vshrl.u32 %v5691_v43, 30 }
 0x609   : > { %v5526_v53 = vsel %vm5516_vm11, nan, %v5525_v47  ;;  %v10774_v14 = vsel %vm5516_vm11, nan, %v10773_v11  ;;  %v5598_v15 = vsel %vm11340_vm12, 0, %v11339_v55  ;;  %v10868_v25 = vadd.s32 3, %v5616_v44 }
 0x60a   : > { %5780 = vst [vmem:[%s12696_s30 + $0x178] sm:$0xff] %v5526_v53  ;;  %11592 = vst [vmem:[%s12696_s30 + $0x308] sm:$0xff] %v10774_v14  ;;  %v5599_v27 = vsub.s32 32, %v5598_v15  ;;  %v5603_v41 = vsub.s32 4294967266, %v5598_v15  ;;  %v5600_v61 = vshll.u32 %v5591_v21, %v5598_v15  ;;  %v5693_v20 = vshll.u32 %v5692_v22, 30 }
 0x60b   : > { %v5620_v7 = vand.u32 3, %v5616_v44  ;;  %v10869_v4 = vand.u32 3, %v10868_v25  ;;  %v5716_v37 = vsub.s32 4, %v5692_v22 }
 0x60c   : > { %v5601_v9 = vshrl.u32 %v5583_v12, %v5599_v27  ;;  %v5604_v58 = vadd.s32 127, %v5603_v41  ;;  %v5694_v23 = vsub.s32 %v5690_v46, %v5693_v20 }
 0x60d   : > { %vm5621_vm15 = vcmp.lt.s32.totalorder %v5620_v7, 2  ;;  %vm5622_vm4 = vcmp.eq.s32.totalorder %v5620_v7, 0  ;;  %vm5625_vm5 = vcmp.eq.s32.totalorder %v5620_v7, 2  ;;  %vm10874_vm6 = vcmp.eq.s32.totalorder %v10869_v4, 2 }
 0x60e   : > { %v5602_v39 = vor.u32 %v5601_v9, %v5600_v61  ;;  %v5605_v13 = vshll.u32 %v5604_v58, 23  ;;  %v5696_v0 = vsub.s32 0, %v5694_v23  ;;  %vm10870_vm8 = vcmp.lt.s32.totalorder %v10869_v4, 2 }
 0x60f   : > { %vm10871_vm7 = vcmp.eq.s32.totalorder %v10869_v4, 0  ;;  %v5717_v30 = vsel %vm5632_vm3, %v5716_v37, %v5692_v22 }
 0x610   : > { %v5606_v33 = vor.u32 4788187, %v5605_v13  ;;  %v5609_v1 = vcvt.s32.f32 %v5602_v39  ;;  %v11342_v3 = vmin.u32 %v5696_v0, %v5694_v23  ;;  %v5719_v46 = vsel %vm17620_vm0, 0, %v5717_v30 }
 0x611   : > { %v10972_v43 = vadd.s32 3, %v5719_v46  ;;  %v5723_v15 = vand.u32 3, %v5719_v46 }
 0x612   : > { %v5607_v31 = vand.u32 2147483647, %v5606_v33  ;;  %v5698_v5 = vclz %v11342_v3 }
 0x613   : > { %v10973_v12 = vand.u32 3, %v10972_v43  ;;  %vm5728_vm9 = vcmp.eq.s32.totalorder %v5723_v15, 2  ;;  %vm5725_vm11 = vcmp.eq.s32.totalorder %v5723_v15, 0 }
 0x614   : > { %v5610_v2 = vmul.f32 %v5609_v1, %v5607_v31  ;;  %v11343_v24 = vadd.s32 4294967294, %v5698_v5 }
 0x615   : > { %vm10978_vm10 = vcmp.eq.s32.totalorder %v10973_v12, 2  ;;  %vm10975_vm12 = vcmp.eq.s32.totalorder %v10973_v12, 0 }
 0x616   : > { %v5611_v52 = vxor.u32 2147483648, %v5610_v2  ;;  %vm11344_vm2 = vcmp.lt.s32.totalorder %v11343_v24, 0 }
 0x617   : > { %v5701_v50 = vsel %vm11344_vm2, 0, %v11343_v24  ;;  %vm5722_vm2 = vweird.f32 %v17444_v18 }
 0x618   : > { %v5612_v16 = vsel %vm5529_vm13, %v5611_v52, %v5610_v2  ;;  %v5702_v63 = vsub.s32 32, %v5701_v50  ;;  %v5706_v42 = vsub.s32 4294967266, %v5701_v50  ;;  %v5703_v49 = vshll.u32 %v5694_v23, %v5701_v50 }
 0x619   : > { %v5615_v10 = vsel %vm5528_vm14, %v17421_v26, %v5612_v16  ;;  %vm5724_vm13 = vcmp.lt.s32.totalorder %v5723_v15, 2  ;;  %vm10974_vm14 = vcmp.lt.s32.totalorder %v10973_v12, 2 }
 0x61a   : > { %12059 = vcosq.f32 %v5615_v10  ;;  %v5704_v32 = vshrl.u32 %v5686_v29, %v5702_v63  ;;  %v5707_v62 = vadd.s32 127, %v5706_v42 }
 0x61b   : > { %12061 = vsinq.f32 %v5615_v10 }
 0x61c   : > { %v5705_v21 = vor.u32 %v5704_v32, %v5703_v49  ;;  %v5708_v59 = vshll.u32 %v5707_v62, 23 }
 0x61e   : > { %v5709_v40 = vor.u32 4788187, %v5708_v59  ;;  %v5712_v36 = vcvt.s32.f32 %v5705_v21 }
 0x620   : > { %v5710_v45 = vand.u32 2147483647, %v5709_v40 }
 0x622   : > { %v5713_v38 = vmul.f32 %v5712_v36, %v5710_v45 }
 0x624   : > { %v12060_v54 = vpop.eup %12059  ;;  %v5714_v51 = vxor.u32 2147483648, %v5713_v38 }
 0x625   : > { %v12062_v17 = vpop.eup %12061  ;;  %v5626_v60 = vxor.u32 2147483648, %v12060_v54 }
 0x626   : > { %v5623_v35 = vxor.u32 2147483648, %v12062_v17  ;;  %v5715_v19 = vsel %vm5632_vm3, %v5714_v51, %v5713_v38 }
 0x627   : > { %v5627_v57 = vsel %vm5625_vm5, %v5626_v60, %v12062_v17  ;;  %v10876_v6 = vsel %vm10874_vm6, %v5626_v60, %v12062_v17  ;;  %v5718_v34 = vsel %vm17620_vm0, %v17444_v18, %v5715_v19 }
 0x628   : > { %v5624_v48 = vsel %vm5622_vm4, %v12060_v54, %v5623_v35  ;;  %v10873_v47 = vsel %vm10871_vm7, %v12060_v54, %v5623_v35  ;;  %12063 = vcosq.f32 %v5718_v34 }
 0x629   : > { %v5628_v11 = vsel %vm5621_vm15, %v5624_v48, %v5627_v57  ;;  %v10877_v53 = vsel %vm10870_vm8, %v10873_v47, %v10876_v6  ;;  %12065 = vsinq.f32 %v5718_v34 }
 0x62a   : > { %v5629_v14 = vsel %vm5619_vm1, nan, %v5628_v11  ;;  %v10878_v55 = vsel %vm5619_vm1, nan, %v10877_v53 }
 0x62b   : > { %5781 = vst [vmem:[%s12696_s30 + $0x180] sm:$0xff] %v5629_v14  ;;  %11593 = vst [vmem:[%s12696_s30 + $0x310] sm:$0xff] %v10878_v55 }
 0x632   : > { %v12064_v26 = vpop.eup %12063 }
 0x633   : > { %v12066_v27 = vpop.eup %12065  ;;  %v5729_v41 = vxor.u32 2147483648, %v12064_v26 }
 0x634   : > { %v5726_v22 = vxor.u32 2147483648, %v12066_v27 }
 0x635   : > { %v5730_v61 = vsel %vm5728_vm9, %v5729_v41, %v12066_v27  ;;  %v10980_v9 = vsel %vm10978_vm10, %v5729_v41, %v12066_v27 }
 0x636   : > { %v5727_v58 = vsel %vm5725_vm11, %v12064_v26, %v5726_v22  ;;  %v10977_v20 = vsel %vm10975_vm12, %v12064_v26, %v5726_v22 }
 0x637   : > { %v5731_v39 = vsel %vm5724_vm13, %v5727_v58, %v5730_v61  ;;  %v10981_v13 = vsel %vm10974_vm14, %v10977_v20, %v10980_v9 }
 0x638   : > { %v5732_v23 = vsel %vm5722_vm2, nan, %v5731_v39  ;;  %v10982_v33 = vsel %vm5722_vm2, nan, %v10981_v13 }
 0x639   : > { %5782 = vst [vmem:[%s12696_s30 + $0x188] sm:$0xff] %v5732_v23  ;;  %11594 = vst [vmem:[%s12696_s30 + $0x318] sm:$0xff] %v10982_v33 }
 0x63a   : > { %s11601_s4 = smul.u32 6400, %s12154_s13  ;;  %s11065_s5 = sshll.u32 %s12696_s30, 4  ;;  %s11066_s5 = int_to_ptr.vmem [resolvable:$true] %s11065_s5 }
 0x63b   : > { %s12111_s14 = smov 6400   ;;  %s12112_s16 = smov 12800  }
 0x63c   : > { %s11048_s8 = scalar_lea.hbm %s17680_s2, %s11601_s4  ;;  %11803 = sst [smem:[#allocation5]] (%p12171_p5), %s12111_s14 }
 0x63d   : > { %11804 = sst [smem:[#allocation5 + $0x1]] (%p12171_p5), %s12112_s16  ;;  %s12113_s17 = smov 25  }
 0x63e   : > { %11805 = sst [smem:[#allocation5 + $0x2]] (%p12171_p5), %s12113_s17  ;;  %s12114_s21 = smov 256  }
 0x63f   : > { %11806 = sst [smem:[#allocation5 + $0x3]] (%p12171_p5), %s12114_s21  ;;  %s12115_s13 = smov 16  }
 0x640   : > { %11807 = sst [smem:[#allocation5 + $0x4]] (%p12171_p5), %s12114_s21  ;;  %s12116_s22 = smov [#allocation4]  }
 0x641   : > { %11808 = sst [smem:[#allocation5 + $0x5]] (%p12171_p5), %s12115_s13  ;;  %s12117_s23 = smov 0  }
 0x642   : > { %11809 = dma.general (%p12171_p5), %s11066_s5, 12800, %s11048_s8, %s11035_s3, %s12116_s22, [#allocation5], %s12117_s23, 0  }
 0x643 PF: > { %p11815_p11 = scmp.ge.s32.totalorder %s12101_s12, 2  ;;  %s11093_s24 = sand.u32 1, %s12089_s9  }
 0x644   : > { %s11094_s25 = scalar_lea.sflag [#allocation3], %s11093_s24 }
 0x645   : > { %p11812_p12 = pnand %p11815_p11, %p12175_p6 }
 0x647   : > { %12084 = dma.done.wait (!%p11812_p12), %s11094_s25, 12800  }
 0x648   : > { %12086 = vsyncadd (!%p11812_p12), %s11094_s25, 4294954496  ;;  %p12_p13 = scmp.ge.s32.totalorder %s12158_s15, 4   ;;  %s17871_s9 = smov %s12093_s10 }
 0x649   : > { %s17872_s10 = smov %s12097_s11  ;;  %s17873_s11 = smov %s12169_s18 }
 0x64a   : > { %s17874_s12 = smov %s12158_s15  ;;  %14 = sbr.rel (!%p12_p13) target bundleno = 3 (0x3), region = 69 }
 0x651   :  { %11099 = vsyncpa [#allocation3], 1 }
 0x652   :  { %11101 = vsyncpa [#allocation3 + $0x1], 1 }

</bundles_post_ra>
